<compile_context>
chip_gen: v5e
topology: v5e:2x2
jax: 0.10.0
libtpu: 0.0.40
codegen_flags: <defaults>
</compile_context>

<pallas_src>
import functools
import math

import jax
import jax.numpy as jnp
import numpy as np
from jax.experimental import pallas as pl
from jax.experimental.pallas import tpu as pltpu

# -----------------------------------------------------------------------------
# Configuration.  eps network = SDA ScoreUNet(channels=4, embedding=32,
# hidden_channels=(8, 16), hidden_blocks=(1, 2), spatial=2).  GaussianScore demo
# instance: A = 4x4 average pooling, std = 0.1, gamma = 0.01, detach = False.
# -----------------------------------------------------------------------------
CHANNELS = 4
EMBEDDING = 32
HIDDEN_CHANNELS = (8, 16)
NUM_FREQS = 32
LN_EPS = 1e-5
SDE_ETA = 1e-3      # TODO(synk): VPSDE cosine schedule (alpha='cos', eta) reconstructed from sda/score.py.
STD = 0.1
GAMMA = 0.01
DETACH = False      # reference default

# (level, block index, channels) - order defines the fused projection layout.
BLOCK_LAYOUT = (
    ("d0", 0, HIDDEN_CHANNELS[0]),
    ("d1", 0, HIDDEN_CHANNELS[1]),
    ("d1", 1, HIDDEN_CHANNELS[1]),
    ("a1", 0, HIDDEN_CHANNELS[1]),
    ("a1", 1, HIDDEN_CHANNELS[1]),
    ("a0", 0, HIDDEN_CHANNELS[0]),
)


# -----------------------------------------------------------------------------
# pallas_call plumbing: whole-array VMEM-resident kernels (everything is tiny).
# -----------------------------------------------------------------------------
def _full_spec(shape):
    n = len(shape)
    return pl.BlockSpec(shape, lambda *_, _n=n: (0,) * _n)


def _whole_array_call(kernel, args, out_shapes):
    return pl.pallas_call(
        kernel,
        grid=(1,),
        in_specs=[_full_spec(a.shape) for a in args],
        out_shape=tuple(out_shapes),
        out_specs=tuple(_full_spec(s.shape) for s in out_shapes),
        compiler_params=pltpu.CompilerParams(dimension_semantics=("arbitrary",)),
    )(*args)


@functools.lru_cache(maxsize=None)
def _tap_masks_np(batch, img_h, img_w):
    """(9, 1, B*H*W) float32 validity masks for the 3x3 'same'-padding taps (built statically)."""
    yy = np.arange(img_h)[:, None]
    xx = np.arange(img_w)[None, :]
    masks = np.zeros((9, 1, batch * img_h * img_w), np.float32)
    for k in range(9):
        dy, dx = k // 3 - 1, k % 3 - 1
        valid = ((yy + dy >= 0) & (yy + dy < img_h) &
                 (xx + dx >= 0) & (xx + dx < img_w))
        masks[k, 0] = np.tile(valid.reshape(-1).astype(np.float32), batch)
    return masks


# -----------------------------------------------------------------------------
# Fused (LayerNorm?) -> 3x3 'same' conv -> bias -> (SiLU?) kernel, channels-first layout.
# -----------------------------------------------------------------------------
def _conv3x3_kernel(x_ref, w_ref, b_ref, mask_ref, *out_refs, img_w, pre_ln, act):
    refs = list(out_refs)
    y_ref = refs.pop(0)
    z_ref = refs.pop(0) if act == "silu" else None
    v_ref = refs.pop(0) if pre_ln else None
    r_ref = refs.pop(0) if pre_ln else None

    x = x_ref[...].astype(jnp.float32)                      # (Cin, M), M = B*H*W on lanes
    cin, m_tot = x.shape

    if pre_ln:
        # SDA LayerNorm: torch.var_mean default => unbiased variance (ddof=1), no affine.
        mean = jnp.mean(x, axis=0, keepdims=True)
        d = x - mean
        var = jnp.sum(d * d, axis=0, keepdims=True) * (1.0 / (cin - 1))
        rstd = jax.lax.rsqrt(var + LN_EPS)
        x = d * rstd
        v_ref[...] = x
        r_ref[...] = rstd

    # In-kernel im2col: 9 lane-shifted, edge-masked copies -> one MXU dot with K = 9*Cin.
    taps = []
    for k in range(9):
        dy, dx = k // 3 - 1, k % 3 - 1
        off = dy * img_w + dx
        if off == 0:
            sh = x
        else:
            o = off % m_tot
            sh = jnp.concatenate([x[:, o:], x[:, :o]], axis=1)   # sh[:, m] = x[:, m + off]
        taps.append(sh * mask_ref[k])                            # zero out-of-image neighbours
    patches = jnp.concatenate(taps, axis=0)                      # (9*Cin, M)

    z = jnp.dot(w_ref[...], patches, preferred_element_type=jnp.float32) + b_ref[...]
    if act == "silu":
        y = z * jax.nn.sigmoid(z)
        z_ref[...] = z
    else:
        y = z
    y_ref[...] = y.astype(y_ref.dtype)


def _conv_apply(img_h, img_w, pre_ln, act, x_cm, w9, b):
    cin, m_tot = x_cm.shape
    cout = w9.shape[1]
    batch = m_tot // (img_h * img_w)
    w2 = jnp.transpose(w9, (1, 0, 2)).reshape(cout, 9 * w9.shape[2])
    masks = jnp.asarray(_tap_masks_np(batch, img_h, img_w))
    out_shapes = [jax.ShapeDtypeStruct((cout, m_tot), jnp.float32)]
    if act == "silu":
        out_shapes.append(jax.ShapeDtypeStruct((cout, m_tot), jnp.float32))
    if pre_ln:
        out_shapes.append(jax.ShapeDtypeStruct((cin, m_tot), jnp.float32))
        out_shapes.append(jax.ShapeDtypeStruct((1, m_tot), jnp.float32))
    kern = functools.partial(_conv3x3_kernel, img_w=img_w, pre_ln=pre_ln, act=act)
    return _whole_array_call(kern, (x_cm, w2, b.reshape(cout, 1), masks), out_shapes)


# Differentiable wrapper so GaussianScore's in-forward gradient flows through the Pallas convs.
@functools.partial(jax.custom_vjp, nondiff_argnums=(0, 1, 2, 3))
def conv3x3_cm(img_h, img_w, pre_ln, act, x_cm, w9, b):
    return _conv_apply(img_h, img_w, pre_ln, act, x_cm, w9, b)[0]


def _conv3x3_fwd(img_h, img_w, pre_ln, act, x_cm, w9, b):
    outs = _conv_apply(img_h, img_w, pre_ln, act, x_cm, w9, b)
    z = outs[1] if act == "silu" else None
    v = outs[-2] if pre_ln else None
    r = outs[-1] if pre_ln else None
    return outs[0], (w9, b, z, v, r)


def _conv3x3_bwd(img_h, img_w, pre_ln, act, res, g):
    w9, b, z, v, r = res
    if act == "silu":
        sig = jax.nn.sigmoid(z)
        g = g * sig * (1.0 + z * (1.0 - sig))
    # d/d(input) of a 3x3 'same' conv == same conv with spatially flipped, (cin,cout)-swapped
    # weights -> reuse the same Pallas kernel (same masks, zero bias).
    w9_t = jnp.transpose(jnp.flip(w9, axis=0), (0, 2, 1))
    gx = _conv_apply(img_h, img_w, False, None, g, w9_t,
                     jnp.zeros((w9.shape[2],), g.dtype))[0]
    if pre_ln:
        cin = v.shape[0]
        gmean = jnp.mean(gx, axis=0, keepdims=True)
        gdot = jnp.sum(gx * v, axis=0, keepdims=True)
        gx = r * (gx - gmean - v * gdot * (1.0 / (cin - 1)))
    # TODO(synk): weight/bias cotangents omitted (zeros) - GaussianScore only differentiates w.r.t. x.
    return gx, jnp.zeros_like(w9), jnp.zeros_like(b)


conv3x3_cm.defvjp(_conv3x3_fwd, _conv3x3_bwd)


# -----------------------------------------------------------------------------
# Fused time-conditioning kernel: TimeEmbedding MLP + every block's Linear(embedding -> C).
# -----------------------------------------------------------------------------
def _timecond_kernel(f_ref, w1_ref, b1_ref, w2_ref, b2_ref, wp_ref, bp_ref, o_ref):
    h = jnp.dot(f_ref[...], w1_ref[...], preferred_element_type=jnp.float32) + b1_ref[...]
    h = h * jax.nn.sigmoid(h)
    e = jnp.dot(h, w2_ref[...], preferred_element_type=jnp.float32) + b2_ref[...]
    p = jnp.dot(e, wp_ref[...], preferred_element_type=jnp.float32) + bp_ref[...]
    o_ref[...] = p.astype(o_ref.dtype)


def time_conditioning(params, t_b):
    # TODO(synk): TimeEmbedding frequencies/arch reconstructed (32 cos + 32 sin -> 256 -> SiLU -> 32).
    te = params["te"]
    ang = t_b[:, None] * te["freqs"][None, :]
    feat = jnp.concatenate([jnp.cos(ang), jnp.sin(ang)], axis=-1)       # (B, 2*NUM_FREQS)
    total = sum(c for _, _, c in BLOCK_LAYOUT)
    (out,) = _whole_array_call(
        _timecond_kernel,
        (feat, te["w1"], te["b1"].reshape(1, -1), te["w2"], te["b2"].reshape(1, -1),
         te["wp"], te["bp"].reshape(1, -1)),
        [jax.ShapeDtypeStruct((feat.shape[0], total), jnp.float32)])
    projs, off = {}, 0
    for lvl, idx, c in BLOCK_LAYOUT:
        projs[(lvl, idx)] = out[:, off:off + c]
        off += c
    return projs


# -----------------------------------------------------------------------------
# SDA ScoreUNet (the sde.eps network) in the lane-dense (C, B*H*W) layout.
# -----------------------------------------------------------------------------
def _mod_res_block(h, bp, proj, img_h, img_w):
    """x + Conv(SiLU(Conv(LayerNorm(x + proj(y))))) - LN/bias/SiLU fused into the conv kernels."""
    u = h + jnp.repeat(proj.T, img_h * img_w, axis=1)
    t1 = conv3x3_cm(img_h, img_w, True, "silu", u, bp["w1"], bp["b1"])
    t2 = conv3x3_cm(img_h, img_w, False, None, t1, bp["w2"], bp["b2"])
    return h + t2


def score_unet_eps(params, x, t_b):
    b, c, img_h, img_w = x.shape
    projs = time_conditioning(params, t_b)
    h = jnp.transpose(x, (1, 0, 2, 3)).reshape(c, b * img_h * img_w)

    h = conv3x3_cm(img_h, img_w, False, None, h, *params["head0"])
    for i, bp in enumerate(params["d0"]):
        h = _mod_res_block(h, bp, projs[("d0", i)], img_h, img_w)
    skip0 = h

    # stride-2 head: full-resolution conv (same fused kernel) then spatial subsampling.
    h = conv3x3_cm(img_h, img_w, False, None, h, *params["head1"])
    h2, w2_ = img_h // 2, img_w // 2
    h = h.reshape(-1, b, img_h, img_w)[:, :, ::2, ::2].reshape(-1, b * h2 * w2_)

    for i, bp in enumerate(params["d1"]):
        h = _mod_res_block(h, bp, projs[("d1", i)], h2, w2_)
    for i, bp in enumerate(params["a1"]):
        h = _mod_res_block(h, bp, projs[("a1", i)], h2, w2_)

    # tail: LayerNorm -> nearest 2x upsample -> conv.  Nearest upsample commutes with the
    # per-pixel LayerNorm, so the LN is fused into the conv after upsampling.
    # TODO(synk): nearest-neighbour upsampling assumed (as in the SDA UNet).
    h = h.reshape(-1, b, h2, w2_)
    h = jnp.repeat(jnp.repeat(h, 2, axis=2), 2, axis=3).reshape(-1, b * img_h * img_w)
    h = conv3x3_cm(img_h, img_w, True, None, h, *params["tail1"])
    h = h + skip0

    for i, bp in enumerate(params["a0"]):
        h = _mod_res_block(h, bp, projs[("a0", i)], img_h, img_w)
    out = conv3x3_cm(img_h, img_w, False, None, h, *params["tail0"])
    return jnp.transpose(out.reshape(c, b, img_h, img_w), (1, 0, 2, 3))


# -----------------------------------------------------------------------------
# GaussianScore: VPSDE schedule, observation operator, likelihood-score forward.
# -----------------------------------------------------------------------------
def _vpsde_alpha(t):
    return jnp.cos(math.acos(math.sqrt(SDE_ETA)) * t) ** 2


def _vpsde_mu(t):
    return _vpsde_alpha(t)


def _vpsde_sigma(t):
    a = _vpsde_alpha(t)
    return jnp.sqrt(1.0 - a * a + SDE_ETA ** 2)


def observation_op(x):
    """A(x): 4x4 average pooling - the injected observation operator of this demo instance."""
    bb, cc, hh, ww = x.shape
    return x.reshape(bb, cc, hh // 4, 4, ww // 4, 4).mean(axis=(3, 5))


def gaussian_score_forward(params, y_obs, x, t):
    """Returns -sigma(t) * s(x(t), t | y), i.e. eps - sigma * d/dx log N(y | A(x_hat), var)."""
    mu = _vpsde_mu(t)
    sigma = _vpsde_sigma(t)
    var = STD ** 2 + GAMMA * (sigma / mu) ** 2
    t_b = jnp.full((x.shape[0],), t, x.dtype)

    if DETACH:
        eps = score_unet_eps(params, x, t_b)

        def log_p_detached(xx):
            x_hat = (xx - sigma * eps) / mu
            err = y_obs - observation_op(x_hat)
            return -0.5 * jnp.sum(err * err / var)

        s = jax.grad(log_p_detached)(x)
    else:

        def log_p(xx):
            eps_in = score_unet_eps(params, xx, t_b)
            x_hat = (xx - sigma * eps_in) / mu
            err = y_obs - observation_op(x_hat)
            return -0.5 * jnp.sum(err * err / var), eps_in

        (_, eps), s = jax.value_and_grad(log_p, has_aux=True)(x)

    return eps - sigma * s


# -----------------------------------------------------------------------------
# Deterministic parameter construction (PyTorch-default-like uniform init).
# -----------------------------------------------------------------------------
def make_params(key):
    keys = iter(jax.random.split(key, 128))

    def lin(nin, nout):
        bound = 1.0 / math.sqrt(nin)
        w = jax.random.uniform(next(keys), (nin, nout), jnp.float32, -bound, bound)
        bb = jax.random.uniform(next(keys), (nout,), jnp.float32, -bound, bound)
        return w, bb

    def conv(cin, cout):
        bound = 1.0 / math.sqrt(cin * 9)
        w = jax.random.uniform(next(keys), (9, cout, cin), jnp.float32, -bound, bound)
        bb = jax.random.uniform(next(keys), (cout,), jnp.float32, -bound, bound)
        return w, bb

    def block(c):
        pw, pb = lin(EMBEDDING, c)
        w1, b1 = conv(c, c)
        w2, b2 = conv(c, c)
        return {"pw": pw, "pb": pb, "w1": w1, "b1": b1, "w2": w2, "b2": b2}

    w1, b1 = lin(2 * NUM_FREQS, 256)
    w2, b2 = lin(256, EMBEDDING)

    blocks = {(lvl, idx): block(c) for lvl, idx, c in BLOCK_LAYOUT}
    wp = jnp.concatenate([blocks[(lvl, idx)]["pw"] for lvl, idx, _ in BLOCK_LAYOUT], axis=1)
    bp = jnp.concatenate([blocks[(lvl, idx)]["pb"] for lvl, idx, _ in BLOCK_LAYOUT], axis=0)

    def blist(level):
        out = []
        for lvl, idx, _ in BLOCK_LAYOUT:
            if lvl == level:
                blk = blocks[(lvl, idx)]
                out.append({"w1": blk["w1"], "b1": blk["b1"],
                            "w2": blk["w2"], "b2": blk["b2"]})
        return out

    params = {
        "te": {"freqs": (math.pi / 2) * (1e3 ** jnp.linspace(0.0, 1.0, NUM_FREQS)),
               "w1": w1, "b1": b1, "w2": w2, "b2": b2, "wp": wp, "bp": bp},
        "head0": conv(CHANNELS, HIDDEN_CHANNELS[0]),
        "head1": conv(HIDDEN_CHANNELS[0], HIDDEN_CHANNELS[1]),
        "tail1": conv(HIDDEN_CHANNELS[1], HIDDEN_CHANNELS[0]),
        "tail0": conv(HIDDEN_CHANNELS[0], CHANNELS),
        "d0": blist("d0"), "d1": blist("d1"), "a1": blist("a1"), "a0": blist("a0"),
    }
    return params


# -----------------------------------------------------------------------------
if __name__ == "__main__":
    key = jax.random.PRNGKey(0)
    pkey, xkey, tkey, ykey = jax.random.split(key, 4)

    params = make_params(pkey)
    x = jax.random.normal(xkey, (2, CHANNELS, 16, 16), jnp.float32)   # NCHW like torch
    t = jax.random.uniform(tkey, (), jnp.float32, 0.05, 0.95)         # scalar diffusion time
    y_obs = jax.random.normal(ykey, (2, CHANNELS, 4, 4), jnp.float32)  # observation y ~ A(x)

    fwd = jax.jit(gaussian_score_forward)
    out = jax.block_until_ready(fwd(params, y_obs, x, t))

    assert out.shape == x.shape, (out.shape, x.shape)
    assert out.dtype == x.dtype
    assert bool(jnp.all(jnp.isfinite(out)))
    print("KERNEL_OK")
</pallas_src>

<mosaic_0001>
module attributes {stable_mosaic.version = 11 : i64} {
  func.func @_timecond_kernel(%arg0: i32, %arg1: memref<2x64xf32, #tpu.memory_space<vmem>>, %arg2: memref<64x256xf32, #tpu.memory_space<vmem>>, %arg3: memref<1x256xf32, #tpu.memory_space<vmem>>, %arg4: memref<256x32xf32, #tpu.memory_space<vmem>>, %arg5: memref<1x32xf32, #tpu.memory_space<vmem>>, %arg6: memref<32x80xf32, #tpu.memory_space<vmem>>, %arg7: memref<1x80xf32, #tpu.memory_space<vmem>>, %arg8: memref<2x80xf32, #tpu.memory_space<vmem>>) attributes {dimension_semantics = [#tpu.dimension_semantics<arbitrary>], iteration_bounds = array<i64: 1>, scalar_prefetch = 0 : i64, scratch_operands = 0 : i64, tpu.core_type = #tpu.core_type<tc>, window_params = [{pipeline_mode = #tpu.pipeline_mode<synchronous>, transform_indices = @transform_0, window_bounds = array<i64: 2, 64>}, {pipeline_mode = #tpu.pipeline_mode<synchronous>, transform_indices = @transform_1, window_bounds = array<i64: 64, 256>}, {pipeline_mode = #tpu.pipeline_mode<synchronous>, transform_indices = @transform_2, window_bounds = array<i64: 1, 256>}, {pipeline_mode = #tpu.pipeline_mode<synchronous>, transform_indices = @transform_3, window_bounds = array<i64: 256, 32>}, {pipeline_mode = #tpu.pipeline_mode<synchronous>, transform_indices = @transform_4, window_bounds = array<i64: 1, 32>}, {pipeline_mode = #tpu.pipeline_mode<synchronous>, transform_indices = @transform_5, window_bounds = array<i64: 32, 80>}, {pipeline_mode = #tpu.pipeline_mode<synchronous>, transform_indices = @transform_6, window_bounds = array<i64: 1, 80>}, {pipeline_mode = #tpu.pipeline_mode<synchronous>, transform_indices = @transform_7, window_bounds = array<i64: 2, 80>}]} {
    %c0 = arith.constant 0 : index
    %c0_0 = arith.constant 0 : index
    %0 = vector.load %arg1[%c0, %c0_0] : memref<2x64xf32, #tpu.memory_space<vmem>>, vector<2x64xf32>
    %c0_1 = arith.constant 0 : index
    %c0_2 = arith.constant 0 : index
    %1 = vector.load %arg2[%c0_1, %c0_2] : memref<64x256xf32, #tpu.memory_space<vmem>>, vector<64x256xf32>
    %cst = arith.constant dense<0.000000e+00> : vector<2x256xf32>
    %2 = tpu.matmul %0, %1, %cst {dimension_numbers = #tpu.dot_dimension_numbers<[1], [0], [0], [1], [0, 0, 1, 1], [], []>} : vector<2x64xf32>, vector<64x256xf32>, vector<2x256xf32> -> vector<2x256xf32>
    %c0_3 = arith.constant 0 : index
    %c0_4 = arith.constant 0 : index
    %3 = vector.load %arg3[%c0_3, %c0_4] : memref<1x256xf32, #tpu.memory_space<vmem>>, vector<1x256xf32>
    %4 = vector.broadcast %3 : vector<1x256xf32> to vector<2x256xf32>
    %5 = arith.addf %2, %4 : vector<2x256xf32>
    %6 = arith.negf %5 : vector<2x256xf32>
    %7 = math.exp %6 : vector<2x256xf32>
    %cst_5 = arith.constant 1.000000e+00 : f32
    %8 = vector.broadcast %cst_5 : f32 to vector<2x256xf32>
    %9 = arith.addf %8, %7 : vector<2x256xf32>
    %10 = arith.divf %8, %9 : vector<2x256xf32>
    %11 = arith.mulf %5, %10 : vector<2x256xf32>
    %c0_6 = arith.constant 0 : index
    %c0_7 = arith.constant 0 : index
    %12 = vector.load %arg4[%c0_6, %c0_7] : memref<256x32xf32, #tpu.memory_space<vmem>>, vector<256x32xf32>
    %cst_8 = arith.constant dense<0.000000e+00> : vector<2x32xf32>
    %13 = tpu.matmul %11, %12, %cst_8 {dimension_numbers = #tpu.dot_dimension_numbers<[1], [0], [0], [1], [0, 0, 1, 1], [], []>} : vector<2x256xf32>, vector<256x32xf32>, vector<2x32xf32> -> vector<2x32xf32>
    %c0_9 = arith.constant 0 : index
    %c0_10 = arith.constant 0 : index
    %14 = vector.load %arg5[%c0_9, %c0_10] : memref<1x32xf32, #tpu.memory_space<vmem>>, vector<1x32xf32>
    %15 = vector.broadcast %14 : vector<1x32xf32> to vector<2x32xf32>
    %16 = arith.addf %13, %15 : vector<2x32xf32>
    %c0_11 = arith.constant 0 : index
    %c0_12 = arith.constant 0 : index
    %17 = vector.load %arg6[%c0_11, %c0_12] : memref<32x80xf32, #tpu.memory_space<vmem>>, vector<32x80xf32>
    %cst_13 = arith.constant dense<0.000000e+00> : vector<2x80xf32>
    %18 = tpu.matmul %16, %17, %cst_13 {dimension_numbers = #tpu.dot_dimension_numbers<[1], [0], [0], [1], [0, 0, 1, 1], [], []>} : vector<2x32xf32>, vector<32x80xf32>, vector<2x80xf32> -> vector<2x80xf32>
    %c0_14 = arith.constant 0 : index
    %c0_15 = arith.constant 0 : index
    %19 = vector.load %arg7[%c0_14, %c0_15] : memref<1x80xf32, #tpu.memory_space<vmem>>, vector<1x80xf32>
    %20 = vector.broadcast %19 : vector<1x80xf32> to vector<2x80xf32>
    %21 = arith.addf %18, %20 : vector<2x80xf32>
    %c0_16 = arith.constant 0 : index
    %c0_17 = arith.constant 0 : index
    %22 = vector.load %arg8[%c0_16, %c0_17] : memref<2x80xf32, #tpu.memory_space<vmem>>, vector<2x80xf32>
    tpu.vector_store %arg8[%c0_16, %c0_17], %21 {strides = array<i32>} : memref<2x80xf32, #tpu.memory_space<vmem>>, vector<2x80xf32>,
    return
  }
  func.func @transform_0(%arg0: i32) -> (i32, i32) {
    %c0_i32 = arith.constant 0 : i32
    %c0_i32_0 = arith.constant 0 : i32
    %c0_i32_1 = arith.constant 0 : i32
    return %c0_i32, %c0_i32_0 : i32, i32
  }
  func.func @transform_1(%arg0: i32) -> (i32, i32) {
    %c0_i32 = arith.constant 0 : i32
    %c0_i32_0 = arith.constant 0 : i32
    %c0_i32_1 = arith.constant 0 : i32
    return %c0_i32, %c0_i32_0 : i32, i32
  }
  func.func @transform_2(%arg0: i32) -> (i32, i32) {
    %c0_i32 = arith.constant 0 : i32
    %c0_i32_0 = arith.constant 0 : i32
    %c0_i32_1 = arith.constant 0 : i32
    return %c0_i32, %c0_i32_0 : i32, i32
  }
  func.func @transform_3(%arg0: i32) -> (i32, i32) {
    %c0_i32 = arith.constant 0 : i32
    %c0_i32_0 = arith.constant 0 : i32
    %c0_i32_1 = arith.constant 0 : i32
    return %c0_i32, %c0_i32_0 : i32, i32
  }
  func.func @transform_4(%arg0: i32) -> (i32, i32) {
    %c0_i32 = arith.constant 0 : i32
    %c0_i32_0 = arith.constant 0 : i32
    %c0_i32_1 = arith.constant 0 : i32
    return %c0_i32, %c0_i32_0 : i32, i32
  }
  func.func @transform_5(%arg0: i32) -> (i32, i32) {
    %c0_i32 = arith.constant 0 : i32
    %c0_i32_0 = arith.constant 0 : i32
    %c0_i32_1 = arith.constant 0 : i32
    return %c0_i32, %c0_i32_0 : i32, i32
  }
  func.func @transform_6(%arg0: i32) -> (i32, i32) {
    %c0_i32 = arith.constant 0 : i32
    %c0_i32_0 = arith.constant 0 : i32
    %c0_i32_1 = arith.constant 0 : i32
    return %c0_i32, %c0_i32_0 : i32, i32
  }
  func.func @transform_7(%arg0: i32) -> (i32, i32) {
    %c0_i32 = arith.constant 0 : i32
    %c0_i32_0 = arith.constant 0 : i32
    %c0_i32_1 = arith.constant 0 : i32
    return %c0_i32, %c0_i32_0 : i32, i32
  }
}

module attributes {stable_mosaic.version = 11 : i64} {
  func.func @_conv3x3_kernel(%arg0: i32, %arg1: memref<4x512xf32, #tpu.memory_space<vmem>>, %arg2: memref<8x36xf32, #tpu.memory_space<vmem>>, %arg3: memref<8x1xf32, #tpu.memory_space<vmem>>, %arg4: memref<9x1x512xf32, #tpu.memory_space<vmem>>, %arg5: memref<8x512xf32, #tpu.memory_space<vmem>>) attributes {dimension_semantics = [#tpu.dimension_semantics<arbitrary>], iteration_bounds = array<i64: 1>, scalar_prefetch = 0 : i64, scratch_operands = 0 : i64, tpu.core_type = #tpu.core_type<tc>, window_params = [{pipeline_mode = #tpu.pipeline_mode<synchronous>, transform_indices = @transform_0, window_bounds = array<i64: 4, 512>}, {pipeline_mode = #tpu.pipeline_mode<synchronous>, transform_indices = @transform_1, window_bounds = array<i64: 8, 36>}, {pipeline_mode = #tpu.pipeline_mode<synchronous>, transform_indices = @transform_2, window_bounds = array<i64: 8, 1>}, {pipeline_mode = #tpu.pipeline_mode<synchronous>, transform_indices = @transform_3, window_bounds = array<i64: 9, 1, 512>}, {pipeline_mode = #tpu.pipeline_mode<synchronous>, transform_indices = @transform_4, window_bounds = array<i64: 8, 512>}]} {
    %c0 = arith.constant 0 : index
    %c0_0 = arith.constant 0 : index
    %0 = vector.load %arg1[%c0, %c0_0] : memref<4x512xf32, #tpu.memory_space<vmem>>, vector<4x512xf32>
    %1 = vector.extract_strided_slice %0 {offsets = [0, 495], sizes = [4, 17], strides = [1, 1]} : vector<4x512xf32> to vector<4x17xf32>
    %2 = vector.extract_strided_slice %0 {offsets = [0, 0], sizes = [4, 495], strides = [1, 1]} : vector<4x512xf32> to vector<4x495xf32>
    %3 = tpu.concatenate %1, %2 in 1 : vector<4x17xf32>, vector<4x495xf32> -> vector<4x512xf32>
    %c0_1 = arith.constant 0 : index
    %c0_2 = arith.constant 0 : index
    %c0_3 = arith.constant 0 : index
    %4 = vector.load %arg4[%c0_1, %c0_2, %c0_3] : memref<9x1x512xf32, #tpu.memory_space<vmem>>, vector<1x1x512xf32>
    %5 = vector.shape_cast %4 : vector<1x1x512xf32> to vector<1x512xf32>
    %6 = vector.broadcast %5 : vector<1x512xf32> to vector<4x512xf32>
    %7 = arith.mulf %3, %6 : vector<4x512xf32>
    %8 = vector.extract_strided_slice %0 {offsets = [0, 496], sizes = [4, 16], strides = [1, 1]} : vector<4x512xf32> to vector<4x16xf32>
    %9 = vector.extract_strided_slice %0 {offsets = [0, 0], sizes = [4, 496], strides = [1, 1]} : vector<4x512xf32> to vector<4x496xf32>
    %10 = tpu.concatenate %8, %9 in 1 : vector<4x16xf32>, vector<4x496xf32> -> vector<4x512xf32>
    %c1 = arith.constant 1 : index
    %c0_4 = arith.constant 0 : index
    %c0_5 = arith.constant 0 : index
    %11 = vector.load %arg4[%c1, %c0_4, %c0_5] : memref<9x1x512xf32, #tpu.memory_space<vmem>>, vector<1x1x512xf32>
    %12 = vector.shape_cast %11 : vector<1x1x512xf32> to vector<1x512xf32>
    %13 = vector.broadcast %12 : vector<1x512xf32> to vector<4x512xf32>
    %14 = arith.mulf %10, %13 : vector<4x512xf32>
    %15 = vector.extract_strided_slice %0 {offsets = [0, 497], sizes = [4, 15], strides = [1, 1]} : vector<4x512xf32> to vector<4x15xf32>
    %16 = vector.extract_strided_slice %0 {offsets = [0, 0], sizes = [4, 497], strides = [1, 1]} : vector<4x512xf32> to vector<4x497xf32>
    %17 = tpu.concatenate %15, %16 in 1 : vector<4x15xf32>, vector<4x497xf32> -> vector<4x512xf32>
    %c2 = arith.constant 2 : index
    %c0_6 = arith.constant 0 : index
    %c0_7 = arith.constant 0 : index
    %18 = vector.load %arg4[%c2, %c0_6, %c0_7] : memref<9x1x512xf32, #tpu.memory_space<vmem>>, vector<1x1x512xf32>
    %19 = vector.shape_cast %18 : vector<1x1x512xf32> to vector<1x512xf32>
    %20 = vector.broadcast %19 : vector<1x512xf32> to vector<4x512xf32>
    %21 = arith.mulf %17, %20 : vector<4x512xf32>
    %22 = vector.extract_strided_slice %0 {offsets = [0, 511], sizes = [4, 1], strides = [1, 1]} : vector<4x512xf32> to vector<4x1xf32>
    %23 = vector.extract_strided_slice %0 {offsets = [0, 0], sizes = [4, 511], strides = [1, 1]} : vector<4x512xf32> to vector<4x511xf32>
    %24 = tpu.concatenate %22, %23 in 1 : vector<4x1xf32>, vector<4x511xf32> -> vector<4x512xf32>
    %c3 = arith.constant 3 : index
    %c0_8 = arith.constant 0 : index
    %c0_9 = arith.constant 0 : index
    %25 = vector.load %arg4[%c3, %c0_8, %c0_9] : memref<9x1x512xf32, #tpu.memory_space<vmem>>, vector<1x1x512xf32>
    %26 = vector.shape_cast %25 : vector<1x1x512xf32> to vector<1x512xf32>
    %27 = vector.broadcast %26 : vector<1x512xf32> to vector<4x512xf32>
    %28 = arith.mulf %24, %27 : vector<4x512xf32>
    %c4 = arith.constant 4 : index
    %c0_10 = arith.constant 0 : index
    %c0_11 = arith.constant 0 : index
    %29 = vector.load %arg4[%c4, %c0_10, %c0_11] : memref<9x1x512xf32, #tpu.memory_space<vmem>>, vector<1x1x512xf32>
    %30 = vector.shape_cast %29 : vector<1x1x512xf32> to vector<1x512xf32>
    %31 = vector.broadcast %30 : vector<1x512xf32> to vector<4x512xf32>
    %32 = arith.mulf %0, %31 : vector<4x512xf32>
    %33 = vector.extract_strided_slice %0 {offsets = [0, 1], sizes = [4, 511], strides = [1, 1]} : vector<4x512xf32> to vector<4x511xf32>
    %34 = vector.extract_strided_slice %0 {offsets = [0, 0], sizes = [4, 1], strides = [1, 1]} : vector<4x512xf32> to vector<4x1xf32>
    %35 = tpu.concatenate %33, %34 in 1 : vector<4x511xf32>, vector<4x1xf32> -> vector<4x512xf32>
    %c5 = arith.constant 5 : index
    %c0_12 = arith.constant 0 : index
    %c0_13 = arith.constant 0 : index
    %36 = vector.load %arg4[%c5, %c0_12, %c0_13] : memref<9x1x512xf32, #tpu.memory_space<vmem>>, vector<1x1x512xf32>
    %37 = vector.shape_cast %36 : vector<1x1x512xf32> to vector<1x512xf32>
    %38 = vector.broadcast %37 : vector<1x512xf32> to vector<4x512xf32>
    %39 = arith.mulf %35, %38 : vector<4x512xf32>
    %40 = vector.extract_strided_slice %0 {offsets = [0, 15], sizes = [4, 497], strides = [1, 1]} : vector<4x512xf32> to vector<4x497xf32>
    %41 = vector.extract_strided_slice %0 {offsets = [0, 0], sizes = [4, 15], strides = [1, 1]} : vector<4x512xf32> to vector<4x15xf32>
    %42 = tpu.concatenate %40, %41 in 1 : vector<4x497xf32>, vector<4x15xf32> -> vector<4x512xf32>
    %c6 = arith.constant 6 : index
    %c0_14 = arith.constant 0 : index
    %c0_15 = arith.constant 0 : index
    %43 = vector.load %arg4[%c6, %c0_14, %c0_15] : memref<9x1x512xf32, #tpu.memory_space<vmem>>, vector<1x1x512xf32>
    %44 = vector.shape_cast %43 : vector<1x1x512xf32> to vector<1x512xf32>
    %45 = vector.broadcast %44 : vector<1x512xf32> to vector<4x512xf32>
    %46 = arith.mulf %42, %45 : vector<4x512xf32>
    %47 = vector.extract_strided_slice %0 {offsets = [0, 16], sizes = [4, 496], strides = [1, 1]} : vector<4x512xf32> to vector<4x496xf32>
    %48 = vector.extract_strided_slice %0 {offsets = [0, 0], sizes = [4, 16], strides = [1, 1]} : vector<4x512xf32> to vector<4x16xf32>
    %49 = tpu.concatenate %47, %48 in 1 : vector<4x496xf32>, vector<4x16xf32> -> vector<4x512xf32>
    %c7 = arith.constant 7 : index
    %c0_16 = arith.constant 0 : index
    %c0_17 = arith.constant 0 : index
    %50 = vector.load %arg4[%c7, %c0_16, %c0_17] : memref<9x1x512xf32, #tpu.memory_space<vmem>>, vector<1x1x512xf32>
    %51 = vector.shape_cast %50 : vector<1x1x512xf32> to vector<1x512xf32>
    %52 = vector.broadcast %51 : vector<1x512xf32> to vector<4x512xf32>
    %53 = arith.mulf %49, %52 : vector<4x512xf32>
    %54 = vector.extract_strided_slice %0 {offsets = [0, 17], sizes = [4, 495], strides = [1, 1]} : vector<4x512xf32> to vector<4x495xf32>
    %55 = vector.extract_strided_slice %0 {offsets = [0, 0], sizes = [4, 17], strides = [1, 1]} : vector<4x512xf32> to vector<4x17xf32>
    %56 = tpu.concatenate %54, %55 in 1 : vector<4x495xf32>, vector<4x17xf32> -> vector<4x512xf32>
    %c8 = arith.constant 8 : index
    %c0_18 = arith.constant 0 : index
    %c0_19 = arith.constant 0 : index
    %57 = vector.load %arg4[%c8, %c0_18, %c0_19] : memref<9x1x512xf32, #tpu.memory_space<vmem>>, vector<1x1x512xf32>
    %58 = vector.shape_cast %57 : vector<1x1x512xf32> to vector<1x512xf32>
    %59 = vector.broadcast %58 : vector<1x512xf32> to vector<4x512xf32>
    %60 = arith.mulf %56, %59 : vector<4x512xf32>
    %61 = tpu.concatenate %7, %14, %21, %28, %32, %39, %46, %53, %60 in 0 : vector<4x512xf32>, vector<4x512xf32>, vector<4x512xf32>, vector<4x512xf32>, vector<4x512xf32>, vector<4x512xf32>, vector<4x512xf32>, vector<4x512xf32>, vector<4x512xf32> -> vector<36x512xf32>
    %c0_20 = arith.constant 0 : index
    %c0_21 = arith.constant 0 : index
    %62 = vector.load %arg2[%c0_20, %c0_21] : memref<8x36xf32, #tpu.memory_space<vmem>>, vector<8x36xf32>
    %cst = arith.constant dense<0.000000e+00> : vector<8x512xf32>
    %63 = tpu.matmul %62, %61, %cst {dimension_numbers = #tpu.dot_dimension_numbers<[1], [0], [0], [1], [0, 0, 1, 1], [], []>} : vector<8x36xf32>, vector<36x512xf32>, vector<8x512xf32> -> vector<8x512xf32>
    %c0_22 = arith.constant 0 : index
    %c0_23 = arith.constant 0 : index
    %64 = vector.load %arg3[%c0_22, %c0_23] : memref<8x1xf32, #tpu.memory_space<vmem>>, vector<8x1xf32>
    %65 = vector.broadcast %64 : vector<8x1xf32> to vector<8x512xf32>
    %66 = arith.addf %63, %65 : vector<8x512xf32>
    %c0_24 = arith.constant 0 : index
    %c0_25 = arith.constant 0 : index
    %67 = vector.load %arg5[%c0_24, %c0_25] : memref<8x512xf32, #tpu.memory_space<vmem>>, vector<8x512xf32>
    tpu.vector_store %arg5[%c0_24, %c0_25], %66 {strides = array<i32>} : memref<8x512xf32, #tpu.memory_space<vmem>>, vector<8x512xf32>,
    return
  }
  func.func @transform_0(%arg0: i32) -> (i32, i32) {
    %c0_i32 = arith.constant 0 : i32
    %c0_i32_0 = arith.constant 0 : i32
    %c0_i32_1 = arith.constant 0 : i32
    return %c0_i32, %c0_i32_0 : i32, i32
  }
  func.func @transform_1(%arg0: i32) -> (i32, i32) {
    %c0_i32 = arith.constant 0 : i32
    %c0_i32_0 = arith.constant 0 : i32
    %c0_i32_1 = arith.constant 0 : i32
    return %c0_i32, %c0_i32_0 : i32, i32
  }
  func.func @transform_2(%arg0: i32) -> (i32, i32) {
    %c0_i32 = arith.constant 0 : i32
    %c0_i32_0 = arith.constant 0 : i32
    %c0_i32_1 = arith.constant 0 : i32
    return %c0_i32, %c0_i32_0 : i32, i32
  }
  func.func @transform_3(%arg0: i32) -> (i32, i32, i32) {
    %c0_i32 = arith.constant 0 : i32
    %c0_i32_0 = arith.constant 0 : i32
    %c0_i32_1 = arith.constant 0 : i32
    %c0_i32_2 = arith.constant 0 : i32
    return %c0_i32, %c0_i32_0, %c0_i32_1 : i32, i32, i32
  }
  func.func @transform_4(%arg0: i32) -> (i32, i32) {
    %c0_i32 = arith.constant 0 : i32
    %c0_i32_0 = arith.constant 0 : i32
    %c0_i32_1 = arith.constant 0 : i32
    return %c0_i32, %c0_i32_0 : i32, i32
  }
}

module attributes {stable_mosaic.version = 11 : i64} {
  func.func @_conv3x3_kernel(%arg0: i32, %arg1: memref<8x512xf32, #tpu.memory_space<vmem>>, %arg2: memref<8x72xf32, #tpu.memory_space<vmem>>, %arg3: memref<8x1xf32, #tpu.memory_space<vmem>>, %arg4: memref<9x1x512xf32, #tpu.memory_space<vmem>>, %arg5: memref<8x512xf32, #tpu.memory_space<vmem>>, %arg6: memref<8x512xf32, #tpu.memory_space<vmem>>, %arg7: memref<8x512xf32, #tpu.memory_space<vmem>>, %arg8: memref<1x512xf32, #tpu.memory_space<vmem>>) attributes {dimension_semantics = [#tpu.dimension_semantics<arbitrary>], iteration_bounds = array<i64: 1>, scalar_prefetch = 0 : i64, scratch_operands = 0 : i64, tpu.core_type = #tpu.core_type<tc>, window_params = [{pipeline_mode = #tpu.pipeline_mode<synchronous>, transform_indices = @transform_0, window_bounds = array<i64: 8, 512>}, {pipeline_mode = #tpu.pipeline_mode<synchronous>, transform_indices = @transform_1, window_bounds = array<i64: 8, 72>}, {pipeline_mode = #tpu.pipeline_mode<synchronous>, transform_indices = @transform_2, window_bounds = array<i64: 8, 1>}, {pipeline_mode = #tpu.pipeline_mode<synchronous>, transform_indices = @transform_3, window_bounds = array<i64: 9, 1, 512>}, {pipeline_mode = #tpu.pipeline_mode<synchronous>, transform_indices = @transform_4, window_bounds = array<i64: 8, 512>}, {pipeline_mode = #tpu.pipeline_mode<synchronous>, transform_indices = @transform_5, window_bounds = array<i64: 8, 512>}, {pipeline_mode = #tpu.pipeline_mode<synchronous>, transform_indices = @transform_6, window_bounds = array<i64: 8, 512>}, {pipeline_mode = #tpu.pipeline_mode<synchronous>, transform_indices = @transform_7, window_bounds = array<i64: 1, 512>}]} {
    %c0 = arith.constant 0 : index
    %c0_0 = arith.constant 0 : index
    %0 = vector.load %arg1[%c0, %c0_0] : memref<8x512xf32, #tpu.memory_space<vmem>>, vector<8x512xf32>
    %cst = arith.constant dense<0.000000e+00> : vector<512xf32>
    %1 = vector.multi_reduction <add>, %0, %cst [0] : vector<8x512xf32> to vector<512xf32>
    %2 = vector.shape_cast %1 : vector<512xf32> to vector<1x512xf32>
    %cst_1 = arith.constant 8.000000e+00 : f32
    %3 = vector.broadcast %cst_1 : f32 to vector<1x512xf32>
    %4 = arith.divf %2, %3 : vector<1x512xf32>
    %5 = vector.broadcast %4 : vector<1x512xf32> to vector<8x512xf32>
    %6 = arith.subf %0, %5 : vector<8x512xf32>
    %7 = arith.mulf %6, %6 : vector<8x512xf32>
    %cst_2 = arith.constant dense<0.000000e+00> : vector<512xf32>
    %8 = vector.multi_reduction <add>, %7, %cst_2 [0] : vector<8x512xf32> to vector<512xf32>
    %9 = vector.shape_cast %8 : vector<512xf32> to vector<1x512xf32>
    %cst_3 = arith.constant 0.142857149 : f32
    %10 = vector.broadcast %cst_3 : f32 to vector<1x512xf32>
    %11 = arith.mulf %9, %10 : vector<1x512xf32>
    %cst_4 = arith.constant 9.99999974E-6 : f32
    %12 = vector.broadcast %cst_4 : f32 to vector<1x512xf32>
    %13 = arith.addf %11, %12 : vector<1x512xf32>
    %14 = math.rsqrt %13 : vector<1x512xf32>
    %15 = vector.broadcast %14 : vector<1x512xf32> to vector<8x512xf32>
    %16 = arith.mulf %6, %15 : vector<8x512xf32>
    %c0_5 = arith.constant 0 : index
    %c0_6 = arith.constant 0 : index
    %17 = vector.load %arg7[%c0_5, %c0_6] : memref<8x512xf32, #tpu.memory_space<vmem>>, vector<8x512xf32>
    tpu.vector_store %arg7[%c0_5, %c0_6], %16 {strides = array<i32>} : memref<8x512xf32, #tpu.memory_space<vmem>>, vector<8x512xf32>,
    %c0_7 = arith.constant 0 : index
    %c0_8 = arith.constant 0 : index
    %18 = vector.load %arg8[%c0_7, %c0_8] : memref<1x512xf32, #tpu.memory_space<vmem>>, vector<1x512xf32>
    tpu.vector_store %arg8[%c0_7, %c0_8], %14 {strides = array<i32>} : memref<1x512xf32, #tpu.memory_space<vmem>>, vector<1x512xf32>,
    %19 = vector.extract_strided_slice %16 {offsets = [0, 495], sizes = [8, 17], strides = [1, 1]} : vector<8x512xf32> to vector<8x17xf32>
    %20 = vector.extract_strided_slice %16 {offsets = [0, 0], sizes = [8, 495], strides = [1, 1]} : vector<8x512xf32> to vector<8x495xf32>
    %21 = tpu.concatenate %19, %20 in 1 : vector<8x17xf32>, vector<8x495xf32> -> vector<8x512xf32>
    %c0_9 = arith.constant 0 : index
    %c0_10 = arith.constant 0 : index
    %c0_11 = arith.constant 0 : index
    %22 = vector.load %arg4[%c0_9, %c0_10, %c0_11] : memref<9x1x512xf32, #tpu.memory_space<vmem>>, vector<1x1x512xf32>
    %23 = vector.shape_cast %22 : vector<1x1x512xf32> to vector<1x512xf32>
    %24 = vector.broadcast %23 : vector<1x512xf32> to vector<8x512xf32>
    %25 = arith.mulf %21, %24 : vector<8x512xf32>
    %26 = vector.extract_strided_slice %16 {offsets = [0, 496], sizes = [8, 16], strides = [1, 1]} : vector<8x512xf32> to vector<8x16xf32>
    %27 = vector.extract_strided_slice %16 {offsets = [0, 0], sizes = [8, 496], strides = [1, 1]} : vector<8x512xf32> to vector<8x496xf32>
    %28 = tpu.concatenate %26, %27 in 1 : vector<8x16xf32>, vector<8x496xf32> -> vector<8x512xf32>
    %c1 = arith.constant 1 : index
    %c0_12 = arith.constant 0 : index
    %c0_13 = arith.constant 0 : index
    %29 = vector.load %arg4[%c1, %c0_12, %c0_13] : memref<9x1x512xf32, #tpu.memory_space<vmem>>, vector<1x1x512xf32>
    %30 = vector.shape_cast %29 : vector<1x1x512xf32> to vector<1x512xf32>
    %31 = vector.broadcast %30 : vector<1x512xf32> to vector<8x512xf32>
    %32 = arith.mulf %28, %31 : vector<8x512xf32>
    %33 = vector.extract_strided_slice %16 {offsets = [0, 497], sizes = [8, 15], strides = [1, 1]} : vector<8x512xf32> to vector<8x15xf32>
    %34 = vector.extract_strided_slice %16 {offsets = [0, 0], sizes = [8, 497], strides = [1, 1]} : vector<8x512xf32> to vector<8x497xf32>
    %35 = tpu.concatenate %33, %34 in 1 : vector<8x15xf32>, vector<8x497xf32> -> vector<8x512xf32>
    %c2 = arith.constant 2 : index
    %c0_14 = arith.constant 0 : index
    %c0_15 = arith.constant 0 : index
    %36 = vector.load %arg4[%c2, %c0_14, %c0_15] : memref<9x1x512xf32, #tpu.memory_space<vmem>>, vector<1x1x512xf32>
    %37 = vector.shape_cast %36 : vector<1x1x512xf32> to vector<1x512xf32>
    %38 = vector.broadcast %37 : vector<1x512xf32> to vector<8x512xf32>
    %39 = arith.mulf %35, %38 : vector<8x512xf32>
    %40 = vector.extract_strided_slice %16 {offsets = [0, 511], sizes = [8, 1], strides = [1, 1]} : vector<8x512xf32> to vector<8x1xf32>
    %41 = vector.extract_strided_slice %16 {offsets = [0, 0], sizes = [8, 511], strides = [1, 1]} : vector<8x512xf32> to vector<8x511xf32>
    %42 = tpu.concatenate %40, %41 in 1 : vector<8x1xf32>, vector<8x511xf32> -> vector<8x512xf32>
    %c3 = arith.constant 3 : index
    %c0_16 = arith.constant 0 : index
    %c0_17 = arith.constant 0 : index
    %43 = vector.load %arg4[%c3, %c0_16, %c0_17] : memref<9x1x512xf32, #tpu.memory_space<vmem>>, vector<1x1x512xf32>
    %44 = vector.shape_cast %43 : vector<1x1x512xf32> to vector<1x512xf32>
    %45 = vector.broadcast %44 : vector<1x512xf32> to vector<8x512xf32>
    %46 = arith.mulf %42, %45 : vector<8x512xf32>
    %c4 = arith.constant 4 : index
    %c0_18 = arith.constant 0 : index
    %c0_19 = arith.constant 0 : index
    %47 = vector.load %arg4[%c4, %c0_18, %c0_19] : memref<9x1x512xf32, #tpu.memory_space<vmem>>, vector<1x1x512xf32>
    %48 = vector.shape_cast %47 : vector<1x1x512xf32> to vector<1x512xf32>
    %49 = vector.broadcast %48 : vector<1x512xf32> to vector<8x512xf32>
    %50 = arith.mulf %16, %49 : vector<8x512xf32>
    %51 = vector.extract_strided_slice %16 {offsets = [0, 1], sizes = [8, 511], strides = [1, 1]} : vector<8x512xf32> to vector<8x511xf32>
    %52 = vector.extract_strided_slice %16 {offsets = [0, 0], sizes = [8, 1], strides = [1, 1]} : vector<8x512xf32> to vector<8x1xf32>
    %53 = tpu.concatenate %51, %52 in 1 : vector<8x511xf32>, vector<8x1xf32> -> vector<8x512xf32>
    %c5 = arith.constant 5 : index
    %c0_20 = arith.constant 0 : index
    %c0_21 = arith.constant 0 : index
    %54 = vector.load %arg4[%c5, %c0_20, %c0_21] : memref<9x1x512xf32, #tpu.memory_space<vmem>>, vector<1x1x512xf32>
    %55 = vector.shape_cast %54 : vector<1x1x512xf32> to vector<1x512xf32>
    %56 = vector.broadcast %55 : vector<1x512xf32> to vector<8x512xf32>
    %57 = arith.mulf %53, %56 : vector<8x512xf32>
    %58 = vector.extract_strided_slice %16 {offsets = [0, 15], sizes = [8, 497], strides = [1, 1]} : vector<8x512xf32> to vector<8x497xf32>
    %59 = vector.extract_strided_slice %16 {offsets = [0, 0], sizes = [8, 15], strides = [1, 1]} : vector<8x512xf32> to vector<8x15xf32>
    %60 = tpu.concatenate %58, %59 in 1 : vector<8x497xf32>, vector<8x15xf32> -> vector<8x512xf32>
    %c6 = arith.constant 6 : index
    %c0_22 = arith.constant 0 : index
    %c0_23 = arith.constant 0 : index
    %61 = vector.load %arg4[%c6, %c0_22, %c0_23] : memref<9x1x512xf32, #tpu.memory_space<vmem>>, vector<1x1x512xf32>
    %62 = vector.shape_cast %61 : vector<1x1x512xf32> to vector<1x512xf32>
    %63 = vector.broadcast %62 : vector<1x512xf32> to vector<8x512xf32>
    %64 = arith.mulf %60, %63 : vector<8x512xf32>
    %65 = vector.extract_strided_slice %16 {offsets = [0, 16], sizes = [8, 496], strides = [1, 1]} : vector<8x512xf32> to vector<8x496xf32>
    %66 = vector.extract_strided_slice %16 {offsets = [0, 0], sizes = [8, 16], strides = [1, 1]} : vector<8x512xf32> to vector<8x16xf32>
    %67 = tpu.concatenate %65, %66 in 1 : vector<8x496xf32>, vector<8x16xf32> -> vector<8x512xf32>
    %c7 = arith.constant 7 : index
    %c0_24 = arith.constant 0 : index
    %c0_25 = arith.constant 0 : index
    %68 = vector.load %arg4[%c7, %c0_24, %c0_25] : memref<9x1x512xf32, #tpu.memory_space<vmem>>, vector<1x1x512xf32>
    %69 = vector.shape_cast %68 : vector<1x1x512xf32> to vector<1x512xf32>
    %70 = vector.broadcast %69 : vector<1x512xf32> to vector<8x512xf32>
    %71 = arith.mulf %67, %70 : vector<8x512xf32>
    %72 = vector.extract_strided_slice %16 {offsets = [0, 17], sizes = [8, 495], strides = [1, 1]} : vector<8x512xf32> to vector<8x495xf32>
    %73 = vector.extract_strided_slice %16 {offsets = [0, 0], sizes = [8, 17], strides = [1, 1]} : vector<8x512xf32> to vector<8x17xf32>
    %74 = tpu.concatenate %72, %73 in 1 : vector<8x495xf32>, vector<8x17xf32> -> vector<8x512xf32>
    %c8 = arith.constant 8 : index
    %c0_26 = arith.constant 0 : index
    %c0_27 = arith.constant 0 : index
    %75 = vector.load %arg4[%c8, %c0_26, %c0_27] : memref<9x1x512xf32, #tpu.memory_space<vmem>>, vector<1x1x512xf32>
    %76 = vector.shape_cast %75 : vector<1x1x512xf32> to vector<1x512xf32>
    %77 = vector.broadcast %76 : vector<1x512xf32> to vector<8x512xf32>
    %78 = arith.mulf %74, %77 : vector<8x512xf32>
    %79 = tpu.concatenate %25, %32, %39, %46, %50, %57, %64, %71, %78 in 0 : vector<8x512xf32>, vector<8x512xf32>, vector<8x512xf32>, vector<8x512xf32>, vector<8x512xf32>, vector<8x512xf32>, vector<8x512xf32>, vector<8x512xf32>, vector<8x512xf32> -> vector<72x512xf32>
    %c0_28 = arith.constant 0 : index
    %c0_29 = arith.constant 0 : index
    %80 = vector.load %arg2[%c0_28, %c0_29] : memref<8x72xf32, #tpu.memory_space<vmem>>, vector<8x72xf32>
    %cst_30 = arith.constant dense<0.000000e+00> : vector<8x512xf32>
    %81 = tpu.matmul %80, %79, %cst_30 {dimension_numbers = #tpu.dot_dimension_numbers<[1], [0], [0], [1], [0, 0, 1, 1], [], []>} : vector<8x72xf32>, vector<72x512xf32>, vector<8x512xf32> -> vector<8x512xf32>
    %c0_31 = arith.constant 0 : index
    %c0_32 = arith.constant 0 : index
    %82 = vector.load %arg3[%c0_31, %c0_32] : memref<8x1xf32, #tpu.memory_space<vmem>>, vector<8x1xf32>
    %83 = vector.broadcast %82 : vector<8x1xf32> to vector<8x512xf32>
    %84 = arith.addf %81, %83 : vector<8x512xf32>
    %85 = arith.negf %84 : vector<8x512xf32>
    %86 = math.exp %85 : vector<8x512xf32>
    %cst_33 = arith.constant 1.000000e+00 : f32
    %87 = vector.broadcast %cst_33 : f32 to vector<8x512xf32>
    %88 = arith.addf %87, %86 : vector<8x512xf32>
    %89 = arith.divf %87, %88 : vector<8x512xf32>
    %90 = arith.mulf %84, %89 : vector<8x512xf32>
    %c0_34 = arith.constant 0 : index
    %c0_35 = arith.constant 0 : index
    %91 = vector.load %arg6[%c0_34, %c0_35] : memref<8x512xf32, #tpu.memory_space<vmem>>, vector<8x512xf32>
    tpu.vector_store %arg6[%c0_34, %c0_35], %84 {strides = array<i32>} : memref<8x512xf32, #tpu.memory_space<vmem>>, vector<8x512xf32>,
    %c0_36 = arith.constant 0 : index
    %c0_37 = arith.constant 0 : index
    %92 = vector.load %arg5[%c0_36, %c0_37] : memref<8x512xf32, #tpu.memory_space<vmem>>, vector<8x512xf32>
    tpu.vector_store %arg5[%c0_36, %c0_37], %90 {strides = array<i32>} : memref<8x512xf32, #tpu.memory_space<vmem>>, vector<8x512xf32>,
    return
  }
  func.func @transform_0(%arg0: i32) -> (i32, i32) {
    %c0_i32 = arith.constant 0 : i32
    %c0_i32_0 = arith.constant 0 : i32
    %c0_i32_1 = arith.constant 0 : i32
    return %c0_i32, %c0_i32_0 : i32, i32
  }
  func.func @transform_1(%arg0: i32) -> (i32, i32) {
    %c0_i32 = arith.constant 0 : i32
    %c0_i32_0 = arith.constant 0 : i32
    %c0_i32_1 = arith.constant 0 : i32
    return %c0_i32, %c0_i32_0 : i32, i32
  }
  func.func @transform_2(%arg0: i32) -> (i32, i32) {
    %c0_i32 = arith.constant 0 : i32
    %c0_i32_0 = arith.constant 0 : i32
    %c0_i32_1 = arith.constant 0 : i32
    return %c0_i32, %c0_i32_0 : i32, i32
  }
  func.func @transform_3(%arg0: i32) -> (i32, i32, i32) {
    %c0_i32 = arith.constant 0 : i32
    %c0_i32_0 = arith.constant 0 : i32
    %c0_i32_1 = arith.constant 0 : i32
    %c0_i32_2 = arith.constant 0 : i32
    return %c0_i32, %c0_i32_0, %c0_i32_1 : i32, i32, i32
  }
  func.func @transform_4(%arg0: i32) -> (i32, i32) {
    %c0_i32 = arith.constant 0 : i32
    %c0_i32_0 = arith.constant 0 : i32
    %c0_i32_1 = arith.constant 0 : i32
    return %c0_i32, %c0_i32_0 : i32, i32
  }
  func.func @transform_5(%arg0: i32) -> (i32, i32) {
    %c0_i32 = arith.constant 0 : i32
    %c0_i32_0 = arith.constant 0 : i32
    %c0_i32_1 = arith.constant 0 : i32
    return %c0_i32, %c0_i32_0 : i32, i32
  }
  func.func @transform_6(%arg0: i32) -> (i32, i32) {
    %c0_i32 = arith.constant 0 : i32
    %c0_i32_0 = arith.constant 0 : i32
    %c0_i32_1 = arith.constant 0 : i32
    return %c0_i32, %c0_i32_0 : i32, i32
  }
  func.func @transform_7(%arg0: i32) -> (i32, i32) {
    %c0_i32 = arith.constant 0 : i32
    %c0_i32_0 = arith.constant 0 : i32
    %c0_i32_1 = arith.constant 0 : i32
    return %c0_i32, %c0_i32_0 : i32, i32
  }
}

module attributes {stable_mosaic.version = 11 : i64} {
  func.func @_conv3x3_kernel(%arg0: i32, %arg1: memref<8x512xf32, #tpu.memory_space<vmem>>, %arg2: memref<8x72xf32, #tpu.memory_space<vmem>>, %arg3: memref<8x1xf32, #tpu.memory_space<vmem>>, %arg4: memref<9x1x512xf32, #tpu.memory_space<vmem>>, %arg5: memref<8x512xf32, #tpu.memory_space<vmem>>) attributes {dimension_semantics = [#tpu.dimension_semantics<arbitrary>], iteration_bounds = array<i64: 1>, scalar_prefetch = 0 : i64, scratch_operands = 0 : i64, tpu.core_type = #tpu.core_type<tc>, window_params = [{pipeline_mode = #tpu.pipeline_mode<synchronous>, transform_indices = @transform_0, window_bounds = array<i64: 8, 512>}, {pipeline_mode = #tpu.pipeline_mode<synchronous>, transform_indices = @transform_1, window_bounds = array<i64: 8, 72>}, {pipeline_mode = #tpu.pipeline_mode<synchronous>, transform_indices = @transform_2, window_bounds = array<i64: 8, 1>}, {pipeline_mode = #tpu.pipeline_mode<synchronous>, transform_indices = @transform_3, window_bounds = array<i64: 9, 1, 512>}, {pipeline_mode = #tpu.pipeline_mode<synchronous>, transform_indices = @transform_4, window_bounds = array<i64: 8, 512>}]} {
    %c0 = arith.constant 0 : index
    %c0_0 = arith.constant 0 : index
    %0 = vector.load %arg1[%c0, %c0_0] : memref<8x512xf32, #tpu.memory_space<vmem>>, vector<8x512xf32>
    %1 = vector.extract_strided_slice %0 {offsets = [0, 495], sizes = [8, 17], strides = [1, 1]} : vector<8x512xf32> to vector<8x17xf32>
    %2 = vector.extract_strided_slice %0 {offsets = [0, 0], sizes = [8, 495], strides = [1, 1]} : vector<8x512xf32> to vector<8x495xf32>
    %3 = tpu.concatenate %1, %2 in 1 : vector<8x17xf32>, vector<8x495xf32> -> vector<8x512xf32>
    %c0_1 = arith.constant 0 : index
    %c0_2 = arith.constant 0 : index
    %c0_3 = arith.constant 0 : index
    %4 = vector.load %arg4[%c0_1, %c0_2, %c0_3] : memref<9x1x512xf32, #tpu.memory_space<vmem>>, vector<1x1x512xf32>
    %5 = vector.shape_cast %4 : vector<1x1x512xf32> to vector<1x512xf32>
    %6 = vector.broadcast %5 : vector<1x512xf32> to vector<8x512xf32>
    %7 = arith.mulf %3, %6 : vector<8x512xf32>
    %8 = vector.extract_strided_slice %0 {offsets = [0, 496], sizes = [8, 16], strides = [1, 1]} : vector<8x512xf32> to vector<8x16xf32>
    %9 = vector.extract_strided_slice %0 {offsets = [0, 0], sizes = [8, 496], strides = [1, 1]} : vector<8x512xf32> to vector<8x496xf32>
    %10 = tpu.concatenate %8, %9 in 1 : vector<8x16xf32>, vector<8x496xf32> -> vector<8x512xf32>
    %c1 = arith.constant 1 : index
    %c0_4 = arith.constant 0 : index
    %c0_5 = arith.constant 0 : index
    %11 = vector.load %arg4[%c1, %c0_4, %c0_5] : memref<9x1x512xf32, #tpu.memory_space<vmem>>, vector<1x1x512xf32>
    %12 = vector.shape_cast %11 : vector<1x1x512xf32> to vector<1x512xf32>
    %13 = vector.broadcast %12 : vector<1x512xf32> to vector<8x512xf32>
    %14 = arith.mulf %10, %13 : vector<8x512xf32>
    %15 = vector.extract_strided_slice %0 {offsets = [0, 497], sizes = [8, 15], strides = [1, 1]} : vector<8x512xf32> to vector<8x15xf32>
    %16 = vector.extract_strided_slice %0 {offsets = [0, 0], sizes = [8, 497], strides = [1, 1]} : vector<8x512xf32> to vector<8x497xf32>
    %17 = tpu.concatenate %15, %16 in 1 : vector<8x15xf32>, vector<8x497xf32> -> vector<8x512xf32>
    %c2 = arith.constant 2 : index
    %c0_6 = arith.constant 0 : index
    %c0_7 = arith.constant 0 : index
    %18 = vector.load %arg4[%c2, %c0_6, %c0_7] : memref<9x1x512xf32, #tpu.memory_space<vmem>>, vector<1x1x512xf32>
    %19 = vector.shape_cast %18 : vector<1x1x512xf32> to vector<1x512xf32>
    %20 = vector.broadcast %19 : vector<1x512xf32> to vector<8x512xf32>
    %21 = arith.mulf %17, %20 : vector<8x512xf32>
    %22 = vector.extract_strided_slice %0 {offsets = [0, 511], sizes = [8, 1], strides = [1, 1]} : vector<8x512xf32> to vector<8x1xf32>
    %23 = vector.extract_strided_slice %0 {offsets = [0, 0], sizes = [8, 511], strides = [1, 1]} : vector<8x512xf32> to vector<8x511xf32>
    %24 = tpu.concatenate %22, %23 in 1 : vector<8x1xf32>, vector<8x511xf32> -> vector<8x512xf32>
    %c3 = arith.constant 3 : index
    %c0_8 = arith.constant 0 : index
    %c0_9 = arith.constant 0 : index
    %25 = vector.load %arg4[%c3, %c0_8, %c0_9] : memref<9x1x512xf32, #tpu.memory_space<vmem>>, vector<1x1x512xf32>
    %26 = vector.shape_cast %25 : vector<1x1x512xf32> to vector<1x512xf32>
    %27 = vector.broadcast %26 : vector<1x512xf32> to vector<8x512xf32>
    %28 = arith.mulf %24, %27 : vector<8x512xf32>
    %c4 = arith.constant 4 : index
    %c0_10 = arith.constant 0 : index
    %c0_11 = arith.constant 0 : index
    %29 = vector.load %arg4[%c4, %c0_10, %c0_11] : memref<9x1x512xf32, #tpu.memory_space<vmem>>, vector<1x1x512xf32>
    %30 = vector.shape_cast %29 : vector<1x1x512xf32> to vector<1x512xf32>
    %31 = vector.broadcast %30 : vector<1x512xf32> to vector<8x512xf32>
    %32 = arith.mulf %0, %31 : vector<8x512xf32>
    %33 = vector.extract_strided_slice %0 {offsets = [0, 1], sizes = [8, 511], strides = [1, 1]} : vector<8x512xf32> to vector<8x511xf32>
    %34 = vector.extract_strided_slice %0 {offsets = [0, 0], sizes = [8, 1], strides = [1, 1]} : vector<8x512xf32> to vector<8x1xf32>
    %35 = tpu.concatenate %33, %34 in 1 : vector<8x511xf32>, vector<8x1xf32> -> vector<8x512xf32>
    %c5 = arith.constant 5 : index
    %c0_12 = arith.constant 0 : index
    %c0_13 = arith.constant 0 : index
    %36 = vector.load %arg4[%c5, %c0_12, %c0_13] : memref<9x1x512xf32, #tpu.memory_space<vmem>>, vector<1x1x512xf32>
    %37 = vector.shape_cast %36 : vector<1x1x512xf32> to vector<1x512xf32>
    %38 = vector.broadcast %37 : vector<1x512xf32> to vector<8x512xf32>
    %39 = arith.mulf %35, %38 : vector<8x512xf32>
    %40 = vector.extract_strided_slice %0 {offsets = [0, 15], sizes = [8, 497], strides = [1, 1]} : vector<8x512xf32> to vector<8x497xf32>
    %41 = vector.extract_strided_slice %0 {offsets = [0, 0], sizes = [8, 15], strides = [1, 1]} : vector<8x512xf32> to vector<8x15xf32>
    %42 = tpu.concatenate %40, %41 in 1 : vector<8x497xf32>, vector<8x15xf32> -> vector<8x512xf32>
    %c6 = arith.constant 6 : index
    %c0_14 = arith.constant 0 : index
    %c0_15 = arith.constant 0 : index
    %43 = vector.load %arg4[%c6, %c0_14, %c0_15] : memref<9x1x512xf32, #tpu.memory_space<vmem>>, vector<1x1x512xf32>
    %44 = vector.shape_cast %43 : vector<1x1x512xf32> to vector<1x512xf32>
    %45 = vector.broadcast %44 : vector<1x512xf32> to vector<8x512xf32>
    %46 = arith.mulf %42, %45 : vector<8x512xf32>
    %47 = vector.extract_strided_slice %0 {offsets = [0, 16], sizes = [8, 496], strides = [1, 1]} : vector<8x512xf32> to vector<8x496xf32>
    %48 = vector.extract_strided_slice %0 {offsets = [0, 0], sizes = [8, 16], strides = [1, 1]} : vector<8x512xf32> to vector<8x16xf32>
    %49 = tpu.concatenate %47, %48 in 1 : vector<8x496xf32>, vector<8x16xf32> -> vector<8x512xf32>
    %c7 = arith.constant 7 : index
    %c0_16 = arith.constant 0 : index
    %c0_17 = arith.constant 0 : index
    %50 = vector.load %arg4[%c7, %c0_16, %c0_17] : memref<9x1x512xf32, #tpu.memory_space<vmem>>, vector<1x1x512xf32>
    %51 = vector.shape_cast %50 : vector<1x1x512xf32> to vector<1x512xf32>
    %52 = vector.broadcast %51 : vector<1x512xf32> to vector<8x512xf32>
    %53 = arith.mulf %49, %52 : vector<8x512xf32>
    %54 = vector.extract_strided_slice %0 {offsets = [0, 17], sizes = [8, 495], strides = [1, 1]} : vector<8x512xf32> to vector<8x495xf32>
    %55 = vector.extract_strided_slice %0 {offsets = [0, 0], sizes = [8, 17], strides = [1, 1]} : vector<8x512xf32> to vector<8x17xf32>
    %56 = tpu.concatenate %54, %55 in 1 : vector<8x495xf32>, vector<8x17xf32> -> vector<8x512xf32>
    %c8 = arith.constant 8 : index
    %c0_18 = arith.constant 0 : index
    %c0_19 = arith.constant 0 : index
    %57 = vector.load %arg4[%c8, %c0_18, %c0_19] : memref<9x1x512xf32, #tpu.memory_space<vmem>>, vector<1x1x512xf32>
    %58 = vector.shape_cast %57 : vector<1x1x512xf32> to vector<1x512xf32>
    %59 = vector.broadcast %58 : vector<1x512xf32> to vector<8x512xf32>
    %60 = arith.mulf %56, %59 : vector<8x512xf32>
    %61 = tpu.concatenate %7, %14, %21, %28, %32, %39, %46, %53, %60 in 0 : vector<8x512xf32>, vector<8x512xf32>, vector<8x512xf32>, vector<8x512xf32>, vector<8x512xf32>, vector<8x512xf32>, vector<8x512xf32>, vector<8x512xf32>, vector<8x512xf32> -> vector<72x512xf32>
    %c0_20 = arith.constant 0 : index
    %c0_21 = arith.constant 0 : index
    %62 = vector.load %arg2[%c0_20, %c0_21] : memref<8x72xf32, #tpu.memory_space<vmem>>, vector<8x72xf32>
    %cst = arith.constant dense<0.000000e+00> : vector<8x512xf32>
    %63 = tpu.matmul %62, %61, %cst {dimension_numbers = #tpu.dot_dimension_numbers<[1], [0], [0], [1], [0, 0, 1, 1], [], []>} : vector<8x72xf32>, vector<72x512xf32>, vector<8x512xf32> -> vector<8x512xf32>
    %c0_22 = arith.constant 0 : index
    %c0_23 = arith.constant 0 : index
    %64 = vector.load %arg3[%c0_22, %c0_23] : memref<8x1xf32, #tpu.memory_space<vmem>>, vector<8x1xf32>
    %65 = vector.broadcast %64 : vector<8x1xf32> to vector<8x512xf32>
    %66 = arith.addf %63, %65 : vector<8x512xf32>
    %c0_24 = arith.constant 0 : index
    %c0_25 = arith.constant 0 : index
    %67 = vector.load %arg5[%c0_24, %c0_25] : memref<8x512xf32, #tpu.memory_space<vmem>>, vector<8x512xf32>
    tpu.vector_store %arg5[%c0_24, %c0_25], %66 {strides = array<i32>} : memref<8x512xf32, #tpu.memory_space<vmem>>, vector<8x512xf32>,
    return
  }
  func.func @transform_0(%arg0: i32) -> (i32, i32) {
    %c0_i32 = arith.constant 0 : i32
    %c0_i32_0 = arith.constant 0 : i32
    %c0_i32_1 = arith.constant 0 : i32
    return %c0_i32, %c0_i32_0 : i32, i32
  }
  func.func @transform_1(%arg0: i32) -> (i32, i32) {
    %c0_i32 = arith.constant 0 : i32
    %c0_i32_0 = arith.constant 0 : i32
    %c0_i32_1 = arith.constant 0 : i32
    return %c0_i32, %c0_i32_0 : i32, i32
  }
  func.func @transform_2(%arg0: i32) -> (i32, i32) {
    %c0_i32 = arith.constant 0 : i32
    %c0_i32_0 = arith.constant 0 : i32
    %c0_i32_1 = arith.constant 0 : i32
    return %c0_i32, %c0_i32_0 : i32, i32
  }
  func.func @transform_3(%arg0: i32) -> (i32, i32, i32) {
    %c0_i32 = arith.constant 0 : i32
    %c0_i32_0 = arith.constant 0 : i32
    %c0_i32_1 = arith.constant 0 : i32
    %c0_i32_2 = arith.constant 0 : i32
    return %c0_i32, %c0_i32_0, %c0_i32_1 : i32, i32, i32
  }
  func.func @transform_4(%arg0: i32) -> (i32, i32) {
    %c0_i32 = arith.constant 0 : i32
    %c0_i32_0 = arith.constant 0 : i32
    %c0_i32_1 = arith.constant 0 : i32
    return %c0_i32, %c0_i32_0 : i32, i32
  }
}

module attributes {stable_mosaic.version = 11 : i64} {
  func.func @_conv3x3_kernel(%arg0: i32, %arg1: memref<8x512xf32, #tpu.memory_space<vmem>>, %arg2: memref<16x72xf32, #tpu.memory_space<vmem>>, %arg3: memref<16x1xf32, #tpu.memory_space<vmem>>, %arg4: memref<9x1x512xf32, #tpu.memory_space<vmem>>, %arg5: memref<16x512xf32, #tpu.memory_space<vmem>>) attributes {dimension_semantics = [#tpu.dimension_semantics<arbitrary>], iteration_bounds = array<i64: 1>, scalar_prefetch = 0 : i64, scratch_operands = 0 : i64, tpu.core_type = #tpu.core_type<tc>, window_params = [{pipeline_mode = #tpu.pipeline_mode<synchronous>, transform_indices = @transform_0, window_bounds = array<i64: 8, 512>}, {pipeline_mode = #tpu.pipeline_mode<synchronous>, transform_indices = @transform_1, window_bounds = array<i64: 16, 72>}, {pipeline_mode = #tpu.pipeline_mode<synchronous>, transform_indices = @transform_2, window_bounds = array<i64: 16, 1>}, {pipeline_mode = #tpu.pipeline_mode<synchronous>, transform_indices = @transform_3, window_bounds = array<i64: 9, 1, 512>}, {pipeline_mode = #tpu.pipeline_mode<synchronous>, transform_indices = @transform_4, window_bounds = array<i64: 16, 512>}]} {
    %c0 = arith.constant 0 : index
    %c0_0 = arith.constant 0 : index
    %0 = vector.load %arg1[%c0, %c0_0] : memref<8x512xf32, #tpu.memory_space<vmem>>, vector<8x512xf32>
    %1 = vector.extract_strided_slice %0 {offsets = [0, 495], sizes = [8, 17], strides = [1, 1]} : vector<8x512xf32> to vector<8x17xf32>
    %2 = vector.extract_strided_slice %0 {offsets = [0, 0], sizes = [8, 495], strides = [1, 1]} : vector<8x512xf32> to vector<8x495xf32>
    %3 = tpu.concatenate %1, %2 in 1 : vector<8x17xf32>, vector<8x495xf32> -> vector<8x512xf32>
    %c0_1 = arith.constant 0 : index
    %c0_2 = arith.constant 0 : index
    %c0_3 = arith.constant 0 : index
    %4 = vector.load %arg4[%c0_1, %c0_2, %c0_3] : memref<9x1x512xf32, #tpu.memory_space<vmem>>, vector<1x1x512xf32>
    %5 = vector.shape_cast %4 : vector<1x1x512xf32> to vector<1x512xf32>
    %6 = vector.broadcast %5 : vector<1x512xf32> to vector<8x512xf32>
    %7 = arith.mulf %3, %6 : vector<8x512xf32>
    %8 = vector.extract_strided_slice %0 {offsets = [0, 496], sizes = [8, 16], strides = [1, 1]} : vector<8x512xf32> to vector<8x16xf32>
    %9 = vector.extract_strided_slice %0 {offsets = [0, 0], sizes = [8, 496], strides = [1, 1]} : vector<8x512xf32> to vector<8x496xf32>
    %10 = tpu.concatenate %8, %9 in 1 : vector<8x16xf32>, vector<8x496xf32> -> vector<8x512xf32>
    %c1 = arith.constant 1 : index
    %c0_4 = arith.constant 0 : index
    %c0_5 = arith.constant 0 : index
    %11 = vector.load %arg4[%c1, %c0_4, %c0_5] : memref<9x1x512xf32, #tpu.memory_space<vmem>>, vector<1x1x512xf32>
    %12 = vector.shape_cast %11 : vector<1x1x512xf32> to vector<1x512xf32>
    %13 = vector.broadcast %12 : vector<1x512xf32> to vector<8x512xf32>
    %14 = arith.mulf %10, %13 : vector<8x512xf32>
    %15 = vector.extract_strided_slice %0 {offsets = [0, 497], sizes = [8, 15], strides = [1, 1]} : vector<8x512xf32> to vector<8x15xf32>
    %16 = vector.extract_strided_slice %0 {offsets = [0, 0], sizes = [8, 497], strides = [1, 1]} : vector<8x512xf32> to vector<8x497xf32>
    %17 = tpu.concatenate %15, %16 in 1 : vector<8x15xf32>, vector<8x497xf32> -> vector<8x512xf32>
    %c2 = arith.constant 2 : index
    %c0_6 = arith.constant 0 : index
    %c0_7 = arith.constant 0 : index
    %18 = vector.load %arg4[%c2, %c0_6, %c0_7] : memref<9x1x512xf32, #tpu.memory_space<vmem>>, vector<1x1x512xf32>
    %19 = vector.shape_cast %18 : vector<1x1x512xf32> to vector<1x512xf32>
    %20 = vector.broadcast %19 : vector<1x512xf32> to vector<8x512xf32>
    %21 = arith.mulf %17, %20 : vector<8x512xf32>
    %22 = vector.extract_strided_slice %0 {offsets = [0, 511], sizes = [8, 1], strides = [1, 1]} : vector<8x512xf32> to vector<8x1xf32>
    %23 = vector.extract_strided_slice %0 {offsets = [0, 0], sizes = [8, 511], strides = [1, 1]} : vector<8x512xf32> to vector<8x511xf32>
    %24 = tpu.concatenate %22, %23 in 1 : vector<8x1xf32>, vector<8x511xf32> -> vector<8x512xf32>
    %c3 = arith.constant 3 : index
    %c0_8 = arith.constant 0 : index
    %c0_9 = arith.constant 0 : index
    %25 = vector.load %arg4[%c3, %c0_8, %c0_9] : memref<9x1x512xf32, #tpu.memory_space<vmem>>, vector<1x1x512xf32>
    %26 = vector.shape_cast %25 : vector<1x1x512xf32> to vector<1x512xf32>
    %27 = vector.broadcast %26 : vector<1x512xf32> to vector<8x512xf32>
    %28 = arith.mulf %24, %27 : vector<8x512xf32>
    %c4 = arith.constant 4 : index
    %c0_10 = arith.constant 0 : index
    %c0_11 = arith.constant 0 : index
    %29 = vector.load %arg4[%c4, %c0_10, %c0_11] : memref<9x1x512xf32, #tpu.memory_space<vmem>>, vector<1x1x512xf32>
    %30 = vector.shape_cast %29 : vector<1x1x512xf32> to vector<1x512xf32>
    %31 = vector.broadcast %30 : vector<1x512xf32> to vector<8x512xf32>
    %32 = arith.mulf %0, %31 : vector<8x512xf32>
    %33 = vector.extract_strided_slice %0 {offsets = [0, 1], sizes = [8, 511], strides = [1, 1]} : vector<8x512xf32> to vector<8x511xf32>
    %34 = vector.extract_strided_slice %0 {offsets = [0, 0], sizes = [8, 1], strides = [1, 1]} : vector<8x512xf32> to vector<8x1xf32>
    %35 = tpu.concatenate %33, %34 in 1 : vector<8x511xf32>, vector<8x1xf32> -> vector<8x512xf32>
    %c5 = arith.constant 5 : index
    %c0_12 = arith.constant 0 : index
    %c0_13 = arith.constant 0 : index
    %36 = vector.load %arg4[%c5, %c0_12, %c0_13] : memref<9x1x512xf32, #tpu.memory_space<vmem>>, vector<1x1x512xf32>
    %37 = vector.shape_cast %36 : vector<1x1x512xf32> to vector<1x512xf32>
    %38 = vector.broadcast %37 : vector<1x512xf32> to vector<8x512xf32>
    %39 = arith.mulf %35, %38 : vector<8x512xf32>
    %40 = vector.extract_strided_slice %0 {offsets = [0, 15], sizes = [8, 497], strides = [1, 1]} : vector<8x512xf32> to vector<8x497xf32>
    %41 = vector.extract_strided_slice %0 {offsets = [0, 0], sizes = [8, 15], strides = [1, 1]} : vector<8x512xf32> to vector<8x15xf32>
    %42 = tpu.concatenate %40, %41 in 1 : vector<8x497xf32>, vector<8x15xf32> -> vector<8x512xf32>
    %c6 = arith.constant 6 : index
    %c0_14 = arith.constant 0 : index
    %c0_15 = arith.constant 0 : index
    %43 = vector.load %arg4[%c6, %c0_14, %c0_15] : memref<9x1x512xf32, #tpu.memory_space<vmem>>, vector<1x1x512xf32>
    %44 = vector.shape_cast %43 : vector<1x1x512xf32> to vector<1x512xf32>
    %45 = vector.broadcast %44 : vector<1x512xf32> to vector<8x512xf32>
    %46 = arith.mulf %42, %45 : vector<8x512xf32>
    %47 = vector.extract_strided_slice %0 {offsets = [0, 16], sizes = [8, 496], strides = [1, 1]} : vector<8x512xf32> to vector<8x496xf32>
    %48 = vector.extract_strided_slice %0 {offsets = [0, 0], sizes = [8, 16], strides = [1, 1]} : vector<8x512xf32> to vector<8x16xf32>
    %49 = tpu.concatenate %47, %48 in 1 : vector<8x496xf32>, vector<8x16xf32> -> vector<8x512xf32>
    %c7 = arith.constant 7 : index
    %c0_16 = arith.constant 0 : index
    %c0_17 = arith.constant 0 : index
    %50 = vector.load %arg4[%c7, %c0_16, %c0_17] : memref<9x1x512xf32, #tpu.memory_space<vmem>>, vector<1x1x512xf32>
    %51 = vector.shape_cast %50 : vector<1x1x512xf32> to vector<1x512xf32>
    %52 = vector.broadcast %51 : vector<1x512xf32> to vector<8x512xf32>
    %53 = arith.mulf %49, %52 : vector<8x512xf32>
    %54 = vector.extract_strided_slice %0 {offsets = [0, 17], sizes = [8, 495], strides = [1, 1]} : vector<8x512xf32> to vector<8x495xf32>
    %55 = vector.extract_strided_slice %0 {offsets = [0, 0], sizes = [8, 17], strides = [1, 1]} : vector<8x512xf32> to vector<8x17xf32>
    %56 = tpu.concatenate %54, %55 in 1 : vector<8x495xf32>, vector<8x17xf32> -> vector<8x512xf32>
    %c8 = arith.constant 8 : index
    %c0_18 = arith.constant 0 : index
    %c0_19 = arith.constant 0 : index
    %57 = vector.load %arg4[%c8, %c0_18, %c0_19] : memref<9x1x512xf32, #tpu.memory_space<vmem>>, vector<1x1x512xf32>
    %58 = vector.shape_cast %57 : vector<1x1x512xf32> to vector<1x512xf32>
    %59 = vector.broadcast %58 : vector<1x512xf32> to vector<8x512xf32>
    %60 = arith.mulf %56, %59 : vector<8x512xf32>
    %61 = tpu.concatenate %7, %14, %21, %28, %32, %39, %46, %53, %60 in 0 : vector<8x512xf32>, vector<8x512xf32>, vector<8x512xf32>, vector<8x512xf32>, vector<8x512xf32>, vector<8x512xf32>, vector<8x512xf32>, vector<8x512xf32>, vector<8x512xf32> -> vector<72x512xf32>
    %c0_20 = arith.constant 0 : index
    %c0_21 = arith.constant 0 : index
    %62 = vector.load %arg2[%c0_20, %c0_21] : memref<16x72xf32, #tpu.memory_space<vmem>>, vector<16x72xf32>
    %cst = arith.constant dense<0.000000e+00> : vector<16x512xf32>
    %63 = tpu.matmul %62, %61, %cst {dimension_numbers = #tpu.dot_dimension_numbers<[1], [0], [0], [1], [0, 0, 1, 1], [], []>} : vector<16x72xf32>, vector<72x512xf32>, vector<16x512xf32> -> vector<16x512xf32>
    %c0_22 = arith.constant 0 : index
    %c0_23 = arith.constant 0 : index
    %64 = vector.load %arg3[%c0_22, %c0_23] : memref<16x1xf32, #tpu.memory_space<vmem>>, vector<16x1xf32>
    %65 = vector.broadcast %64 : vector<16x1xf32> to vector<16x512xf32>
    %66 = arith.addf %63, %65 : vector<16x512xf32>
    %c0_24 = arith.constant 0 : index
    %c0_25 = arith.constant 0 : index
    %67 = vector.load %arg5[%c0_24, %c0_25] : memref<16x512xf32, #tpu.memory_space<vmem>>, vector<16x512xf32>
    tpu.vector_store %arg5[%c0_24, %c0_25], %66 {strides = array<i32>} : memref<16x512xf32, #tpu.memory_space<vmem>>, vector<16x512xf32>,
    return
  }
  func.func @transform_0(%arg0: i32) -> (i32, i32) {
    %c0_i32 = arith.constant 0 : i32
    %c0_i32_0 = arith.constant 0 : i32
    %c0_i32_1 = arith.constant 0 : i32
    return %c0_i32, %c0_i32_0 : i32, i32
  }
  func.func @transform_1(%arg0: i32) -> (i32, i32) {
    %c0_i32 = arith.constant 0 : i32
    %c0_i32_0 = arith.constant 0 : i32
    %c0_i32_1 = arith.constant 0 : i32
    return %c0_i32, %c0_i32_0 : i32, i32
  }
  func.func @transform_2(%arg0: i32) -> (i32, i32) {
    %c0_i32 = arith.constant 0 : i32
    %c0_i32_0 = arith.constant 0 : i32
    %c0_i32_1 = arith.constant 0 : i32
    return %c0_i32, %c0_i32_0 : i32, i32
  }
  func.func @transform_3(%arg0: i32) -> (i32, i32, i32) {
    %c0_i32 = arith.constant 0 : i32
    %c0_i32_0 = arith.constant 0 : i32
    %c0_i32_1 = arith.constant 0 : i32
    %c0_i32_2 = arith.constant 0 : i32
    return %c0_i32, %c0_i32_0, %c0_i32_1 : i32, i32, i32
  }
  func.func @transform_4(%arg0: i32) -> (i32, i32) {
    %c0_i32 = arith.constant 0 : i32
    %c0_i32_0 = arith.constant 0 : i32
    %c0_i32_1 = arith.constant 0 : i32
    return %c0_i32, %c0_i32_0 : i32, i32
  }
}

module attributes {stable_mosaic.version = 11 : i64} {
  func.func @_conv3x3_kernel(%arg0: i32, %arg1: memref<16x128xf32, #tpu.memory_space<vmem>>, %arg2: memref<16x144xf32, #tpu.memory_space<vmem>>, %arg3: memref<16x1xf32, #tpu.memory_space<vmem>>, %arg4: memref<9x1x128xf32, #tpu.memory_space<vmem>>, %arg5: memref<16x128xf32, #tpu.memory_space<vmem>>, %arg6: memref<16x128xf32, #tpu.memory_space<vmem>>, %arg7: memref<16x128xf32, #tpu.memory_space<vmem>>, %arg8: memref<1x128xf32, #tpu.memory_space<vmem>>) attributes {dimension_semantics = [#tpu.dimension_semantics<arbitrary>], iteration_bounds = array<i64: 1>, scalar_prefetch = 0 : i64, scratch_operands = 0 : i64, tpu.core_type = #tpu.core_type<tc>, window_params = [{pipeline_mode = #tpu.pipeline_mode<synchronous>, transform_indices = @transform_0, window_bounds = array<i64: 16, 128>}, {pipeline_mode = #tpu.pipeline_mode<synchronous>, transform_indices = @transform_1, window_bounds = array<i64: 16, 144>}, {pipeline_mode = #tpu.pipeline_mode<synchronous>, transform_indices = @transform_2, window_bounds = array<i64: 16, 1>}, {pipeline_mode = #tpu.pipeline_mode<synchronous>, transform_indices = @transform_3, window_bounds = array<i64: 9, 1, 128>}, {pipeline_mode = #tpu.pipeline_mode<synchronous>, transform_indices = @transform_4, window_bounds = array<i64: 16, 128>}, {pipeline_mode = #tpu.pipeline_mode<synchronous>, transform_indices = @transform_5, window_bounds = array<i64: 16, 128>}, {pipeline_mode = #tpu.pipeline_mode<synchronous>, transform_indices = @transform_6, window_bounds = array<i64: 16, 128>}, {pipeline_mode = #tpu.pipeline_mode<synchronous>, transform_indices = @transform_7, window_bounds = array<i64: 1, 128>}]} {
    %c0 = arith.constant 0 : index
    %c0_0 = arith.constant 0 : index
    %0 = vector.load %arg1[%c0, %c0_0] : memref<16x128xf32, #tpu.memory_space<vmem>>, vector<16x128xf32>
    %cst = arith.constant dense<0.000000e+00> : vector<128xf32>
    %1 = vector.multi_reduction <add>, %0, %cst [0] : vector<16x128xf32> to vector<128xf32>
    %2 = vector.shape_cast %1 : vector<128xf32> to vector<1x128xf32>
    %cst_1 = arith.constant 1.600000e+01 : f32
    %3 = vector.broadcast %cst_1 : f32 to vector<1x128xf32>
    %4 = arith.divf %2, %3 : vector<1x128xf32>
    %5 = vector.broadcast %4 : vector<1x128xf32> to vector<16x128xf32>
    %6 = arith.subf %0, %5 : vector<16x128xf32>
    %7 = arith.mulf %6, %6 : vector<16x128xf32>
    %cst_2 = arith.constant dense<0.000000e+00> : vector<128xf32>
    %8 = vector.multi_reduction <add>, %7, %cst_2 [0] : vector<16x128xf32> to vector<128xf32>
    %9 = vector.shape_cast %8 : vector<128xf32> to vector<1x128xf32>
    %cst_3 = arith.constant 0.0666666701 : f32
    %10 = vector.broadcast %cst_3 : f32 to vector<1x128xf32>
    %11 = arith.mulf %9, %10 : vector<1x128xf32>
    %cst_4 = arith.constant 9.99999974E-6 : f32
    %12 = vector.broadcast %cst_4 : f32 to vector<1x128xf32>
    %13 = arith.addf %11, %12 : vector<1x128xf32>
    %14 = math.rsqrt %13 : vector<1x128xf32>
    %15 = vector.broadcast %14 : vector<1x128xf32> to vector<16x128xf32>
    %16 = arith.mulf %6, %15 : vector<16x128xf32>
    %c0_5 = arith.constant 0 : index
    %c0_6 = arith.constant 0 : index
    %17 = vector.load %arg7[%c0_5, %c0_6] : memref<16x128xf32, #tpu.memory_space<vmem>>, vector<16x128xf32>
    tpu.vector_store %arg7[%c0_5, %c0_6], %16 {strides = array<i32>} : memref<16x128xf32, #tpu.memory_space<vmem>>, vector<16x128xf32>,
    %c0_7 = arith.constant 0 : index
    %c0_8 = arith.constant 0 : index
    %18 = vector.load %arg8[%c0_7, %c0_8] : memref<1x128xf32, #tpu.memory_space<vmem>>, vector<1x128xf32>
    tpu.vector_store %arg8[%c0_7, %c0_8], %14 {strides = array<i32>} : memref<1x128xf32, #tpu.memory_space<vmem>>, vector<1x128xf32>,
    %19 = vector.extract_strided_slice %16 {offsets = [0, 119], sizes = [16, 9], strides = [1, 1]} : vector<16x128xf32> to vector<16x9xf32>
    %20 = vector.extract_strided_slice %16 {offsets = [0, 0], sizes = [16, 119], strides = [1, 1]} : vector<16x128xf32> to vector<16x119xf32>
    %21 = tpu.concatenate %19, %20 in 1 : vector<16x9xf32>, vector<16x119xf32> -> vector<16x128xf32>
    %c0_9 = arith.constant 0 : index
    %c0_10 = arith.constant 0 : index
    %c0_11 = arith.constant 0 : index
    %22 = vector.load %arg4[%c0_9, %c0_10, %c0_11] : memref<9x1x128xf32, #tpu.memory_space<vmem>>, vector<1x1x128xf32>
    %23 = vector.shape_cast %22 : vector<1x1x128xf32> to vector<1x128xf32>
    %24 = vector.broadcast %23 : vector<1x128xf32> to vector<16x128xf32>
    %25 = arith.mulf %21, %24 : vector<16x128xf32>
    %26 = vector.extract_strided_slice %16 {offsets = [0, 120], sizes = [16, 8], strides = [1, 1]} : vector<16x128xf32> to vector<16x8xf32>
    %27 = vector.extract_strided_slice %16 {offsets = [0, 0], sizes = [16, 120], strides = [1, 1]} : vector<16x128xf32> to vector<16x120xf32>
    %28 = tpu.concatenate %26, %27 in 1 : vector<16x8xf32>, vector<16x120xf32> -> vector<16x128xf32>
    %c1 = arith.constant 1 : index
    %c0_12 = arith.constant 0 : index
    %c0_13 = arith.constant 0 : index
    %29 = vector.load %arg4[%c1, %c0_12, %c0_13] : memref<9x1x128xf32, #tpu.memory_space<vmem>>, vector<1x1x128xf32>
    %30 = vector.shape_cast %29 : vector<1x1x128xf32> to vector<1x128xf32>
    %31 = vector.broadcast %30 : vector<1x128xf32> to vector<16x128xf32>
    %32 = arith.mulf %28, %31 : vector<16x128xf32>
    %33 = vector.extract_strided_slice %16 {offsets = [0, 121], sizes = [16, 7], strides = [1, 1]} : vector<16x128xf32> to vector<16x7xf32>
    %34 = vector.extract_strided_slice %16 {offsets = [0, 0], sizes = [16, 121], strides = [1, 1]} : vector<16x128xf32> to vector<16x121xf32>
    %35 = tpu.concatenate %33, %34 in 1 : vector<16x7xf32>, vector<16x121xf32> -> vector<16x128xf32>
    %c2 = arith.constant 2 : index
    %c0_14 = arith.constant 0 : index
    %c0_15 = arith.constant 0 : index
    %36 = vector.load %arg4[%c2, %c0_14, %c0_15] : memref<9x1x128xf32, #tpu.memory_space<vmem>>, vector<1x1x128xf32>
    %37 = vector.shape_cast %36 : vector<1x1x128xf32> to vector<1x128xf32>
    %38 = vector.broadcast %37 : vector<1x128xf32> to vector<16x128xf32>
    %39 = arith.mulf %35, %38 : vector<16x128xf32>
    %40 = vector.extract_strided_slice %16 {offsets = [0, 127], sizes = [16, 1], strides = [1, 1]} : vector<16x128xf32> to vector<16x1xf32>
    %41 = vector.extract_strided_slice %16 {offsets = [0, 0], sizes = [16, 127], strides = [1, 1]} : vector<16x128xf32> to vector<16x127xf32>
    %42 = tpu.concatenate %40, %41 in 1 : vector<16x1xf32>, vector<16x127xf32> -> vector<16x128xf32>
    %c3 = arith.constant 3 : index
    %c0_16 = arith.constant 0 : index
    %c0_17 = arith.constant 0 : index
    %43 = vector.load %arg4[%c3, %c0_16, %c0_17] : memref<9x1x128xf32, #tpu.memory_space<vmem>>, vector<1x1x128xf32>
    %44 = vector.shape_cast %43 : vector<1x1x128xf32> to vector<1x128xf32>
    %45 = vector.broadcast %44 : vector<1x128xf32> to vector<16x128xf32>
    %46 = arith.mulf %42, %45 : vector<16x128xf32>
    %c4 = arith.constant 4 : index
    %c0_18 = arith.constant 0 : index
    %c0_19 = arith.constant 0 : index
    %47 = vector.load %arg4[%c4, %c0_18, %c0_19] : memref<9x1x128xf32, #tpu.memory_space<vmem>>, vector<1x1x128xf32>
    %48 = vector.shape_cast %47 : vector<1x1x128xf32> to vector<1x128xf32>
    %49 = vector.broadcast %48 : vector<1x128xf32> to vector<16x128xf32>
    %50 = arith.mulf %16, %49 : vector<16x128xf32>
    %51 = vector.extract_strided_slice %16 {offsets = [0, 1], sizes = [16, 127], strides = [1, 1]} : vector<16x128xf32> to vector<16x127xf32>
    %52 = vector.extract_strided_slice %16 {offsets = [0, 0], sizes = [16, 1], strides = [1, 1]} : vector<16x128xf32> to vector<16x1xf32>
    %53 = tpu.concatenate %51, %52 in 1 : vector<16x127xf32>, vector<16x1xf32> -> vector<16x128xf32>
    %c5 = arith.constant 5 : index
    %c0_20 = arith.constant 0 : index
    %c0_21 = arith.constant 0 : index
    %54 = vector.load %arg4[%c5, %c0_20, %c0_21] : memref<9x1x128xf32, #tpu.memory_space<vmem>>, vector<1x1x128xf32>
    %55 = vector.shape_cast %54 : vector<1x1x128xf32> to vector<1x128xf32>
    %56 = vector.broadcast %55 : vector<1x128xf32> to vector<16x128xf32>
    %57 = arith.mulf %53, %56 : vector<16x128xf32>
    %58 = vector.extract_strided_slice %16 {offsets = [0, 7], sizes = [16, 121], strides = [1, 1]} : vector<16x128xf32> to vector<16x121xf32>
    %59 = vector.extract_strided_slice %16 {offsets = [0, 0], sizes = [16, 7], strides = [1, 1]} : vector<16x128xf32> to vector<16x7xf32>
    %60 = tpu.concatenate %58, %59 in 1 : vector<16x121xf32>, vector<16x7xf32> -> vector<16x128xf32>
    %c6 = arith.constant 6 : index
    %c0_22 = arith.constant 0 : index
    %c0_23 = arith.constant 0 : index
    %61 = vector.load %arg4[%c6, %c0_22, %c0_23] : memref<9x1x128xf32, #tpu.memory_space<vmem>>, vector<1x1x128xf32>
    %62 = vector.shape_cast %61 : vector<1x1x128xf32> to vector<1x128xf32>
    %63 = vector.broadcast %62 : vector<1x128xf32> to vector<16x128xf32>
    %64 = arith.mulf %60, %63 : vector<16x128xf32>
    %65 = vector.extract_strided_slice %16 {offsets = [0, 8], sizes = [16, 120], strides = [1, 1]} : vector<16x128xf32> to vector<16x120xf32>
    %66 = vector.extract_strided_slice %16 {offsets = [0, 0], sizes = [16, 8], strides = [1, 1]} : vector<16x128xf32> to vector<16x8xf32>
    %67 = tpu.concatenate %65, %66 in 1 : vector<16x120xf32>, vector<16x8xf32> -> vector<16x128xf32>
    %c7 = arith.constant 7 : index
    %c0_24 = arith.constant 0 : index
    %c0_25 = arith.constant 0 : index
    %68 = vector.load %arg4[%c7, %c0_24, %c0_25] : memref<9x1x128xf32, #tpu.memory_space<vmem>>, vector<1x1x128xf32>
    %69 = vector.shape_cast %68 : vector<1x1x128xf32> to vector<1x128xf32>
    %70 = vector.broadcast %69 : vector<1x128xf32> to vector<16x128xf32>
    %71 = arith.mulf %67, %70 : vector<16x128xf32>
    %72 = vector.extract_strided_slice %16 {offsets = [0, 9], sizes = [16, 119], strides = [1, 1]} : vector<16x128xf32> to vector<16x119xf32>
    %73 = vector.extract_strided_slice %16 {offsets = [0, 0], sizes = [16, 9], strides = [1, 1]} : vector<16x128xf32> to vector<16x9xf32>
    %74 = tpu.concatenate %72, %73 in 1 : vector<16x119xf32>, vector<16x9xf32> -> vector<16x128xf32>
    %c8 = arith.constant 8 : index
    %c0_26 = arith.constant 0 : index
    %c0_27 = arith.constant 0 : index
    %75 = vector.load %arg4[%c8, %c0_26, %c0_27] : memref<9x1x128xf32, #tpu.memory_space<vmem>>, vector<1x1x128xf32>
    %76 = vector.shape_cast %75 : vector<1x1x128xf32> to vector<1x128xf32>
    %77 = vector.broadcast %76 : vector<1x128xf32> to vector<16x128xf32>
    %78 = arith.mulf %74, %77 : vector<16x128xf32>
    %79 = tpu.concatenate %25, %32, %39, %46, %50, %57, %64, %71, %78 in 0 : vector<16x128xf32>, vector<16x128xf32>, vector<16x128xf32>, vector<16x128xf32>, vector<16x128xf32>, vector<16x128xf32>, vector<16x128xf32>, vector<16x128xf32>, vector<16x128xf32> -> vector<144x128xf32>
    %c0_28 = arith.constant 0 : index
    %c0_29 = arith.constant 0 : index
    %80 = vector.load %arg2[%c0_28, %c0_29] : memref<16x144xf32, #tpu.memory_space<vmem>>, vector<16x144xf32>
    %cst_30 = arith.constant dense<0.000000e+00> : vector<16x128xf32>
    %81 = tpu.matmul %80, %79, %cst_30 {dimension_numbers = #tpu.dot_dimension_numbers<[1], [0], [0], [1], [0, 0, 1, 1], [], []>} : vector<16x144xf32>, vector<144x128xf32>, vector<16x128xf32> -> vector<16x128xf32>
    %c0_31 = arith.constant 0 : index
    %c0_32 = arith.constant 0 : index
    %82 = vector.load %arg3[%c0_31, %c0_32] : memref<16x1xf32, #tpu.memory_space<vmem>>, vector<16x1xf32>
    %83 = vector.broadcast %82 : vector<16x1xf32> to vector<16x128xf32>
    %84 = arith.addf %81, %83 : vector<16x128xf32>
    %85 = arith.negf %84 : vector<16x128xf32>
    %86 = math.exp %85 : vector<16x128xf32>
    %cst_33 = arith.constant 1.000000e+00 : f32
    %87 = vector.broadcast %cst_33 : f32 to vector<16x128xf32>
    %88 = arith.addf %87, %86 : vector<16x128xf32>
    %89 = arith.divf %87, %88 : vector<16x128xf32>
    %90 = arith.mulf %84, %89 : vector<16x128xf32>
    %c0_34 = arith.constant 0 : index
    %c0_35 = arith.constant 0 : index
    %91 = vector.load %arg6[%c0_34, %c0_35] : memref<16x128xf32, #tpu.memory_space<vmem>>, vector<16x128xf32>
    tpu.vector_store %arg6[%c0_34, %c0_35], %84 {strides = array<i32>} : memref<16x128xf32, #tpu.memory_space<vmem>>, vector<16x128xf32>,
    %c0_36 = arith.constant 0 : index
    %c0_37 = arith.constant 0 : index
    %92 = vector.load %arg5[%c0_36, %c0_37] : memref<16x128xf32, #tpu.memory_space<vmem>>, vector<16x128xf32>
    tpu.vector_store %arg5[%c0_36, %c0_37], %90 {strides = array<i32>} : memref<16x128xf32, #tpu.memory_space<vmem>>, vector<16x128xf32>,
    return
  }
  func.func @transform_0(%arg0: i32) -> (i32, i32) {
    %c0_i32 = arith.constant 0 : i32
    %c0_i32_0 = arith.constant 0 : i32
    %c0_i32_1 = arith.constant 0 : i32
    return %c0_i32, %c0_i32_0 : i32, i32
  }
  func.func @transform_1(%arg0: i32) -> (i32, i32) {
    %c0_i32 = arith.constant 0 : i32
    %c0_i32_0 = arith.constant 0 : i32
    %c0_i32_1 = arith.constant 0 : i32
    return %c0_i32, %c0_i32_0 : i32, i32
  }
  func.func @transform_2(%arg0: i32) -> (i32, i32) {
    %c0_i32 = arith.constant 0 : i32
    %c0_i32_0 = arith.constant 0 : i32
    %c0_i32_1 = arith.constant 0 : i32
    return %c0_i32, %c0_i32_0 : i32, i32
  }
  func.func @transform_3(%arg0: i32) -> (i32, i32, i32) {
    %c0_i32 = arith.constant 0 : i32
    %c0_i32_0 = arith.constant 0 : i32
    %c0_i32_1 = arith.constant 0 : i32
    %c0_i32_2 = arith.constant 0 : i32
    return %c0_i32, %c0_i32_0, %c0_i32_1 : i32, i32, i32
  }
  func.func @transform_4(%arg0: i32) -> (i32, i32) {
    %c0_i32 = arith.constant 0 : i32
    %c0_i32_0 = arith.constant 0 : i32
    %c0_i32_1 = arith.constant 0 : i32
    return %c0_i32, %c0_i32_0 : i32, i32
  }
  func.func @transform_5(%arg0: i32) -> (i32, i32) {
    %c0_i32 = arith.constant 0 : i32
    %c0_i32_0 = arith.constant 0 : i32
    %c0_i32_1 = arith.constant 0 : i32
    return %c0_i32, %c0_i32_0 : i32, i32
  }
  func.func @transform_6(%arg0: i32) -> (i32, i32) {
    %c0_i32 = arith.constant 0 : i32
    %c0_i32_0 = arith.constant 0 : i32
    %c0_i32_1 = arith.constant 0 : i32
    return %c0_i32, %c0_i32_0 : i32, i32
  }
  func.func @transform_7(%arg0: i32) -> (i32, i32) {
    %c0_i32 = arith.constant 0 : i32
    %c0_i32_0 = arith.constant 0 : i32
    %c0_i32_1 = arith.constant 0 : i32
    return %c0_i32, %c0_i32_0 : i32, i32
  }
}

module attributes {stable_mosaic.version = 11 : i64} {
  func.func @_conv3x3_kernel(%arg0: i32, %arg1: memref<16x128xf32, #tpu.memory_space<vmem>>, %arg2: memref<16x144xf32, #tpu.memory_space<vmem>>, %arg3: memref<16x1xf32, #tpu.memory_space<vmem>>, %arg4: memref<9x1x128xf32, #tpu.memory_space<vmem>>, %arg5: memref<16x128xf32, #tpu.memory_space<vmem>>) attributes {dimension_semantics = [#tpu.dimension_semantics<arbitrary>], iteration_bounds = array<i64: 1>, scalar_prefetch = 0 : i64, scratch_operands = 0 : i64, tpu.core_type = #tpu.core_type<tc>, window_params = [{pipeline_mode = #tpu.pipeline_mode<synchronous>, transform_indices = @transform_0, window_bounds = array<i64: 16, 128>}, {pipeline_mode = #tpu.pipeline_mode<synchronous>, transform_indices = @transform_1, window_bounds = array<i64: 16, 144>}, {pipeline_mode = #tpu.pipeline_mode<synchronous>, transform_indices = @transform_2, window_bounds = array<i64: 16, 1>}, {pipeline_mode = #tpu.pipeline_mode<synchronous>, transform_indices = @transform_3, window_bounds = array<i64: 9, 1, 128>}, {pipeline_mode = #tpu.pipeline_mode<synchronous>, transform_indices = @transform_4, window_bounds = array<i64: 16, 128>}]} {
    %c0 = arith.constant 0 : index
    %c0_0 = arith.constant 0 : index
    %0 = vector.load %arg1[%c0, %c0_0] : memref<16x128xf32, #tpu.memory_space<vmem>>, vector<16x128xf32>
    %1 = vector.extract_strided_slice %0 {offsets = [0, 119], sizes = [16, 9], strides = [1, 1]} : vector<16x128xf32> to vector<16x9xf32>
    %2 = vector.extract_strided_slice %0 {offsets = [0, 0], sizes = [16, 119], strides = [1, 1]} : vector<16x128xf32> to vector<16x119xf32>
    %3 = tpu.concatenate %1, %2 in 1 : vector<16x9xf32>, vector<16x119xf32> -> vector<16x128xf32>
    %c0_1 = arith.constant 0 : index
    %c0_2 = arith.constant 0 : index
    %c0_3 = arith.constant 0 : index
    %4 = vector.load %arg4[%c0_1, %c0_2, %c0_3] : memref<9x1x128xf32, #tpu.memory_space<vmem>>, vector<1x1x128xf32>
    %5 = vector.shape_cast %4 : vector<1x1x128xf32> to vector<1x128xf32>
    %6 = vector.broadcast %5 : vector<1x128xf32> to vector<16x128xf32>
    %7 = arith.mulf %3, %6 : vector<16x128xf32>
    %8 = vector.extract_strided_slice %0 {offsets = [0, 120], sizes = [16, 8], strides = [1, 1]} : vector<16x128xf32> to vector<16x8xf32>
    %9 = vector.extract_strided_slice %0 {offsets = [0, 0], sizes = [16, 120], strides = [1, 1]} : vector<16x128xf32> to vector<16x120xf32>
    %10 = tpu.concatenate %8, %9 in 1 : vector<16x8xf32>, vector<16x120xf32> -> vector<16x128xf32>
    %c1 = arith.constant 1 : index
    %c0_4 = arith.constant 0 : index
    %c0_5 = arith.constant 0 : index
    %11 = vector.load %arg4[%c1, %c0_4, %c0_5] : memref<9x1x128xf32, #tpu.memory_space<vmem>>, vector<1x1x128xf32>
    %12 = vector.shape_cast %11 : vector<1x1x128xf32> to vector<1x128xf32>
    %13 = vector.broadcast %12 : vector<1x128xf32> to vector<16x128xf32>
    %14 = arith.mulf %10, %13 : vector<16x128xf32>
    %15 = vector.extract_strided_slice %0 {offsets = [0, 121], sizes = [16, 7], strides = [1, 1]} : vector<16x128xf32> to vector<16x7xf32>
    %16 = vector.extract_strided_slice %0 {offsets = [0, 0], sizes = [16, 121], strides = [1, 1]} : vector<16x128xf32> to vector<16x121xf32>
    %17 = tpu.concatenate %15, %16 in 1 : vector<16x7xf32>, vector<16x121xf32> -> vector<16x128xf32>
    %c2 = arith.constant 2 : index
    %c0_6 = arith.constant 0 : index
    %c0_7 = arith.constant 0 : index
    %18 = vector.load %arg4[%c2, %c0_6, %c0_7] : memref<9x1x128xf32, #tpu.memory_space<vmem>>, vector<1x1x128xf32>
    %19 = vector.shape_cast %18 : vector<1x1x128xf32> to vector<1x128xf32>
    %20 = vector.broadcast %19 : vector<1x128xf32> to vector<16x128xf32>
    %21 = arith.mulf %17, %20 : vector<16x128xf32>
    %22 = vector.extract_strided_slice %0 {offsets = [0, 127], sizes = [16, 1], strides = [1, 1]} : vector<16x128xf32> to vector<16x1xf32>
    %23 = vector.extract_strided_slice %0 {offsets = [0, 0], sizes = [16, 127], strides = [1, 1]} : vector<16x128xf32> to vector<16x127xf32>
    %24 = tpu.concatenate %22, %23 in 1 : vector<16x1xf32>, vector<16x127xf32> -> vector<16x128xf32>
    %c3 = arith.constant 3 : index
    %c0_8 = arith.constant 0 : index
    %c0_9 = arith.constant 0 : index
    %25 = vector.load %arg4[%c3, %c0_8, %c0_9] : memref<9x1x128xf32, #tpu.memory_space<vmem>>, vector<1x1x128xf32>
    %26 = vector.shape_cast %25 : vector<1x1x128xf32> to vector<1x128xf32>
    %27 = vector.broadcast %26 : vector<1x128xf32> to vector<16x128xf32>
    %28 = arith.mulf %24, %27 : vector<16x128xf32>
    %c4 = arith.constant 4 : index
    %c0_10 = arith.constant 0 : index
    %c0_11 = arith.constant 0 : index
    %29 = vector.load %arg4[%c4, %c0_10, %c0_11] : memref<9x1x128xf32, #tpu.memory_space<vmem>>, vector<1x1x128xf32>
    %30 = vector.shape_cast %29 : vector<1x1x128xf32> to vector<1x128xf32>
    %31 = vector.broadcast %30 : vector<1x128xf32> to vector<16x128xf32>
    %32 = arith.mulf %0, %31 : vector<16x128xf32>
    %33 = vector.extract_strided_slice %0 {offsets = [0, 1], sizes = [16, 127], strides = [1, 1]} : vector<16x128xf32> to vector<16x127xf32>
    %34 = vector.extract_strided_slice %0 {offsets = [0, 0], sizes = [16, 1], strides = [1, 1]} : vector<16x128xf32> to vector<16x1xf32>
    %35 = tpu.concatenate %33, %34 in 1 : vector<16x127xf32>, vector<16x1xf32> -> vector<16x128xf32>
    %c5 = arith.constant 5 : index
    %c0_12 = arith.constant 0 : index
    %c0_13 = arith.constant 0 : index
    %36 = vector.load %arg4[%c5, %c0_12, %c0_13] : memref<9x1x128xf32, #tpu.memory_space<vmem>>, vector<1x1x128xf32>
    %37 = vector.shape_cast %36 : vector<1x1x128xf32> to vector<1x128xf32>
    %38 = vector.broadcast %37 : vector<1x128xf32> to vector<16x128xf32>
    %39 = arith.mulf %35, %38 : vector<16x128xf32>
    %40 = vector.extract_strided_slice %0 {offsets = [0, 7], sizes = [16, 121], strides = [1, 1]} : vector<16x128xf32> to vector<16x121xf32>
    %41 = vector.extract_strided_slice %0 {offsets = [0, 0], sizes = [16, 7], strides = [1, 1]} : vector<16x128xf32> to vector<16x7xf32>
    %42 = tpu.concatenate %40, %41 in 1 : vector<16x121xf32>, vector<16x7xf32> -> vector<16x128xf32>
    %c6 = arith.constant 6 : index
    %c0_14 = arith.constant 0 : index
    %c0_15 = arith.constant 0 : index
    %43 = vector.load %arg4[%c6, %c0_14, %c0_15] : memref<9x1x128xf32, #tpu.memory_space<vmem>>, vector<1x1x128xf32>
    %44 = vector.shape_cast %43 : vector<1x1x128xf32> to vector<1x128xf32>
    %45 = vector.broadcast %44 : vector<1x128xf32> to vector<16x128xf32>
    %46 = arith.mulf %42, %45 : vector<16x128xf32>
    %47 = vector.extract_strided_slice %0 {offsets = [0, 8], sizes = [16, 120], strides = [1, 1]} : vector<16x128xf32> to vector<16x120xf32>
    %48 = vector.extract_strided_slice %0 {offsets = [0, 0], sizes = [16, 8], strides = [1, 1]} : vector<16x128xf32> to vector<16x8xf32>
    %49 = tpu.concatenate %47, %48 in 1 : vector<16x120xf32>, vector<16x8xf32> -> vector<16x128xf32>
    %c7 = arith.constant 7 : index
    %c0_16 = arith.constant 0 : index
    %c0_17 = arith.constant 0 : index
    %50 = vector.load %arg4[%c7, %c0_16, %c0_17] : memref<9x1x128xf32, #tpu.memory_space<vmem>>, vector<1x1x128xf32>
    %51 = vector.shape_cast %50 : vector<1x1x128xf32> to vector<1x128xf32>
    %52 = vector.broadcast %51 : vector<1x128xf32> to vector<16x128xf32>
    %53 = arith.mulf %49, %52 : vector<16x128xf32>
    %54 = vector.extract_strided_slice %0 {offsets = [0, 9], sizes = [16, 119], strides = [1, 1]} : vector<16x128xf32> to vector<16x119xf32>
    %55 = vector.extract_strided_slice %0 {offsets = [0, 0], sizes = [16, 9], strides = [1, 1]} : vector<16x128xf32> to vector<16x9xf32>
    %56 = tpu.concatenate %54, %55 in 1 : vector<16x119xf32>, vector<16x9xf32> -> vector<16x128xf32>
    %c8 = arith.constant 8 : index
    %c0_18 = arith.constant 0 : index
    %c0_19 = arith.constant 0 : index
    %57 = vector.load %arg4[%c8, %c0_18, %c0_19] : memref<9x1x128xf32, #tpu.memory_space<vmem>>, vector<1x1x128xf32>
    %58 = vector.shape_cast %57 : vector<1x1x128xf32> to vector<1x128xf32>
    %59 = vector.broadcast %58 : vector<1x128xf32> to vector<16x128xf32>
    %60 = arith.mulf %56, %59 : vector<16x128xf32>
    %61 = tpu.concatenate %7, %14, %21, %28, %32, %39, %46, %53, %60 in 0 : vector<16x128xf32>, vector<16x128xf32>, vector<16x128xf32>, vector<16x128xf32>, vector<16x128xf32>, vector<16x128xf32>, vector<16x128xf32>, vector<16x128xf32>, vector<16x128xf32> -> vector<144x128xf32>
    %c0_20 = arith.constant 0 : index
    %c0_21 = arith.constant 0 : index
    %62 = vector.load %arg2[%c0_20, %c0_21] : memref<16x144xf32, #tpu.memory_space<vmem>>, vector<16x144xf32>
    %cst = arith.constant dense<0.000000e+00> : vector<16x128xf32>
    %63 = tpu.matmul %62, %61, %cst {dimension_numbers = #tpu.dot_dimension_numbers<[1], [0], [0], [1], [0, 0, 1, 1], [], []>} : vector<16x144xf32>, vector<144x128xf32>, vector<16x128xf32> -> vector<16x128xf32>
    %c0_22 = arith.constant 0 : index
    %c0_23 = arith.constant 0 : index
    %64 = vector.load %arg3[%c0_22, %c0_23] : memref<16x1xf32, #tpu.memory_space<vmem>>, vector<16x1xf32>
    %65 = vector.broadcast %64 : vector<16x1xf32> to vector<16x128xf32>
    %66 = arith.addf %63, %65 : vector<16x128xf32>
    %c0_24 = arith.constant 0 : index
    %c0_25 = arith.constant 0 : index
    %67 = vector.load %arg5[%c0_24, %c0_25] : memref<16x128xf32, #tpu.memory_space<vmem>>, vector<16x128xf32>
    tpu.vector_store %arg5[%c0_24, %c0_25], %66 {strides = array<i32>} : memref<16x128xf32, #tpu.memory_space<vmem>>, vector<16x128xf32>,
    return
  }
  func.func @transform_0(%arg0: i32) -> (i32, i32) {
    %c0_i32 = arith.constant 0 : i32
    %c0_i32_0 = arith.constant 0 : i32
    %c0_i32_1 = arith.constant 0 : i32
    return %c0_i32, %c0_i32_0 : i32, i32
  }
  func.func @transform_1(%arg0: i32) -> (i32, i32) {
    %c0_i32 = arith.constant 0 : i32
    %c0_i32_0 = arith.constant 0 : i32
    %c0_i32_1 = arith.constant 0 : i32
    return %c0_i32, %c0_i32_0 : i32, i32
  }
  func.func @transform_2(%arg0: i32) -> (i32, i32) {
    %c0_i32 = arith.constant 0 : i32
    %c0_i32_0 = arith.constant 0 : i32
    %c0_i32_1 = arith.constant 0 : i32
    return %c0_i32, %c0_i32_0 : i32, i32
  }
  func.func @transform_3(%arg0: i32) -> (i32, i32, i32) {
    %c0_i32 = arith.constant 0 : i32
    %c0_i32_0 = arith.constant 0 : i32
    %c0_i32_1 = arith.constant 0 : i32
    %c0_i32_2 = arith.constant 0 : i32
    return %c0_i32, %c0_i32_0, %c0_i32_1 : i32, i32, i32
  }
  func.func @transform_4(%arg0: i32) -> (i32, i32) {
    %c0_i32 = arith.constant 0 : i32
    %c0_i32_0 = arith.constant 0 : i32
    %c0_i32_1 = arith.constant 0 : i32
    return %c0_i32, %c0_i32_0 : i32, i32
  }
}

module attributes {stable_mosaic.version = 11 : i64} {
  func.func @_conv3x3_kernel(%arg0: i32, %arg1: memref<16x512xf32, #tpu.memory_space<vmem>>, %arg2: memref<8x144xf32, #tpu.memory_space<vmem>>, %arg3: memref<8x1xf32, #tpu.memory_space<vmem>>, %arg4: memref<9x1x512xf32, #tpu.memory_space<vmem>>, %arg5: memref<8x512xf32, #tpu.memory_space<vmem>>, %arg6: memref<16x512xf32, #tpu.memory_space<vmem>>, %arg7: memref<1x512xf32, #tpu.memory_space<vmem>>) attributes {dimension_semantics = [#tpu.dimension_semantics<arbitrary>], iteration_bounds = array<i64: 1>, scalar_prefetch = 0 : i64, scratch_operands = 0 : i64, tpu.core_type = #tpu.core_type<tc>, window_params = [{pipeline_mode = #tpu.pipeline_mode<synchronous>, transform_indices = @transform_0, window_bounds = array<i64: 16, 512>}, {pipeline_mode = #tpu.pipeline_mode<synchronous>, transform_indices = @transform_1, window_bounds = array<i64: 8, 144>}, {pipeline_mode = #tpu.pipeline_mode<synchronous>, transform_indices = @transform_2, window_bounds = array<i64: 8, 1>}, {pipeline_mode = #tpu.pipeline_mode<synchronous>, transform_indices = @transform_3, window_bounds = array<i64: 9, 1, 512>}, {pipeline_mode = #tpu.pipeline_mode<synchronous>, transform_indices = @transform_4, window_bounds = array<i64: 8, 512>}, {pipeline_mode = #tpu.pipeline_mode<synchronous>, transform_indices = @transform_5, window_bounds = array<i64: 16, 512>}, {pipeline_mode = #tpu.pipeline_mode<synchronous>, transform_indices = @transform_6, window_bounds = array<i64: 1, 512>}]} {
    %c0 = arith.constant 0 : index
    %c0_0 = arith.constant 0 : index
    %0 = vector.load %arg1[%c0, %c0_0] : memref<16x512xf32, #tpu.memory_space<vmem>>, vector<16x512xf32>
    %cst = arith.constant dense<0.000000e+00> : vector<512xf32>
    %1 = vector.multi_reduction <add>, %0, %cst [0] : vector<16x512xf32> to vector<512xf32>
    %2 = vector.shape_cast %1 : vector<512xf32> to vector<1x512xf32>
    %cst_1 = arith.constant 1.600000e+01 : f32
    %3 = vector.broadcast %cst_1 : f32 to vector<1x512xf32>
    %4 = arith.divf %2, %3 : vector<1x512xf32>
    %5 = vector.broadcast %4 : vector<1x512xf32> to vector<16x512xf32>
    %6 = arith.subf %0, %5 : vector<16x512xf32>
    %7 = arith.mulf %6, %6 : vector<16x512xf32>
    %cst_2 = arith.constant dense<0.000000e+00> : vector<512xf32>
    %8 = vector.multi_reduction <add>, %7, %cst_2 [0] : vector<16x512xf32> to vector<512xf32>
    %9 = vector.shape_cast %8 : vector<512xf32> to vector<1x512xf32>
    %cst_3 = arith.constant 0.0666666701 : f32
    %10 = vector.broadcast %cst_3 : f32 to vector<1x512xf32>
    %11 = arith.mulf %9, %10 : vector<1x512xf32>
    %cst_4 = arith.constant 9.99999974E-6 : f32
    %12 = vector.broadcast %cst_4 : f32 to vector<1x512xf32>
    %13 = arith.addf %11, %12 : vector<1x512xf32>
    %14 = math.rsqrt %13 : vector<1x512xf32>
    %15 = vector.broadcast %14 : vector<1x512xf32> to vector<16x512xf32>
    %16 = arith.mulf %6, %15 : vector<16x512xf32>
    %c0_5 = arith.constant 0 : index
    %c0_6 = arith.constant 0 : index
    %17 = vector.load %arg6[%c0_5, %c0_6] : memref<16x512xf32, #tpu.memory_space<vmem>>, vector<16x512xf32>
    tpu.vector_store %arg6[%c0_5, %c0_6], %16 {strides = array<i32>} : memref<16x512xf32, #tpu.memory_space<vmem>>, vector<16x512xf32>,
    %c0_7 = arith.constant 0 : index
    %c0_8 = arith.constant 0 : index
    %18 = vector.load %arg7[%c0_7, %c0_8] : memref<1x512xf32, #tpu.memory_space<vmem>>, vector<1x512xf32>
    tpu.vector_store %arg7[%c0_7, %c0_8], %14 {strides = array<i32>} : memref<1x512xf32, #tpu.memory_space<vmem>>, vector<1x512xf32>,
    %19 = vector.extract_strided_slice %16 {offsets = [0, 495], sizes = [16, 17], strides = [1, 1]} : vector<16x512xf32> to vector<16x17xf32>
    %20 = vector.extract_strided_slice %16 {offsets = [0, 0], sizes = [16, 495], strides = [1, 1]} : vector<16x512xf32> to vector<16x495xf32>
    %21 = tpu.concatenate %19, %20 in 1 : vector<16x17xf32>, vector<16x495xf32> -> vector<16x512xf32>
    %c0_9 = arith.constant 0 : index
    %c0_10 = arith.constant 0 : index
    %c0_11 = arith.constant 0 : index
    %22 = vector.load %arg4[%c0_9, %c0_10, %c0_11] : memref<9x1x512xf32, #tpu.memory_space<vmem>>, vector<1x1x512xf32>
    %23 = vector.shape_cast %22 : vector<1x1x512xf32> to vector<1x512xf32>
    %24 = vector.broadcast %23 : vector<1x512xf32> to vector<16x512xf32>
    %25 = arith.mulf %21, %24 : vector<16x512xf32>
    %26 = vector.extract_strided_slice %16 {offsets = [0, 496], sizes = [16, 16], strides = [1, 1]} : vector<16x512xf32> to vector<16x16xf32>
    %27 = vector.extract_strided_slice %16 {offsets = [0, 0], sizes = [16, 496], strides = [1, 1]} : vector<16x512xf32> to vector<16x496xf32>
    %28 = tpu.concatenate %26, %27 in 1 : vector<16x16xf32>, vector<16x496xf32> -> vector<16x512xf32>
    %c1 = arith.constant 1 : index
    %c0_12 = arith.constant 0 : index
    %c0_13 = arith.constant 0 : index
    %29 = vector.load %arg4[%c1, %c0_12, %c0_13] : memref<9x1x512xf32, #tpu.memory_space<vmem>>, vector<1x1x512xf32>
    %30 = vector.shape_cast %29 : vector<1x1x512xf32> to vector<1x512xf32>
    %31 = vector.broadcast %30 : vector<1x512xf32> to vector<16x512xf32>
    %32 = arith.mulf %28, %31 : vector<16x512xf32>
    %33 = vector.extract_strided_slice %16 {offsets = [0, 497], sizes = [16, 15], strides = [1, 1]} : vector<16x512xf32> to vector<16x15xf32>
    %34 = vector.extract_strided_slice %16 {offsets = [0, 0], sizes = [16, 497], strides = [1, 1]} : vector<16x512xf32> to vector<16x497xf32>
    %35 = tpu.concatenate %33, %34 in 1 : vector<16x15xf32>, vector<16x497xf32> -> vector<16x512xf32>
    %c2 = arith.constant 2 : index
    %c0_14 = arith.constant 0 : index
    %c0_15 = arith.constant 0 : index
    %36 = vector.load %arg4[%c2, %c0_14, %c0_15] : memref<9x1x512xf32, #tpu.memory_space<vmem>>, vector<1x1x512xf32>
    %37 = vector.shape_cast %36 : vector<1x1x512xf32> to vector<1x512xf32>
    %38 = vector.broadcast %37 : vector<1x512xf32> to vector<16x512xf32>
    %39 = arith.mulf %35, %38 : vector<16x512xf32>
    %40 = vector.extract_strided_slice %16 {offsets = [0, 511], sizes = [16, 1], strides = [1, 1]} : vector<16x512xf32> to vector<16x1xf32>
    %41 = vector.extract_strided_slice %16 {offsets = [0, 0], sizes = [16, 511], strides = [1, 1]} : vector<16x512xf32> to vector<16x511xf32>
    %42 = tpu.concatenate %40, %41 in 1 : vector<16x1xf32>, vector<16x511xf32> -> vector<16x512xf32>
    %c3 = arith.constant 3 : index
    %c0_16 = arith.constant 0 : index
    %c0_17 = arith.constant 0 : index
    %43 = vector.load %arg4[%c3, %c0_16, %c0_17] : memref<9x1x512xf32, #tpu.memory_space<vmem>>, vector<1x1x512xf32>
    %44 = vector.shape_cast %43 : vector<1x1x512xf32> to vector<1x512xf32>
    %45 = vector.broadcast %44 : vector<1x512xf32> to vector<16x512xf32>
    %46 = arith.mulf %42, %45 : vector<16x512xf32>
    %c4 = arith.constant 4 : index
    %c0_18 = arith.constant 0 : index
    %c0_19 = arith.constant 0 : index
    %47 = vector.load %arg4[%c4, %c0_18, %c0_19] : memref<9x1x512xf32, #tpu.memory_space<vmem>>, vector<1x1x512xf32>
    %48 = vector.shape_cast %47 : vector<1x1x512xf32> to vector<1x512xf32>
    %49 = vector.broadcast %48 : vector<1x512xf32> to vector<16x512xf32>
    %50 = arith.mulf %16, %49 : vector<16x512xf32>
    %51 = vector.extract_strided_slice %16 {offsets = [0, 1], sizes = [16, 511], strides = [1, 1]} : vector<16x512xf32> to vector<16x511xf32>
    %52 = vector.extract_strided_slice %16 {offsets = [0, 0], sizes = [16, 1], strides = [1, 1]} : vector<16x512xf32> to vector<16x1xf32>
    %53 = tpu.concatenate %51, %52 in 1 : vector<16x511xf32>, vector<16x1xf32> -> vector<16x512xf32>
    %c5 = arith.constant 5 : index
    %c0_20 = arith.constant 0 : index
    %c0_21 = arith.constant 0 : index
    %54 = vector.load %arg4[%c5, %c0_20, %c0_21] : memref<9x1x512xf32, #tpu.memory_space<vmem>>, vector<1x1x512xf32>
    %55 = vector.shape_cast %54 : vector<1x1x512xf32> to vector<1x512xf32>
    %56 = vector.broadcast %55 : vector<1x512xf32> to vector<16x512xf32>
    %57 = arith.mulf %53, %56 : vector<16x512xf32>
    %58 = vector.extract_strided_slice %16 {offsets = [0, 15], sizes = [16, 497], strides = [1, 1]} : vector<16x512xf32> to vector<16x497xf32>
    %59 = vector.extract_strided_slice %16 {offsets = [0, 0], sizes = [16, 15], strides = [1, 1]} : vector<16x512xf32> to vector<16x15xf32>
    %60 = tpu.concatenate %58, %59 in 1 : vector<16x497xf32>, vector<16x15xf32> -> vector<16x512xf32>
    %c6 = arith.constant 6 : index
    %c0_22 = arith.constant 0 : index
    %c0_23 = arith.constant 0 : index
    %61 = vector.load %arg4[%c6, %c0_22, %c0_23] : memref<9x1x512xf32, #tpu.memory_space<vmem>>, vector<1x1x512xf32>
    %62 = vector.shape_cast %61 : vector<1x1x512xf32> to vector<1x512xf32>
    %63 = vector.broadcast %62 : vector<1x512xf32> to vector<16x512xf32>
    %64 = arith.mulf %60, %63 : vector<16x512xf32>
    %65 = vector.extract_strided_slice %16 {offsets = [0, 16], sizes = [16, 496], strides = [1, 1]} : vector<16x512xf32> to vector<16x496xf32>
    %66 = vector.extract_strided_slice %16 {offsets = [0, 0], sizes = [16, 16], strides = [1, 1]} : vector<16x512xf32> to vector<16x16xf32>
    %67 = tpu.concatenate %65, %66 in 1 : vector<16x496xf32>, vector<16x16xf32> -> vector<16x512xf32>
    %c7 = arith.constant 7 : index
    %c0_24 = arith.constant 0 : index
    %c0_25 = arith.constant 0 : index
    %68 = vector.load %arg4[%c7, %c0_24, %c0_25] : memref<9x1x512xf32, #tpu.memory_space<vmem>>, vector<1x1x512xf32>
    %69 = vector.shape_cast %68 : vector<1x1x512xf32> to vector<1x512xf32>
    %70 = vector.broadcast %69 : vector<1x512xf32> to vector<16x512xf32>
    %71 = arith.mulf %67, %70 : vector<16x512xf32>
    %72 = vector.extract_strided_slice %16 {offsets = [0, 17], sizes = [16, 495], strides = [1, 1]} : vector<16x512xf32> to vector<16x495xf32>
    %73 = vector.extract_strided_slice %16 {offsets = [0, 0], sizes = [16, 17], strides = [1, 1]} : vector<16x512xf32> to vector<16x17xf32>
    %74 = tpu.concatenate %72, %73 in 1 : vector<16x495xf32>, vector<16x17xf32> -> vector<16x512xf32>
    %c8 = arith.constant 8 : index
    %c0_26 = arith.constant 0 : index
    %c0_27 = arith.constant 0 : index
    %75 = vector.load %arg4[%c8, %c0_26, %c0_27] : memref<9x1x512xf32, #tpu.memory_space<vmem>>, vector<1x1x512xf32>
    %76 = vector.shape_cast %75 : vector<1x1x512xf32> to vector<1x512xf32>
    %77 = vector.broadcast %76 : vector<1x512xf32> to vector<16x512xf32>
    %78 = arith.mulf %74, %77 : vector<16x512xf32>
    %79 = tpu.concatenate %25, %32, %39, %46, %50, %57, %64, %71, %78 in 0 : vector<16x512xf32>, vector<16x512xf32>, vector<16x512xf32>, vector<16x512xf32>, vector<16x512xf32>, vector<16x512xf32>, vector<16x512xf32>, vector<16x512xf32>, vector<16x512xf32> -> vector<144x512xf32>
    %c0_28 = arith.constant 0 : index
    %c0_29 = arith.constant 0 : index
    %80 = vector.load %arg2[%c0_28, %c0_29] : memref<8x144xf32, #tpu.memory_space<vmem>>, vector<8x144xf32>
    %cst_30 = arith.constant dense<0.000000e+00> : vector<8x512xf32>
    %81 = tpu.matmul %80, %79, %cst_30 {dimension_numbers = #tpu.dot_dimension_numbers<[1], [0], [0], [1], [0, 0, 1, 1], [], []>} : vector<8x144xf32>, vector<144x512xf32>, vector<8x512xf32> -> vector<8x512xf32>
    %c0_31 = arith.constant 0 : index
    %c0_32 = arith.constant 0 : index
    %82 = vector.load %arg3[%c0_31, %c0_32] : memref<8x1xf32, #tpu.memory_space<vmem>>, vector<8x1xf32>
    %83 = vector.broadcast %82 : vector<8x1xf32> to vector<8x512xf32>
    %84 = arith.addf %81, %83 : vector<8x512xf32>
    %c0_33 = arith.constant 0 : index
    %c0_34 = arith.constant 0 : index
    %85 = vector.load %arg5[%c0_33, %c0_34] : memref<8x512xf32, #tpu.memory_space<vmem>>, vector<8x512xf32>
    tpu.vector_store %arg5[%c0_33, %c0_34], %84 {strides = array<i32>} : memref<8x512xf32, #tpu.memory_space<vmem>>, vector<8x512xf32>,
    return
  }
  func.func @transform_0(%arg0: i32) -> (i32, i32) {
    %c0_i32 = arith.constant 0 : i32
    %c0_i32_0 = arith.constant 0 : i32
    %c0_i32_1 = arith.constant 0 : i32
    return %c0_i32, %c0_i32_0 : i32, i32
  }
  func.func @transform_1(%arg0: i32) -> (i32, i32) {
    %c0_i32 = arith.constant 0 : i32
    %c0_i32_0 = arith.constant 0 : i32
    %c0_i32_1 = arith.constant 0 : i32
    return %c0_i32, %c0_i32_0 : i32, i32
  }
  func.func @transform_2(%arg0: i32) -> (i32, i32) {
    %c0_i32 = arith.constant 0 : i32
    %c0_i32_0 = arith.constant 0 : i32
    %c0_i32_1 = arith.constant 0 : i32
    return %c0_i32, %c0_i32_0 : i32, i32
  }
  func.func @transform_3(%arg0: i32) -> (i32, i32, i32) {
    %c0_i32 = arith.constant 0 : i32
    %c0_i32_0 = arith.constant 0 : i32
    %c0_i32_1 = arith.constant 0 : i32
    %c0_i32_2 = arith.constant 0 : i32
    return %c0_i32, %c0_i32_0, %c0_i32_1 : i32, i32, i32
  }
  func.func @transform_4(%arg0: i32) -> (i32, i32) {
    %c0_i32 = arith.constant 0 : i32
    %c0_i32_0 = arith.constant 0 : i32
    %c0_i32_1 = arith.constant 0 : i32
    return %c0_i32, %c0_i32_0 : i32, i32
  }
  func.func @transform_5(%arg0: i32) -> (i32, i32) {
    %c0_i32 = arith.constant 0 : i32
    %c0_i32_0 = arith.constant 0 : i32
    %c0_i32_1 = arith.constant 0 : i32
    return %c0_i32, %c0_i32_0 : i32, i32
  }
  func.func @transform_6(%arg0: i32) -> (i32, i32) {
    %c0_i32 = arith.constant 0 : i32
    %c0_i32_0 = arith.constant 0 : i32
    %c0_i32_1 = arith.constant 0 : i32
    return %c0_i32, %c0_i32_0 : i32, i32
  }
}

module attributes {stable_mosaic.version = 11 : i64} {
  func.func @_conv3x3_kernel(%arg0: i32, %arg1: memref<8x512xf32, #tpu.memory_space<vmem>>, %arg2: memref<4x72xf32, #tpu.memory_space<vmem>>, %arg3: memref<4x1xf32, #tpu.memory_space<vmem>>, %arg4: memref<9x1x512xf32, #tpu.memory_space<vmem>>, %arg5: memref<4x512xf32, #tpu.memory_space<vmem>>) attributes {dimension_semantics = [#tpu.dimension_semantics<arbitrary>], iteration_bounds = array<i64: 1>, scalar_prefetch = 0 : i64, scratch_operands = 0 : i64, tpu.core_type = #tpu.core_type<tc>, window_params = [{pipeline_mode = #tpu.pipeline_mode<synchronous>, transform_indices = @transform_0, window_bounds = array<i64: 8, 512>}, {pipeline_mode = #tpu.pipeline_mode<synchronous>, transform_indices = @transform_1, window_bounds = array<i64: 4, 72>}, {pipeline_mode = #tpu.pipeline_mode<synchronous>, transform_indices = @transform_2, window_bounds = array<i64: 4, 1>}, {pipeline_mode = #tpu.pipeline_mode<synchronous>, transform_indices = @transform_3, window_bounds = array<i64: 9, 1, 512>}, {pipeline_mode = #tpu.pipeline_mode<synchronous>, transform_indices = @transform_4, window_bounds = array<i64: 4, 512>}]} {
    %c0 = arith.constant 0 : index
    %c0_0 = arith.constant 0 : index
    %0 = vector.load %arg1[%c0, %c0_0] : memref<8x512xf32, #tpu.memory_space<vmem>>, vector<8x512xf32>
    %1 = vector.extract_strided_slice %0 {offsets = [0, 495], sizes = [8, 17], strides = [1, 1]} : vector<8x512xf32> to vector<8x17xf32>
    %2 = vector.extract_strided_slice %0 {offsets = [0, 0], sizes = [8, 495], strides = [1, 1]} : vector<8x512xf32> to vector<8x495xf32>
    %3 = tpu.concatenate %1, %2 in 1 : vector<8x17xf32>, vector<8x495xf32> -> vector<8x512xf32>
    %c0_1 = arith.constant 0 : index
    %c0_2 = arith.constant 0 : index
    %c0_3 = arith.constant 0 : index
    %4 = vector.load %arg4[%c0_1, %c0_2, %c0_3] : memref<9x1x512xf32, #tpu.memory_space<vmem>>, vector<1x1x512xf32>
    %5 = vector.shape_cast %4 : vector<1x1x512xf32> to vector<1x512xf32>
    %6 = vector.broadcast %5 : vector<1x512xf32> to vector<8x512xf32>
    %7 = arith.mulf %3, %6 : vector<8x512xf32>
    %8 = vector.extract_strided_slice %0 {offsets = [0, 496], sizes = [8, 16], strides = [1, 1]} : vector<8x512xf32> to vector<8x16xf32>
    %9 = vector.extract_strided_slice %0 {offsets = [0, 0], sizes = [8, 496], strides = [1, 1]} : vector<8x512xf32> to vector<8x496xf32>
    %10 = tpu.concatenate %8, %9 in 1 : vector<8x16xf32>, vector<8x496xf32> -> vector<8x512xf32>
    %c1 = arith.constant 1 : index
    %c0_4 = arith.constant 0 : index
    %c0_5 = arith.constant 0 : index
    %11 = vector.load %arg4[%c1, %c0_4, %c0_5] : memref<9x1x512xf32, #tpu.memory_space<vmem>>, vector<1x1x512xf32>
    %12 = vector.shape_cast %11 : vector<1x1x512xf32> to vector<1x512xf32>
    %13 = vector.broadcast %12 : vector<1x512xf32> to vector<8x512xf32>
    %14 = arith.mulf %10, %13 : vector<8x512xf32>
    %15 = vector.extract_strided_slice %0 {offsets = [0, 497], sizes = [8, 15], strides = [1, 1]} : vector<8x512xf32> to vector<8x15xf32>
    %16 = vector.extract_strided_slice %0 {offsets = [0, 0], sizes = [8, 497], strides = [1, 1]} : vector<8x512xf32> to vector<8x497xf32>
    %17 = tpu.concatenate %15, %16 in 1 : vector<8x15xf32>, vector<8x497xf32> -> vector<8x512xf32>
    %c2 = arith.constant 2 : index
    %c0_6 = arith.constant 0 : index
    %c0_7 = arith.constant 0 : index
    %18 = vector.load %arg4[%c2, %c0_6, %c0_7] : memref<9x1x512xf32, #tpu.memory_space<vmem>>, vector<1x1x512xf32>
    %19 = vector.shape_cast %18 : vector<1x1x512xf32> to vector<1x512xf32>
    %20 = vector.broadcast %19 : vector<1x512xf32> to vector<8x512xf32>
    %21 = arith.mulf %17, %20 : vector<8x512xf32>
    %22 = vector.extract_strided_slice %0 {offsets = [0, 511], sizes = [8, 1], strides = [1, 1]} : vector<8x512xf32> to vector<8x1xf32>
    %23 = vector.extract_strided_slice %0 {offsets = [0, 0], sizes = [8, 511], strides = [1, 1]} : vector<8x512xf32> to vector<8x511xf32>
    %24 = tpu.concatenate %22, %23 in 1 : vector<8x1xf32>, vector<8x511xf32> -> vector<8x512xf32>
    %c3 = arith.constant 3 : index
    %c0_8 = arith.constant 0 : index
    %c0_9 = arith.constant 0 : index
    %25 = vector.load %arg4[%c3, %c0_8, %c0_9] : memref<9x1x512xf32, #tpu.memory_space<vmem>>, vector<1x1x512xf32>
    %26 = vector.shape_cast %25 : vector<1x1x512xf32> to vector<1x512xf32>
    %27 = vector.broadcast %26 : vector<1x512xf32> to vector<8x512xf32>
    %28 = arith.mulf %24, %27 : vector<8x512xf32>
    %c4 = arith.constant 4 : index
    %c0_10 = arith.constant 0 : index
    %c0_11 = arith.constant 0 : index
    %29 = vector.load %arg4[%c4, %c0_10, %c0_11] : memref<9x1x512xf32, #tpu.memory_space<vmem>>, vector<1x1x512xf32>
    %30 = vector.shape_cast %29 : vector<1x1x512xf32> to vector<1x512xf32>
    %31 = vector.broadcast %30 : vector<1x512xf32> to vector<8x512xf32>
    %32 = arith.mulf %0, %31 : vector<8x512xf32>
    %33 = vector.extract_strided_slice %0 {offsets = [0, 1], sizes = [8, 511], strides = [1, 1]} : vector<8x512xf32> to vector<8x511xf32>
    %34 = vector.extract_strided_slice %0 {offsets = [0, 0], sizes = [8, 1], strides = [1, 1]} : vector<8x512xf32> to vector<8x1xf32>
    %35 = tpu.concatenate %33, %34 in 1 : vector<8x511xf32>, vector<8x1xf32> -> vector<8x512xf32>
    %c5 = arith.constant 5 : index
    %c0_12 = arith.constant 0 : index
    %c0_13 = arith.constant 0 : index
    %36 = vector.load %arg4[%c5, %c0_12, %c0_13] : memref<9x1x512xf32, #tpu.memory_space<vmem>>, vector<1x1x512xf32>
    %37 = vector.shape_cast %36 : vector<1x1x512xf32> to vector<1x512xf32>
    %38 = vector.broadcast %37 : vector<1x512xf32> to vector<8x512xf32>
    %39 = arith.mulf %35, %38 : vector<8x512xf32>
    %40 = vector.extract_strided_slice %0 {offsets = [0, 15], sizes = [8, 497], strides = [1, 1]} : vector<8x512xf32> to vector<8x497xf32>
    %41 = vector.extract_strided_slice %0 {offsets = [0, 0], sizes = [8, 15], strides = [1, 1]} : vector<8x512xf32> to vector<8x15xf32>
    %42 = tpu.concatenate %40, %41 in 1 : vector<8x497xf32>, vector<8x15xf32> -> vector<8x512xf32>
    %c6 = arith.constant 6 : index
    %c0_14 = arith.constant 0 : index
    %c0_15 = arith.constant 0 : index
    %43 = vector.load %arg4[%c6, %c0_14, %c0_15] : memref<9x1x512xf32, #tpu.memory_space<vmem>>, vector<1x1x512xf32>
    %44 = vector.shape_cast %43 : vector<1x1x512xf32> to vector<1x512xf32>
    %45 = vector.broadcast %44 : vector<1x512xf32> to vector<8x512xf32>
    %46 = arith.mulf %42, %45 : vector<8x512xf32>
    %47 = vector.extract_strided_slice %0 {offsets = [0, 16], sizes = [8, 496], strides = [1, 1]} : vector<8x512xf32> to vector<8x496xf32>
    %48 = vector.extract_strided_slice %0 {offsets = [0, 0], sizes = [8, 16], strides = [1, 1]} : vector<8x512xf32> to vector<8x16xf32>
    %49 = tpu.concatenate %47, %48 in 1 : vector<8x496xf32>, vector<8x16xf32> -> vector<8x512xf32>
    %c7 = arith.constant 7 : index
    %c0_16 = arith.constant 0 : index
    %c0_17 = arith.constant 0 : index
    %50 = vector.load %arg4[%c7, %c0_16, %c0_17] : memref<9x1x512xf32, #tpu.memory_space<vmem>>, vector<1x1x512xf32>
    %51 = vector.shape_cast %50 : vector<1x1x512xf32> to vector<1x512xf32>
    %52 = vector.broadcast %51 : vector<1x512xf32> to vector<8x512xf32>
    %53 = arith.mulf %49, %52 : vector<8x512xf32>
    %54 = vector.extract_strided_slice %0 {offsets = [0, 17], sizes = [8, 495], strides = [1, 1]} : vector<8x512xf32> to vector<8x495xf32>
    %55 = vector.extract_strided_slice %0 {offsets = [0, 0], sizes = [8, 17], strides = [1, 1]} : vector<8x512xf32> to vector<8x17xf32>
    %56 = tpu.concatenate %54, %55 in 1 : vector<8x495xf32>, vector<8x17xf32> -> vector<8x512xf32>
    %c8 = arith.constant 8 : index
    %c0_18 = arith.constant 0 : index
    %c0_19 = arith.constant 0 : index
    %57 = vector.load %arg4[%c8, %c0_18, %c0_19] : memref<9x1x512xf32, #tpu.memory_space<vmem>>, vector<1x1x512xf32>
    %58 = vector.shape_cast %57 : vector<1x1x512xf32> to vector<1x512xf32>
    %59 = vector.broadcast %58 : vector<1x512xf32> to vector<8x512xf32>
    %60 = arith.mulf %56, %59 : vector<8x512xf32>
    %61 = tpu.concatenate %7, %14, %21, %28, %32, %39, %46, %53, %60 in 0 : vector<8x512xf32>, vector<8x512xf32>, vector<8x512xf32>, vector<8x512xf32>, vector<8x512xf32>, vector<8x512xf32>, vector<8x512xf32>, vector<8x512xf32>, vector<8x512xf32> -> vector<72x512xf32>
    %c0_20 = arith.constant 0 : index
    %c0_21 = arith.constant 0 : index
    %62 = vector.load %arg2[%c0_20, %c0_21] : memref<4x72xf32, #tpu.memory_space<vmem>>, vector<4x72xf32>
    %cst = arith.constant dense<0.000000e+00> : vector<4x512xf32>
    %63 = tpu.matmul %62, %61, %cst {dimension_numbers = #tpu.dot_dimension_numbers<[1], [0], [0], [1], [0, 0, 1, 1], [], []>} : vector<4x72xf32>, vector<72x512xf32>, vector<4x512xf32> -> vector<4x512xf32>
    %c0_22 = arith.constant 0 : index
    %c0_23 = arith.constant 0 : index
    %64 = vector.load %arg3[%c0_22, %c0_23] : memref<4x1xf32, #tpu.memory_space<vmem>>, vector<4x1xf32>
    %65 = vector.broadcast %64 : vector<4x1xf32> to vector<4x512xf32>
    %66 = arith.addf %63, %65 : vector<4x512xf32>
    %c0_24 = arith.constant 0 : index
    %c0_25 = arith.constant 0 : index
    %67 = vector.load %arg5[%c0_24, %c0_25] : memref<4x512xf32, #tpu.memory_space<vmem>>, vector<4x512xf32>
    tpu.vector_store %arg5[%c0_24, %c0_25], %66 {strides = array<i32>} : memref<4x512xf32, #tpu.memory_space<vmem>>, vector<4x512xf32>,
    return
  }
  func.func @transform_0(%arg0: i32) -> (i32, i32) {
    %c0_i32 = arith.constant 0 : i32
    %c0_i32_0 = arith.constant 0 : i32
    %c0_i32_1 = arith.constant 0 : i32
    return %c0_i32, %c0_i32_0 : i32, i32
  }
  func.func @transform_1(%arg0: i32) -> (i32, i32) {
    %c0_i32 = arith.constant 0 : i32
    %c0_i32_0 = arith.constant 0 : i32
    %c0_i32_1 = arith.constant 0 : i32
    return %c0_i32, %c0_i32_0 : i32, i32
  }
  func.func @transform_2(%arg0: i32) -> (i32, i32) {
    %c0_i32 = arith.constant 0 : i32
    %c0_i32_0 = arith.constant 0 : i32
    %c0_i32_1 = arith.constant 0 : i32
    return %c0_i32, %c0_i32_0 : i32, i32
  }
  func.func @transform_3(%arg0: i32) -> (i32, i32, i32) {
    %c0_i32 = arith.constant 0 : i32
    %c0_i32_0 = arith.constant 0 : i32
    %c0_i32_1 = arith.constant 0 : i32
    %c0_i32_2 = arith.constant 0 : i32
    return %c0_i32, %c0_i32_0, %c0_i32_1 : i32, i32, i32
  }
  func.func @transform_4(%arg0: i32) -> (i32, i32) {
    %c0_i32 = arith.constant 0 : i32
    %c0_i32_0 = arith.constant 0 : i32
    %c0_i32_1 = arith.constant 0 : i32
    return %c0_i32, %c0_i32_0 : i32, i32
  }
}

module attributes {stable_mosaic.version = 11 : i64} {
  func.func @_conv3x3_kernel(%arg0: i32, %arg1: memref<4x512xf32, #tpu.memory_space<vmem>>, %arg2: memref<8x36xf32, #tpu.memory_space<vmem>>, %arg3: memref<8x1xf32, #tpu.memory_space<vmem>>, %arg4: memref<9x1x512xf32, #tpu.memory_space<vmem>>, %arg5: memref<8x512xf32, #tpu.memory_space<vmem>>) attributes {dimension_semantics = [#tpu.dimension_semantics<arbitrary>], iteration_bounds = array<i64: 1>, scalar_prefetch = 0 : i64, scratch_operands = 0 : i64, tpu.core_type = #tpu.core_type<tc>, window_params = [{pipeline_mode = #tpu.pipeline_mode<synchronous>, transform_indices = @transform_0, window_bounds = array<i64: 4, 512>}, {pipeline_mode = #tpu.pipeline_mode<synchronous>, transform_indices = @transform_1, window_bounds = array<i64: 8, 36>}, {pipeline_mode = #tpu.pipeline_mode<synchronous>, transform_indices = @transform_2, window_bounds = array<i64: 8, 1>}, {pipeline_mode = #tpu.pipeline_mode<synchronous>, transform_indices = @transform_3, window_bounds = array<i64: 9, 1, 512>}, {pipeline_mode = #tpu.pipeline_mode<synchronous>, transform_indices = @transform_4, window_bounds = array<i64: 8, 512>}]} {
    %c0 = arith.constant 0 : index
    %c0_0 = arith.constant 0 : index
    %0 = vector.load %arg1[%c0, %c0_0] : memref<4x512xf32, #tpu.memory_space<vmem>>, vector<4x512xf32>
    %1 = vector.extract_strided_slice %0 {offsets = [0, 495], sizes = [4, 17], strides = [1, 1]} : vector<4x512xf32> to vector<4x17xf32>
    %2 = vector.extract_strided_slice %0 {offsets = [0, 0], sizes = [4, 495], strides = [1, 1]} : vector<4x512xf32> to vector<4x495xf32>
    %3 = tpu.concatenate %1, %2 in 1 : vector<4x17xf32>, vector<4x495xf32> -> vector<4x512xf32>
    %c0_1 = arith.constant 0 : index
    %c0_2 = arith.constant 0 : index
    %c0_3 = arith.constant 0 : index
    %4 = vector.load %arg4[%c0_1, %c0_2, %c0_3] : memref<9x1x512xf32, #tpu.memory_space<vmem>>, vector<1x1x512xf32>
    %5 = vector.shape_cast %4 : vector<1x1x512xf32> to vector<1x512xf32>
    %6 = vector.broadcast %5 : vector<1x512xf32> to vector<4x512xf32>
    %7 = arith.mulf %3, %6 : vector<4x512xf32>
    %8 = vector.extract_strided_slice %0 {offsets = [0, 496], sizes = [4, 16], strides = [1, 1]} : vector<4x512xf32> to vector<4x16xf32>
    %9 = vector.extract_strided_slice %0 {offsets = [0, 0], sizes = [4, 496], strides = [1, 1]} : vector<4x512xf32> to vector<4x496xf32>
    %10 = tpu.concatenate %8, %9 in 1 : vector<4x16xf32>, vector<4x496xf32> -> vector<4x512xf32>
    %c1 = arith.constant 1 : index
    %c0_4 = arith.constant 0 : index
    %c0_5 = arith.constant 0 : index
    %11 = vector.load %arg4[%c1, %c0_4, %c0_5] : memref<9x1x512xf32, #tpu.memory_space<vmem>>, vector<1x1x512xf32>
    %12 = vector.shape_cast %11 : vector<1x1x512xf32> to vector<1x512xf32>
    %13 = vector.broadcast %12 : vector<1x512xf32> to vector<4x512xf32>
    %14 = arith.mulf %10, %13 : vector<4x512xf32>
    %15 = vector.extract_strided_slice %0 {offsets = [0, 497], sizes = [4, 15], strides = [1, 1]} : vector<4x512xf32> to vector<4x15xf32>
    %16 = vector.extract_strided_slice %0 {offsets = [0, 0], sizes = [4, 497], strides = [1, 1]} : vector<4x512xf32> to vector<4x497xf32>
    %17 = tpu.concatenate %15, %16 in 1 : vector<4x15xf32>, vector<4x497xf32> -> vector<4x512xf32>
    %c2 = arith.constant 2 : index
    %c0_6 = arith.constant 0 : index
    %c0_7 = arith.constant 0 : index
    %18 = vector.load %arg4[%c2, %c0_6, %c0_7] : memref<9x1x512xf32, #tpu.memory_space<vmem>>, vector<1x1x512xf32>
    %19 = vector.shape_cast %18 : vector<1x1x512xf32> to vector<1x512xf32>
    %20 = vector.broadcast %19 : vector<1x512xf32> to vector<4x512xf32>
    %21 = arith.mulf %17, %20 : vector<4x512xf32>
    %22 = vector.extract_strided_slice %0 {offsets = [0, 511], sizes = [4, 1], strides = [1, 1]} : vector<4x512xf32> to vector<4x1xf32>
    %23 = vector.extract_strided_slice %0 {offsets = [0, 0], sizes = [4, 511], strides = [1, 1]} : vector<4x512xf32> to vector<4x511xf32>
    %24 = tpu.concatenate %22, %23 in 1 : vector<4x1xf32>, vector<4x511xf32> -> vector<4x512xf32>
    %c3 = arith.constant 3 : index
    %c0_8 = arith.constant 0 : index
    %c0_9 = arith.constant 0 : index
    %25 = vector.load %arg4[%c3, %c0_8, %c0_9] : memref<9x1x512xf32, #tpu.memory_space<vmem>>, vector<1x1x512xf32>
    %26 = vector.shape_cast %25 : vector<1x1x512xf32> to vector<1x512xf32>
    %27 = vector.broadcast %26 : vector<1x512xf32> to vector<4x512xf32>
    %28 = arith.mulf %24, %27 : vector<4x512xf32>
    %c4 = arith.constant 4 : index
    %c0_10 = arith.constant 0 : index
    %c0_11 = arith.constant 0 : index
    %29 = vector.load %arg4[%c4, %c0_10, %c0_11] : memref<9x1x512xf32, #tpu.memory_space<vmem>>, vector<1x1x512xf32>
    %30 = vector.shape_cast %29 : vector<1x1x512xf32> to vector<1x512xf32>
    %31 = vector.broadcast %30 : vector<1x512xf32> to vector<4x512xf32>
    %32 = arith.mulf %0, %31 : vector<4x512xf32>
    %33 = vector.extract_strided_slice %0 {offsets = [0, 1], sizes = [4, 511], strides = [1, 1]} : vector<4x512xf32> to vector<4x511xf32>
    %34 = vector.extract_strided_slice %0 {offsets = [0, 0], sizes = [4, 1], strides = [1, 1]} : vector<4x512xf32> to vector<4x1xf32>
    %35 = tpu.concatenate %33, %34 in 1 : vector<4x511xf32>, vector<4x1xf32> -> vector<4x512xf32>
    %c5 = arith.constant 5 : index
    %c0_12 = arith.constant 0 : index
    %c0_13 = arith.constant 0 : index
    %36 = vector.load %arg4[%c5, %c0_12, %c0_13] : memref<9x1x512xf32, #tpu.memory_space<vmem>>, vector<1x1x512xf32>
    %37 = vector.shape_cast %36 : vector<1x1x512xf32> to vector<1x512xf32>
    %38 = vector.broadcast %37 : vector<1x512xf32> to vector<4x512xf32>
    %39 = arith.mulf %35, %38 : vector<4x512xf32>
    %40 = vector.extract_strided_slice %0 {offsets = [0, 15], sizes = [4, 497], strides = [1, 1]} : vector<4x512xf32> to vector<4x497xf32>
    %41 = vector.extract_strided_slice %0 {offsets = [0, 0], sizes = [4, 15], strides = [1, 1]} : vector<4x512xf32> to vector<4x15xf32>
    %42 = tpu.concatenate %40, %41 in 1 : vector<4x497xf32>, vector<4x15xf32> -> vector<4x512xf32>
    %c6 = arith.constant 6 : index
    %c0_14 = arith.constant 0 : index
    %c0_15 = arith.constant 0 : index
    %43 = vector.load %arg4[%c6, %c0_14, %c0_15] : memref<9x1x512xf32, #tpu.memory_space<vmem>>, vector<1x1x512xf32>
    %44 = vector.shape_cast %43 : vector<1x1x512xf32> to vector<1x512xf32>
    %45 = vector.broadcast %44 : vector<1x512xf32> to vector<4x512xf32>
    %46 = arith.mulf %42, %45 : vector<4x512xf32>
    %47 = vector.extract_strided_slice %0 {offsets = [0, 16], sizes = [4, 496], strides = [1, 1]} : vector<4x512xf32> to vector<4x496xf32>
    %48 = vector.extract_strided_slice %0 {offsets = [0, 0], sizes = [4, 16], strides = [1, 1]} : vector<4x512xf32> to vector<4x16xf32>
    %49 = tpu.concatenate %47, %48 in 1 : vector<4x496xf32>, vector<4x16xf32> -> vector<4x512xf32>
    %c7 = arith.constant 7 : index
    %c0_16 = arith.constant 0 : index
    %c0_17 = arith.constant 0 : index
    %50 = vector.load %arg4[%c7, %c0_16, %c0_17] : memref<9x1x512xf32, #tpu.memory_space<vmem>>, vector<1x1x512xf32>
    %51 = vector.shape_cast %50 : vector<1x1x512xf32> to vector<1x512xf32>
    %52 = vector.broadcast %51 : vector<1x512xf32> to vector<4x512xf32>
    %53 = arith.mulf %49, %52 : vector<4x512xf32>
    %54 = vector.extract_strided_slice %0 {offsets = [0, 17], sizes = [4, 495], strides = [1, 1]} : vector<4x512xf32> to vector<4x495xf32>
    %55 = vector.extract_strided_slice %0 {offsets = [0, 0], sizes = [4, 17], strides = [1, 1]} : vector<4x512xf32> to vector<4x17xf32>
    %56 = tpu.concatenate %54, %55 in 1 : vector<4x495xf32>, vector<4x17xf32> -> vector<4x512xf32>
    %c8 = arith.constant 8 : index
    %c0_18 = arith.constant 0 : index
    %c0_19 = arith.constant 0 : index
    %57 = vector.load %arg4[%c8, %c0_18, %c0_19] : memref<9x1x512xf32, #tpu.memory_space<vmem>>, vector<1x1x512xf32>
    %58 = vector.shape_cast %57 : vector<1x1x512xf32> to vector<1x512xf32>
    %59 = vector.broadcast %58 : vector<1x512xf32> to vector<4x512xf32>
    %60 = arith.mulf %56, %59 : vector<4x512xf32>
    %61 = tpu.concatenate %7, %14, %21, %28, %32, %39, %46, %53, %60 in 0 : vector<4x512xf32>, vector<4x512xf32>, vector<4x512xf32>, vector<4x512xf32>, vector<4x512xf32>, vector<4x512xf32>, vector<4x512xf32>, vector<4x512xf32>, vector<4x512xf32> -> vector<36x512xf32>
    %c0_20 = arith.constant 0 : index
    %c0_21 = arith.constant 0 : index
    %62 = vector.load %arg2[%c0_20, %c0_21] : memref<8x36xf32, #tpu.memory_space<vmem>>, vector<8x36xf32>
    %cst = arith.constant dense<0.000000e+00> : vector<8x512xf32>
    %63 = tpu.matmul %62, %61, %cst {dimension_numbers = #tpu.dot_dimension_numbers<[1], [0], [0], [1], [0, 0, 1, 1], [], []>} : vector<8x36xf32>, vector<36x512xf32>, vector<8x512xf32> -> vector<8x512xf32>
    %c0_22 = arith.constant 0 : index
    %c0_23 = arith.constant 0 : index
    %64 = vector.load %arg3[%c0_22, %c0_23] : memref<8x1xf32, #tpu.memory_space<vmem>>, vector<8x1xf32>
    %65 = vector.broadcast %64 : vector<8x1xf32> to vector<8x512xf32>
    %66 = arith.addf %63, %65 : vector<8x512xf32>
    %c0_24 = arith.constant 0 : index
    %c0_25 = arith.constant 0 : index
    %67 = vector.load %arg5[%c0_24, %c0_25] : memref<8x512xf32, #tpu.memory_space<vmem>>, vector<8x512xf32>
    tpu.vector_store %arg5[%c0_24, %c0_25], %66 {strides = array<i32>} : memref<8x512xf32, #tpu.memory_space<vmem>>, vector<8x512xf32>,
    return
  }
  func.func @transform_0(%arg0: i32) -> (i32, i32) {
    %c0_i32 = arith.constant 0 : i32
    %c0_i32_0 = arith.constant 0 : i32
    %c0_i32_1 = arith.constant 0 : i32
    return %c0_i32, %c0_i32_0 : i32, i32
  }
  func.func @transform_1(%arg0: i32) -> (i32, i32) {
    %c0_i32 = arith.constant 0 : i32
    %c0_i32_0 = arith.constant 0 : i32
    %c0_i32_1 = arith.constant 0 : i32
    return %c0_i32, %c0_i32_0 : i32, i32
  }
  func.func @transform_2(%arg0: i32) -> (i32, i32) {
    %c0_i32 = arith.constant 0 : i32
    %c0_i32_0 = arith.constant 0 : i32
    %c0_i32_1 = arith.constant 0 : i32
    return %c0_i32, %c0_i32_0 : i32, i32
  }
  func.func @transform_3(%arg0: i32) -> (i32, i32, i32) {
    %c0_i32 = arith.constant 0 : i32
    %c0_i32_0 = arith.constant 0 : i32
    %c0_i32_1 = arith.constant 0 : i32
    %c0_i32_2 = arith.constant 0 : i32
    return %c0_i32, %c0_i32_0, %c0_i32_1 : i32, i32, i32
  }
  func.func @transform_4(%arg0: i32) -> (i32, i32) {
    %c0_i32 = arith.constant 0 : i32
    %c0_i32_0 = arith.constant 0 : i32
    %c0_i32_1 = arith.constant 0 : i32
    return %c0_i32, %c0_i32_0 : i32, i32
  }
}

module attributes {stable_mosaic.version = 11 : i64} {
  func.func @_conv3x3_kernel(%arg0: i32, %arg1: memref<8x512xf32, #tpu.memory_space<vmem>>, %arg2: memref<8x72xf32, #tpu.memory_space<vmem>>, %arg3: memref<8x1xf32, #tpu.memory_space<vmem>>, %arg4: memref<9x1x512xf32, #tpu.memory_space<vmem>>, %arg5: memref<8x512xf32, #tpu.memory_space<vmem>>) attributes {dimension_semantics = [#tpu.dimension_semantics<arbitrary>], iteration_bounds = array<i64: 1>, scalar_prefetch = 0 : i64, scratch_operands = 0 : i64, tpu.core_type = #tpu.core_type<tc>, window_params = [{pipeline_mode = #tpu.pipeline_mode<synchronous>, transform_indices = @transform_0, window_bounds = array<i64: 8, 512>}, {pipeline_mode = #tpu.pipeline_mode<synchronous>, transform_indices = @transform_1, window_bounds = array<i64: 8, 72>}, {pipeline_mode = #tpu.pipeline_mode<synchronous>, transform_indices = @transform_2, window_bounds = array<i64: 8, 1>}, {pipeline_mode = #tpu.pipeline_mode<synchronous>, transform_indices = @transform_3, window_bounds = array<i64: 9, 1, 512>}, {pipeline_mode = #tpu.pipeline_mode<synchronous>, transform_indices = @transform_4, window_bounds = array<i64: 8, 512>}]} {
    %c0 = arith.constant 0 : index
    %c0_0 = arith.constant 0 : index
    %0 = vector.load %arg1[%c0, %c0_0] : memref<8x512xf32, #tpu.memory_space<vmem>>, vector<8x512xf32>
    %1 = vector.extract_strided_slice %0 {offsets = [0, 495], sizes = [8, 17], strides = [1, 1]} : vector<8x512xf32> to vector<8x17xf32>
    %2 = vector.extract_strided_slice %0 {offsets = [0, 0], sizes = [8, 495], strides = [1, 1]} : vector<8x512xf32> to vector<8x495xf32>
    %3 = tpu.concatenate %1, %2 in 1 : vector<8x17xf32>, vector<8x495xf32> -> vector<8x512xf32>
    %c0_1 = arith.constant 0 : index
    %c0_2 = arith.constant 0 : index
    %c0_3 = arith.constant 0 : index
    %4 = vector.load %arg4[%c0_1, %c0_2, %c0_3] : memref<9x1x512xf32, #tpu.memory_space<vmem>>, vector<1x1x512xf32>
    %5 = vector.shape_cast %4 : vector<1x1x512xf32> to vector<1x512xf32>
    %6 = vector.broadcast %5 : vector<1x512xf32> to vector<8x512xf32>
    %7 = arith.mulf %3, %6 : vector<8x512xf32>
    %8 = vector.extract_strided_slice %0 {offsets = [0, 496], sizes = [8, 16], strides = [1, 1]} : vector<8x512xf32> to vector<8x16xf32>
    %9 = vector.extract_strided_slice %0 {offsets = [0, 0], sizes = [8, 496], strides = [1, 1]} : vector<8x512xf32> to vector<8x496xf32>
    %10 = tpu.concatenate %8, %9 in 1 : vector<8x16xf32>, vector<8x496xf32> -> vector<8x512xf32>
    %c1 = arith.constant 1 : index
    %c0_4 = arith.constant 0 : index
    %c0_5 = arith.constant 0 : index
    %11 = vector.load %arg4[%c1, %c0_4, %c0_5] : memref<9x1x512xf32, #tpu.memory_space<vmem>>, vector<1x1x512xf32>
    %12 = vector.shape_cast %11 : vector<1x1x512xf32> to vector<1x512xf32>
    %13 = vector.broadcast %12 : vector<1x512xf32> to vector<8x512xf32>
    %14 = arith.mulf %10, %13 : vector<8x512xf32>
    %15 = vector.extract_strided_slice %0 {offsets = [0, 497], sizes = [8, 15], strides = [1, 1]} : vector<8x512xf32> to vector<8x15xf32>
    %16 = vector.extract_strided_slice %0 {offsets = [0, 0], sizes = [8, 497], strides = [1, 1]} : vector<8x512xf32> to vector<8x497xf32>
    %17 = tpu.concatenate %15, %16 in 1 : vector<8x15xf32>, vector<8x497xf32> -> vector<8x512xf32>
    %c2 = arith.constant 2 : index
    %c0_6 = arith.constant 0 : index
    %c0_7 = arith.constant 0 : index
    %18 = vector.load %arg4[%c2, %c0_6, %c0_7] : memref<9x1x512xf32, #tpu.memory_space<vmem>>, vector<1x1x512xf32>
    %19 = vector.shape_cast %18 : vector<1x1x512xf32> to vector<1x512xf32>
    %20 = vector.broadcast %19 : vector<1x512xf32> to vector<8x512xf32>
    %21 = arith.mulf %17, %20 : vector<8x512xf32>
    %22 = vector.extract_strided_slice %0 {offsets = [0, 511], sizes = [8, 1], strides = [1, 1]} : vector<8x512xf32> to vector<8x1xf32>
    %23 = vector.extract_strided_slice %0 {offsets = [0, 0], sizes = [8, 511], strides = [1, 1]} : vector<8x512xf32> to vector<8x511xf32>
    %24 = tpu.concatenate %22, %23 in 1 : vector<8x1xf32>, vector<8x511xf32> -> vector<8x512xf32>
    %c3 = arith.constant 3 : index
    %c0_8 = arith.constant 0 : index
    %c0_9 = arith.constant 0 : index
    %25 = vector.load %arg4[%c3, %c0_8, %c0_9] : memref<9x1x512xf32, #tpu.memory_space<vmem>>, vector<1x1x512xf32>
    %26 = vector.shape_cast %25 : vector<1x1x512xf32> to vector<1x512xf32>
    %27 = vector.broadcast %26 : vector<1x512xf32> to vector<8x512xf32>
    %28 = arith.mulf %24, %27 : vector<8x512xf32>
    %c4 = arith.constant 4 : index
    %c0_10 = arith.constant 0 : index
    %c0_11 = arith.constant 0 : index
    %29 = vector.load %arg4[%c4, %c0_10, %c0_11] : memref<9x1x512xf32, #tpu.memory_space<vmem>>, vector<1x1x512xf32>
    %30 = vector.shape_cast %29 : vector<1x1x512xf32> to vector<1x512xf32>
    %31 = vector.broadcast %30 : vector<1x512xf32> to vector<8x512xf32>
    %32 = arith.mulf %0, %31 : vector<8x512xf32>
    %33 = vector.extract_strided_slice %0 {offsets = [0, 1], sizes = [8, 511], strides = [1, 1]} : vector<8x512xf32> to vector<8x511xf32>
    %34 = vector.extract_strided_slice %0 {offsets = [0, 0], sizes = [8, 1], strides = [1, 1]} : vector<8x512xf32> to vector<8x1xf32>
    %35 = tpu.concatenate %33, %34 in 1 : vector<8x511xf32>, vector<8x1xf32> -> vector<8x512xf32>
    %c5 = arith.constant 5 : index
    %c0_12 = arith.constant 0 : index
    %c0_13 = arith.constant 0 : index
    %36 = vector.load %arg4[%c5, %c0_12, %c0_13] : memref<9x1x512xf32, #tpu.memory_space<vmem>>, vector<1x1x512xf32>
    %37 = vector.shape_cast %36 : vector<1x1x512xf32> to vector<1x512xf32>
    %38 = vector.broadcast %37 : vector<1x512xf32> to vector<8x512xf32>
    %39 = arith.mulf %35, %38 : vector<8x512xf32>
    %40 = vector.extract_strided_slice %0 {offsets = [0, 15], sizes = [8, 497], strides = [1, 1]} : vector<8x512xf32> to vector<8x497xf32>
    %41 = vector.extract_strided_slice %0 {offsets = [0, 0], sizes = [8, 15], strides = [1, 1]} : vector<8x512xf32> to vector<8x15xf32>
    %42 = tpu.concatenate %40, %41 in 1 : vector<8x497xf32>, vector<8x15xf32> -> vector<8x512xf32>
    %c6 = arith.constant 6 : index
    %c0_14 = arith.constant 0 : index
    %c0_15 = arith.constant 0 : index
    %43 = vector.load %arg4[%c6, %c0_14, %c0_15] : memref<9x1x512xf32, #tpu.memory_space<vmem>>, vector<1x1x512xf32>
    %44 = vector.shape_cast %43 : vector<1x1x512xf32> to vector<1x512xf32>
    %45 = vector.broadcast %44 : vector<1x512xf32> to vector<8x512xf32>
    %46 = arith.mulf %42, %45 : vector<8x512xf32>
    %47 = vector.extract_strided_slice %0 {offsets = [0, 16], sizes = [8, 496], strides = [1, 1]} : vector<8x512xf32> to vector<8x496xf32>
    %48 = vector.extract_strided_slice %0 {offsets = [0, 0], sizes = [8, 16], strides = [1, 1]} : vector<8x512xf32> to vector<8x16xf32>
    %49 = tpu.concatenate %47, %48 in 1 : vector<8x496xf32>, vector<8x16xf32> -> vector<8x512xf32>
    %c7 = arith.constant 7 : index
    %c0_16 = arith.constant 0 : index
    %c0_17 = arith.constant 0 : index
    %50 = vector.load %arg4[%c7, %c0_16, %c0_17] : memref<9x1x512xf32, #tpu.memory_space<vmem>>, vector<1x1x512xf32>
    %51 = vector.shape_cast %50 : vector<1x1x512xf32> to vector<1x512xf32>
    %52 = vector.broadcast %51 : vector<1x512xf32> to vector<8x512xf32>
    %53 = arith.mulf %49, %52 : vector<8x512xf32>
    %54 = vector.extract_strided_slice %0 {offsets = [0, 17], sizes = [8, 495], strides = [1, 1]} : vector<8x512xf32> to vector<8x495xf32>
    %55 = vector.extract_strided_slice %0 {offsets = [0, 0], sizes = [8, 17], strides = [1, 1]} : vector<8x512xf32> to vector<8x17xf32>
    %56 = tpu.concatenate %54, %55 in 1 : vector<8x495xf32>, vector<8x17xf32> -> vector<8x512xf32>
    %c8 = arith.constant 8 : index
    %c0_18 = arith.constant 0 : index
    %c0_19 = arith.constant 0 : index
    %57 = vector.load %arg4[%c8, %c0_18, %c0_19] : memref<9x1x512xf32, #tpu.memory_space<vmem>>, vector<1x1x512xf32>
    %58 = vector.shape_cast %57 : vector<1x1x512xf32> to vector<1x512xf32>
    %59 = vector.broadcast %58 : vector<1x512xf32> to vector<8x512xf32>
    %60 = arith.mulf %56, %59 : vector<8x512xf32>
    %61 = tpu.concatenate %7, %14, %21, %28, %32, %39, %46, %53, %60 in 0 : vector<8x512xf32>, vector<8x512xf32>, vector<8x512xf32>, vector<8x512xf32>, vector<8x512xf32>, vector<8x512xf32>, vector<8x512xf32>, vector<8x512xf32>, vector<8x512xf32> -> vector<72x512xf32>
    %c0_20 = arith.constant 0 : index
    %c0_21 = arith.constant 0 : index
    %62 = vector.load %arg2[%c0_20, %c0_21] : memref<8x72xf32, #tpu.memory_space<vmem>>, vector<8x72xf32>
    %cst = arith.constant dense<0.000000e+00> : vector<8x512xf32>
    %63 = tpu.matmul %62, %61, %cst {dimension_numbers = #tpu.dot_dimension_numbers<[1], [0], [0], [1], [0, 0, 1, 1], [], []>} : vector<8x72xf32>, vector<72x512xf32>, vector<8x512xf32> -> vector<8x512xf32>
    %c0_22 = arith.constant 0 : index
    %c0_23 = arith.constant 0 : index
    %64 = vector.load %arg3[%c0_22, %c0_23] : memref<8x1xf32, #tpu.memory_space<vmem>>, vector<8x1xf32>
    %65 = vector.broadcast %64 : vector<8x1xf32> to vector<8x512xf32>
    %66 = arith.addf %63, %65 : vector<8x512xf32>
    %c0_24 = arith.constant 0 : index
    %c0_25 = arith.constant 0 : index
    %67 = vector.load %arg5[%c0_24, %c0_25] : memref<8x512xf32, #tpu.memory_space<vmem>>, vector<8x512xf32>
    tpu.vector_store %arg5[%c0_24, %c0_25], %66 {strides = array<i32>} : memref<8x512xf32, #tpu.memory_space<vmem>>, vector<8x512xf32>,
    return
  }
  func.func @transform_0(%arg0: i32) -> (i32, i32) {
    %c0_i32 = arith.constant 0 : i32
    %c0_i32_0 = arith.constant 0 : i32
    %c0_i32_1 = arith.constant 0 : i32
    return %c0_i32, %c0_i32_0 : i32, i32
  }
  func.func @transform_1(%arg0: i32) -> (i32, i32) {
    %c0_i32 = arith.constant 0 : i32
    %c0_i32_0 = arith.constant 0 : i32
    %c0_i32_1 = arith.constant 0 : i32
    return %c0_i32, %c0_i32_0 : i32, i32
  }
  func.func @transform_2(%arg0: i32) -> (i32, i32) {
    %c0_i32 = arith.constant 0 : i32
    %c0_i32_0 = arith.constant 0 : i32
    %c0_i32_1 = arith.constant 0 : i32
    return %c0_i32, %c0_i32_0 : i32, i32
  }
  func.func @transform_3(%arg0: i32) -> (i32, i32, i32) {
    %c0_i32 = arith.constant 0 : i32
    %c0_i32_0 = arith.constant 0 : i32
    %c0_i32_1 = arith.constant 0 : i32
    %c0_i32_2 = arith.constant 0 : i32
    return %c0_i32, %c0_i32_0, %c0_i32_1 : i32, i32, i32
  }
  func.func @transform_4(%arg0: i32) -> (i32, i32) {
    %c0_i32 = arith.constant 0 : i32
    %c0_i32_0 = arith.constant 0 : i32
    %c0_i32_1 = arith.constant 0 : i32
    return %c0_i32, %c0_i32_0 : i32, i32
  }
}

module attributes {stable_mosaic.version = 11 : i64} {
  func.func @_conv3x3_kernel(%arg0: i32, %arg1: memref<8x512xf32, #tpu.memory_space<vmem>>, %arg2: memref<8x72xf32, #tpu.memory_space<vmem>>, %arg3: memref<8x1xf32, #tpu.memory_space<vmem>>, %arg4: memref<9x1x512xf32, #tpu.memory_space<vmem>>, %arg5: memref<8x512xf32, #tpu.memory_space<vmem>>) attributes {dimension_semantics = [#tpu.dimension_semantics<arbitrary>], iteration_bounds = array<i64: 1>, scalar_prefetch = 0 : i64, scratch_operands = 0 : i64, tpu.core_type = #tpu.core_type<tc>, window_params = [{pipeline_mode = #tpu.pipeline_mode<synchronous>, transform_indices = @transform_0, window_bounds = array<i64: 8, 512>}, {pipeline_mode = #tpu.pipeline_mode<synchronous>, transform_indices = @transform_1, window_bounds = array<i64: 8, 72>}, {pipeline_mode = #tpu.pipeline_mode<synchronous>, transform_indices = @transform_2, window_bounds = array<i64: 8, 1>}, {pipeline_mode = #tpu.pipeline_mode<synchronous>, transform_indices = @transform_3, window_bounds = array<i64: 9, 1, 512>}, {pipeline_mode = #tpu.pipeline_mode<synchronous>, transform_indices = @transform_4, window_bounds = array<i64: 8, 512>}]} {
    %c0 = arith.constant 0 : index
    %c0_0 = arith.constant 0 : index
    %0 = vector.load %arg1[%c0, %c0_0] : memref<8x512xf32, #tpu.memory_space<vmem>>, vector<8x512xf32>
    %1 = vector.extract_strided_slice %0 {offsets = [0, 495], sizes = [8, 17], strides = [1, 1]} : vector<8x512xf32> to vector<8x17xf32>
    %2 = vector.extract_strided_slice %0 {offsets = [0, 0], sizes = [8, 495], strides = [1, 1]} : vector<8x512xf32> to vector<8x495xf32>
    %3 = tpu.concatenate %1, %2 in 1 : vector<8x17xf32>, vector<8x495xf32> -> vector<8x512xf32>
    %c0_1 = arith.constant 0 : index
    %c0_2 = arith.constant 0 : index
    %c0_3 = arith.constant 0 : index
    %4 = vector.load %arg4[%c0_1, %c0_2, %c0_3] : memref<9x1x512xf32, #tpu.memory_space<vmem>>, vector<1x1x512xf32>
    %5 = vector.shape_cast %4 : vector<1x1x512xf32> to vector<1x512xf32>
    %6 = vector.broadcast %5 : vector<1x512xf32> to vector<8x512xf32>
    %7 = arith.mulf %3, %6 : vector<8x512xf32>
    %8 = vector.extract_strided_slice %0 {offsets = [0, 496], sizes = [8, 16], strides = [1, 1]} : vector<8x512xf32> to vector<8x16xf32>
    %9 = vector.extract_strided_slice %0 {offsets = [0, 0], sizes = [8, 496], strides = [1, 1]} : vector<8x512xf32> to vector<8x496xf32>
    %10 = tpu.concatenate %8, %9 in 1 : vector<8x16xf32>, vector<8x496xf32> -> vector<8x512xf32>
    %c1 = arith.constant 1 : index
    %c0_4 = arith.constant 0 : index
    %c0_5 = arith.constant 0 : index
    %11 = vector.load %arg4[%c1, %c0_4, %c0_5] : memref<9x1x512xf32, #tpu.memory_space<vmem>>, vector<1x1x512xf32>
    %12 = vector.shape_cast %11 : vector<1x1x512xf32> to vector<1x512xf32>
    %13 = vector.broadcast %12 : vector<1x512xf32> to vector<8x512xf32>
    %14 = arith.mulf %10, %13 : vector<8x512xf32>
    %15 = vector.extract_strided_slice %0 {offsets = [0, 497], sizes = [8, 15], strides = [1, 1]} : vector<8x512xf32> to vector<8x15xf32>
    %16 = vector.extract_strided_slice %0 {offsets = [0, 0], sizes = [8, 497], strides = [1, 1]} : vector<8x512xf32> to vector<8x497xf32>
    %17 = tpu.concatenate %15, %16 in 1 : vector<8x15xf32>, vector<8x497xf32> -> vector<8x512xf32>
    %c2 = arith.constant 2 : index
    %c0_6 = arith.constant 0 : index
    %c0_7 = arith.constant 0 : index
    %18 = vector.load %arg4[%c2, %c0_6, %c0_7] : memref<9x1x512xf32, #tpu.memory_space<vmem>>, vector<1x1x512xf32>
    %19 = vector.shape_cast %18 : vector<1x1x512xf32> to vector<1x512xf32>
    %20 = vector.broadcast %19 : vector<1x512xf32> to vector<8x512xf32>
    %21 = arith.mulf %17, %20 : vector<8x512xf32>
    %22 = vector.extract_strided_slice %0 {offsets = [0, 511], sizes = [8, 1], strides = [1, 1]} : vector<8x512xf32> to vector<8x1xf32>
    %23 = vector.extract_strided_slice %0 {offsets = [0, 0], sizes = [8, 511], strides = [1, 1]} : vector<8x512xf32> to vector<8x511xf32>
    %24 = tpu.concatenate %22, %23 in 1 : vector<8x1xf32>, vector<8x511xf32> -> vector<8x512xf32>
    %c3 = arith.constant 3 : index
    %c0_8 = arith.constant 0 : index
    %c0_9 = arith.constant 0 : index
    %25 = vector.load %arg4[%c3, %c0_8, %c0_9] : memref<9x1x512xf32, #tpu.memory_space<vmem>>, vector<1x1x512xf32>
    %26 = vector.shape_cast %25 : vector<1x1x512xf32> to vector<1x512xf32>
    %27 = vector.broadcast %26 : vector<1x512xf32> to vector<8x512xf32>
    %28 = arith.mulf %24, %27 : vector<8x512xf32>
    %c4 = arith.constant 4 : index
    %c0_10 = arith.constant 0 : index
    %c0_11 = arith.constant 0 : index
    %29 = vector.load %arg4[%c4, %c0_10, %c0_11] : memref<9x1x512xf32, #tpu.memory_space<vmem>>, vector<1x1x512xf32>
    %30 = vector.shape_cast %29 : vector<1x1x512xf32> to vector<1x512xf32>
    %31 = vector.broadcast %30 : vector<1x512xf32> to vector<8x512xf32>
    %32 = arith.mulf %0, %31 : vector<8x512xf32>
    %33 = vector.extract_strided_slice %0 {offsets = [0, 1], sizes = [8, 511], strides = [1, 1]} : vector<8x512xf32> to vector<8x511xf32>
    %34 = vector.extract_strided_slice %0 {offsets = [0, 0], sizes = [8, 1], strides = [1, 1]} : vector<8x512xf32> to vector<8x1xf32>
    %35 = tpu.concatenate %33, %34 in 1 : vector<8x511xf32>, vector<8x1xf32> -> vector<8x512xf32>
    %c5 = arith.constant 5 : index
    %c0_12 = arith.constant 0 : index
    %c0_13 = arith.constant 0 : index
    %36 = vector.load %arg4[%c5, %c0_12, %c0_13] : memref<9x1x512xf32, #tpu.memory_space<vmem>>, vector<1x1x512xf32>
    %37 = vector.shape_cast %36 : vector<1x1x512xf32> to vector<1x512xf32>
    %38 = vector.broadcast %37 : vector<1x512xf32> to vector<8x512xf32>
    %39 = arith.mulf %35, %38 : vector<8x512xf32>
    %40 = vector.extract_strided_slice %0 {offsets = [0, 15], sizes = [8, 497], strides = [1, 1]} : vector<8x512xf32> to vector<8x497xf32>
    %41 = vector.extract_strided_slice %0 {offsets = [0, 0], sizes = [8, 15], strides = [1, 1]} : vector<8x512xf32> to vector<8x15xf32>
    %42 = tpu.concatenate %40, %41 in 1 : vector<8x497xf32>, vector<8x15xf32> -> vector<8x512xf32>
    %c6 = arith.constant 6 : index
    %c0_14 = arith.constant 0 : index
    %c0_15 = arith.constant 0 : index
    %43 = vector.load %arg4[%c6, %c0_14, %c0_15] : memref<9x1x512xf32, #tpu.memory_space<vmem>>, vector<1x1x512xf32>
    %44 = vector.shape_cast %43 : vector<1x1x512xf32> to vector<1x512xf32>
    %45 = vector.broadcast %44 : vector<1x512xf32> to vector<8x512xf32>
    %46 = arith.mulf %42, %45 : vector<8x512xf32>
    %47 = vector.extract_strided_slice %0 {offsets = [0, 16], sizes = [8, 496], strides = [1, 1]} : vector<8x512xf32> to vector<8x496xf32>
    %48 = vector.extract_strided_slice %0 {offsets = [0, 0], sizes = [8, 16], strides = [1, 1]} : vector<8x512xf32> to vector<8x16xf32>
    %49 = tpu.concatenate %47, %48 in 1 : vector<8x496xf32>, vector<8x16xf32> -> vector<8x512xf32>
    %c7 = arith.constant 7 : index
    %c0_16 = arith.constant 0 : index
    %c0_17 = arith.constant 0 : index
    %50 = vector.load %arg4[%c7, %c0_16, %c0_17] : memref<9x1x512xf32, #tpu.memory_space<vmem>>, vector<1x1x512xf32>
    %51 = vector.shape_cast %50 : vector<1x1x512xf32> to vector<1x512xf32>
    %52 = vector.broadcast %51 : vector<1x512xf32> to vector<8x512xf32>
    %53 = arith.mulf %49, %52 : vector<8x512xf32>
    %54 = vector.extract_strided_slice %0 {offsets = [0, 17], sizes = [8, 495], strides = [1, 1]} : vector<8x512xf32> to vector<8x495xf32>
    %55 = vector.extract_strided_slice %0 {offsets = [0, 0], sizes = [8, 17], strides = [1, 1]} : vector<8x512xf32> to vector<8x17xf32>
    %56 = tpu.concatenate %54, %55 in 1 : vector<8x495xf32>, vector<8x17xf32> -> vector<8x512xf32>
    %c8 = arith.constant 8 : index
    %c0_18 = arith.constant 0 : index
    %c0_19 = arith.constant 0 : index
    %57 = vector.load %arg4[%c8, %c0_18, %c0_19] : memref<9x1x512xf32, #tpu.memory_space<vmem>>, vector<1x1x512xf32>
    %58 = vector.shape_cast %57 : vector<1x1x512xf32> to vector<1x512xf32>
    %59 = vector.broadcast %58 : vector<1x512xf32> to vector<8x512xf32>
    %60 = arith.mulf %56, %59 : vector<8x512xf32>
    %61 = tpu.concatenate %7, %14, %21, %28, %32, %39, %46, %53, %60 in 0 : vector<8x512xf32>, vector<8x512xf32>, vector<8x512xf32>, vector<8x512xf32>, vector<8x512xf32>, vector<8x512xf32>, vector<8x512xf32>, vector<8x512xf32>, vector<8x512xf32> -> vector<72x512xf32>
    %c0_20 = arith.constant 0 : index
    %c0_21 = arith.constant 0 : index
    %62 = vector.load %arg2[%c0_20, %c0_21] : memref<8x72xf32, #tpu.memory_space<vmem>>, vector<8x72xf32>
    %cst = arith.constant dense<0.000000e+00> : vector<8x512xf32>
    %63 = tpu.matmul %62, %61, %cst {dimension_numbers = #tpu.dot_dimension_numbers<[1], [0], [0], [1], [0, 0, 1, 1], [], []>} : vector<8x72xf32>, vector<72x512xf32>, vector<8x512xf32> -> vector<8x512xf32>
    %c0_22 = arith.constant 0 : index
    %c0_23 = arith.constant 0 : index
    %64 = vector.load %arg3[%c0_22, %c0_23] : memref<8x1xf32, #tpu.memory_space<vmem>>, vector<8x1xf32>
    %65 = vector.broadcast %64 : vector<8x1xf32> to vector<8x512xf32>
    %66 = arith.addf %63, %65 : vector<8x512xf32>
    %c0_24 = arith.constant 0 : index
    %c0_25 = arith.constant 0 : index
    %67 = vector.load %arg5[%c0_24, %c0_25] : memref<8x512xf32, #tpu.memory_space<vmem>>, vector<8x512xf32>
    tpu.vector_store %arg5[%c0_24, %c0_25], %66 {strides = array<i32>} : memref<8x512xf32, #tpu.memory_space<vmem>>, vector<8x512xf32>,
    return
  }
  func.func @transform_0(%arg0: i32) -> (i32, i32) {
    %c0_i32 = arith.constant 0 : i32
    %c0_i32_0 = arith.constant 0 : i32
    %c0_i32_1 = arith.constant 0 : i32
    return %c0_i32, %c0_i32_0 : i32, i32
  }
  func.func @transform_1(%arg0: i32) -> (i32, i32) {
    %c0_i32 = arith.constant 0 : i32
    %c0_i32_0 = arith.constant 0 : i32
    %c0_i32_1 = arith.constant 0 : i32
    return %c0_i32, %c0_i32_0 : i32, i32
  }
  func.func @transform_2(%arg0: i32) -> (i32, i32) {
    %c0_i32 = arith.constant 0 : i32
    %c0_i32_0 = arith.constant 0 : i32
    %c0_i32_1 = arith.constant 0 : i32
    return %c0_i32, %c0_i32_0 : i32, i32
  }
  func.func @transform_3(%arg0: i32) -> (i32, i32, i32) {
    %c0_i32 = arith.constant 0 : i32
    %c0_i32_0 = arith.constant 0 : i32
    %c0_i32_1 = arith.constant 0 : i32
    %c0_i32_2 = arith.constant 0 : i32
    return %c0_i32, %c0_i32_0, %c0_i32_1 : i32, i32, i32
  }
  func.func @transform_4(%arg0: i32) -> (i32, i32) {
    %c0_i32 = arith.constant 0 : i32
    %c0_i32_0 = arith.constant 0 : i32
    %c0_i32_1 = arith.constant 0 : i32
    return %c0_i32, %c0_i32_0 : i32, i32
  }
}

module attributes {stable_mosaic.version = 11 : i64} {
  func.func @_conv3x3_kernel(%arg0: i32, %arg1: memref<8x512xf32, #tpu.memory_space<vmem>>, %arg2: memref<16x72xf32, #tpu.memory_space<vmem>>, %arg3: memref<16x1xf32, #tpu.memory_space<vmem>>, %arg4: memref<9x1x512xf32, #tpu.memory_space<vmem>>, %arg5: memref<16x512xf32, #tpu.memory_space<vmem>>) attributes {dimension_semantics = [#tpu.dimension_semantics<arbitrary>], iteration_bounds = array<i64: 1>, scalar_prefetch = 0 : i64, scratch_operands = 0 : i64, tpu.core_type = #tpu.core_type<tc>, window_params = [{pipeline_mode = #tpu.pipeline_mode<synchronous>, transform_indices = @transform_0, window_bounds = array<i64: 8, 512>}, {pipeline_mode = #tpu.pipeline_mode<synchronous>, transform_indices = @transform_1, window_bounds = array<i64: 16, 72>}, {pipeline_mode = #tpu.pipeline_mode<synchronous>, transform_indices = @transform_2, window_bounds = array<i64: 16, 1>}, {pipeline_mode = #tpu.pipeline_mode<synchronous>, transform_indices = @transform_3, window_bounds = array<i64: 9, 1, 512>}, {pipeline_mode = #tpu.pipeline_mode<synchronous>, transform_indices = @transform_4, window_bounds = array<i64: 16, 512>}]} {
    %c0 = arith.constant 0 : index
    %c0_0 = arith.constant 0 : index
    %0 = vector.load %arg1[%c0, %c0_0] : memref<8x512xf32, #tpu.memory_space<vmem>>, vector<8x512xf32>
    %1 = vector.extract_strided_slice %0 {offsets = [0, 495], sizes = [8, 17], strides = [1, 1]} : vector<8x512xf32> to vector<8x17xf32>
    %2 = vector.extract_strided_slice %0 {offsets = [0, 0], sizes = [8, 495], strides = [1, 1]} : vector<8x512xf32> to vector<8x495xf32>
    %3 = tpu.concatenate %1, %2 in 1 : vector<8x17xf32>, vector<8x495xf32> -> vector<8x512xf32>
    %c0_1 = arith.constant 0 : index
    %c0_2 = arith.constant 0 : index
    %c0_3 = arith.constant 0 : index
    %4 = vector.load %arg4[%c0_1, %c0_2, %c0_3] : memref<9x1x512xf32, #tpu.memory_space<vmem>>, vector<1x1x512xf32>
    %5 = vector.shape_cast %4 : vector<1x1x512xf32> to vector<1x512xf32>
    %6 = vector.broadcast %5 : vector<1x512xf32> to vector<8x512xf32>
    %7 = arith.mulf %3, %6 : vector<8x512xf32>
    %8 = vector.extract_strided_slice %0 {offsets = [0, 496], sizes = [8, 16], strides = [1, 1]} : vector<8x512xf32> to vector<8x16xf32>
    %9 = vector.extract_strided_slice %0 {offsets = [0, 0], sizes = [8, 496], strides = [1, 1]} : vector<8x512xf32> to vector<8x496xf32>
    %10 = tpu.concatenate %8, %9 in 1 : vector<8x16xf32>, vector<8x496xf32> -> vector<8x512xf32>
    %c1 = arith.constant 1 : index
    %c0_4 = arith.constant 0 : index
    %c0_5 = arith.constant 0 : index
    %11 = vector.load %arg4[%c1, %c0_4, %c0_5] : memref<9x1x512xf32, #tpu.memory_space<vmem>>, vector<1x1x512xf32>
    %12 = vector.shape_cast %11 : vector<1x1x512xf32> to vector<1x512xf32>
    %13 = vector.broadcast %12 : vector<1x512xf32> to vector<8x512xf32>
    %14 = arith.mulf %10, %13 : vector<8x512xf32>
    %15 = vector.extract_strided_slice %0 {offsets = [0, 497], sizes = [8, 15], strides = [1, 1]} : vector<8x512xf32> to vector<8x15xf32>
    %16 = vector.extract_strided_slice %0 {offsets = [0, 0], sizes = [8, 497], strides = [1, 1]} : vector<8x512xf32> to vector<8x497xf32>
    %17 = tpu.concatenate %15, %16 in 1 : vector<8x15xf32>, vector<8x497xf32> -> vector<8x512xf32>
    %c2 = arith.constant 2 : index
    %c0_6 = arith.constant 0 : index
    %c0_7 = arith.constant 0 : index
    %18 = vector.load %arg4[%c2, %c0_6, %c0_7] : memref<9x1x512xf32, #tpu.memory_space<vmem>>, vector<1x1x512xf32>
    %19 = vector.shape_cast %18 : vector<1x1x512xf32> to vector<1x512xf32>
    %20 = vector.broadcast %19 : vector<1x512xf32> to vector<8x512xf32>
    %21 = arith.mulf %17, %20 : vector<8x512xf32>
    %22 = vector.extract_strided_slice %0 {offsets = [0, 511], sizes = [8, 1], strides = [1, 1]} : vector<8x512xf32> to vector<8x1xf32>
    %23 = vector.extract_strided_slice %0 {offsets = [0, 0], sizes = [8, 511], strides = [1, 1]} : vector<8x512xf32> to vector<8x511xf32>
    %24 = tpu.concatenate %22, %23 in 1 : vector<8x1xf32>, vector<8x511xf32> -> vector<8x512xf32>
    %c3 = arith.constant 3 : index
    %c0_8 = arith.constant 0 : index
    %c0_9 = arith.constant 0 : index
    %25 = vector.load %arg4[%c3, %c0_8, %c0_9] : memref<9x1x512xf32, #tpu.memory_space<vmem>>, vector<1x1x512xf32>
    %26 = vector.shape_cast %25 : vector<1x1x512xf32> to vector<1x512xf32>
    %27 = vector.broadcast %26 : vector<1x512xf32> to vector<8x512xf32>
    %28 = arith.mulf %24, %27 : vector<8x512xf32>
    %c4 = arith.constant 4 : index
    %c0_10 = arith.constant 0 : index
    %c0_11 = arith.constant 0 : index
    %29 = vector.load %arg4[%c4, %c0_10, %c0_11] : memref<9x1x512xf32, #tpu.memory_space<vmem>>, vector<1x1x512xf32>
    %30 = vector.shape_cast %29 : vector<1x1x512xf32> to vector<1x512xf32>
    %31 = vector.broadcast %30 : vector<1x512xf32> to vector<8x512xf32>
    %32 = arith.mulf %0, %31 : vector<8x512xf32>
    %33 = vector.extract_strided_slice %0 {offsets = [0, 1], sizes = [8, 511], strides = [1, 1]} : vector<8x512xf32> to vector<8x511xf32>
    %34 = vector.extract_strided_slice %0 {offsets = [0, 0], sizes = [8, 1], strides = [1, 1]} : vector<8x512xf32> to vector<8x1xf32>
    %35 = tpu.concatenate %33, %34 in 1 : vector<8x511xf32>, vector<8x1xf32> -> vector<8x512xf32>
    %c5 = arith.constant 5 : index
    %c0_12 = arith.constant 0 : index
    %c0_13 = arith.constant 0 : index
    %36 = vector.load %arg4[%c5, %c0_12, %c0_13] : memref<9x1x512xf32, #tpu.memory_space<vmem>>, vector<1x1x512xf32>
    %37 = vector.shape_cast %36 : vector<1x1x512xf32> to vector<1x512xf32>
    %38 = vector.broadcast %37 : vector<1x512xf32> to vector<8x512xf32>
    %39 = arith.mulf %35, %38 : vector<8x512xf32>
    %40 = vector.extract_strided_slice %0 {offsets = [0, 15], sizes = [8, 497], strides = [1, 1]} : vector<8x512xf32> to vector<8x497xf32>
    %41 = vector.extract_strided_slice %0 {offsets = [0, 0], sizes = [8, 15], strides = [1, 1]} : vector<8x512xf32> to vector<8x15xf32>
    %42 = tpu.concatenate %40, %41 in 1 : vector<8x497xf32>, vector<8x15xf32> -> vector<8x512xf32>
    %c6 = arith.constant 6 : index
    %c0_14 = arith.constant 0 : index
    %c0_15 = arith.constant 0 : index
    %43 = vector.load %arg4[%c6, %c0_14, %c0_15] : memref<9x1x512xf32, #tpu.memory_space<vmem>>, vector<1x1x512xf32>
    %44 = vector.shape_cast %43 : vector<1x1x512xf32> to vector<1x512xf32>
    %45 = vector.broadcast %44 : vector<1x512xf32> to vector<8x512xf32>
    %46 = arith.mulf %42, %45 : vector<8x512xf32>
    %47 = vector.extract_strided_slice %0 {offsets = [0, 16], sizes = [8, 496], strides = [1, 1]} : vector<8x512xf32> to vector<8x496xf32>
    %48 = vector.extract_strided_slice %0 {offsets = [0, 0], sizes = [8, 16], strides = [1, 1]} : vector<8x512xf32> to vector<8x16xf32>
    %49 = tpu.concatenate %47, %48 in 1 : vector<8x496xf32>, vector<8x16xf32> -> vector<8x512xf32>
    %c7 = arith.constant 7 : index
    %c0_16 = arith.constant 0 : index
    %c0_17 = arith.constant 0 : index
    %50 = vector.load %arg4[%c7, %c0_16, %c0_17] : memref<9x1x512xf32, #tpu.memory_space<vmem>>, vector<1x1x512xf32>
    %51 = vector.shape_cast %50 : vector<1x1x512xf32> to vector<1x512xf32>
    %52 = vector.broadcast %51 : vector<1x512xf32> to vector<8x512xf32>
    %53 = arith.mulf %49, %52 : vector<8x512xf32>
    %54 = vector.extract_strided_slice %0 {offsets = [0, 17], sizes = [8, 495], strides = [1, 1]} : vector<8x512xf32> to vector<8x495xf32>
    %55 = vector.extract_strided_slice %0 {offsets = [0, 0], sizes = [8, 17], strides = [1, 1]} : vector<8x512xf32> to vector<8x17xf32>
    %56 = tpu.concatenate %54, %55 in 1 : vector<8x495xf32>, vector<8x17xf32> -> vector<8x512xf32>
    %c8 = arith.constant 8 : index
    %c0_18 = arith.constant 0 : index
    %c0_19 = arith.constant 0 : index
    %57 = vector.load %arg4[%c8, %c0_18, %c0_19] : memref<9x1x512xf32, #tpu.memory_space<vmem>>, vector<1x1x512xf32>
    %58 = vector.shape_cast %57 : vector<1x1x512xf32> to vector<1x512xf32>
    %59 = vector.broadcast %58 : vector<1x512xf32> to vector<8x512xf32>
    %60 = arith.mulf %56, %59 : vector<8x512xf32>
    %61 = tpu.concatenate %7, %14, %21, %28, %32, %39, %46, %53, %60 in 0 : vector<8x512xf32>, vector<8x512xf32>, vector<8x512xf32>, vector<8x512xf32>, vector<8x512xf32>, vector<8x512xf32>, vector<8x512xf32>, vector<8x512xf32>, vector<8x512xf32> -> vector<72x512xf32>
    %c0_20 = arith.constant 0 : index
    %c0_21 = arith.constant 0 : index
    %62 = vector.load %arg2[%c0_20, %c0_21] : memref<16x72xf32, #tpu.memory_space<vmem>>, vector<16x72xf32>
    %cst = arith.constant dense<0.000000e+00> : vector<16x512xf32>
    %63 = tpu.matmul %62, %61, %cst {dimension_numbers = #tpu.dot_dimension_numbers<[1], [0], [0], [1], [0, 0, 1, 1], [], []>} : vector<16x72xf32>, vector<72x512xf32>, vector<16x512xf32> -> vector<16x512xf32>
    %c0_22 = arith.constant 0 : index
    %c0_23 = arith.constant 0 : index
    %64 = vector.load %arg3[%c0_22, %c0_23] : memref<16x1xf32, #tpu.memory_space<vmem>>, vector<16x1xf32>
    %65 = vector.broadcast %64 : vector<16x1xf32> to vector<16x512xf32>
    %66 = arith.addf %63, %65 : vector<16x512xf32>
    %c0_24 = arith.constant 0 : index
    %c0_25 = arith.constant 0 : index
    %67 = vector.load %arg5[%c0_24, %c0_25] : memref<16x512xf32, #tpu.memory_space<vmem>>, vector<16x512xf32>
    tpu.vector_store %arg5[%c0_24, %c0_25], %66 {strides = array<i32>} : memref<16x512xf32, #tpu.memory_space<vmem>>, vector<16x512xf32>,
    return
  }
  func.func @transform_0(%arg0: i32) -> (i32, i32) {
    %c0_i32 = arith.constant 0 : i32
    %c0_i32_0 = arith.constant 0 : i32
    %c0_i32_1 = arith.constant 0 : i32
    return %c0_i32, %c0_i32_0 : i32, i32
  }
  func.func @transform_1(%arg0: i32) -> (i32, i32) {
    %c0_i32 = arith.constant 0 : i32
    %c0_i32_0 = arith.constant 0 : i32
    %c0_i32_1 = arith.constant 0 : i32
    return %c0_i32, %c0_i32_0 : i32, i32
  }
  func.func @transform_2(%arg0: i32) -> (i32, i32) {
    %c0_i32 = arith.constant 0 : i32
    %c0_i32_0 = arith.constant 0 : i32
    %c0_i32_1 = arith.constant 0 : i32
    return %c0_i32, %c0_i32_0 : i32, i32
  }
  func.func @transform_3(%arg0: i32) -> (i32, i32, i32) {
    %c0_i32 = arith.constant 0 : i32
    %c0_i32_0 = arith.constant 0 : i32
    %c0_i32_1 = arith.constant 0 : i32
    %c0_i32_2 = arith.constant 0 : i32
    return %c0_i32, %c0_i32_0, %c0_i32_1 : i32, i32, i32
  }
  func.func @transform_4(%arg0: i32) -> (i32, i32) {
    %c0_i32 = arith.constant 0 : i32
    %c0_i32_0 = arith.constant 0 : i32
    %c0_i32_1 = arith.constant 0 : i32
    return %c0_i32, %c0_i32_0 : i32, i32
  }
}

module attributes {stable_mosaic.version = 11 : i64} {
  func.func @_conv3x3_kernel(%arg0: i32, %arg1: memref<16x128xf32, #tpu.memory_space<vmem>>, %arg2: memref<16x144xf32, #tpu.memory_space<vmem>>, %arg3: memref<16x1xf32, #tpu.memory_space<vmem>>, %arg4: memref<9x1x128xf32, #tpu.memory_space<vmem>>, %arg5: memref<16x128xf32, #tpu.memory_space<vmem>>) attributes {dimension_semantics = [#tpu.dimension_semantics<arbitrary>], iteration_bounds = array<i64: 1>, scalar_prefetch = 0 : i64, scratch_operands = 0 : i64, tpu.core_type = #tpu.core_type<tc>, window_params = [{pipeline_mode = #tpu.pipeline_mode<synchronous>, transform_indices = @transform_0, window_bounds = array<i64: 16, 128>}, {pipeline_mode = #tpu.pipeline_mode<synchronous>, transform_indices = @transform_1, window_bounds = array<i64: 16, 144>}, {pipeline_mode = #tpu.pipeline_mode<synchronous>, transform_indices = @transform_2, window_bounds = array<i64: 16, 1>}, {pipeline_mode = #tpu.pipeline_mode<synchronous>, transform_indices = @transform_3, window_bounds = array<i64: 9, 1, 128>}, {pipeline_mode = #tpu.pipeline_mode<synchronous>, transform_indices = @transform_4, window_bounds = array<i64: 16, 128>}]} {
    %c0 = arith.constant 0 : index
    %c0_0 = arith.constant 0 : index
    %0 = vector.load %arg1[%c0, %c0_0] : memref<16x128xf32, #tpu.memory_space<vmem>>, vector<16x128xf32>
    %1 = vector.extract_strided_slice %0 {offsets = [0, 119], sizes = [16, 9], strides = [1, 1]} : vector<16x128xf32> to vector<16x9xf32>
    %2 = vector.extract_strided_slice %0 {offsets = [0, 0], sizes = [16, 119], strides = [1, 1]} : vector<16x128xf32> to vector<16x119xf32>
    %3 = tpu.concatenate %1, %2 in 1 : vector<16x9xf32>, vector<16x119xf32> -> vector<16x128xf32>
    %c0_1 = arith.constant 0 : index
    %c0_2 = arith.constant 0 : index
    %c0_3 = arith.constant 0 : index
    %4 = vector.load %arg4[%c0_1, %c0_2, %c0_3] : memref<9x1x128xf32, #tpu.memory_space<vmem>>, vector<1x1x128xf32>
    %5 = vector.shape_cast %4 : vector<1x1x128xf32> to vector<1x128xf32>
    %6 = vector.broadcast %5 : vector<1x128xf32> to vector<16x128xf32>
    %7 = arith.mulf %3, %6 : vector<16x128xf32>
    %8 = vector.extract_strided_slice %0 {offsets = [0, 120], sizes = [16, 8], strides = [1, 1]} : vector<16x128xf32> to vector<16x8xf32>
    %9 = vector.extract_strided_slice %0 {offsets = [0, 0], sizes = [16, 120], strides = [1, 1]} : vector<16x128xf32> to vector<16x120xf32>
    %10 = tpu.concatenate %8, %9 in 1 : vector<16x8xf32>, vector<16x120xf32> -> vector<16x128xf32>
    %c1 = arith.constant 1 : index
    %c0_4 = arith.constant 0 : index
    %c0_5 = arith.constant 0 : index
    %11 = vector.load %arg4[%c1, %c0_4, %c0_5] : memref<9x1x128xf32, #tpu.memory_space<vmem>>, vector<1x1x128xf32>
    %12 = vector.shape_cast %11 : vector<1x1x128xf32> to vector<1x128xf32>
    %13 = vector.broadcast %12 : vector<1x128xf32> to vector<16x128xf32>
    %14 = arith.mulf %10, %13 : vector<16x128xf32>
    %15 = vector.extract_strided_slice %0 {offsets = [0, 121], sizes = [16, 7], strides = [1, 1]} : vector<16x128xf32> to vector<16x7xf32>
    %16 = vector.extract_strided_slice %0 {offsets = [0, 0], sizes = [16, 121], strides = [1, 1]} : vector<16x128xf32> to vector<16x121xf32>
    %17 = tpu.concatenate %15, %16 in 1 : vector<16x7xf32>, vector<16x121xf32> -> vector<16x128xf32>
    %c2 = arith.constant 2 : index
    %c0_6 = arith.constant 0 : index
    %c0_7 = arith.constant 0 : index
    %18 = vector.load %arg4[%c2, %c0_6, %c0_7] : memref<9x1x128xf32, #tpu.memory_space<vmem>>, vector<1x1x128xf32>
    %19 = vector.shape_cast %18 : vector<1x1x128xf32> to vector<1x128xf32>
    %20 = vector.broadcast %19 : vector<1x128xf32> to vector<16x128xf32>
    %21 = arith.mulf %17, %20 : vector<16x128xf32>
    %22 = vector.extract_strided_slice %0 {offsets = [0, 127], sizes = [16, 1], strides = [1, 1]} : vector<16x128xf32> to vector<16x1xf32>
    %23 = vector.extract_strided_slice %0 {offsets = [0, 0], sizes = [16, 127], strides = [1, 1]} : vector<16x128xf32> to vector<16x127xf32>
    %24 = tpu.concatenate %22, %23 in 1 : vector<16x1xf32>, vector<16x127xf32> -> vector<16x128xf32>
    %c3 = arith.constant 3 : index
    %c0_8 = arith.constant 0 : index
    %c0_9 = arith.constant 0 : index
    %25 = vector.load %arg4[%c3, %c0_8, %c0_9] : memref<9x1x128xf32, #tpu.memory_space<vmem>>, vector<1x1x128xf32>
    %26 = vector.shape_cast %25 : vector<1x1x128xf32> to vector<1x128xf32>
    %27 = vector.broadcast %26 : vector<1x128xf32> to vector<16x128xf32>
    %28 = arith.mulf %24, %27 : vector<16x128xf32>
    %c4 = arith.constant 4 : index
    %c0_10 = arith.constant 0 : index
    %c0_11 = arith.constant 0 : index
    %29 = vector.load %arg4[%c4, %c0_10, %c0_11] : memref<9x1x128xf32, #tpu.memory_space<vmem>>, vector<1x1x128xf32>
    %30 = vector.shape_cast %29 : vector<1x1x128xf32> to vector<1x128xf32>
    %31 = vector.broadcast %30 : vector<1x128xf32> to vector<16x128xf32>
    %32 = arith.mulf %0, %31 : vector<16x128xf32>
    %33 = vector.extract_strided_slice %0 {offsets = [0, 1], sizes = [16, 127], strides = [1, 1]} : vector<16x128xf32> to vector<16x127xf32>
    %34 = vector.extract_strided_slice %0 {offsets = [0, 0], sizes = [16, 1], strides = [1, 1]} : vector<16x128xf32> to vector<16x1xf32>
    %35 = tpu.concatenate %33, %34 in 1 : vector<16x127xf32>, vector<16x1xf32> -> vector<16x128xf32>
    %c5 = arith.constant 5 : index
    %c0_12 = arith.constant 0 : index
    %c0_13 = arith.constant 0 : index
    %36 = vector.load %arg4[%c5, %c0_12, %c0_13] : memref<9x1x128xf32, #tpu.memory_space<vmem>>, vector<1x1x128xf32>
    %37 = vector.shape_cast %36 : vector<1x1x128xf32> to vector<1x128xf32>
    %38 = vector.broadcast %37 : vector<1x128xf32> to vector<16x128xf32>
    %39 = arith.mulf %35, %38 : vector<16x128xf32>
    %40 = vector.extract_strided_slice %0 {offsets = [0, 7], sizes = [16, 121], strides = [1, 1]} : vector<16x128xf32> to vector<16x121xf32>
    %41 = vector.extract_strided_slice %0 {offsets = [0, 0], sizes = [16, 7], strides = [1, 1]} : vector<16x128xf32> to vector<16x7xf32>
    %42 = tpu.concatenate %40, %41 in 1 : vector<16x121xf32>, vector<16x7xf32> -> vector<16x128xf32>
    %c6 = arith.constant 6 : index
    %c0_14 = arith.constant 0 : index
    %c0_15 = arith.constant 0 : index
    %43 = vector.load %arg4[%c6, %c0_14, %c0_15] : memref<9x1x128xf32, #tpu.memory_space<vmem>>, vector<1x1x128xf32>
    %44 = vector.shape_cast %43 : vector<1x1x128xf32> to vector<1x128xf32>
    %45 = vector.broadcast %44 : vector<1x128xf32> to vector<16x128xf32>
    %46 = arith.mulf %42, %45 : vector<16x128xf32>
    %47 = vector.extract_strided_slice %0 {offsets = [0, 8], sizes = [16, 120], strides = [1, 1]} : vector<16x128xf32> to vector<16x120xf32>
    %48 = vector.extract_strided_slice %0 {offsets = [0, 0], sizes = [16, 8], strides = [1, 1]} : vector<16x128xf32> to vector<16x8xf32>
    %49 = tpu.concatenate %47, %48 in 1 : vector<16x120xf32>, vector<16x8xf32> -> vector<16x128xf32>
    %c7 = arith.constant 7 : index
    %c0_16 = arith.constant 0 : index
    %c0_17 = arith.constant 0 : index
    %50 = vector.load %arg4[%c7, %c0_16, %c0_17] : memref<9x1x128xf32, #tpu.memory_space<vmem>>, vector<1x1x128xf32>
    %51 = vector.shape_cast %50 : vector<1x1x128xf32> to vector<1x128xf32>
    %52 = vector.broadcast %51 : vector<1x128xf32> to vector<16x128xf32>
    %53 = arith.mulf %49, %52 : vector<16x128xf32>
    %54 = vector.extract_strided_slice %0 {offsets = [0, 9], sizes = [16, 119], strides = [1, 1]} : vector<16x128xf32> to vector<16x119xf32>
    %55 = vector.extract_strided_slice %0 {offsets = [0, 0], sizes = [16, 9], strides = [1, 1]} : vector<16x128xf32> to vector<16x9xf32>
    %56 = tpu.concatenate %54, %55 in 1 : vector<16x119xf32>, vector<16x9xf32> -> vector<16x128xf32>
    %c8 = arith.constant 8 : index
    %c0_18 = arith.constant 0 : index
    %c0_19 = arith.constant 0 : index
    %57 = vector.load %arg4[%c8, %c0_18, %c0_19] : memref<9x1x128xf32, #tpu.memory_space<vmem>>, vector<1x1x128xf32>
    %58 = vector.shape_cast %57 : vector<1x1x128xf32> to vector<1x128xf32>
    %59 = vector.broadcast %58 : vector<1x128xf32> to vector<16x128xf32>
    %60 = arith.mulf %56, %59 : vector<16x128xf32>
    %61 = tpu.concatenate %7, %14, %21, %28, %32, %39, %46, %53, %60 in 0 : vector<16x128xf32>, vector<16x128xf32>, vector<16x128xf32>, vector<16x128xf32>, vector<16x128xf32>, vector<16x128xf32>, vector<16x128xf32>, vector<16x128xf32>, vector<16x128xf32> -> vector<144x128xf32>
    %c0_20 = arith.constant 0 : index
    %c0_21 = arith.constant 0 : index
    %62 = vector.load %arg2[%c0_20, %c0_21] : memref<16x144xf32, #tpu.memory_space<vmem>>, vector<16x144xf32>
    %cst = arith.constant dense<0.000000e+00> : vector<16x128xf32>
    %63 = tpu.matmul %62, %61, %cst {dimension_numbers = #tpu.dot_dimension_numbers<[1], [0], [0], [1], [0, 0, 1, 1], [], []>} : vector<16x144xf32>, vector<144x128xf32>, vector<16x128xf32> -> vector<16x128xf32>
    %c0_22 = arith.constant 0 : index
    %c0_23 = arith.constant 0 : index
    %64 = vector.load %arg3[%c0_22, %c0_23] : memref<16x1xf32, #tpu.memory_space<vmem>>, vector<16x1xf32>
    %65 = vector.broadcast %64 : vector<16x1xf32> to vector<16x128xf32>
    %66 = arith.addf %63, %65 : vector<16x128xf32>
    %c0_24 = arith.constant 0 : index
    %c0_25 = arith.constant 0 : index
    %67 = vector.load %arg5[%c0_24, %c0_25] : memref<16x128xf32, #tpu.memory_space<vmem>>, vector<16x128xf32>
    tpu.vector_store %arg5[%c0_24, %c0_25], %66 {strides = array<i32>} : memref<16x128xf32, #tpu.memory_space<vmem>>, vector<16x128xf32>,
    return
  }
  func.func @transform_0(%arg0: i32) -> (i32, i32) {
    %c0_i32 = arith.constant 0 : i32
    %c0_i32_0 = arith.constant 0 : i32
    %c0_i32_1 = arith.constant 0 : i32
    return %c0_i32, %c0_i32_0 : i32, i32
  }
  func.func @transform_1(%arg0: i32) -> (i32, i32) {
    %c0_i32 = arith.constant 0 : i32
    %c0_i32_0 = arith.constant 0 : i32
    %c0_i32_1 = arith.constant 0 : i32
    return %c0_i32, %c0_i32_0 : i32, i32
  }
  func.func @transform_2(%arg0: i32) -> (i32, i32) {
    %c0_i32 = arith.constant 0 : i32
    %c0_i32_0 = arith.constant 0 : i32
    %c0_i32_1 = arith.constant 0 : i32
    return %c0_i32, %c0_i32_0 : i32, i32
  }
  func.func @transform_3(%arg0: i32) -> (i32, i32, i32) {
    %c0_i32 = arith.constant 0 : i32
    %c0_i32_0 = arith.constant 0 : i32
    %c0_i32_1 = arith.constant 0 : i32
    %c0_i32_2 = arith.constant 0 : i32
    return %c0_i32, %c0_i32_0, %c0_i32_1 : i32, i32, i32
  }
  func.func @transform_4(%arg0: i32) -> (i32, i32) {
    %c0_i32 = arith.constant 0 : i32
    %c0_i32_0 = arith.constant 0 : i32
    %c0_i32_1 = arith.constant 0 : i32
    return %c0_i32, %c0_i32_0 : i32, i32
  }
}

module attributes {stable_mosaic.version = 11 : i64} {
  func.func @_conv3x3_kernel(%arg0: i32, %arg1: memref<16x128xf32, #tpu.memory_space<vmem>>, %arg2: memref<16x144xf32, #tpu.memory_space<vmem>>, %arg3: memref<16x1xf32, #tpu.memory_space<vmem>>, %arg4: memref<9x1x128xf32, #tpu.memory_space<vmem>>, %arg5: memref<16x128xf32, #tpu.memory_space<vmem>>) attributes {dimension_semantics = [#tpu.dimension_semantics<arbitrary>], iteration_bounds = array<i64: 1>, scalar_prefetch = 0 : i64, scratch_operands = 0 : i64, tpu.core_type = #tpu.core_type<tc>, window_params = [{pipeline_mode = #tpu.pipeline_mode<synchronous>, transform_indices = @transform_0, window_bounds = array<i64: 16, 128>}, {pipeline_mode = #tpu.pipeline_mode<synchronous>, transform_indices = @transform_1, window_bounds = array<i64: 16, 144>}, {pipeline_mode = #tpu.pipeline_mode<synchronous>, transform_indices = @transform_2, window_bounds = array<i64: 16, 1>}, {pipeline_mode = #tpu.pipeline_mode<synchronous>, transform_indices = @transform_3, window_bounds = array<i64: 9, 1, 128>}, {pipeline_mode = #tpu.pipeline_mode<synchronous>, transform_indices = @transform_4, window_bounds = array<i64: 16, 128>}]} {
    %c0 = arith.constant 0 : index
    %c0_0 = arith.constant 0 : index
    %0 = vector.load %arg1[%c0, %c0_0] : memref<16x128xf32, #tpu.memory_space<vmem>>, vector<16x128xf32>
    %1 = vector.extract_strided_slice %0 {offsets = [0, 119], sizes = [16, 9], strides = [1, 1]} : vector<16x128xf32> to vector<16x9xf32>
    %2 = vector.extract_strided_slice %0 {offsets = [0, 0], sizes = [16, 119], strides = [1, 1]} : vector<16x128xf32> to vector<16x119xf32>
    %3 = tpu.concatenate %1, %2 in 1 : vector<16x9xf32>, vector<16x119xf32> -> vector<16x128xf32>
    %c0_1 = arith.constant 0 : index
    %c0_2 = arith.constant 0 : index
    %c0_3 = arith.constant 0 : index
    %4 = vector.load %arg4[%c0_1, %c0_2, %c0_3] : memref<9x1x128xf32, #tpu.memory_space<vmem>>, vector<1x1x128xf32>
    %5 = vector.shape_cast %4 : vector<1x1x128xf32> to vector<1x128xf32>
    %6 = vector.broadcast %5 : vector<1x128xf32> to vector<16x128xf32>
    %7 = arith.mulf %3, %6 : vector<16x128xf32>
    %8 = vector.extract_strided_slice %0 {offsets = [0, 120], sizes = [16, 8], strides = [1, 1]} : vector<16x128xf32> to vector<16x8xf32>
    %9 = vector.extract_strided_slice %0 {offsets = [0, 0], sizes = [16, 120], strides = [1, 1]} : vector<16x128xf32> to vector<16x120xf32>
    %10 = tpu.concatenate %8, %9 in 1 : vector<16x8xf32>, vector<16x120xf32> -> vector<16x128xf32>
    %c1 = arith.constant 1 : index
    %c0_4 = arith.constant 0 : index
    %c0_5 = arith.constant 0 : index
    %11 = vector.load %arg4[%c1, %c0_4, %c0_5] : memref<9x1x128xf32, #tpu.memory_space<vmem>>, vector<1x1x128xf32>
    %12 = vector.shape_cast %11 : vector<1x1x128xf32> to vector<1x128xf32>
    %13 = vector.broadcast %12 : vector<1x128xf32> to vector<16x128xf32>
    %14 = arith.mulf %10, %13 : vector<16x128xf32>
    %15 = vector.extract_strided_slice %0 {offsets = [0, 121], sizes = [16, 7], strides = [1, 1]} : vector<16x128xf32> to vector<16x7xf32>
    %16 = vector.extract_strided_slice %0 {offsets = [0, 0], sizes = [16, 121], strides = [1, 1]} : vector<16x128xf32> to vector<16x121xf32>
    %17 = tpu.concatenate %15, %16 in 1 : vector<16x7xf32>, vector<16x121xf32> -> vector<16x128xf32>
    %c2 = arith.constant 2 : index
    %c0_6 = arith.constant 0 : index
    %c0_7 = arith.constant 0 : index
    %18 = vector.load %arg4[%c2, %c0_6, %c0_7] : memref<9x1x128xf32, #tpu.memory_space<vmem>>, vector<1x1x128xf32>
    %19 = vector.shape_cast %18 : vector<1x1x128xf32> to vector<1x128xf32>
    %20 = vector.broadcast %19 : vector<1x128xf32> to vector<16x128xf32>
    %21 = arith.mulf %17, %20 : vector<16x128xf32>
    %22 = vector.extract_strided_slice %0 {offsets = [0, 127], sizes = [16, 1], strides = [1, 1]} : vector<16x128xf32> to vector<16x1xf32>
    %23 = vector.extract_strided_slice %0 {offsets = [0, 0], sizes = [16, 127], strides = [1, 1]} : vector<16x128xf32> to vector<16x127xf32>
    %24 = tpu.concatenate %22, %23 in 1 : vector<16x1xf32>, vector<16x127xf32> -> vector<16x128xf32>
    %c3 = arith.constant 3 : index
    %c0_8 = arith.constant 0 : index
    %c0_9 = arith.constant 0 : index
    %25 = vector.load %arg4[%c3, %c0_8, %c0_9] : memref<9x1x128xf32, #tpu.memory_space<vmem>>, vector<1x1x128xf32>
    %26 = vector.shape_cast %25 : vector<1x1x128xf32> to vector<1x128xf32>
    %27 = vector.broadcast %26 : vector<1x128xf32> to vector<16x128xf32>
    %28 = arith.mulf %24, %27 : vector<16x128xf32>
    %c4 = arith.constant 4 : index
    %c0_10 = arith.constant 0 : index
    %c0_11 = arith.constant 0 : index
    %29 = vector.load %arg4[%c4, %c0_10, %c0_11] : memref<9x1x128xf32, #tpu.memory_space<vmem>>, vector<1x1x128xf32>
    %30 = vector.shape_cast %29 : vector<1x1x128xf32> to vector<1x128xf32>
    %31 = vector.broadcast %30 : vector<1x128xf32> to vector<16x128xf32>
    %32 = arith.mulf %0, %31 : vector<16x128xf32>
    %33 = vector.extract_strided_slice %0 {offsets = [0, 1], sizes = [16, 127], strides = [1, 1]} : vector<16x128xf32> to vector<16x127xf32>
    %34 = vector.extract_strided_slice %0 {offsets = [0, 0], sizes = [16, 1], strides = [1, 1]} : vector<16x128xf32> to vector<16x1xf32>
    %35 = tpu.concatenate %33, %34 in 1 : vector<16x127xf32>, vector<16x1xf32> -> vector<16x128xf32>
    %c5 = arith.constant 5 : index
    %c0_12 = arith.constant 0 : index
    %c0_13 = arith.constant 0 : index
    %36 = vector.load %arg4[%c5, %c0_12, %c0_13] : memref<9x1x128xf32, #tpu.memory_space<vmem>>, vector<1x1x128xf32>
    %37 = vector.shape_cast %36 : vector<1x1x128xf32> to vector<1x128xf32>
    %38 = vector.broadcast %37 : vector<1x128xf32> to vector<16x128xf32>
    %39 = arith.mulf %35, %38 : vector<16x128xf32>
    %40 = vector.extract_strided_slice %0 {offsets = [0, 7], sizes = [16, 121], strides = [1, 1]} : vector<16x128xf32> to vector<16x121xf32>
    %41 = vector.extract_strided_slice %0 {offsets = [0, 0], sizes = [16, 7], strides = [1, 1]} : vector<16x128xf32> to vector<16x7xf32>
    %42 = tpu.concatenate %40, %41 in 1 : vector<16x121xf32>, vector<16x7xf32> -> vector<16x128xf32>
    %c6 = arith.constant 6 : index
    %c0_14 = arith.constant 0 : index
    %c0_15 = arith.constant 0 : index
    %43 = vector.load %arg4[%c6, %c0_14, %c0_15] : memref<9x1x128xf32, #tpu.memory_space<vmem>>, vector<1x1x128xf32>
    %44 = vector.shape_cast %43 : vector<1x1x128xf32> to vector<1x128xf32>
    %45 = vector.broadcast %44 : vector<1x128xf32> to vector<16x128xf32>
    %46 = arith.mulf %42, %45 : vector<16x128xf32>
    %47 = vector.extract_strided_slice %0 {offsets = [0, 8], sizes = [16, 120], strides = [1, 1]} : vector<16x128xf32> to vector<16x120xf32>
    %48 = vector.extract_strided_slice %0 {offsets = [0, 0], sizes = [16, 8], strides = [1, 1]} : vector<16x128xf32> to vector<16x8xf32>
    %49 = tpu.concatenate %47, %48 in 1 : vector<16x120xf32>, vector<16x8xf32> -> vector<16x128xf32>
    %c7 = arith.constant 7 : index
    %c0_16 = arith.constant 0 : index
    %c0_17 = arith.constant 0 : index
    %50 = vector.load %arg4[%c7, %c0_16, %c0_17] : memref<9x1x128xf32, #tpu.memory_space<vmem>>, vector<1x1x128xf32>
    %51 = vector.shape_cast %50 : vector<1x1x128xf32> to vector<1x128xf32>
    %52 = vector.broadcast %51 : vector<1x128xf32> to vector<16x128xf32>
    %53 = arith.mulf %49, %52 : vector<16x128xf32>
    %54 = vector.extract_strided_slice %0 {offsets = [0, 9], sizes = [16, 119], strides = [1, 1]} : vector<16x128xf32> to vector<16x119xf32>
    %55 = vector.extract_strided_slice %0 {offsets = [0, 0], sizes = [16, 9], strides = [1, 1]} : vector<16x128xf32> to vector<16x9xf32>
    %56 = tpu.concatenate %54, %55 in 1 : vector<16x119xf32>, vector<16x9xf32> -> vector<16x128xf32>
    %c8 = arith.constant 8 : index
    %c0_18 = arith.constant 0 : index
    %c0_19 = arith.constant 0 : index
    %57 = vector.load %arg4[%c8, %c0_18, %c0_19] : memref<9x1x128xf32, #tpu.memory_space<vmem>>, vector<1x1x128xf32>
    %58 = vector.shape_cast %57 : vector<1x1x128xf32> to vector<1x128xf32>
    %59 = vector.broadcast %58 : vector<1x128xf32> to vector<16x128xf32>
    %60 = arith.mulf %56, %59 : vector<16x128xf32>
    %61 = tpu.concatenate %7, %14, %21, %28, %32, %39, %46, %53, %60 in 0 : vector<16x128xf32>, vector<16x128xf32>, vector<16x128xf32>, vector<16x128xf32>, vector<16x128xf32>, vector<16x128xf32>, vector<16x128xf32>, vector<16x128xf32>, vector<16x128xf32> -> vector<144x128xf32>
    %c0_20 = arith.constant 0 : index
    %c0_21 = arith.constant 0 : index
    %62 = vector.load %arg2[%c0_20, %c0_21] : memref<16x144xf32, #tpu.memory_space<vmem>>, vector<16x144xf32>
    %cst = arith.constant dense<0.000000e+00> : vector<16x128xf32>
    %63 = tpu.matmul %62, %61, %cst {dimension_numbers = #tpu.dot_dimension_numbers<[1], [0], [0], [1], [0, 0, 1, 1], [], []>} : vector<16x144xf32>, vector<144x128xf32>, vector<16x128xf32> -> vector<16x128xf32>
    %c0_22 = arith.constant 0 : index
    %c0_23 = arith.constant 0 : index
    %64 = vector.load %arg3[%c0_22, %c0_23] : memref<16x1xf32, #tpu.memory_space<vmem>>, vector<16x1xf32>
    %65 = vector.broadcast %64 : vector<16x1xf32> to vector<16x128xf32>
    %66 = arith.addf %63, %65 : vector<16x128xf32>
    %c0_24 = arith.constant 0 : index
    %c0_25 = arith.constant 0 : index
    %67 = vector.load %arg5[%c0_24, %c0_25] : memref<16x128xf32, #tpu.memory_space<vmem>>, vector<16x128xf32>
    tpu.vector_store %arg5[%c0_24, %c0_25], %66 {strides = array<i32>} : memref<16x128xf32, #tpu.memory_space<vmem>>, vector<16x128xf32>,
    return
  }
  func.func @transform_0(%arg0: i32) -> (i32, i32) {
    %c0_i32 = arith.constant 0 : i32
    %c0_i32_0 = arith.constant 0 : i32
    %c0_i32_1 = arith.constant 0 : i32
    return %c0_i32, %c0_i32_0 : i32, i32
  }
  func.func @transform_1(%arg0: i32) -> (i32, i32) {
    %c0_i32 = arith.constant 0 : i32
    %c0_i32_0 = arith.constant 0 : i32
    %c0_i32_1 = arith.constant 0 : i32
    return %c0_i32, %c0_i32_0 : i32, i32
  }
  func.func @transform_2(%arg0: i32) -> (i32, i32) {
    %c0_i32 = arith.constant 0 : i32
    %c0_i32_0 = arith.constant 0 : i32
    %c0_i32_1 = arith.constant 0 : i32
    return %c0_i32, %c0_i32_0 : i32, i32
  }
  func.func @transform_3(%arg0: i32) -> (i32, i32, i32) {
    %c0_i32 = arith.constant 0 : i32
    %c0_i32_0 = arith.constant 0 : i32
    %c0_i32_1 = arith.constant 0 : i32
    %c0_i32_2 = arith.constant 0 : i32
    return %c0_i32, %c0_i32_0, %c0_i32_1 : i32, i32, i32
  }
  func.func @transform_4(%arg0: i32) -> (i32, i32) {
    %c0_i32 = arith.constant 0 : i32
    %c0_i32_0 = arith.constant 0 : i32
    %c0_i32_1 = arith.constant 0 : i32
    return %c0_i32, %c0_i32_0 : i32, i32
  }
}

module attributes {stable_mosaic.version = 11 : i64} {
  func.func @_conv3x3_kernel(%arg0: i32, %arg1: memref<16x128xf32, #tpu.memory_space<vmem>>, %arg2: memref<16x144xf32, #tpu.memory_space<vmem>>, %arg3: memref<16x1xf32, #tpu.memory_space<vmem>>, %arg4: memref<9x1x128xf32, #tpu.memory_space<vmem>>, %arg5: memref<16x128xf32, #tpu.memory_space<vmem>>) attributes {dimension_semantics = [#tpu.dimension_semantics<arbitrary>], iteration_bounds = array<i64: 1>, scalar_prefetch = 0 : i64, scratch_operands = 0 : i64, tpu.core_type = #tpu.core_type<tc>, window_params = [{pipeline_mode = #tpu.pipeline_mode<synchronous>, transform_indices = @transform_0, window_bounds = array<i64: 16, 128>}, {pipeline_mode = #tpu.pipeline_mode<synchronous>, transform_indices = @transform_1, window_bounds = array<i64: 16, 144>}, {pipeline_mode = #tpu.pipeline_mode<synchronous>, transform_indices = @transform_2, window_bounds = array<i64: 16, 1>}, {pipeline_mode = #tpu.pipeline_mode<synchronous>, transform_indices = @transform_3, window_bounds = array<i64: 9, 1, 128>}, {pipeline_mode = #tpu.pipeline_mode<synchronous>, transform_indices = @transform_4, window_bounds = array<i64: 16, 128>}]} {
    %c0 = arith.constant 0 : index
    %c0_0 = arith.constant 0 : index
    %0 = vector.load %arg1[%c0, %c0_0] : memref<16x128xf32, #tpu.memory_space<vmem>>, vector<16x128xf32>
    %1 = vector.extract_strided_slice %0 {offsets = [0, 119], sizes = [16, 9], strides = [1, 1]} : vector<16x128xf32> to vector<16x9xf32>
    %2 = vector.extract_strided_slice %0 {offsets = [0, 0], sizes = [16, 119], strides = [1, 1]} : vector<16x128xf32> to vector<16x119xf32>
    %3 = tpu.concatenate %1, %2 in 1 : vector<16x9xf32>, vector<16x119xf32> -> vector<16x128xf32>
    %c0_1 = arith.constant 0 : index
    %c0_2 = arith.constant 0 : index
    %c0_3 = arith.constant 0 : index
    %4 = vector.load %arg4[%c0_1, %c0_2, %c0_3] : memref<9x1x128xf32, #tpu.memory_space<vmem>>, vector<1x1x128xf32>
    %5 = vector.shape_cast %4 : vector<1x1x128xf32> to vector<1x128xf32>
    %6 = vector.broadcast %5 : vector<1x128xf32> to vector<16x128xf32>
    %7 = arith.mulf %3, %6 : vector<16x128xf32>
    %8 = vector.extract_strided_slice %0 {offsets = [0, 120], sizes = [16, 8], strides = [1, 1]} : vector<16x128xf32> to vector<16x8xf32>
    %9 = vector.extract_strided_slice %0 {offsets = [0, 0], sizes = [16, 120], strides = [1, 1]} : vector<16x128xf32> to vector<16x120xf32>
    %10 = tpu.concatenate %8, %9 in 1 : vector<16x8xf32>, vector<16x120xf32> -> vector<16x128xf32>
    %c1 = arith.constant 1 : index
    %c0_4 = arith.constant 0 : index
    %c0_5 = arith.constant 0 : index
    %11 = vector.load %arg4[%c1, %c0_4, %c0_5] : memref<9x1x128xf32, #tpu.memory_space<vmem>>, vector<1x1x128xf32>
    %12 = vector.shape_cast %11 : vector<1x1x128xf32> to vector<1x128xf32>
    %13 = vector.broadcast %12 : vector<1x128xf32> to vector<16x128xf32>
    %14 = arith.mulf %10, %13 : vector<16x128xf32>
    %15 = vector.extract_strided_slice %0 {offsets = [0, 121], sizes = [16, 7], strides = [1, 1]} : vector<16x128xf32> to vector<16x7xf32>
    %16 = vector.extract_strided_slice %0 {offsets = [0, 0], sizes = [16, 121], strides = [1, 1]} : vector<16x128xf32> to vector<16x121xf32>
    %17 = tpu.concatenate %15, %16 in 1 : vector<16x7xf32>, vector<16x121xf32> -> vector<16x128xf32>
    %c2 = arith.constant 2 : index
    %c0_6 = arith.constant 0 : index
    %c0_7 = arith.constant 0 : index
    %18 = vector.load %arg4[%c2, %c0_6, %c0_7] : memref<9x1x128xf32, #tpu.memory_space<vmem>>, vector<1x1x128xf32>
    %19 = vector.shape_cast %18 : vector<1x1x128xf32> to vector<1x128xf32>
    %20 = vector.broadcast %19 : vector<1x128xf32> to vector<16x128xf32>
    %21 = arith.mulf %17, %20 : vector<16x128xf32>
    %22 = vector.extract_strided_slice %0 {offsets = [0, 127], sizes = [16, 1], strides = [1, 1]} : vector<16x128xf32> to vector<16x1xf32>
    %23 = vector.extract_strided_slice %0 {offsets = [0, 0], sizes = [16, 127], strides = [1, 1]} : vector<16x128xf32> to vector<16x127xf32>
    %24 = tpu.concatenate %22, %23 in 1 : vector<16x1xf32>, vector<16x127xf32> -> vector<16x128xf32>
    %c3 = arith.constant 3 : index
    %c0_8 = arith.constant 0 : index
    %c0_9 = arith.constant 0 : index
    %25 = vector.load %arg4[%c3, %c0_8, %c0_9] : memref<9x1x128xf32, #tpu.memory_space<vmem>>, vector<1x1x128xf32>
    %26 = vector.shape_cast %25 : vector<1x1x128xf32> to vector<1x128xf32>
    %27 = vector.broadcast %26 : vector<1x128xf32> to vector<16x128xf32>
    %28 = arith.mulf %24, %27 : vector<16x128xf32>
    %c4 = arith.constant 4 : index
    %c0_10 = arith.constant 0 : index
    %c0_11 = arith.constant 0 : index
    %29 = vector.load %arg4[%c4, %c0_10, %c0_11] : memref<9x1x128xf32, #tpu.memory_space<vmem>>, vector<1x1x128xf32>
    %30 = vector.shape_cast %29 : vector<1x1x128xf32> to vector<1x128xf32>
    %31 = vector.broadcast %30 : vector<1x128xf32> to vector<16x128xf32>
    %32 = arith.mulf %0, %31 : vector<16x128xf32>
    %33 = vector.extract_strided_slice %0 {offsets = [0, 1], sizes = [16, 127], strides = [1, 1]} : vector<16x128xf32> to vector<16x127xf32>
    %34 = vector.extract_strided_slice %0 {offsets = [0, 0], sizes = [16, 1], strides = [1, 1]} : vector<16x128xf32> to vector<16x1xf32>
    %35 = tpu.concatenate %33, %34 in 1 : vector<16x127xf32>, vector<16x1xf32> -> vector<16x128xf32>
    %c5 = arith.constant 5 : index
    %c0_12 = arith.constant 0 : index
    %c0_13 = arith.constant 0 : index
    %36 = vector.load %arg4[%c5, %c0_12, %c0_13] : memref<9x1x128xf32, #tpu.memory_space<vmem>>, vector<1x1x128xf32>
    %37 = vector.shape_cast %36 : vector<1x1x128xf32> to vector<1x128xf32>
    %38 = vector.broadcast %37 : vector<1x128xf32> to vector<16x128xf32>
    %39 = arith.mulf %35, %38 : vector<16x128xf32>
    %40 = vector.extract_strided_slice %0 {offsets = [0, 7], sizes = [16, 121], strides = [1, 1]} : vector<16x128xf32> to vector<16x121xf32>
    %41 = vector.extract_strided_slice %0 {offsets = [0, 0], sizes = [16, 7], strides = [1, 1]} : vector<16x128xf32> to vector<16x7xf32>
    %42 = tpu.concatenate %40, %41 in 1 : vector<16x121xf32>, vector<16x7xf32> -> vector<16x128xf32>
    %c6 = arith.constant 6 : index
    %c0_14 = arith.constant 0 : index
    %c0_15 = arith.constant 0 : index
    %43 = vector.load %arg4[%c6, %c0_14, %c0_15] : memref<9x1x128xf32, #tpu.memory_space<vmem>>, vector<1x1x128xf32>
    %44 = vector.shape_cast %43 : vector<1x1x128xf32> to vector<1x128xf32>
    %45 = vector.broadcast %44 : vector<1x128xf32> to vector<16x128xf32>
    %46 = arith.mulf %42, %45 : vector<16x128xf32>
    %47 = vector.extract_strided_slice %0 {offsets = [0, 8], sizes = [16, 120], strides = [1, 1]} : vector<16x128xf32> to vector<16x120xf32>
    %48 = vector.extract_strided_slice %0 {offsets = [0, 0], sizes = [16, 8], strides = [1, 1]} : vector<16x128xf32> to vector<16x8xf32>
    %49 = tpu.concatenate %47, %48 in 1 : vector<16x120xf32>, vector<16x8xf32> -> vector<16x128xf32>
    %c7 = arith.constant 7 : index
    %c0_16 = arith.constant 0 : index
    %c0_17 = arith.constant 0 : index
    %50 = vector.load %arg4[%c7, %c0_16, %c0_17] : memref<9x1x128xf32, #tpu.memory_space<vmem>>, vector<1x1x128xf32>
    %51 = vector.shape_cast %50 : vector<1x1x128xf32> to vector<1x128xf32>
    %52 = vector.broadcast %51 : vector<1x128xf32> to vector<16x128xf32>
    %53 = arith.mulf %49, %52 : vector<16x128xf32>
    %54 = vector.extract_strided_slice %0 {offsets = [0, 9], sizes = [16, 119], strides = [1, 1]} : vector<16x128xf32> to vector<16x119xf32>
    %55 = vector.extract_strided_slice %0 {offsets = [0, 0], sizes = [16, 9], strides = [1, 1]} : vector<16x128xf32> to vector<16x9xf32>
    %56 = tpu.concatenate %54, %55 in 1 : vector<16x119xf32>, vector<16x9xf32> -> vector<16x128xf32>
    %c8 = arith.constant 8 : index
    %c0_18 = arith.constant 0 : index
    %c0_19 = arith.constant 0 : index
    %57 = vector.load %arg4[%c8, %c0_18, %c0_19] : memref<9x1x128xf32, #tpu.memory_space<vmem>>, vector<1x1x128xf32>
    %58 = vector.shape_cast %57 : vector<1x1x128xf32> to vector<1x128xf32>
    %59 = vector.broadcast %58 : vector<1x128xf32> to vector<16x128xf32>
    %60 = arith.mulf %56, %59 : vector<16x128xf32>
    %61 = tpu.concatenate %7, %14, %21, %28, %32, %39, %46, %53, %60 in 0 : vector<16x128xf32>, vector<16x128xf32>, vector<16x128xf32>, vector<16x128xf32>, vector<16x128xf32>, vector<16x128xf32>, vector<16x128xf32>, vector<16x128xf32>, vector<16x128xf32> -> vector<144x128xf32>
    %c0_20 = arith.constant 0 : index
    %c0_21 = arith.constant 0 : index
    %62 = vector.load %arg2[%c0_20, %c0_21] : memref<16x144xf32, #tpu.memory_space<vmem>>, vector<16x144xf32>
    %cst = arith.constant dense<0.000000e+00> : vector<16x128xf32>
    %63 = tpu.matmul %62, %61, %cst {dimension_numbers = #tpu.dot_dimension_numbers<[1], [0], [0], [1], [0, 0, 1, 1], [], []>} : vector<16x144xf32>, vector<144x128xf32>, vector<16x128xf32> -> vector<16x128xf32>
    %c0_22 = arith.constant 0 : index
    %c0_23 = arith.constant 0 : index
    %64 = vector.load %arg3[%c0_22, %c0_23] : memref<16x1xf32, #tpu.memory_space<vmem>>, vector<16x1xf32>
    %65 = vector.broadcast %64 : vector<16x1xf32> to vector<16x128xf32>
    %66 = arith.addf %63, %65 : vector<16x128xf32>
    %c0_24 = arith.constant 0 : index
    %c0_25 = arith.constant 0 : index
    %67 = vector.load %arg5[%c0_24, %c0_25] : memref<16x128xf32, #tpu.memory_space<vmem>>, vector<16x128xf32>
    tpu.vector_store %arg5[%c0_24, %c0_25], %66 {strides = array<i32>} : memref<16x128xf32, #tpu.memory_space<vmem>>, vector<16x128xf32>,
    return
  }
  func.func @transform_0(%arg0: i32) -> (i32, i32) {
    %c0_i32 = arith.constant 0 : i32
    %c0_i32_0 = arith.constant 0 : i32
    %c0_i32_1 = arith.constant 0 : i32
    return %c0_i32, %c0_i32_0 : i32, i32
  }
  func.func @transform_1(%arg0: i32) -> (i32, i32) {
    %c0_i32 = arith.constant 0 : i32
    %c0_i32_0 = arith.constant 0 : i32
    %c0_i32_1 = arith.constant 0 : i32
    return %c0_i32, %c0_i32_0 : i32, i32
  }
  func.func @transform_2(%arg0: i32) -> (i32, i32) {
    %c0_i32 = arith.constant 0 : i32
    %c0_i32_0 = arith.constant 0 : i32
    %c0_i32_1 = arith.constant 0 : i32
    return %c0_i32, %c0_i32_0 : i32, i32
  }
  func.func @transform_3(%arg0: i32) -> (i32, i32, i32) {
    %c0_i32 = arith.constant 0 : i32
    %c0_i32_0 = arith.constant 0 : i32
    %c0_i32_1 = arith.constant 0 : i32
    %c0_i32_2 = arith.constant 0 : i32
    return %c0_i32, %c0_i32_0, %c0_i32_1 : i32, i32, i32
  }
  func.func @transform_4(%arg0: i32) -> (i32, i32) {
    %c0_i32 = arith.constant 0 : i32
    %c0_i32_0 = arith.constant 0 : i32
    %c0_i32_1 = arith.constant 0 : i32
    return %c0_i32, %c0_i32_0 : i32, i32
  }
}

module attributes {stable_mosaic.version = 11 : i64} {
  func.func @_conv3x3_kernel(%arg0: i32, %arg1: memref<16x128xf32, #tpu.memory_space<vmem>>, %arg2: memref<16x144xf32, #tpu.memory_space<vmem>>, %arg3: memref<16x1xf32, #tpu.memory_space<vmem>>, %arg4: memref<9x1x128xf32, #tpu.memory_space<vmem>>, %arg5: memref<16x128xf32, #tpu.memory_space<vmem>>) attributes {dimension_semantics = [#tpu.dimension_semantics<arbitrary>], iteration_bounds = array<i64: 1>, scalar_prefetch = 0 : i64, scratch_operands = 0 : i64, tpu.core_type = #tpu.core_type<tc>, window_params = [{pipeline_mode = #tpu.pipeline_mode<synchronous>, transform_indices = @transform_0, window_bounds = array<i64: 16, 128>}, {pipeline_mode = #tpu.pipeline_mode<synchronous>, transform_indices = @transform_1, window_bounds = array<i64: 16, 144>}, {pipeline_mode = #tpu.pipeline_mode<synchronous>, transform_indices = @transform_2, window_bounds = array<i64: 16, 1>}, {pipeline_mode = #tpu.pipeline_mode<synchronous>, transform_indices = @transform_3, window_bounds = array<i64: 9, 1, 128>}, {pipeline_mode = #tpu.pipeline_mode<synchronous>, transform_indices = @transform_4, window_bounds = array<i64: 16, 128>}]} {
    %c0 = arith.constant 0 : index
    %c0_0 = arith.constant 0 : index
    %0 = vector.load %arg1[%c0, %c0_0] : memref<16x128xf32, #tpu.memory_space<vmem>>, vector<16x128xf32>
    %1 = vector.extract_strided_slice %0 {offsets = [0, 119], sizes = [16, 9], strides = [1, 1]} : vector<16x128xf32> to vector<16x9xf32>
    %2 = vector.extract_strided_slice %0 {offsets = [0, 0], sizes = [16, 119], strides = [1, 1]} : vector<16x128xf32> to vector<16x119xf32>
    %3 = tpu.concatenate %1, %2 in 1 : vector<16x9xf32>, vector<16x119xf32> -> vector<16x128xf32>
    %c0_1 = arith.constant 0 : index
    %c0_2 = arith.constant 0 : index
    %c0_3 = arith.constant 0 : index
    %4 = vector.load %arg4[%c0_1, %c0_2, %c0_3] : memref<9x1x128xf32, #tpu.memory_space<vmem>>, vector<1x1x128xf32>
    %5 = vector.shape_cast %4 : vector<1x1x128xf32> to vector<1x128xf32>
    %6 = vector.broadcast %5 : vector<1x128xf32> to vector<16x128xf32>
    %7 = arith.mulf %3, %6 : vector<16x128xf32>
    %8 = vector.extract_strided_slice %0 {offsets = [0, 120], sizes = [16, 8], strides = [1, 1]} : vector<16x128xf32> to vector<16x8xf32>
    %9 = vector.extract_strided_slice %0 {offsets = [0, 0], sizes = [16, 120], strides = [1, 1]} : vector<16x128xf32> to vector<16x120xf32>
    %10 = tpu.concatenate %8, %9 in 1 : vector<16x8xf32>, vector<16x120xf32> -> vector<16x128xf32>
    %c1 = arith.constant 1 : index
    %c0_4 = arith.constant 0 : index
    %c0_5 = arith.constant 0 : index
    %11 = vector.load %arg4[%c1, %c0_4, %c0_5] : memref<9x1x128xf32, #tpu.memory_space<vmem>>, vector<1x1x128xf32>
    %12 = vector.shape_cast %11 : vector<1x1x128xf32> to vector<1x128xf32>
    %13 = vector.broadcast %12 : vector<1x128xf32> to vector<16x128xf32>
    %14 = arith.mulf %10, %13 : vector<16x128xf32>
    %15 = vector.extract_strided_slice %0 {offsets = [0, 121], sizes = [16, 7], strides = [1, 1]} : vector<16x128xf32> to vector<16x7xf32>
    %16 = vector.extract_strided_slice %0 {offsets = [0, 0], sizes = [16, 121], strides = [1, 1]} : vector<16x128xf32> to vector<16x121xf32>
    %17 = tpu.concatenate %15, %16 in 1 : vector<16x7xf32>, vector<16x121xf32> -> vector<16x128xf32>
    %c2 = arith.constant 2 : index
    %c0_6 = arith.constant 0 : index
    %c0_7 = arith.constant 0 : index
    %18 = vector.load %arg4[%c2, %c0_6, %c0_7] : memref<9x1x128xf32, #tpu.memory_space<vmem>>, vector<1x1x128xf32>
    %19 = vector.shape_cast %18 : vector<1x1x128xf32> to vector<1x128xf32>
    %20 = vector.broadcast %19 : vector<1x128xf32> to vector<16x128xf32>
    %21 = arith.mulf %17, %20 : vector<16x128xf32>
    %22 = vector.extract_strided_slice %0 {offsets = [0, 127], sizes = [16, 1], strides = [1, 1]} : vector<16x128xf32> to vector<16x1xf32>
    %23 = vector.extract_strided_slice %0 {offsets = [0, 0], sizes = [16, 127], strides = [1, 1]} : vector<16x128xf32> to vector<16x127xf32>
    %24 = tpu.concatenate %22, %23 in 1 : vector<16x1xf32>, vector<16x127xf32> -> vector<16x128xf32>
    %c3 = arith.constant 3 : index
    %c0_8 = arith.constant 0 : index
    %c0_9 = arith.constant 0 : index
    %25 = vector.load %arg4[%c3, %c0_8, %c0_9] : memref<9x1x128xf32, #tpu.memory_space<vmem>>, vector<1x1x128xf32>
    %26 = vector.shape_cast %25 : vector<1x1x128xf32> to vector<1x128xf32>
    %27 = vector.broadcast %26 : vector<1x128xf32> to vector<16x128xf32>
    %28 = arith.mulf %24, %27 : vector<16x128xf32>
    %c4 = arith.constant 4 : index
    %c0_10 = arith.constant 0 : index
    %c0_11 = arith.constant 0 : index
    %29 = vector.load %arg4[%c4, %c0_10, %c0_11] : memref<9x1x128xf32, #tpu.memory_space<vmem>>, vector<1x1x128xf32>
    %30 = vector.shape_cast %29 : vector<1x1x128xf32> to vector<1x128xf32>
    %31 = vector.broadcast %30 : vector<1x128xf32> to vector<16x128xf32>
    %32 = arith.mulf %0, %31 : vector<16x128xf32>
    %33 = vector.extract_strided_slice %0 {offsets = [0, 1], sizes = [16, 127], strides = [1, 1]} : vector<16x128xf32> to vector<16x127xf32>
    %34 = vector.extract_strided_slice %0 {offsets = [0, 0], sizes = [16, 1], strides = [1, 1]} : vector<16x128xf32> to vector<16x1xf32>
    %35 = tpu.concatenate %33, %34 in 1 : vector<16x127xf32>, vector<16x1xf32> -> vector<16x128xf32>
    %c5 = arith.constant 5 : index
    %c0_12 = arith.constant 0 : index
    %c0_13 = arith.constant 0 : index
    %36 = vector.load %arg4[%c5, %c0_12, %c0_13] : memref<9x1x128xf32, #tpu.memory_space<vmem>>, vector<1x1x128xf32>
    %37 = vector.shape_cast %36 : vector<1x1x128xf32> to vector<1x128xf32>
    %38 = vector.broadcast %37 : vector<1x128xf32> to vector<16x128xf32>
    %39 = arith.mulf %35, %38 : vector<16x128xf32>
    %40 = vector.extract_strided_slice %0 {offsets = [0, 7], sizes = [16, 121], strides = [1, 1]} : vector<16x128xf32> to vector<16x121xf32>
    %41 = vector.extract_strided_slice %0 {offsets = [0, 0], sizes = [16, 7], strides = [1, 1]} : vector<16x128xf32> to vector<16x7xf32>
    %42 = tpu.concatenate %40, %41 in 1 : vector<16x121xf32>, vector<16x7xf32> -> vector<16x128xf32>
    %c6 = arith.constant 6 : index
    %c0_14 = arith.constant 0 : index
    %c0_15 = arith.constant 0 : index
    %43 = vector.load %arg4[%c6, %c0_14, %c0_15] : memref<9x1x128xf32, #tpu.memory_space<vmem>>, vector<1x1x128xf32>
    %44 = vector.shape_cast %43 : vector<1x1x128xf32> to vector<1x128xf32>
    %45 = vector.broadcast %44 : vector<1x128xf32> to vector<16x128xf32>
    %46 = arith.mulf %42, %45 : vector<16x128xf32>
    %47 = vector.extract_strided_slice %0 {offsets = [0, 8], sizes = [16, 120], strides = [1, 1]} : vector<16x128xf32> to vector<16x120xf32>
    %48 = vector.extract_strided_slice %0 {offsets = [0, 0], sizes = [16, 8], strides = [1, 1]} : vector<16x128xf32> to vector<16x8xf32>
    %49 = tpu.concatenate %47, %48 in 1 : vector<16x120xf32>, vector<16x8xf32> -> vector<16x128xf32>
    %c7 = arith.constant 7 : index
    %c0_16 = arith.constant 0 : index
    %c0_17 = arith.constant 0 : index
    %50 = vector.load %arg4[%c7, %c0_16, %c0_17] : memref<9x1x128xf32, #tpu.memory_space<vmem>>, vector<1x1x128xf32>
    %51 = vector.shape_cast %50 : vector<1x1x128xf32> to vector<1x128xf32>
    %52 = vector.broadcast %51 : vector<1x128xf32> to vector<16x128xf32>
    %53 = arith.mulf %49, %52 : vector<16x128xf32>
    %54 = vector.extract_strided_slice %0 {offsets = [0, 9], sizes = [16, 119], strides = [1, 1]} : vector<16x128xf32> to vector<16x119xf32>
    %55 = vector.extract_strided_slice %0 {offsets = [0, 0], sizes = [16, 9], strides = [1, 1]} : vector<16x128xf32> to vector<16x9xf32>
    %56 = tpu.concatenate %54, %55 in 1 : vector<16x119xf32>, vector<16x9xf32> -> vector<16x128xf32>
    %c8 = arith.constant 8 : index
    %c0_18 = arith.constant 0 : index
    %c0_19 = arith.constant 0 : index
    %57 = vector.load %arg4[%c8, %c0_18, %c0_19] : memref<9x1x128xf32, #tpu.memory_space<vmem>>, vector<1x1x128xf32>
    %58 = vector.shape_cast %57 : vector<1x1x128xf32> to vector<1x128xf32>
    %59 = vector.broadcast %58 : vector<1x128xf32> to vector<16x128xf32>
    %60 = arith.mulf %56, %59 : vector<16x128xf32>
    %61 = tpu.concatenate %7, %14, %21, %28, %32, %39, %46, %53, %60 in 0 : vector<16x128xf32>, vector<16x128xf32>, vector<16x128xf32>, vector<16x128xf32>, vector<16x128xf32>, vector<16x128xf32>, vector<16x128xf32>, vector<16x128xf32>, vector<16x128xf32> -> vector<144x128xf32>
    %c0_20 = arith.constant 0 : index
    %c0_21 = arith.constant 0 : index
    %62 = vector.load %arg2[%c0_20, %c0_21] : memref<16x144xf32, #tpu.memory_space<vmem>>, vector<16x144xf32>
    %cst = arith.constant dense<0.000000e+00> : vector<16x128xf32>
    %63 = tpu.matmul %62, %61, %cst {dimension_numbers = #tpu.dot_dimension_numbers<[1], [0], [0], [1], [0, 0, 1, 1], [], []>} : vector<16x144xf32>, vector<144x128xf32>, vector<16x128xf32> -> vector<16x128xf32>
    %c0_22 = arith.constant 0 : index
    %c0_23 = arith.constant 0 : index
    %64 = vector.load %arg3[%c0_22, %c0_23] : memref<16x1xf32, #tpu.memory_space<vmem>>, vector<16x1xf32>
    %65 = vector.broadcast %64 : vector<16x1xf32> to vector<16x128xf32>
    %66 = arith.addf %63, %65 : vector<16x128xf32>
    %c0_24 = arith.constant 0 : index
    %c0_25 = arith.constant 0 : index
    %67 = vector.load %arg5[%c0_24, %c0_25] : memref<16x128xf32, #tpu.memory_space<vmem>>, vector<16x128xf32>
    tpu.vector_store %arg5[%c0_24, %c0_25], %66 {strides = array<i32>} : memref<16x128xf32, #tpu.memory_space<vmem>>, vector<16x128xf32>,
    return
  }
  func.func @transform_0(%arg0: i32) -> (i32, i32) {
    %c0_i32 = arith.constant 0 : i32
    %c0_i32_0 = arith.constant 0 : i32
    %c0_i32_1 = arith.constant 0 : i32
    return %c0_i32, %c0_i32_0 : i32, i32
  }
  func.func @transform_1(%arg0: i32) -> (i32, i32) {
    %c0_i32 = arith.constant 0 : i32
    %c0_i32_0 = arith.constant 0 : i32
    %c0_i32_1 = arith.constant 0 : i32
    return %c0_i32, %c0_i32_0 : i32, i32
  }
  func.func @transform_2(%arg0: i32) -> (i32, i32) {
    %c0_i32 = arith.constant 0 : i32
    %c0_i32_0 = arith.constant 0 : i32
    %c0_i32_1 = arith.constant 0 : i32
    return %c0_i32, %c0_i32_0 : i32, i32
  }
  func.func @transform_3(%arg0: i32) -> (i32, i32, i32) {
    %c0_i32 = arith.constant 0 : i32
    %c0_i32_0 = arith.constant 0 : i32
    %c0_i32_1 = arith.constant 0 : i32
    %c0_i32_2 = arith.constant 0 : i32
    return %c0_i32, %c0_i32_0, %c0_i32_1 : i32, i32, i32
  }
  func.func @transform_4(%arg0: i32) -> (i32, i32) {
    %c0_i32 = arith.constant 0 : i32
    %c0_i32_0 = arith.constant 0 : i32
    %c0_i32_1 = arith.constant 0 : i32
    return %c0_i32, %c0_i32_0 : i32, i32
  }
}

module attributes {stable_mosaic.version = 11 : i64} {
  func.func @_conv3x3_kernel(%arg0: i32, %arg1: memref<16x512xf32, #tpu.memory_space<vmem>>, %arg2: memref<8x144xf32, #tpu.memory_space<vmem>>, %arg3: memref<8x1xf32, #tpu.memory_space<vmem>>, %arg4: memref<9x1x512xf32, #tpu.memory_space<vmem>>, %arg5: memref<8x512xf32, #tpu.memory_space<vmem>>) attributes {dimension_semantics = [#tpu.dimension_semantics<arbitrary>], iteration_bounds = array<i64: 1>, scalar_prefetch = 0 : i64, scratch_operands = 0 : i64, tpu.core_type = #tpu.core_type<tc>, window_params = [{pipeline_mode = #tpu.pipeline_mode<synchronous>, transform_indices = @transform_0, window_bounds = array<i64: 16, 512>}, {pipeline_mode = #tpu.pipeline_mode<synchronous>, transform_indices = @transform_1, window_bounds = array<i64: 8, 144>}, {pipeline_mode = #tpu.pipeline_mode<synchronous>, transform_indices = @transform_2, window_bounds = array<i64: 8, 1>}, {pipeline_mode = #tpu.pipeline_mode<synchronous>, transform_indices = @transform_3, window_bounds = array<i64: 9, 1, 512>}, {pipeline_mode = #tpu.pipeline_mode<synchronous>, transform_indices = @transform_4, window_bounds = array<i64: 8, 512>}]} {
    %c0 = arith.constant 0 : index
    %c0_0 = arith.constant 0 : index
    %0 = vector.load %arg1[%c0, %c0_0] : memref<16x512xf32, #tpu.memory_space<vmem>>, vector<16x512xf32>
    %1 = vector.extract_strided_slice %0 {offsets = [0, 495], sizes = [16, 17], strides = [1, 1]} : vector<16x512xf32> to vector<16x17xf32>
    %2 = vector.extract_strided_slice %0 {offsets = [0, 0], sizes = [16, 495], strides = [1, 1]} : vector<16x512xf32> to vector<16x495xf32>
    %3 = tpu.concatenate %1, %2 in 1 : vector<16x17xf32>, vector<16x495xf32> -> vector<16x512xf32>
    %c0_1 = arith.constant 0 : index
    %c0_2 = arith.constant 0 : index
    %c0_3 = arith.constant 0 : index
    %4 = vector.load %arg4[%c0_1, %c0_2, %c0_3] : memref<9x1x512xf32, #tpu.memory_space<vmem>>, vector<1x1x512xf32>
    %5 = vector.shape_cast %4 : vector<1x1x512xf32> to vector<1x512xf32>
    %6 = vector.broadcast %5 : vector<1x512xf32> to vector<16x512xf32>
    %7 = arith.mulf %3, %6 : vector<16x512xf32>
    %8 = vector.extract_strided_slice %0 {offsets = [0, 496], sizes = [16, 16], strides = [1, 1]} : vector<16x512xf32> to vector<16x16xf32>
    %9 = vector.extract_strided_slice %0 {offsets = [0, 0], sizes = [16, 496], strides = [1, 1]} : vector<16x512xf32> to vector<16x496xf32>
    %10 = tpu.concatenate %8, %9 in 1 : vector<16x16xf32>, vector<16x496xf32> -> vector<16x512xf32>
    %c1 = arith.constant 1 : index
    %c0_4 = arith.constant 0 : index
    %c0_5 = arith.constant 0 : index
    %11 = vector.load %arg4[%c1, %c0_4, %c0_5] : memref<9x1x512xf32, #tpu.memory_space<vmem>>, vector<1x1x512xf32>
    %12 = vector.shape_cast %11 : vector<1x1x512xf32> to vector<1x512xf32>
    %13 = vector.broadcast %12 : vector<1x512xf32> to vector<16x512xf32>
    %14 = arith.mulf %10, %13 : vector<16x512xf32>
    %15 = vector.extract_strided_slice %0 {offsets = [0, 497], sizes = [16, 15], strides = [1, 1]} : vector<16x512xf32> to vector<16x15xf32>
    %16 = vector.extract_strided_slice %0 {offsets = [0, 0], sizes = [16, 497], strides = [1, 1]} : vector<16x512xf32> to vector<16x497xf32>
    %17 = tpu.concatenate %15, %16 in 1 : vector<16x15xf32>, vector<16x497xf32> -> vector<16x512xf32>
    %c2 = arith.constant 2 : index
    %c0_6 = arith.constant 0 : index
    %c0_7 = arith.constant 0 : index
    %18 = vector.load %arg4[%c2, %c0_6, %c0_7] : memref<9x1x512xf32, #tpu.memory_space<vmem>>, vector<1x1x512xf32>
    %19 = vector.shape_cast %18 : vector<1x1x512xf32> to vector<1x512xf32>
    %20 = vector.broadcast %19 : vector<1x512xf32> to vector<16x512xf32>
    %21 = arith.mulf %17, %20 : vector<16x512xf32>
    %22 = vector.extract_strided_slice %0 {offsets = [0, 511], sizes = [16, 1], strides = [1, 1]} : vector<16x512xf32> to vector<16x1xf32>
    %23 = vector.extract_strided_slice %0 {offsets = [0, 0], sizes = [16, 511], strides = [1, 1]} : vector<16x512xf32> to vector<16x511xf32>
    %24 = tpu.concatenate %22, %23 in 1 : vector<16x1xf32>, vector<16x511xf32> -> vector<16x512xf32>
    %c3 = arith.constant 3 : index
    %c0_8 = arith.constant 0 : index
    %c0_9 = arith.constant 0 : index
    %25 = vector.load %arg4[%c3, %c0_8, %c0_9] : memref<9x1x512xf32, #tpu.memory_space<vmem>>, vector<1x1x512xf32>
    %26 = vector.shape_cast %25 : vector<1x1x512xf32> to vector<1x512xf32>
    %27 = vector.broadcast %26 : vector<1x512xf32> to vector<16x512xf32>
    %28 = arith.mulf %24, %27 : vector<16x512xf32>
    %c4 = arith.constant 4 : index
    %c0_10 = arith.constant 0 : index
    %c0_11 = arith.constant 0 : index
    %29 = vector.load %arg4[%c4, %c0_10, %c0_11] : memref<9x1x512xf32, #tpu.memory_space<vmem>>, vector<1x1x512xf32>
    %30 = vector.shape_cast %29 : vector<1x1x512xf32> to vector<1x512xf32>
    %31 = vector.broadcast %30 : vector<1x512xf32> to vector<16x512xf32>
    %32 = arith.mulf %0, %31 : vector<16x512xf32>
    %33 = vector.extract_strided_slice %0 {offsets = [0, 1], sizes = [16, 511], strides = [1, 1]} : vector<16x512xf32> to vector<16x511xf32>
    %34 = vector.extract_strided_slice %0 {offsets = [0, 0], sizes = [16, 1], strides = [1, 1]} : vector<16x512xf32> to vector<16x1xf32>
    %35 = tpu.concatenate %33, %34 in 1 : vector<16x511xf32>, vector<16x1xf32> -> vector<16x512xf32>
    %c5 = arith.constant 5 : index
    %c0_12 = arith.constant 0 : index
    %c0_13 = arith.constant 0 : index
    %36 = vector.load %arg4[%c5, %c0_12, %c0_13] : memref<9x1x512xf32, #tpu.memory_space<vmem>>, vector<1x1x512xf32>
    %37 = vector.shape_cast %36 : vector<1x1x512xf32> to vector<1x512xf32>
    %38 = vector.broadcast %37 : vector<1x512xf32> to vector<16x512xf32>
    %39 = arith.mulf %35, %38 : vector<16x512xf32>
    %40 = vector.extract_strided_slice %0 {offsets = [0, 15], sizes = [16, 497], strides = [1, 1]} : vector<16x512xf32> to vector<16x497xf32>
    %41 = vector.extract_strided_slice %0 {offsets = [0, 0], sizes = [16, 15], strides = [1, 1]} : vector<16x512xf32> to vector<16x15xf32>
    %42 = tpu.concatenate %40, %41 in 1 : vector<16x497xf32>, vector<16x15xf32> -> vector<16x512xf32>
    %c6 = arith.constant 6 : index
    %c0_14 = arith.constant 0 : index
    %c0_15 = arith.constant 0 : index
    %43 = vector.load %arg4[%c6, %c0_14, %c0_15] : memref<9x1x512xf32, #tpu.memory_space<vmem>>, vector<1x1x512xf32>
    %44 = vector.shape_cast %43 : vector<1x1x512xf32> to vector<1x512xf32>
    %45 = vector.broadcast %44 : vector<1x512xf32> to vector<16x512xf32>
    %46 = arith.mulf %42, %45 : vector<16x512xf32>
    %47 = vector.extract_strided_slice %0 {offsets = [0, 16], sizes = [16, 496], strides = [1, 1]} : vector<16x512xf32> to vector<16x496xf32>
    %48 = vector.extract_strided_slice %0 {offsets = [0, 0], sizes = [16, 16], strides = [1, 1]} : vector<16x512xf32> to vector<16x16xf32>
    %49 = tpu.concatenate %47, %48 in 1 : vector<16x496xf32>, vector<16x16xf32> -> vector<16x512xf32>
    %c7 = arith.constant 7 : index
    %c0_16 = arith.constant 0 : index
    %c0_17 = arith.constant 0 : index
    %50 = vector.load %arg4[%c7, %c0_16, %c0_17] : memref<9x1x512xf32, #tpu.memory_space<vmem>>, vector<1x1x512xf32>
    %51 = vector.shape_cast %50 : vector<1x1x512xf32> to vector<1x512xf32>
    %52 = vector.broadcast %51 : vector<1x512xf32> to vector<16x512xf32>
    %53 = arith.mulf %49, %52 : vector<16x512xf32>
    %54 = vector.extract_strided_slice %0 {offsets = [0, 17], sizes = [16, 495], strides = [1, 1]} : vector<16x512xf32> to vector<16x495xf32>
    %55 = vector.extract_strided_slice %0 {offsets = [0, 0], sizes = [16, 17], strides = [1, 1]} : vector<16x512xf32> to vector<16x17xf32>
    %56 = tpu.concatenate %54, %55 in 1 : vector<16x495xf32>, vector<16x17xf32> -> vector<16x512xf32>
    %c8 = arith.constant 8 : index
    %c0_18 = arith.constant 0 : index
    %c0_19 = arith.constant 0 : index
    %57 = vector.load %arg4[%c8, %c0_18, %c0_19] : memref<9x1x512xf32, #tpu.memory_space<vmem>>, vector<1x1x512xf32>
    %58 = vector.shape_cast %57 : vector<1x1x512xf32> to vector<1x512xf32>
    %59 = vector.broadcast %58 : vector<1x512xf32> to vector<16x512xf32>
    %60 = arith.mulf %56, %59 : vector<16x512xf32>
    %61 = tpu.concatenate %7, %14, %21, %28, %32, %39, %46, %53, %60 in 0 : vector<16x512xf32>, vector<16x512xf32>, vector<16x512xf32>, vector<16x512xf32>, vector<16x512xf32>, vector<16x512xf32>, vector<16x512xf32>, vector<16x512xf32>, vector<16x512xf32> -> vector<144x512xf32>
    %c0_20 = arith.constant 0 : index
    %c0_21 = arith.constant 0 : index
    %62 = vector.load %arg2[%c0_20, %c0_21] : memref<8x144xf32, #tpu.memory_space<vmem>>, vector<8x144xf32>
    %cst = arith.constant dense<0.000000e+00> : vector<8x512xf32>
    %63 = tpu.matmul %62, %61, %cst {dimension_numbers = #tpu.dot_dimension_numbers<[1], [0], [0], [1], [0, 0, 1, 1], [], []>} : vector<8x144xf32>, vector<144x512xf32>, vector<8x512xf32> -> vector<8x512xf32>
    %c0_22 = arith.constant 0 : index
    %c0_23 = arith.constant 0 : index
    %64 = vector.load %arg3[%c0_22, %c0_23] : memref<8x1xf32, #tpu.memory_space<vmem>>, vector<8x1xf32>
    %65 = vector.broadcast %64 : vector<8x1xf32> to vector<8x512xf32>
    %66 = arith.addf %63, %65 : vector<8x512xf32>
    %c0_24 = arith.constant 0 : index
    %c0_25 = arith.constant 0 : index
    %67 = vector.load %arg5[%c0_24, %c0_25] : memref<8x512xf32, #tpu.memory_space<vmem>>, vector<8x512xf32>
    tpu.vector_store %arg5[%c0_24, %c0_25], %66 {strides = array<i32>} : memref<8x512xf32, #tpu.memory_space<vmem>>, vector<8x512xf32>,
    return
  }
  func.func @transform_0(%arg0: i32) -> (i32, i32) {
    %c0_i32 = arith.constant 0 : i32
    %c0_i32_0 = arith.constant 0 : i32
    %c0_i32_1 = arith.constant 0 : i32
    return %c0_i32, %c0_i32_0 : i32, i32
  }
  func.func @transform_1(%arg0: i32) -> (i32, i32) {
    %c0_i32 = arith.constant 0 : i32
    %c0_i32_0 = arith.constant 0 : i32
    %c0_i32_1 = arith.constant 0 : i32
    return %c0_i32, %c0_i32_0 : i32, i32
  }
  func.func @transform_2(%arg0: i32) -> (i32, i32) {
    %c0_i32 = arith.constant 0 : i32
    %c0_i32_0 = arith.constant 0 : i32
    %c0_i32_1 = arith.constant 0 : i32
    return %c0_i32, %c0_i32_0 : i32, i32
  }
  func.func @transform_3(%arg0: i32) -> (i32, i32, i32) {
    %c0_i32 = arith.constant 0 : i32
    %c0_i32_0 = arith.constant 0 : i32
    %c0_i32_1 = arith.constant 0 : i32
    %c0_i32_2 = arith.constant 0 : i32
    return %c0_i32, %c0_i32_0, %c0_i32_1 : i32, i32, i32
  }
  func.func @transform_4(%arg0: i32) -> (i32, i32) {
    %c0_i32 = arith.constant 0 : i32
    %c0_i32_0 = arith.constant 0 : i32
    %c0_i32_1 = arith.constant 0 : i32
    return %c0_i32, %c0_i32_0 : i32, i32
  }
}

module attributes {stable_mosaic.version = 11 : i64} {
  func.func @_conv3x3_kernel(%arg0: i32, %arg1: memref<8x512xf32, #tpu.memory_space<vmem>>, %arg2: memref<8x72xf32, #tpu.memory_space<vmem>>, %arg3: memref<8x1xf32, #tpu.memory_space<vmem>>, %arg4: memref<9x1x512xf32, #tpu.memory_space<vmem>>, %arg5: memref<8x512xf32, #tpu.memory_space<vmem>>) attributes {dimension_semantics = [#tpu.dimension_semantics<arbitrary>], iteration_bounds = array<i64: 1>, scalar_prefetch = 0 : i64, scratch_operands = 0 : i64, tpu.core_type = #tpu.core_type<tc>, window_params = [{pipeline_mode = #tpu.pipeline_mode<synchronous>, transform_indices = @transform_0, window_bounds = array<i64: 8, 512>}, {pipeline_mode = #tpu.pipeline_mode<synchronous>, transform_indices = @transform_1, window_bounds = array<i64: 8, 72>}, {pipeline_mode = #tpu.pipeline_mode<synchronous>, transform_indices = @transform_2, window_bounds = array<i64: 8, 1>}, {pipeline_mode = #tpu.pipeline_mode<synchronous>, transform_indices = @transform_3, window_bounds = array<i64: 9, 1, 512>}, {pipeline_mode = #tpu.pipeline_mode<synchronous>, transform_indices = @transform_4, window_bounds = array<i64: 8, 512>}]} {
    %c0 = arith.constant 0 : index
    %c0_0 = arith.constant 0 : index
    %0 = vector.load %arg1[%c0, %c0_0] : memref<8x512xf32, #tpu.memory_space<vmem>>, vector<8x512xf32>
    %1 = vector.extract_strided_slice %0 {offsets = [0, 495], sizes = [8, 17], strides = [1, 1]} : vector<8x512xf32> to vector<8x17xf32>
    %2 = vector.extract_strided_slice %0 {offsets = [0, 0], sizes = [8, 495], strides = [1, 1]} : vector<8x512xf32> to vector<8x495xf32>
    %3 = tpu.concatenate %1, %2 in 1 : vector<8x17xf32>, vector<8x495xf32> -> vector<8x512xf32>
    %c0_1 = arith.constant 0 : index
    %c0_2 = arith.constant 0 : index
    %c0_3 = arith.constant 0 : index
    %4 = vector.load %arg4[%c0_1, %c0_2, %c0_3] : memref<9x1x512xf32, #tpu.memory_space<vmem>>, vector<1x1x512xf32>
    %5 = vector.shape_cast %4 : vector<1x1x512xf32> to vector<1x512xf32>
    %6 = vector.broadcast %5 : vector<1x512xf32> to vector<8x512xf32>
    %7 = arith.mulf %3, %6 : vector<8x512xf32>
    %8 = vector.extract_strided_slice %0 {offsets = [0, 496], sizes = [8, 16], strides = [1, 1]} : vector<8x512xf32> to vector<8x16xf32>
    %9 = vector.extract_strided_slice %0 {offsets = [0, 0], sizes = [8, 496], strides = [1, 1]} : vector<8x512xf32> to vector<8x496xf32>
    %10 = tpu.concatenate %8, %9 in 1 : vector<8x16xf32>, vector<8x496xf32> -> vector<8x512xf32>
    %c1 = arith.constant 1 : index
    %c0_4 = arith.constant 0 : index
    %c0_5 = arith.constant 0 : index
    %11 = vector.load %arg4[%c1, %c0_4, %c0_5] : memref<9x1x512xf32, #tpu.memory_space<vmem>>, vector<1x1x512xf32>
    %12 = vector.shape_cast %11 : vector<1x1x512xf32> to vector<1x512xf32>
    %13 = vector.broadcast %12 : vector<1x512xf32> to vector<8x512xf32>
    %14 = arith.mulf %10, %13 : vector<8x512xf32>
    %15 = vector.extract_strided_slice %0 {offsets = [0, 497], sizes = [8, 15], strides = [1, 1]} : vector<8x512xf32> to vector<8x15xf32>
    %16 = vector.extract_strided_slice %0 {offsets = [0, 0], sizes = [8, 497], strides = [1, 1]} : vector<8x512xf32> to vector<8x497xf32>
    %17 = tpu.concatenate %15, %16 in 1 : vector<8x15xf32>, vector<8x497xf32> -> vector<8x512xf32>
    %c2 = arith.constant 2 : index
    %c0_6 = arith.constant 0 : index
    %c0_7 = arith.constant 0 : index
    %18 = vector.load %arg4[%c2, %c0_6, %c0_7] : memref<9x1x512xf32, #tpu.memory_space<vmem>>, vector<1x1x512xf32>
    %19 = vector.shape_cast %18 : vector<1x1x512xf32> to vector<1x512xf32>
    %20 = vector.broadcast %19 : vector<1x512xf32> to vector<8x512xf32>
    %21 = arith.mulf %17, %20 : vector<8x512xf32>
    %22 = vector.extract_strided_slice %0 {offsets = [0, 511], sizes = [8, 1], strides = [1, 1]} : vector<8x512xf32> to vector<8x1xf32>
    %23 = vector.extract_strided_slice %0 {offsets = [0, 0], sizes = [8, 511], strides = [1, 1]} : vector<8x512xf32> to vector<8x511xf32>
    %24 = tpu.concatenate %22, %23 in 1 : vector<8x1xf32>, vector<8x511xf32> -> vector<8x512xf32>
    %c3 = arith.constant 3 : index
    %c0_8 = arith.constant 0 : index
    %c0_9 = arith.constant 0 : index
    %25 = vector.load %arg4[%c3, %c0_8, %c0_9] : memref<9x1x512xf32, #tpu.memory_space<vmem>>, vector<1x1x512xf32>
    %26 = vector.shape_cast %25 : vector<1x1x512xf32> to vector<1x512xf32>
    %27 = vector.broadcast %26 : vector<1x512xf32> to vector<8x512xf32>
    %28 = arith.mulf %24, %27 : vector<8x512xf32>
    %c4 = arith.constant 4 : index
    %c0_10 = arith.constant 0 : index
    %c0_11 = arith.constant 0 : index
    %29 = vector.load %arg4[%c4, %c0_10, %c0_11] : memref<9x1x512xf32, #tpu.memory_space<vmem>>, vector<1x1x512xf32>
    %30 = vector.shape_cast %29 : vector<1x1x512xf32> to vector<1x512xf32>
    %31 = vector.broadcast %30 : vector<1x512xf32> to vector<8x512xf32>
    %32 = arith.mulf %0, %31 : vector<8x512xf32>
    %33 = vector.extract_strided_slice %0 {offsets = [0, 1], sizes = [8, 511], strides = [1, 1]} : vector<8x512xf32> to vector<8x511xf32>
    %34 = vector.extract_strided_slice %0 {offsets = [0, 0], sizes = [8, 1], strides = [1, 1]} : vector<8x512xf32> to vector<8x1xf32>
    %35 = tpu.concatenate %33, %34 in 1 : vector<8x511xf32>, vector<8x1xf32> -> vector<8x512xf32>
    %c5 = arith.constant 5 : index
    %c0_12 = arith.constant 0 : index
    %c0_13 = arith.constant 0 : index
    %36 = vector.load %arg4[%c5, %c0_12, %c0_13] : memref<9x1x512xf32, #tpu.memory_space<vmem>>, vector<1x1x512xf32>
    %37 = vector.shape_cast %36 : vector<1x1x512xf32> to vector<1x512xf32>
    %38 = vector.broadcast %37 : vector<1x512xf32> to vector<8x512xf32>
    %39 = arith.mulf %35, %38 : vector<8x512xf32>
    %40 = vector.extract_strided_slice %0 {offsets = [0, 15], sizes = [8, 497], strides = [1, 1]} : vector<8x512xf32> to vector<8x497xf32>
    %41 = vector.extract_strided_slice %0 {offsets = [0, 0], sizes = [8, 15], strides = [1, 1]} : vector<8x512xf32> to vector<8x15xf32>
    %42 = tpu.concatenate %40, %41 in 1 : vector<8x497xf32>, vector<8x15xf32> -> vector<8x512xf32>
    %c6 = arith.constant 6 : index
    %c0_14 = arith.constant 0 : index
    %c0_15 = arith.constant 0 : index
    %43 = vector.load %arg4[%c6, %c0_14, %c0_15] : memref<9x1x512xf32, #tpu.memory_space<vmem>>, vector<1x1x512xf32>
    %44 = vector.shape_cast %43 : vector<1x1x512xf32> to vector<1x512xf32>
    %45 = vector.broadcast %44 : vector<1x512xf32> to vector<8x512xf32>
    %46 = arith.mulf %42, %45 : vector<8x512xf32>
    %47 = vector.extract_strided_slice %0 {offsets = [0, 16], sizes = [8, 496], strides = [1, 1]} : vector<8x512xf32> to vector<8x496xf32>
    %48 = vector.extract_strided_slice %0 {offsets = [0, 0], sizes = [8, 16], strides = [1, 1]} : vector<8x512xf32> to vector<8x16xf32>
    %49 = tpu.concatenate %47, %48 in 1 : vector<8x496xf32>, vector<8x16xf32> -> vector<8x512xf32>
    %c7 = arith.constant 7 : index
    %c0_16 = arith.constant 0 : index
    %c0_17 = arith.constant 0 : index
    %50 = vector.load %arg4[%c7, %c0_16, %c0_17] : memref<9x1x512xf32, #tpu.memory_space<vmem>>, vector<1x1x512xf32>
    %51 = vector.shape_cast %50 : vector<1x1x512xf32> to vector<1x512xf32>
    %52 = vector.broadcast %51 : vector<1x512xf32> to vector<8x512xf32>
    %53 = arith.mulf %49, %52 : vector<8x512xf32>
    %54 = vector.extract_strided_slice %0 {offsets = [0, 17], sizes = [8, 495], strides = [1, 1]} : vector<8x512xf32> to vector<8x495xf32>
    %55 = vector.extract_strided_slice %0 {offsets = [0, 0], sizes = [8, 17], strides = [1, 1]} : vector<8x512xf32> to vector<8x17xf32>
    %56 = tpu.concatenate %54, %55 in 1 : vector<8x495xf32>, vector<8x17xf32> -> vector<8x512xf32>
    %c8 = arith.constant 8 : index
    %c0_18 = arith.constant 0 : index
    %c0_19 = arith.constant 0 : index
    %57 = vector.load %arg4[%c8, %c0_18, %c0_19] : memref<9x1x512xf32, #tpu.memory_space<vmem>>, vector<1x1x512xf32>
    %58 = vector.shape_cast %57 : vector<1x1x512xf32> to vector<1x512xf32>
    %59 = vector.broadcast %58 : vector<1x512xf32> to vector<8x512xf32>
    %60 = arith.mulf %56, %59 : vector<8x512xf32>
    %61 = tpu.concatenate %7, %14, %21, %28, %32, %39, %46, %53, %60 in 0 : vector<8x512xf32>, vector<8x512xf32>, vector<8x512xf32>, vector<8x512xf32>, vector<8x512xf32>, vector<8x512xf32>, vector<8x512xf32>, vector<8x512xf32>, vector<8x512xf32> -> vector<72x512xf32>
    %c0_20 = arith.constant 0 : index
    %c0_21 = arith.constant 0 : index
    %62 = vector.load %arg2[%c0_20, %c0_21] : memref<8x72xf32, #tpu.memory_space<vmem>>, vector<8x72xf32>
    %cst = arith.constant dense<0.000000e+00> : vector<8x512xf32>
    %63 = tpu.matmul %62, %61, %cst {dimension_numbers = #tpu.dot_dimension_numbers<[1], [0], [0], [1], [0, 0, 1, 1], [], []>} : vector<8x72xf32>, vector<72x512xf32>, vector<8x512xf32> -> vector<8x512xf32>
    %c0_22 = arith.constant 0 : index
    %c0_23 = arith.constant 0 : index
    %64 = vector.load %arg3[%c0_22, %c0_23] : memref<8x1xf32, #tpu.memory_space<vmem>>, vector<8x1xf32>
    %65 = vector.broadcast %64 : vector<8x1xf32> to vector<8x512xf32>
    %66 = arith.addf %63, %65 : vector<8x512xf32>
    %c0_24 = arith.constant 0 : index
    %c0_25 = arith.constant 0 : index
    %67 = vector.load %arg5[%c0_24, %c0_25] : memref<8x512xf32, #tpu.memory_space<vmem>>, vector<8x512xf32>
    tpu.vector_store %arg5[%c0_24, %c0_25], %66 {strides = array<i32>} : memref<8x512xf32, #tpu.memory_space<vmem>>, vector<8x512xf32>,
    return
  }
  func.func @transform_0(%arg0: i32) -> (i32, i32) {
    %c0_i32 = arith.constant 0 : i32
    %c0_i32_0 = arith.constant 0 : i32
    %c0_i32_1 = arith.constant 0 : i32
    return %c0_i32, %c0_i32_0 : i32, i32
  }
  func.func @transform_1(%arg0: i32) -> (i32, i32) {
    %c0_i32 = arith.constant 0 : i32
    %c0_i32_0 = arith.constant 0 : i32
    %c0_i32_1 = arith.constant 0 : i32
    return %c0_i32, %c0_i32_0 : i32, i32
  }
  func.func @transform_2(%arg0: i32) -> (i32, i32) {
    %c0_i32 = arith.constant 0 : i32
    %c0_i32_0 = arith.constant 0 : i32
    %c0_i32_1 = arith.constant 0 : i32
    return %c0_i32, %c0_i32_0 : i32, i32
  }
  func.func @transform_3(%arg0: i32) -> (i32, i32, i32) {
    %c0_i32 = arith.constant 0 : i32
    %c0_i32_0 = arith.constant 0 : i32
    %c0_i32_1 = arith.constant 0 : i32
    %c0_i32_2 = arith.constant 0 : i32
    return %c0_i32, %c0_i32_0, %c0_i32_1 : i32, i32, i32
  }
  func.func @transform_4(%arg0: i32) -> (i32, i32) {
    %c0_i32 = arith.constant 0 : i32
    %c0_i32_0 = arith.constant 0 : i32
    %c0_i32_1 = arith.constant 0 : i32
    return %c0_i32, %c0_i32_0 : i32, i32
  }
}

module attributes {stable_mosaic.version = 11 : i64} {
  func.func @_conv3x3_kernel(%arg0: i32, %arg1: memref<8x512xf32, #tpu.memory_space<vmem>>, %arg2: memref<8x72xf32, #tpu.memory_space<vmem>>, %arg3: memref<8x1xf32, #tpu.memory_space<vmem>>, %arg4: memref<9x1x512xf32, #tpu.memory_space<vmem>>, %arg5: memref<8x512xf32, #tpu.memory_space<vmem>>) attributes {dimension_semantics = [#tpu.dimension_semantics<arbitrary>], iteration_bounds = array<i64: 1>, scalar_prefetch = 0 : i64, scratch_operands = 0 : i64, tpu.core_type = #tpu.core_type<tc>, window_params = [{pipeline_mode = #tpu.pipeline_mode<synchronous>, transform_indices = @transform_0, window_bounds = array<i64: 8, 512>}, {pipeline_mode = #tpu.pipeline_mode<synchronous>, transform_indices = @transform_1, window_bounds = array<i64: 8, 72>}, {pipeline_mode = #tpu.pipeline_mode<synchronous>, transform_indices = @transform_2, window_bounds = array<i64: 8, 1>}, {pipeline_mode = #tpu.pipeline_mode<synchronous>, transform_indices = @transform_3, window_bounds = array<i64: 9, 1, 512>}, {pipeline_mode = #tpu.pipeline_mode<synchronous>, transform_indices = @transform_4, window_bounds = array<i64: 8, 512>}]} {
    %c0 = arith.constant 0 : index
    %c0_0 = arith.constant 0 : index
    %0 = vector.load %arg1[%c0, %c0_0] : memref<8x512xf32, #tpu.memory_space<vmem>>, vector<8x512xf32>
    %1 = vector.extract_strided_slice %0 {offsets = [0, 495], sizes = [8, 17], strides = [1, 1]} : vector<8x512xf32> to vector<8x17xf32>
    %2 = vector.extract_strided_slice %0 {offsets = [0, 0], sizes = [8, 495], strides = [1, 1]} : vector<8x512xf32> to vector<8x495xf32>
    %3 = tpu.concatenate %1, %2 in 1 : vector<8x17xf32>, vector<8x495xf32> -> vector<8x512xf32>
    %c0_1 = arith.constant 0 : index
    %c0_2 = arith.constant 0 : index
    %c0_3 = arith.constant 0 : index
    %4 = vector.load %arg4[%c0_1, %c0_2, %c0_3] : memref<9x1x512xf32, #tpu.memory_space<vmem>>, vector<1x1x512xf32>
    %5 = vector.shape_cast %4 : vector<1x1x512xf32> to vector<1x512xf32>
    %6 = vector.broadcast %5 : vector<1x512xf32> to vector<8x512xf32>
    %7 = arith.mulf %3, %6 : vector<8x512xf32>
    %8 = vector.extract_strided_slice %0 {offsets = [0, 496], sizes = [8, 16], strides = [1, 1]} : vector<8x512xf32> to vector<8x16xf32>
    %9 = vector.extract_strided_slice %0 {offsets = [0, 0], sizes = [8, 496], strides = [1, 1]} : vector<8x512xf32> to vector<8x496xf32>
    %10 = tpu.concatenate %8, %9 in 1 : vector<8x16xf32>, vector<8x496xf32> -> vector<8x512xf32>
    %c1 = arith.constant 1 : index
    %c0_4 = arith.constant 0 : index
    %c0_5 = arith.constant 0 : index
    %11 = vector.load %arg4[%c1, %c0_4, %c0_5] : memref<9x1x512xf32, #tpu.memory_space<vmem>>, vector<1x1x512xf32>
    %12 = vector.shape_cast %11 : vector<1x1x512xf32> to vector<1x512xf32>
    %13 = vector.broadcast %12 : vector<1x512xf32> to vector<8x512xf32>
    %14 = arith.mulf %10, %13 : vector<8x512xf32>
    %15 = vector.extract_strided_slice %0 {offsets = [0, 497], sizes = [8, 15], strides = [1, 1]} : vector<8x512xf32> to vector<8x15xf32>
    %16 = vector.extract_strided_slice %0 {offsets = [0, 0], sizes = [8, 497], strides = [1, 1]} : vector<8x512xf32> to vector<8x497xf32>
    %17 = tpu.concatenate %15, %16 in 1 : vector<8x15xf32>, vector<8x497xf32> -> vector<8x512xf32>
    %c2 = arith.constant 2 : index
    %c0_6 = arith.constant 0 : index
    %c0_7 = arith.constant 0 : index
    %18 = vector.load %arg4[%c2, %c0_6, %c0_7] : memref<9x1x512xf32, #tpu.memory_space<vmem>>, vector<1x1x512xf32>
    %19 = vector.shape_cast %18 : vector<1x1x512xf32> to vector<1x512xf32>
    %20 = vector.broadcast %19 : vector<1x512xf32> to vector<8x512xf32>
    %21 = arith.mulf %17, %20 : vector<8x512xf32>
    %22 = vector.extract_strided_slice %0 {offsets = [0, 511], sizes = [8, 1], strides = [1, 1]} : vector<8x512xf32> to vector<8x1xf32>
    %23 = vector.extract_strided_slice %0 {offsets = [0, 0], sizes = [8, 511], strides = [1, 1]} : vector<8x512xf32> to vector<8x511xf32>
    %24 = tpu.concatenate %22, %23 in 1 : vector<8x1xf32>, vector<8x511xf32> -> vector<8x512xf32>
    %c3 = arith.constant 3 : index
    %c0_8 = arith.constant 0 : index
    %c0_9 = arith.constant 0 : index
    %25 = vector.load %arg4[%c3, %c0_8, %c0_9] : memref<9x1x512xf32, #tpu.memory_space<vmem>>, vector<1x1x512xf32>
    %26 = vector.shape_cast %25 : vector<1x1x512xf32> to vector<1x512xf32>
    %27 = vector.broadcast %26 : vector<1x512xf32> to vector<8x512xf32>
    %28 = arith.mulf %24, %27 : vector<8x512xf32>
    %c4 = arith.constant 4 : index
    %c0_10 = arith.constant 0 : index
    %c0_11 = arith.constant 0 : index
    %29 = vector.load %arg4[%c4, %c0_10, %c0_11] : memref<9x1x512xf32, #tpu.memory_space<vmem>>, vector<1x1x512xf32>
    %30 = vector.shape_cast %29 : vector<1x1x512xf32> to vector<1x512xf32>
    %31 = vector.broadcast %30 : vector<1x512xf32> to vector<8x512xf32>
    %32 = arith.mulf %0, %31 : vector<8x512xf32>
    %33 = vector.extract_strided_slice %0 {offsets = [0, 1], sizes = [8, 511], strides = [1, 1]} : vector<8x512xf32> to vector<8x511xf32>
    %34 = vector.extract_strided_slice %0 {offsets = [0, 0], sizes = [8, 1], strides = [1, 1]} : vector<8x512xf32> to vector<8x1xf32>
    %35 = tpu.concatenate %33, %34 in 1 : vector<8x511xf32>, vector<8x1xf32> -> vector<8x512xf32>
    %c5 = arith.constant 5 : index
    %c0_12 = arith.constant 0 : index
    %c0_13 = arith.constant 0 : index
    %36 = vector.load %arg4[%c5, %c0_12, %c0_13] : memref<9x1x512xf32, #tpu.memory_space<vmem>>, vector<1x1x512xf32>
    %37 = vector.shape_cast %36 : vector<1x1x512xf32> to vector<1x512xf32>
    %38 = vector.broadcast %37 : vector<1x512xf32> to vector<8x512xf32>
    %39 = arith.mulf %35, %38 : vector<8x512xf32>
    %40 = vector.extract_strided_slice %0 {offsets = [0, 15], sizes = [8, 497], strides = [1, 1]} : vector<8x512xf32> to vector<8x497xf32>
    %41 = vector.extract_strided_slice %0 {offsets = [0, 0], sizes = [8, 15], strides = [1, 1]} : vector<8x512xf32> to vector<8x15xf32>
    %42 = tpu.concatenate %40, %41 in 1 : vector<8x497xf32>, vector<8x15xf32> -> vector<8x512xf32>
    %c6 = arith.constant 6 : index
    %c0_14 = arith.constant 0 : index
    %c0_15 = arith.constant 0 : index
    %43 = vector.load %arg4[%c6, %c0_14, %c0_15] : memref<9x1x512xf32, #tpu.memory_space<vmem>>, vector<1x1x512xf32>
    %44 = vector.shape_cast %43 : vector<1x1x512xf32> to vector<1x512xf32>
    %45 = vector.broadcast %44 : vector<1x512xf32> to vector<8x512xf32>
    %46 = arith.mulf %42, %45 : vector<8x512xf32>
    %47 = vector.extract_strided_slice %0 {offsets = [0, 16], sizes = [8, 496], strides = [1, 1]} : vector<8x512xf32> to vector<8x496xf32>
    %48 = vector.extract_strided_slice %0 {offsets = [0, 0], sizes = [8, 16], strides = [1, 1]} : vector<8x512xf32> to vector<8x16xf32>
    %49 = tpu.concatenate %47, %48 in 1 : vector<8x496xf32>, vector<8x16xf32> -> vector<8x512xf32>
    %c7 = arith.constant 7 : index
    %c0_16 = arith.constant 0 : index
    %c0_17 = arith.constant 0 : index
    %50 = vector.load %arg4[%c7, %c0_16, %c0_17] : memref<9x1x512xf32, #tpu.memory_space<vmem>>, vector<1x1x512xf32>
    %51 = vector.shape_cast %50 : vector<1x1x512xf32> to vector<1x512xf32>
    %52 = vector.broadcast %51 : vector<1x512xf32> to vector<8x512xf32>
    %53 = arith.mulf %49, %52 : vector<8x512xf32>
    %54 = vector.extract_strided_slice %0 {offsets = [0, 17], sizes = [8, 495], strides = [1, 1]} : vector<8x512xf32> to vector<8x495xf32>
    %55 = vector.extract_strided_slice %0 {offsets = [0, 0], sizes = [8, 17], strides = [1, 1]} : vector<8x512xf32> to vector<8x17xf32>
    %56 = tpu.concatenate %54, %55 in 1 : vector<8x495xf32>, vector<8x17xf32> -> vector<8x512xf32>
    %c8 = arith.constant 8 : index
    %c0_18 = arith.constant 0 : index
    %c0_19 = arith.constant 0 : index
    %57 = vector.load %arg4[%c8, %c0_18, %c0_19] : memref<9x1x512xf32, #tpu.memory_space<vmem>>, vector<1x1x512xf32>
    %58 = vector.shape_cast %57 : vector<1x1x512xf32> to vector<1x512xf32>
    %59 = vector.broadcast %58 : vector<1x512xf32> to vector<8x512xf32>
    %60 = arith.mulf %56, %59 : vector<8x512xf32>
    %61 = tpu.concatenate %7, %14, %21, %28, %32, %39, %46, %53, %60 in 0 : vector<8x512xf32>, vector<8x512xf32>, vector<8x512xf32>, vector<8x512xf32>, vector<8x512xf32>, vector<8x512xf32>, vector<8x512xf32>, vector<8x512xf32>, vector<8x512xf32> -> vector<72x512xf32>
    %c0_20 = arith.constant 0 : index
    %c0_21 = arith.constant 0 : index
    %62 = vector.load %arg2[%c0_20, %c0_21] : memref<8x72xf32, #tpu.memory_space<vmem>>, vector<8x72xf32>
    %cst = arith.constant dense<0.000000e+00> : vector<8x512xf32>
    %63 = tpu.matmul %62, %61, %cst {dimension_numbers = #tpu.dot_dimension_numbers<[1], [0], [0], [1], [0, 0, 1, 1], [], []>} : vector<8x72xf32>, vector<72x512xf32>, vector<8x512xf32> -> vector<8x512xf32>
    %c0_22 = arith.constant 0 : index
    %c0_23 = arith.constant 0 : index
    %64 = vector.load %arg3[%c0_22, %c0_23] : memref<8x1xf32, #tpu.memory_space<vmem>>, vector<8x1xf32>
    %65 = vector.broadcast %64 : vector<8x1xf32> to vector<8x512xf32>
    %66 = arith.addf %63, %65 : vector<8x512xf32>
    %c0_24 = arith.constant 0 : index
    %c0_25 = arith.constant 0 : index
    %67 = vector.load %arg5[%c0_24, %c0_25] : memref<8x512xf32, #tpu.memory_space<vmem>>, vector<8x512xf32>
    tpu.vector_store %arg5[%c0_24, %c0_25], %66 {strides = array<i32>} : memref<8x512xf32, #tpu.memory_space<vmem>>, vector<8x512xf32>,
    return
  }
  func.func @transform_0(%arg0: i32) -> (i32, i32) {
    %c0_i32 = arith.constant 0 : i32
    %c0_i32_0 = arith.constant 0 : i32
    %c0_i32_1 = arith.constant 0 : i32
    return %c0_i32, %c0_i32_0 : i32, i32
  }
  func.func @transform_1(%arg0: i32) -> (i32, i32) {
    %c0_i32 = arith.constant 0 : i32
    %c0_i32_0 = arith.constant 0 : i32
    %c0_i32_1 = arith.constant 0 : i32
    return %c0_i32, %c0_i32_0 : i32, i32
  }
  func.func @transform_2(%arg0: i32) -> (i32, i32) {
    %c0_i32 = arith.constant 0 : i32
    %c0_i32_0 = arith.constant 0 : i32
    %c0_i32_1 = arith.constant 0 : i32
    return %c0_i32, %c0_i32_0 : i32, i32
  }
  func.func @transform_3(%arg0: i32) -> (i32, i32, i32) {
    %c0_i32 = arith.constant 0 : i32
    %c0_i32_0 = arith.constant 0 : i32
    %c0_i32_1 = arith.constant 0 : i32
    %c0_i32_2 = arith.constant 0 : i32
    return %c0_i32, %c0_i32_0, %c0_i32_1 : i32, i32, i32
  }
  func.func @transform_4(%arg0: i32) -> (i32, i32) {
    %c0_i32 = arith.constant 0 : i32
    %c0_i32_0 = arith.constant 0 : i32
    %c0_i32_1 = arith.constant 0 : i32
    return %c0_i32, %c0_i32_0 : i32, i32
  }
}

module attributes {stable_mosaic.version = 11 : i64} {
  func.func @_conv3x3_kernel(%arg0: i32, %arg1: memref<8x512xf32, #tpu.memory_space<vmem>>, %arg2: memref<4x72xf32, #tpu.memory_space<vmem>>, %arg3: memref<4x1xf32, #tpu.memory_space<vmem>>, %arg4: memref<9x1x512xf32, #tpu.memory_space<vmem>>, %arg5: memref<4x512xf32, #tpu.memory_space<vmem>>) attributes {dimension_semantics = [#tpu.dimension_semantics<arbitrary>], iteration_bounds = array<i64: 1>, scalar_prefetch = 0 : i64, scratch_operands = 0 : i64, tpu.core_type = #tpu.core_type<tc>, window_params = [{pipeline_mode = #tpu.pipeline_mode<synchronous>, transform_indices = @transform_0, window_bounds = array<i64: 8, 512>}, {pipeline_mode = #tpu.pipeline_mode<synchronous>, transform_indices = @transform_1, window_bounds = array<i64: 4, 72>}, {pipeline_mode = #tpu.pipeline_mode<synchronous>, transform_indices = @transform_2, window_bounds = array<i64: 4, 1>}, {pipeline_mode = #tpu.pipeline_mode<synchronous>, transform_indices = @transform_3, window_bounds = array<i64: 9, 1, 512>}, {pipeline_mode = #tpu.pipeline_mode<synchronous>, transform_indices = @transform_4, window_bounds = array<i64: 4, 512>}]} {
    %c0 = arith.constant 0 : index
    %c0_0 = arith.constant 0 : index
    %0 = vector.load %arg1[%c0, %c0_0] : memref<8x512xf32, #tpu.memory_space<vmem>>, vector<8x512xf32>
    %1 = vector.extract_strided_slice %0 {offsets = [0, 495], sizes = [8, 17], strides = [1, 1]} : vector<8x512xf32> to vector<8x17xf32>
    %2 = vector.extract_strided_slice %0 {offsets = [0, 0], sizes = [8, 495], strides = [1, 1]} : vector<8x512xf32> to vector<8x495xf32>
    %3 = tpu.concatenate %1, %2 in 1 : vector<8x17xf32>, vector<8x495xf32> -> vector<8x512xf32>
    %c0_1 = arith.constant 0 : index
    %c0_2 = arith.constant 0 : index
    %c0_3 = arith.constant 0 : index
    %4 = vector.load %arg4[%c0_1, %c0_2, %c0_3] : memref<9x1x512xf32, #tpu.memory_space<vmem>>, vector<1x1x512xf32>
    %5 = vector.shape_cast %4 : vector<1x1x512xf32> to vector<1x512xf32>
    %6 = vector.broadcast %5 : vector<1x512xf32> to vector<8x512xf32>
    %7 = arith.mulf %3, %6 : vector<8x512xf32>
    %8 = vector.extract_strided_slice %0 {offsets = [0, 496], sizes = [8, 16], strides = [1, 1]} : vector<8x512xf32> to vector<8x16xf32>
    %9 = vector.extract_strided_slice %0 {offsets = [0, 0], sizes = [8, 496], strides = [1, 1]} : vector<8x512xf32> to vector<8x496xf32>
    %10 = tpu.concatenate %8, %9 in 1 : vector<8x16xf32>, vector<8x496xf32> -> vector<8x512xf32>
    %c1 = arith.constant 1 : index
    %c0_4 = arith.constant 0 : index
    %c0_5 = arith.constant 0 : index
    %11 = vector.load %arg4[%c1, %c0_4, %c0_5] : memref<9x1x512xf32, #tpu.memory_space<vmem>>, vector<1x1x512xf32>
    %12 = vector.shape_cast %11 : vector<1x1x512xf32> to vector<1x512xf32>
    %13 = vector.broadcast %12 : vector<1x512xf32> to vector<8x512xf32>
    %14 = arith.mulf %10, %13 : vector<8x512xf32>
    %15 = vector.extract_strided_slice %0 {offsets = [0, 497], sizes = [8, 15], strides = [1, 1]} : vector<8x512xf32> to vector<8x15xf32>
    %16 = vector.extract_strided_slice %0 {offsets = [0, 0], sizes = [8, 497], strides = [1, 1]} : vector<8x512xf32> to vector<8x497xf32>
    %17 = tpu.concatenate %15, %16 in 1 : vector<8x15xf32>, vector<8x497xf32> -> vector<8x512xf32>
    %c2 = arith.constant 2 : index
    %c0_6 = arith.constant 0 : index
    %c0_7 = arith.constant 0 : index
    %18 = vector.load %arg4[%c2, %c0_6, %c0_7] : memref<9x1x512xf32, #tpu.memory_space<vmem>>, vector<1x1x512xf32>
    %19 = vector.shape_cast %18 : vector<1x1x512xf32> to vector<1x512xf32>
    %20 = vector.broadcast %19 : vector<1x512xf32> to vector<8x512xf32>
    %21 = arith.mulf %17, %20 : vector<8x512xf32>
    %22 = vector.extract_strided_slice %0 {offsets = [0, 511], sizes = [8, 1], strides = [1, 1]} : vector<8x512xf32> to vector<8x1xf32>
    %23 = vector.extract_strided_slice %0 {offsets = [0, 0], sizes = [8, 511], strides = [1, 1]} : vector<8x512xf32> to vector<8x511xf32>
    %24 = tpu.concatenate %22, %23 in 1 : vector<8x1xf32>, vector<8x511xf32> -> vector<8x512xf32>
    %c3 = arith.constant 3 : index
    %c0_8 = arith.constant 0 : index
    %c0_9 = arith.constant 0 : index
    %25 = vector.load %arg4[%c3, %c0_8, %c0_9] : memref<9x1x512xf32, #tpu.memory_space<vmem>>, vector<1x1x512xf32>
    %26 = vector.shape_cast %25 : vector<1x1x512xf32> to vector<1x512xf32>
    %27 = vector.broadcast %26 : vector<1x512xf32> to vector<8x512xf32>
    %28 = arith.mulf %24, %27 : vector<8x512xf32>
    %c4 = arith.constant 4 : index
    %c0_10 = arith.constant 0 : index
    %c0_11 = arith.constant 0 : index
    %29 = vector.load %arg4[%c4, %c0_10, %c0_11] : memref<9x1x512xf32, #tpu.memory_space<vmem>>, vector<1x1x512xf32>
    %30 = vector.shape_cast %29 : vector<1x1x512xf32> to vector<1x512xf32>
    %31 = vector.broadcast %30 : vector<1x512xf32> to vector<8x512xf32>
    %32 = arith.mulf %0, %31 : vector<8x512xf32>
    %33 = vector.extract_strided_slice %0 {offsets = [0, 1], sizes = [8, 511], strides = [1, 1]} : vector<8x512xf32> to vector<8x511xf32>
    %34 = vector.extract_strided_slice %0 {offsets = [0, 0], sizes = [8, 1], strides = [1, 1]} : vector<8x512xf32> to vector<8x1xf32>
    %35 = tpu.concatenate %33, %34 in 1 : vector<8x511xf32>, vector<8x1xf32> -> vector<8x512xf32>
    %c5 = arith.constant 5 : index
    %c0_12 = arith.constant 0 : index
    %c0_13 = arith.constant 0 : index
    %36 = vector.load %arg4[%c5, %c0_12, %c0_13] : memref<9x1x512xf32, #tpu.memory_space<vmem>>, vector<1x1x512xf32>
    %37 = vector.shape_cast %36 : vector<1x1x512xf32> to vector<1x512xf32>
    %38 = vector.broadcast %37 : vector<1x512xf32> to vector<8x512xf32>
    %39 = arith.mulf %35, %38 : vector<8x512xf32>
    %40 = vector.extract_strided_slice %0 {offsets = [0, 15], sizes = [8, 497], strides = [1, 1]} : vector<8x512xf32> to vector<8x497xf32>
    %41 = vector.extract_strided_slice %0 {offsets = [0, 0], sizes = [8, 15], strides = [1, 1]} : vector<8x512xf32> to vector<8x15xf32>
    %42 = tpu.concatenate %40, %41 in 1 : vector<8x497xf32>, vector<8x15xf32> -> vector<8x512xf32>
    %c6 = arith.constant 6 : index
    %c0_14 = arith.constant 0 : index
    %c0_15 = arith.constant 0 : index
    %43 = vector.load %arg4[%c6, %c0_14, %c0_15] : memref<9x1x512xf32, #tpu.memory_space<vmem>>, vector<1x1x512xf32>
    %44 = vector.shape_cast %43 : vector<1x1x512xf32> to vector<1x512xf32>
    %45 = vector.broadcast %44 : vector<1x512xf32> to vector<8x512xf32>
    %46 = arith.mulf %42, %45 : vector<8x512xf32>
    %47 = vector.extract_strided_slice %0 {offsets = [0, 16], sizes = [8, 496], strides = [1, 1]} : vector<8x512xf32> to vector<8x496xf32>
    %48 = vector.extract_strided_slice %0 {offsets = [0, 0], sizes = [8, 16], strides = [1, 1]} : vector<8x512xf32> to vector<8x16xf32>
    %49 = tpu.concatenate %47, %48 in 1 : vector<8x496xf32>, vector<8x16xf32> -> vector<8x512xf32>
    %c7 = arith.constant 7 : index
    %c0_16 = arith.constant 0 : index
    %c0_17 = arith.constant 0 : index
    %50 = vector.load %arg4[%c7, %c0_16, %c0_17] : memref<9x1x512xf32, #tpu.memory_space<vmem>>, vector<1x1x512xf32>
    %51 = vector.shape_cast %50 : vector<1x1x512xf32> to vector<1x512xf32>
    %52 = vector.broadcast %51 : vector<1x512xf32> to vector<8x512xf32>
    %53 = arith.mulf %49, %52 : vector<8x512xf32>
    %54 = vector.extract_strided_slice %0 {offsets = [0, 17], sizes = [8, 495], strides = [1, 1]} : vector<8x512xf32> to vector<8x495xf32>
    %55 = vector.extract_strided_slice %0 {offsets = [0, 0], sizes = [8, 17], strides = [1, 1]} : vector<8x512xf32> to vector<8x17xf32>
    %56 = tpu.concatenate %54, %55 in 1 : vector<8x495xf32>, vector<8x17xf32> -> vector<8x512xf32>
    %c8 = arith.constant 8 : index
    %c0_18 = arith.constant 0 : index
    %c0_19 = arith.constant 0 : index
    %57 = vector.load %arg4[%c8, %c0_18, %c0_19] : memref<9x1x512xf32, #tpu.memory_space<vmem>>, vector<1x1x512xf32>
    %58 = vector.shape_cast %57 : vector<1x1x512xf32> to vector<1x512xf32>
    %59 = vector.broadcast %58 : vector<1x512xf32> to vector<8x512xf32>
    %60 = arith.mulf %56, %59 : vector<8x512xf32>
    %61 = tpu.concatenate %7, %14, %21, %28, %32, %39, %46, %53, %60 in 0 : vector<8x512xf32>, vector<8x512xf32>, vector<8x512xf32>, vector<8x512xf32>, vector<8x512xf32>, vector<8x512xf32>, vector<8x512xf32>, vector<8x512xf32>, vector<8x512xf32> -> vector<72x512xf32>
    %c0_20 = arith.constant 0 : index
    %c0_21 = arith.constant 0 : index
    %62 = vector.load %arg2[%c0_20, %c0_21] : memref<4x72xf32, #tpu.memory_space<vmem>>, vector<4x72xf32>
    %cst = arith.constant dense<0.000000e+00> : vector<4x512xf32>
    %63 = tpu.matmul %62, %61, %cst {dimension_numbers = #tpu.dot_dimension_numbers<[1], [0], [0], [1], [0, 0, 1, 1], [], []>} : vector<4x72xf32>, vector<72x512xf32>, vector<4x512xf32> -> vector<4x512xf32>
    %c0_22 = arith.constant 0 : index
    %c0_23 = arith.constant 0 : index
    %64 = vector.load %arg3[%c0_22, %c0_23] : memref<4x1xf32, #tpu.memory_space<vmem>>, vector<4x1xf32>
    %65 = vector.broadcast %64 : vector<4x1xf32> to vector<4x512xf32>
    %66 = arith.addf %63, %65 : vector<4x512xf32>
    %c0_24 = arith.constant 0 : index
    %c0_25 = arith.constant 0 : index
    %67 = vector.load %arg5[%c0_24, %c0_25] : memref<4x512xf32, #tpu.memory_space<vmem>>, vector<4x512xf32>
    tpu.vector_store %arg5[%c0_24, %c0_25], %66 {strides = array<i32>} : memref<4x512xf32, #tpu.memory_space<vmem>>, vector<4x512xf32>,
    return
  }
  func.func @transform_0(%arg0: i32) -> (i32, i32) {
    %c0_i32 = arith.constant 0 : i32
    %c0_i32_0 = arith.constant 0 : i32
    %c0_i32_1 = arith.constant 0 : i32
    return %c0_i32, %c0_i32_0 : i32, i32
  }
  func.func @transform_1(%arg0: i32) -> (i32, i32) {
    %c0_i32 = arith.constant 0 : i32
    %c0_i32_0 = arith.constant 0 : i32
    %c0_i32_1 = arith.constant 0 : i32
    return %c0_i32, %c0_i32_0 : i32, i32
  }
  func.func @transform_2(%arg0: i32) -> (i32, i32) {
    %c0_i32 = arith.constant 0 : i32
    %c0_i32_0 = arith.constant 0 : i32
    %c0_i32_1 = arith.constant 0 : i32
    return %c0_i32, %c0_i32_0 : i32, i32
  }
  func.func @transform_3(%arg0: i32) -> (i32, i32, i32) {
    %c0_i32 = arith.constant 0 : i32
    %c0_i32_0 = arith.constant 0 : i32
    %c0_i32_1 = arith.constant 0 : i32
    %c0_i32_2 = arith.constant 0 : i32
    return %c0_i32, %c0_i32_0, %c0_i32_1 : i32, i32, i32
  }
  func.func @transform_4(%arg0: i32) -> (i32, i32) {
    %c0_i32 = arith.constant 0 : i32
    %c0_i32_0 = arith.constant 0 : i32
    %c0_i32_1 = arith.constant 0 : i32
    return %c0_i32, %c0_i32_0 : i32, i32
  }
}

</mosaic_0001>

<bundles_post_ra>
// kernel: jvp__.17
= control target key start
LH: loop header
LB: loop body
LE: loop exit
PB: predicated region body
PF: predicated region fallthrough
CT: control target
= control target key end

     0   :  { %vm49_vm0 = vcmask 523264   ;;  %vm217_vm9 = vcmask 261120   ;;  %vm241_vm10 = vcmask 648192   ;;  %s473_s1 = inlined_call_operand.vmem [shape: f32[64,256], index: 1, kind: input, shape index: {}]   ;;  %s474_s0 = inlined_call_operand.vmem [shape: f32[2,64], index: 0, kind: input, shape index: {}]   ;;  %s475_s4 = inlined_call_operand.vmem [shape: f32[1,32], index: 4, kind: input, shape index: {}]   ;;  %s476_s3 = inlined_call_operand.vmem [shape: f32[256,32], index: 3, kind: input, shape index: {}]   ;;  %s477_s2 = inlined_call_operand.vmem [shape: f32[1,256], index: 2, kind: input, shape index: {}]   ;;  %s478_s5 = inlined_call_operand.vmem [shape: f32[32,80], index: 5, kind: input, shape index: {}]   ;;  %s479_s6 = inlined_call_operand.vmem [shape: f32[1,80], index: 6, kind: input, shape index: {}]   ;;  %s480_s7 = inlined_call_operand.vmem [shape: f32[2,80], index: 7, kind: output, shape index: {}]  }
   0x1   :  { %v41_v0 = vld [vmem:[%s473_s1 + $0x70] sm:$0xff]  ;;  %v42_v1 = vld [vmem:[%s473_s1 + $0x78] sm:$0xff]  ;;  %v39_v2 = vld [vmem:[%s473_s1 + $0x60] sm:$0xff] }
   0x2   :  { %61 = vmatpush.msra.mxu0 %v41_v0  ;;  %81 = vmatpush.msra.mxu1 %v42_v1  ;;  %v40_v3 = vld [vmem:[%s473_s1 + $0x68] sm:$0xff]  ;;  %v37_v4 = vld [vmem:[%s473_s1 + $0x50] sm:$0xff]  ;;  %v38_v5 = vld [vmem:[%s473_s1 + $0x58] sm:$0xff] }
   0x3   :  { %v35_v6 = vld [vmem:[%s473_s1 + $0x40] sm:$0xff]  ;;  %v36_v7 = vld [vmem:[%s473_s1 + $0x48] sm:$0xff]  ;;  %v33_v8 = vld [vmem:[%s473_s1 + $0x30] sm:$0xff] }
   0x4   :  { %62 = vmatpush.msra.mxu0 %v39_v2  ;;  %82 = vmatpush.msra.mxu1 %v40_v3  ;;  %v34_v9 = vld [vmem:[%s473_s1 + $0x38] sm:$0xff]  ;;  %v31_v10 = vld [vmem:[%s473_s1 + $0x20] sm:$0xff]  ;;  %v32_v11 = vld [vmem:[%s473_s1 + $0x28] sm:$0xff] }
   0x5   :  { %v29_v12 = vld [vmem:[%s473_s1 + $0x10] sm:$0xff]  ;;  %v30_v13 = vld [vmem:[%s473_s1 + $0x18] sm:$0xff]  ;;  %v27_v14 = vld [vmem:[%s473_s1] sm:$0xff] }
   0x6   :  { %63 = vmatpush.msra.mxu0 %v37_v4  ;;  %83 = vmatpush.msra.mxu1 %v38_v5  ;;  %v28_v15 = vld [vmem:[%s473_s1 + $0x8] sm:$0xff]  ;;  %v26_v16 = vld [vmem:[%s474_s0] sm:$0x3]  ;;  %v148_v17 = vld [vmem:[%s476_s3 + $0x78] sm:$0xff] }
   0x7   :  { %v164_v18 = vld [vmem:[%s476_s3 + $0xf8] sm:$0xff]  ;;  %169 = vmatpush.msra.mxu2 %v148_v17  ;;  %v147_v19 = vld [vmem:[%s476_s3 + $0x70] sm:$0xff]  ;;  %v146_v21 = vld [vmem:[%s476_s3 + $0x68] sm:$0xff] }
   0x8   :  { %64 = vmatpush.msra.mxu0 %v35_v6  ;;  %84 = vmatpush.msra.mxu1 %v36_v7  ;;  %v163_v20 = vld [vmem:[%s476_s3 + $0xf0] sm:$0xff]  ;;  %v162_v22 = vld [vmem:[%s476_s3 + $0xe8] sm:$0xff]  ;;  %v145_v23 = vld [vmem:[%s476_s3 + $0x60] sm:$0xff] }
   0x9   :  { %189 = vmatpush.msra.mxu3 %v164_v18  ;;  %170 = vmatpush.msra.mxu2 %v147_v19  ;;  %v161_v24 = vld [vmem:[%s476_s3 + $0xe0] sm:$0xff]  ;;  %v144_v25 = vld [vmem:[%s476_s3 + $0x58] sm:$0xff]  ;;  %v143_v27 = vld [vmem:[%s476_s3 + $0x50] sm:$0xff] }
   0xa   :  { %65 = vmatpush.msra.mxu0 %v33_v8  ;;  %85 = vmatpush.msra.mxu1 %v34_v9  ;;  %v160_v26 = vld [vmem:[%s476_s3 + $0xd8] sm:$0xff]  ;;  %v159_v28 = vld [vmem:[%s476_s3 + $0xd0] sm:$0xff]  ;;  %v142_v29 = vld [vmem:[%s476_s3 + $0x48] sm:$0xff] }
   0xb   :  { %190 = vmatpush.msra.mxu3 %v163_v20  ;;  %171 = vmatpush.msra.mxu2 %v146_v21  ;;  %v158_v30 = vld [vmem:[%s476_s3 + $0xc8] sm:$0xff]  ;;  %v141_v31 = vld [vmem:[%s476_s3 + $0x40] sm:$0xff]  ;;  %v140_v33 = vld [vmem:[%s476_s3 + $0x38] sm:$0xff] }
   0xc   :  { %66 = vmatpush.msra.mxu0 %v31_v10  ;;  %86 = vmatpush.msra.mxu1 %v32_v11  ;;  %v157_v32 = vld [vmem:[%s476_s3 + $0xc0] sm:$0xff]  ;;  %v156_v34 = vld [vmem:[%s476_s3 + $0xb8] sm:$0xff]  ;;  %v139_v35 = vld [vmem:[%s476_s3 + $0x30] sm:$0xff] }
   0xd   :  { %191 = vmatpush.msra.mxu3 %v162_v22  ;;  %172 = vmatpush.msra.mxu2 %v145_v23  ;;  %v155_v36 = vld [vmem:[%s476_s3 + $0xb0] sm:$0xff]  ;;  %v138_v37 = vld [vmem:[%s476_s3 + $0x28] sm:$0xff]  ;;  %v137_v39 = vld [vmem:[%s476_s3 + $0x20] sm:$0xff] }
   0xe   :  { %67 = vmatpush.msra.mxu0 %v29_v12  ;;  %87 = vmatpush.msra.mxu1 %v30_v13  ;;  %v154_v38 = vld [vmem:[%s476_s3 + $0xa8] sm:$0xff]  ;;  %v153_v40 = vld [vmem:[%s476_s3 + $0xa0] sm:$0xff]  ;;  %v136_v41 = vld [vmem:[%s476_s3 + $0x18] sm:$0xff] }
   0xf   :  { %192 = vmatpush.msra.mxu3 %v161_v24  ;;  %173 = vmatpush.msra.mxu2 %v144_v25  ;;  %v152_v42 = vld [vmem:[%s476_s3 + $0x98] sm:$0xff]  ;;  %v43_v43 = vld [vmem:[%s477_s2] sm:$0x3]  ;;  %v135_v44 = vld [vmem:[%s476_s3 + $0x10] sm:$0xff] }
  0x10   :  { %68 = vmatpush.msra.mxu0 %v27_v14  ;;  %88 = vmatpush.msra.mxu1 %v28_v15  ;;  %v151_v45 = vld [vmem:[%s476_s3 + $0x90] sm:$0xff]  ;;  %v134_v46 = vld [vmem:[%s476_s3 + $0x8] sm:$0xff]  ;;  %v45_v48 = vperm.slane %v43_v43, 0  ;;  %v46_v49 = vperm.slane %v43_v43, 1  ;;  %v133_v50 = vld [vmem:[%s476_s3] sm:$0xff] }
  0x11   :  { %247 = vmatmul.msk.f32.vlgmr.msra.gmra.mxu0 %vm49_vm0, %v26_v16  ;;  %248 = vmatmul.msk.f32.vlgmr.msra.gmra.mxu1 %vm49_vm0, %v26_v16  ;;  %v150_v47 = vld [vmem:[%s476_s3 + $0x88] sm:$0xff]  ;;  %v149_v51 = vld [vmem:[%s476_s3 + $0x80] sm:$0xff]  ;;  %v212_v56 = vld [vmem:[%s478_s5 + $0x18] sm:$0xff] }
  0x12   :  { %193 = vmatpush.msra.mxu3 %v160_v26  ;;  %174 = vmatpush.msra.mxu2 %v143_v27  ;;  %v211_v57 = vld [vmem:[%s478_s5 + $0x10] sm:$0xff]  ;;  %v210_v22 = vld [vmem:[%s478_s5 + $0x8] sm:$0xff]  ;;  %v209_v23 = vld [vmem:[%s478_s5] sm:$0xff] }
  0x13   :  { %233 = vmatpush.msrb.mxu0 %v212_v56  ;;  %v252_v24 = vld [vmem:[%s475_s4] ss:$0 sm:$0xff] }
  0x14   :  { %194 = vmatpush.msra.mxu3 %v159_v28  ;;  %175 = vmatpush.msra.mxu2 %v142_v29  ;;  %v253_v29 = vld [vmem:[%s479_s6] ss:$0 sm:$0xff] }
  0x15   :  { %234 = vmatpush.msrb.mxu0 %v211_v57 }
  0x16   :  { %195 = vmatpush.msra.mxu3 %v158_v30  ;;  %176 = vmatpush.msra.mxu2 %v141_v31 }
  0x17   :  { %235 = vmatpush.msrb.mxu0 %v210_v22 }
  0x18   :  { %196 = vmatpush.msra.mxu3 %v157_v32  ;;  %177 = vmatpush.msra.mxu2 %v140_v33 }
  0x19   :  { %236 = vmatpush.msrb.mxu0 %v209_v23 }
  0x1a   :  { %197 = vmatpush.msra.mxu3 %v156_v34  ;;  %178 = vmatpush.msra.mxu2 %v139_v35 }
  0x1c   :  { %198 = vmatpush.msra.mxu3 %v155_v36  ;;  %179 = vmatpush.msra.mxu2 %v138_v37 }
  0x1e   :  { %199 = vmatpush.msra.mxu3 %v154_v38  ;;  %180 = vmatpush.msra.mxu2 %v137_v39 }
  0x20   :  { %200 = vmatpush.msra.mxu3 %v153_v40  ;;  %181 = vmatpush.msra.mxu2 %v136_v41 }
  0x22   :  { %201 = vmatpush.msra.mxu3 %v152_v42  ;;  %182 = vmatpush.msra.mxu2 %v135_v44 }
  0x24   :  { %202 = vmatpush.msra.mxu3 %v151_v45  ;;  %183 = vmatpush.msra.mxu2 %v134_v46 }
  0x26   :  { %203 = vmatpush.msra.mxu3 %v150_v47  ;;  %184 = vmatpush.msra.mxu2 %v133_v50 }
  0x28   :  { %204 = vmatpush.msra.mxu3 %v149_v51 }
  0x8e   :  { %v70_v52 = vpop.f32.mrf.mxu0  ;;  %v90_v53 = vpop.f32.mrf.mxu1 }
  0x8f   :  { %v71_v54 = vadd.f32 %v70_v52, %v45_v48  ;;  %v91_v55 = vadd.f32 %v90_v53, %v46_v49 }
  0x91   :  { %v249_v58 = vmul.f32 -1.442695, %v71_v54  ;;  %v250_v59 = vmul.f32 -1.442695, %v91_v55 }
  0x93   :  { %254 = vpow2.f32 %v249_v58 }
  0x94   :  { %256 = vpow2.f32 %v250_v59 }
  0x99   :  { %v255_v60 = vpop.eup %254 }
  0x9a   :  { %v257_v61 = vpop.eup %256  ;;  %v99_v62 = vadd.f32 1.0, %v255_v60 }
  0x9b   :  { %v100_v63 = vadd.f32 1.0, %v257_v61 }
  0x9c   :  { %258 = vrcp.f32 %v99_v62  ;;  %v112_v5 = vand.u32 2147483648, %v99_v62  ;;  %v110_v8 = vand.u32 2147483647, %v99_v62  ;;  %vm106_vm3 = vweird.f32 %v99_v62 }
  0x9d   :  { %260 = vrcp.f32 %v100_v63  ;;  %v127_v9 = vand.u32 2147483648, %v100_v63  ;;  %v125_v11 = vand.u32 2147483647, %v100_v63  ;;  %vm121_vm5 = vweird.f32 %v100_v63 }
  0x9e   :  { %v113_v13 = vor.u32 1.1754944e-38, %v112_v5  ;;  %vm111_vm6 = vcmp.eq.f32.partialorder %v110_v8, 8.507059e+37 }
  0x9f   :  { %v128_v16 = vor.u32 1.1754944e-38, %v127_v9  ;;  %vm126_vm8 = vcmp.eq.f32.partialorder %v125_v11, 8.507059e+37 }
  0xa2   :  { %v259_v0 = vpop.eup %258 }
  0xa3   :  { %v261_v1 = vpop.eup %260  ;;  %v102_v2 = vmul.f32 %v259_v0, %v99_v62  ;;  %vm107_vm1 = vweird.f32 %v259_v0 }
  0xa4   :  { %v117_v3 = vmul.f32 %v261_v1, %v100_v63  ;;  %vm122_vm2 = vweird.f32 %v261_v1  ;;  %vm108_vm4 = vmor %vm106_vm3, %vm107_vm1 }
  0xa5   :  { %v103_v4 = vsub.f32 1.0, %v102_v2  ;;  %vm123_vm7 = vmor %vm121_vm5, %vm122_vm2 }
  0xa6   :  { %v118_v6 = vsub.f32 1.0, %v117_v3 }
  0xa7   :  { %v104_v7 = vmul.f32 %v259_v0, %v103_v4 }
  0xa8   :  { %v119_v10 = vmul.f32 %v261_v1, %v118_v6 }
  0xa9   :  { %v105_v12 = vadd.f32 %v259_v0, %v104_v7 }
  0xaa   :  { %v120_v14 = vadd.f32 %v261_v1, %v119_v10 }
  0xab   :  { %v109_v15 = vsel %vm108_vm4, %v259_v0, %v105_v12 }
  0xac   :  { %v114_v17 = vsel %vm111_vm6, %v113_v13, %v109_v15  ;;  %v124_v18 = vsel %vm123_vm7, %v261_v1, %v120_v14 }
  0xad   :  { %v131_v19 = vmul.f32 %v114_v17, %v71_v54  ;;  %v129_v20 = vsel %vm126_vm8, %v128_v16, %v124_v18 }
  0xae   :  { %v132_v21 = vmul.f32 %v129_v20, %v91_v55 }
  0xaf   :  { %185 = vmatmul.f32.vlgmr.msra.gmra.mxu2 %v131_v19 }
  0xb0   :  { %205 = vmatmul.f32.vlgmr.msra.gmra.mxu3 %v132_v21 }
 0x132   :  { %v186_v25 = vpop.f32.mrf.mxu2 }
 0x133   :  { %v187_v26 = vadd.f32 %v252_v24, %v186_v25  ;;  %v206_v27 = vpop.f32.mrf.mxu3 }
 0x135   :  { %v207_v28 = vadd.f32 %v206_v27, %v187_v26 }
 0x137   :  { %251 = vmatmul.msk.f32.vlgmr.msrb.gmra.mxu0 %vm217_vm9, %v207_v28 }
 0x1b4   :  { %v238_v30 = vpop.f32.mrf.mxu0 }
 0x1b5   :  { %v239_v31 = vadd.f32 %v253_v29, %v238_v30 }
 0x1b7   :  { %242 = vst.msk [vmem:[%s480_s7] sm:$0x3] %vm241_vm10, %v239_v31 }

// kernel: jvp__.20
= control target key start
LH: loop header
LB: loop body
LE: loop exit
PB: predicated region body
PF: predicated region fallthrough
CT: control target
= control target key end

     0   :  { %s425_s21 = smov 111   ;;  %s426_s22 = smov 112   ;;  %vm278_vm0 = vcmask 908288   ;;  %vm245_vm1 = vcmask 916480   ;;  %vm212_vm2 = vcmask 924672   ;;  %vm179_vm3 = vcmask 1039360   ;;  %s670_s0 = inlined_call_operand.vmem [shape: f32[8,512], index: 0, kind: input, shape index: {}]   ;;  %s671_s3 = inlined_call_operand.vmem [shape: f32[9,1,512], index: 3, kind: input, shape index: {}]   ;;  %s672_s2 = inlined_call_operand.vmem [shape: f32[8,1], index: 2, kind: input, shape index: {}]   ;;  %s673_s1 = inlined_call_operand.vmem [shape: f32[8,72], index: 1, kind: input, shape index: {}]   ;;  %s674_s4 = inlined_call_operand.vmem [shape: f32[8,512], index: 4, kind: output, shape index: {}]  }
   0x1   :  { %v462_v0 = vld [vmem:[%s670_s0 + $0x18] sm:$0xff]  ;;  %v467_v1 = vld [vmem:[%s670_s0 + $0x10] sm:$0xff]  ;;  %v472_v2 = vld [vmem:[%s670_s0] sm:$0xff]  ;;  %s427_s23 = smov 113   ;;  %s428_s24 = smov 127   ;;  %vm132_vm4 = vcmask 7168  }
   0x2   :  { %276 = vrot.lane.b32.xlu1 %v462_v0, %s425_s21  ;;  %241 = vrot.lane.b32.xlu2 %v467_v1, %s426_s22  ;;  %v489_v3 = vld [vmem:[%s670_s0 + $0x8] sm:$0xff]  ;;  %s429_s27 = smov 1   ;;  %s430_s28 = smov 15   ;;  %v516_v6 = vld [vmem:[%s671_s3 + $0x20] sm:$0xf]  ;;  %vm99_vm5 = vcmask 121856  }
   0x3   :  { %270 = vrot.lane.b32.xlu0 %v472_v2, %s425_s21  ;;  %s431_s0 = smov 16   ;;  %s432_s29 = smov 17   ;;  %v294_v7 = vperm.slane %v516_v6, 3  ;;  %v526_v13 = vld [vmem:[%s671_s3 + $0x1c] sm:$0xf]  ;;  %v293_v15 = vperm.slane %v516_v6, 2 }
   0x4   :  { %v261_v14 = vperm.slane %v526_v13, 3  ;;  %v260_v19 = vperm.slane %v526_v13, 2  ;;  %v538_v25 = vld [vmem:[%s671_s3 + $0x18] sm:$0xf]  ;;  %v547_v35 = vld [vmem:[%s671_s3 + $0x10] sm:$0xf] }
   0x5   :  { %v227_v27 = vperm.slane %v538_v25, 2  ;;  %v228_v28 = vperm.slane %v538_v25, 3  ;;  %v554_v37 = vld [vmem:[%s671_s3 + $0x14] sm:$0xf]  ;;  %v161_v39 = vperm.slane %v547_v35, 2  ;;  %v162_v41 = vperm.slane %v547_v35, 3 }
   0x6   :  { %v194_v38 = vperm.slane %v554_v37, 2  ;;  %v195_v40 = vperm.slane %v554_v37, 3  ;;  %v291_v51 = vperm.slane %v516_v6, 0  ;;  %v292_v52 = vperm.slane %v516_v6, 1 }
   0x7   :  { %v169_v47 = vmul.f32 %v161_v39, %v467_v1  ;;  %v170_v49 = vmul.f32 %v162_v41, %v462_v0  ;;  %v258_v55 = vperm.slane %v526_v13, 0  ;;  %v259_v56 = vperm.slane %v526_v13, 1 }
   0x8   :  { %v225_v63 = vperm.slane %v538_v25, 0  ;;  %v433_v39 = vmov 0   ;;  %vm66_vm6 = vcmask 130048   ;;  %vm34_vm7 = vcmask 138240  }
   0x9   :  { %423 = vset.pattern.permute.xlu2 %v433_v39  ;;  %424 = vset.pattern.permute.xlu0 %v433_v39  ;;  %vm310_vm8 = vcmask 588800  }
   0xa   :  { %243 = vrot.lane.b32.xlu2 %v462_v0, %s426_s22  ;;  %237 = vrot.lane.b32.xlu1 %v472_v2, %s426_s22 }
   0xb   :  { %274 = vrot.lane.b32.xlu0 %v467_v1, %s425_s21 }
  0x12   :  { %210 = vrot.lane.b32.xlu2 %v462_v0, %s427_s23  ;;  %208 = vrot.lane.b32.xlu1 %v467_v1, %s427_s23 }
  0x13   :  { %204 = vrot.lane.b32.xlu0 %v472_v2, %s427_s23 }
  0x1a   :  { %177 = vrot.lane.b32.xlu2 %v462_v0, %s428_s24  ;;  %175 = vrot.lane.b32.xlu1 %v467_v1, %s428_s24 }
  0x1b   :  { %171 = vrot.lane.b32.xlu0 %v472_v2, %s428_s24 }
  0x22   :  { %123 = vrot.lane.b32.xlu2 %v462_v0, %s429_s27  ;;  %239 = vrot.lane.b32.xlu1 %v489_v3, %s426_s22 }
  0x23   :  { %272 = vrot.lane.b32.xlu0 %v489_v3, %s425_s21 }
  0x2a   :  { %206 = vrot.lane.b32.xlu2 %v489_v3, %s427_s23  ;;  %130 = vrot.lane.b32.xlu1 %v467_v1, %s429_s27 }
  0x2b   :  { %128 = vrot.lane.b32.xlu0 %v489_v3, %s429_s27 }
  0x32   :  { %97 = vrot.lane.b32.xlu2 %v467_v1, %s430_s28  ;;  %95 = vrot.lane.b32.xlu1 %v489_v3, %s430_s28 }
  0x33   :  { %90 = vrot.lane.b32.xlu0 %v462_v0, %s430_s28 }
  0x3a   :  { %62 = vrot.lane.b32.xlu2 %v489_v3, %s431_s0  ;;  %57 = vrot.lane.b32.xlu1 %v462_v0, %s431_s0 }
  0x3b   :  { %173 = vrot.lane.b32.xlu0 %v489_v3, %s428_s24 }
  0x42   :  { %30 = vrot.lane.b32.xlu2 %v489_v3, %s432_s29  ;;  %22 = vrot.lane.b32.xlu1 %v462_v0, %s432_s29  ;;  %v226_v0 = vperm.slane %v538_v25, 1 }
  0x43   :  { %64 = vrot.lane.b32.xlu0 %v467_v1, %s431_s0 }
  0x4a   :  { %93 = vrot.lane.b32.xlu2 %v472_v2, %s430_s28  ;;  %126 = vrot.lane.b32.xlu1 %v472_v2, %s429_s27 }
  0x4b   :  { %32 = vrot.lane.b32.xlu0 %v467_v1, %s432_s29  ;;  %v585_v1 = vld [vmem:[%s671_s3 + $0xc] sm:$0xf] }
  0x52   :  { %28 = vrot.lane.b32.xlu1 %v472_v2, %s432_s29 }
  0x53   :  { %60 = vrot.lane.b32.xlu0 %v472_v2, %s431_s0 }
  0x5c   :  { %v511_v4 = vpop.permute.xlu2 %241 }
  0x64   :  { %v244_v5 = vpop.permute.xlu2 %243 }
  0x65   :  { %v248_v20 = vsel %vm245_vm1, %v511_v4, %v244_v5 }
  0x66   :  { %v268_v26 = vmul.f32 %v260_v19, %v248_v20  ;;  %v600_v19 = vld [vmem:[%s671_s3 + $0x8] sm:$0xf] }
  0x67   :  { %v113_v20 = vperm.slane %v600_v19, 2 }
  0x6c   :  { %v211_v8 = vpop.permute.xlu2 %210 }
  0x74   :  { %v277_v9 = vpop.permute.xlu1 %276  ;;  %v178_v21 = vpop.permute.xlu2 %177 }
  0x75   :  { %v519_v10 = vpop.permute.xlu0 %270 }
  0x76   :  { %v287_v11 = vsel %vm278_vm0, %v277_v9, %v519_v10 }
  0x77   :  { %v302_v12 = vmul.f32 %v294_v7, %v287_v11  ;;  %v146_v11 = vperm.slane %v585_v1, 2 }
  0x79   :  { %381 = vmatpush.msra.mxu3 %v302_v12 }
  0x7c   :  { %v238_v16 = vpop.permute.xlu1 %237  ;;  %v549_v36 = vpop.permute.xlu2 %123 }
  0x7d   :  { %v254_v17 = vsel %vm245_vm1, %v244_v5, %v238_v16  ;;  %v275_v18 = vpop.permute.xlu0 %274 }
  0x7e   :  { %v281_v22 = vsel %vm278_vm0, %v275_v18, %v277_v9  ;;  %v269_v23 = vmul.f32 %v261_v14, %v254_v17 }
  0x7f   :  { %v301_v24 = vmul.f32 %v293_v15, %v281_v22 }
  0x80   :  { %382 = vmatpush.msra.mxu3 %v269_v23 }
  0x81   :  { %361 = vmatpush.msra.mxu2 %v301_v24 }
  0x83   :  { %362 = vmatpush.msra.mxu2 %v268_v26 }
  0x84   :  { %v209_v29 = vpop.permute.xlu1 %208  ;;  %v207_v50 = vpop.permute.xlu2 %206 }
  0x85   :  { %v215_v30 = vsel %vm212_vm2, %v209_v29, %v211_v8  ;;  %v205_v31 = vpop.permute.xlu0 %204  ;;  %v214_v5 = vsel %vm212_vm2, %v207_v50, %v209_v29  ;;  %v192_v29 = vperm.slane %v554_v37, 0 }
  0x86   :  { %v221_v32 = vsel %vm212_vm2, %v211_v8, %v205_v31  ;;  %v235_v33 = vmul.f32 %v227_v27, %v215_v30  ;;  %v147_v8 = vperm.slane %v585_v1, 3  ;;  %v193_v30 = vperm.slane %v554_v37, 1 }
  0x87   :  { %v236_v34 = vmul.f32 %v228_v28, %v221_v32  ;;  %v160_v32 = vperm.slane %v547_v35, 1 }
  0x88   :  { %363 = vmatpush.msra.mxu2 %v235_v33 }
  0x89   :  { %383 = vmatpush.msra.mxu3 %v236_v34  ;;  %v304_v34 = vld [vmem:[%s672_s2] sm:$0xff] }
  0x8a   :  { %307 = vperm.xlu2 %423, %v304_v34  }
  0x8c   :  { %v560_v42 = vpop.permute.xlu1 %175  ;;  %v98_v12 = vpop.permute.xlu2 %97 }
  0x8d   :  { %v182_v43 = vsel %vm179_vm3, %v560_v42, %v178_v21  ;;  %v564_v44 = vpop.permute.xlu0 %171 }
  0x8e   :  { %v188_v45 = vsel %vm179_vm3, %v178_v21, %v564_v44  ;;  %v202_v46 = vmul.f32 %v194_v38, %v182_v43  ;;  %v114_v21 = vperm.slane %v600_v19, 3 }
  0x8f   :  { %v203_v48 = vmul.f32 %v195_v40, %v188_v45  ;;  %v168_v45 = vmul.f32 %v160_v32, %v489_v3 }
  0x90   :  { %364 = vmatpush.msra.mxu2 %v202_v46 }
  0x91   :  { %384 = vmatpush.msra.mxu3 %v203_v48 }
  0x92   :  { %365 = vmatpush.msra.mxu2 %v169_v47  ;;  %v402_v47 = vld [vmem:[%s671_s3 + $0x4] sm:$0xf] }
  0x93   :  { %385 = vmatpush.msra.mxu3 %v170_v49  ;;  %v80_v48 = vperm.slane %v402_v47, 2 }
  0x94   :  { %v240_v53 = vpop.permute.xlu1 %239  ;;  %v605_v25 = vpop.permute.xlu2 %62 }
  0x95   :  { %v273_v54 = vpop.permute.xlu0 %272  ;;  %v246_v57 = vsel %vm245_vm1, %v238_v16, %v240_v53  ;;  %v247_v58 = vsel %vm245_vm1, %v240_v53, %v511_v4  ;;  %v213_v4 = vsel %vm212_vm2, %v205_v31, %v207_v50  ;;  %v159_v31 = vperm.slane %v547_v35, 0 }
  0x96   :  { %v279_v59 = vsel %vm278_vm0, %v519_v10, %v273_v54  ;;  %v280_v60 = vsel %vm278_vm0, %v273_v54, %v275_v18  ;;  %v266_v6 = vmul.f32 %v258_v55, %v246_v57  ;;  %v267_v7 = vmul.f32 %v259_v56, %v247_v58 }
  0x97   :  { %v299_v61 = vmul.f32 %v291_v51, %v279_v59  ;;  %v300_v62 = vmul.f32 %v292_v52, %v280_v60  ;;  %v233_v9 = vmul.f32 %v225_v63, %v213_v4  ;;  %v234_v10 = vmul.f32 %v226_v0, %v214_v5  ;;  %v43_v52 = vld [vmem:[%s671_s3] sm:$0xf] }
  0x98   :  { %v167_v35 = vmul.f32 %v159_v31, %v472_v2  ;;  %v144_v54 = vperm.slane %v585_v1, 0  ;;  %v145_v55 = vperm.slane %v585_v1, 1  ;;  %v47_v56 = vperm.slane %v43_v52, 2 }
  0x99   :  { %321 = vmatpush.msra.mxu0 %v299_v61  ;;  %341 = vmatpush.msra.mxu1 %v300_v62  ;;  %v48_v57 = vperm.slane %v43_v52, 3  ;;  %v111_v59 = vperm.slane %v600_v19, 0  ;;  %v112_v60 = vperm.slane %v600_v19, 1 }
  0x9b   :  { %322 = vmatpush.msra.mxu0 %v266_v6  ;;  %342 = vmatpush.msra.mxu1 %v267_v7 }
  0x9c   :  { %v131_v13 = vpop.permute.xlu1 %130  ;;  %v31_v46 = vpop.permute.xlu2 %30 }
  0x9d   :  { %v135_v14 = vsel %vm132_vm4, %v131_v13, %v549_v36  ;;  %323 = vmatpush.msra.mxu0 %v233_v9  ;;  %343 = vmatpush.msra.mxu1 %v234_v10  ;;  %v593_v15 = vpop.permute.xlu0 %128 }
  0x9e   :  { %v134_v16 = vsel %vm132_vm4, %v593_v15, %v131_v13  ;;  %v155_v17 = vmul.f32 %v147_v8, %v135_v14  ;;  %v79_v13 = vperm.slane %v402_v47, 1 }
  0x9f   :  { %v154_v18 = vmul.f32 %v146_v11, %v134_v16  ;;  %v45_v16 = vperm.slane %v43_v52, 0 }
  0xa0   :  { %386 = vmatpush.msra.mxu3 %v155_v17  ;;  %v46_v17 = vperm.slane %v43_v52, 1 }
  0xa1   :  { %366 = vmatpush.msra.mxu2 %v154_v18 }
  0xa4   :  { %v96_v22 = vpop.permute.xlu1 %95  ;;  %v94_v53 = vpop.permute.xlu2 %93 }
  0xa5   :  { %v101_v23 = vsel %vm99_vm5, %v96_v22, %v98_v12  ;;  %v91_v24 = vpop.permute.xlu0 %90  ;;  %v100_v61 = vsel %vm99_vm5, %v94_v53, %v96_v22 }
  0xa6   :  { %v102_v26 = vsel %vm99_vm5, %v98_v12, %v91_v24  ;;  %v121_v27 = vmul.f32 %v113_v20, %v101_v23  ;;  %v107_v62 = vsel %vm99_vm5, %v91_v24, %v94_v53  ;;  %v120_v11 = vmul.f32 %v112_v60, %v100_v61  ;;  %v303_v12 = vld [vmem:[%s673_s1] sm:$0xff] }
  0xa7   :  { %v122_v28 = vmul.f32 %v114_v21, %v102_v26  ;;  %v119_v10 = vmul.f32 %v111_v59, %v107_v62 }
  0xa8   :  { %367 = vmatpush.msra.mxu2 %v121_v27 }
  0xa9   :  { %387 = vmatpush.msra.mxu3 %v122_v28 }
  0xac   :  { %v612_v33 = vpop.permute.xlu1 %57 }
  0xad   :  { %v174_v38 = vpop.permute.xlu0 %173 }
  0xae   :  { %v180_v40 = vsel %vm179_vm3, %v564_v44, %v174_v38  ;;  %v181_v37 = vsel %vm179_vm3, %v174_v38, %v560_v42  ;;  %v81_v44 = vperm.slane %v402_v47, 3 }
  0xaf   :  { %v200_v41 = vmul.f32 %v192_v29, %v180_v40  ;;  %v201_v43 = vmul.f32 %v193_v30, %v181_v37 }
  0xb1   :  { %324 = vmatpush.msra.mxu0 %v200_v41  ;;  %344 = vmatpush.msra.mxu1 %v201_v43 }
  0xb3   :  { %325 = vmatpush.msra.mxu0 %v167_v35  ;;  %345 = vmatpush.msra.mxu1 %v168_v45 }
  0xb4   :  { %v23_v42 = vpop.permute.xlu1 %22 }
  0xb5   :  { %v65_v49 = vpop.permute.xlu0 %64 }
  0xb6   :  { %v68_v50 = vsel %vm66_vm6, %v605_v25, %v65_v49  ;;  %v69_v2 = vsel %vm66_vm6, %v65_v49, %v612_v33 }
  0xb7   :  { %v88_v3 = vmul.f32 %v80_v48, %v68_v50  ;;  %v89_v51 = vmul.f32 %v81_v44, %v69_v2 }
  0xb9   :  { %368 = vmatpush.msra.mxu2 %v88_v3  ;;  %388 = vmatpush.msra.mxu3 %v89_v51 }
  0xbc   :  { %v127_v58 = vpop.permute.xlu1 %126 }
  0xbd   :  { %v133_v63 = vsel %vm132_vm4, %v127_v58, %v593_v15  ;;  %v140_v0 = vsel %vm132_vm4, %v549_v36, %v127_v58  ;;  %v33_v5 = vpop.permute.xlu0 %32  ;;  %v78_v36 = vperm.slane %v402_v47, 0 }
  0xbe   :  { %v36_v1 = vsel %vm34_vm7, %v31_v46, %v33_v5  ;;  %v37_v4 = vsel %vm34_vm7, %v33_v5, %v23_v42  ;;  %v152_v6 = vmul.f32 %v144_v54, %v140_v0  ;;  %v153_v7 = vmul.f32 %v145_v55, %v133_v63 }
  0xbf   :  { %v55_v8 = vmul.f32 %v47_v56, %v36_v1  ;;  %v56_v9 = vmul.f32 %v48_v57, %v37_v4 }
  0xc0   :  { %326 = vmatpush.msra.mxu0 %v152_v6  ;;  %346 = vmatpush.msra.mxu1 %v153_v7 }
  0xc1   :  { %369 = vmatpush.msra.mxu2 %v55_v8  ;;  %389 = vmatpush.msra.mxu3 %v56_v9 }
  0xc2   :  { %327 = vmatpush.msra.mxu0 %v119_v10  ;;  %347 = vmatpush.msra.mxu1 %v120_v11 }
  0xc3   :  { %412 = vmatmul.msk.f32.vlgmr.msra.gmra.mxu2 %vm310_vm8, %v303_v12  ;;  %413 = vmatmul.msk.f32.vlgmr.msra.gmra.mxu3 %vm310_vm8, %v303_v12 }
  0xc4   :  { %v29_v14 = vpop.permute.xlu1 %28 }
  0xc5   :  { %v61_v15 = vpop.permute.xlu0 %60  ;;  %v35_v18 = vsel %vm34_vm7, %v29_v14, %v31_v46  ;;  %v42_v19 = vsel %vm34_vm7, %v23_v42, %v29_v14 }
  0xc6   :  { %v67_v20 = vsel %vm66_vm6, %v61_v15, %v605_v25  ;;  %v74_v21 = vsel %vm66_vm6, %v612_v33, %v61_v15  ;;  %v53_v24 = vmul.f32 %v45_v16, %v42_v19  ;;  %v54_v26 = vmul.f32 %v46_v17, %v35_v18 }
  0xc7   :  { %v86_v22 = vmul.f32 %v78_v36, %v74_v21  ;;  %v87_v23 = vmul.f32 %v79_v13, %v67_v20 }
  0xc9   :  { %328 = vmatpush.msra.mxu0 %v86_v22  ;;  %348 = vmatpush.msra.mxu1 %v87_v23 }
  0xcb   :  { %329 = vmatpush.msra.mxu0 %v53_v24  ;;  %349 = vmatpush.msra.mxu1 %v54_v26 }
  0xcc   :  { %410 = vmatmul.msk.f32.vlgmr.msra.gmra.mxu0 %vm310_vm8, %v303_v12  ;;  %411 = vmatmul.msk.f32.vlgmr.msra.gmra.mxu1 %vm310_vm8, %v303_v12 }
  0xe4   :  { %v308_v27 = vpop.permute.xlu2 %307 }
 0x146   :  { %v371_v28 = vpop.f32.mrf.mxu2  ;;  %v391_v29 = vpop.f32.mrf.mxu3 }
 0x147   :  { %v372_v30 = vadd.f32 %v371_v28, %v308_v27  ;;  %v392_v25 = vadd.f32 %v391_v29, %v308_v27 }
 0x149   :  { %v331_v31 = vpop.f32.mrf.mxu0  ;;  %v351_v32 = vpop.f32.mrf.mxu1  ;;  %396 = vst [vmem:[%s674_s4 + $0x10] sm:$0xff] %v372_v30 }
 0x14a   :  { %v332_v33 = vadd.f32 %v331_v31, %v308_v27  ;;  %v352_v34 = vadd.f32 %v351_v32, %v308_v27  ;;  %397 = vst [vmem:[%s674_s4 + $0x18] sm:$0xff] %v392_v25 }
 0x14c   :  { %394 = vst [vmem:[%s674_s4] sm:$0xff] %v332_v33 }
 0x14d   :  { %395 = vst [vmem:[%s674_s4 + $0x8] sm:$0xff] %v352_v34 }

// kernel: jvp__.18
= control target key start
LH: loop header
LB: loop body
LE: loop exit
PB: predicated region body
PF: predicated region fallthrough
CT: control target
= control target key end

     0   :  { %s603_s19 = smov 17   ;;  %s604_s20 = smov 16   ;;  %vm205_vm0 = vcmask 1043456   ;;  %vm41_vm1 = vcmask 138240   ;;  %vm84_vm2 = vcmask 130048   ;;  %vm128_vm3 = vcmask 121856   ;;  %s957_s0 = inlined_call_operand.vmem [shape: f32[4,512], index: 0, kind: input, shape index: {}]   ;;  %s958_s3 = inlined_call_operand.vmem [shape: f32[9,1,512], index: 3, kind: input, shape index: {}]   ;;  %s959_s1 = inlined_call_operand.vmem [shape: f32[8,36], index: 1, kind: input, shape index: {}]   ;;  %s960_s2 = inlined_call_operand.vmem [shape: f32[8,1], index: 2, kind: input, shape index: {}]   ;;  %s961_s4 = inlined_call_operand.vmem [shape: f32[8,512], index: 4, kind: output, shape index: {}]  }
   0x1   :  { %v640_v0 = vld [vmem:[%s957_s0 + $0x8] sm:$0xff]  ;;  %v647_v1 = vld [vmem:[%s957_s0] sm:$0xff]  ;;  %s605_s0 = smov 15   ;;  %s606_s21 = smov 1   ;;  %v579_v36 = vld [vmem:[%s958_s3 + $0x10] sm:$0xf] }
   0x2   :  { %28 = vst [vmem:[#allocation1 + $0x10] ss:$2 sm:$0xff] %v640_v0  ;;  %s607_s22 = smov 127   ;;  %s608_s23 = smov 113   ;;  %v201_v37 = vperm.slane %v579_v36, 2  ;;  %v202_v38 = vperm.slane %v579_v36, 3 }
   0x3   :  { %20 = vst [vmem:[#allocation1] ss:$2 sm:$0xff] %v640_v0  ;;  %s609_s24 = smov 112   ;;  %s610_s25 = smov 111   ;;  %v200_v46 = vperm.slane %v579_v36, 1  ;;  %v199_v49 = vperm.slane %v579_v36, 0 }
   0x4   :  { %v204_v39 = vrot.slane %v202_v38, 4  ;;  %v721_v47 = vld [vmem:[%s958_s3] sm:$0xf]  ;;  %v734_v58 = vld [vmem:[%s958_s3 + $0x4] sm:$0xf]  ;;  %vm172_vm4 = vcmask 7168  }
   0x5   :  { %v203_v50 = vrot.slane %v200_v46, 4  ;;  %v55_v51 = vperm.slane %v721_v47, 3  ;;  %v99_v62 = vperm.slane %v734_v58, 3  ;;  %vm227_vm5 = vcmask 1039360  }
   0x6   :  { %v207_v42 = vsel %vm205_vm0, %v201_v37, %v204_v39  ;;  %v811_v39 = vld [vmem:[%s958_s3 + $0x20] sm:$0xf]  ;;  %vm359_vm6 = vcmask 908288   ;;  %vm271_vm7 = vcmask 924672   ;;  %vm315_vm8 = vcmask 916480  }
   0x7   :  { %v211_v43 = vmul.f32 %v207_v42, %v640_v0  ;;  %v206_v54 = vsel %vm205_vm0, %v199_v49, %v203_v50  ;;  %v830_v49 = vld [vmem:[%s958_s3 + $0x18] sm:$0xf]  ;;  %vm472_vm9 = vcmask 293888  }
   0x8   :  { %v210_v59 = vmul.f32 %v206_v54, %v647_v1 }
   0x9   :  { %v31_v2 = vld.sshfl [vmem:[#allocation1 + $0x10] sm:$0xff pattern:$0x75316420]  ;;  %v32_v3 = vld.sshfl [vmem:[#allocation1 + $0x18] sm:$0xff pattern:$0x75316420] }
   0xa   :  { %71 = vst [vmem:[#allocation1 + $0x10] ss:$2 sm:$0xff] %v640_v0  ;;  %39 = vrot.lane.b32.xlu0 %v32_v3, %s603_s19  ;;  %37 = vrot.lane.b32.xlu2 %v31_v2, %s603_s19  ;;  %v652_v4 = vld.sshfl [vmem:[#allocation1 + $0x8] sm:$0xff pattern:$0x75316420] }
   0xb   :  { %26 = vst [vmem:[#allocation1] ss:$2 sm:$0xff] %v647_v1 }
  0x11   :  { %v74_v5 = vld.sshfl [vmem:[#allocation1 + $0x10] sm:$0xff pattern:$0x75316420]  ;;  %v75_v6 = vld.sshfl [vmem:[#allocation1 + $0x18] sm:$0xff pattern:$0x75316420] }
  0x12   :  { %80 = vrot.lane.b32.xlu1 %v74_v5, %s604_s20  ;;  %v30_v7 = vld.sshfl [vmem:[#allocation1 + $0x8] sm:$0xff pattern:$0x75316420]  ;;  %v656_v8 = vld.sshfl [vmem:[#allocation1] sm:$0xff pattern:$0x75316420]  ;;  %82 = vrot.lane.b32.xlu2 %v75_v6, %s604_s20 }
  0x13   :  { %64 = vst [vmem:[#allocation1] ss:$2 sm:$0xff] %v640_v0 }
  0x14   :  { %115 = vst [vmem:[#allocation1 + $0x10] ss:$2 sm:$0xff] %v640_v0 }
  0x1a   :  { %35 = vrot.lane.b32.xlu1 %v30_v7, %s603_s19  ;;  %v662_v9 = vld.sshfl [vmem:[#allocation1 + $0x8] sm:$0xff pattern:$0x75316420] }
  0x1b   :  { %v118_v10 = vld.sshfl [vmem:[#allocation1 + $0x10] sm:$0xff pattern:$0x75316420]  ;;  %69 = vst [vmem:[#allocation1] ss:$2 sm:$0xff] %v647_v1 }
  0x1c   :  { %v119_v11 = vld.sshfl [vmem:[#allocation1 + $0x18] sm:$0xff pattern:$0x75316420]  ;;  %v756_v7 = vld [vmem:[%s958_s3 + $0x8] sm:$0xf] }
  0x1d   :  { %126 = vrot.lane.b32.xlu2 %v119_v11, %s605_s0  ;;  %159 = vst [vmem:[#allocation1 + $0x10] ss:$2 sm:$0xff] %v640_v0  ;;  %v98_v11 = vperm.slane %v734_v58, 2 }
  0x22   :  { %124 = vrot.lane.b32.xlu1 %v118_v10, %s605_s0  ;;  %v73_v12 = vld.sshfl [vmem:[#allocation1 + $0x8] sm:$0xff pattern:$0x75316420]  ;;  %v668_v13 = vld.sshfl [vmem:[#allocation1] sm:$0xff pattern:$0x75316420] }
  0x23   :  { %78 = vrot.lane.b32.xlu0 %v73_v12, %s604_s20  ;;  %108 = vst [vmem:[#allocation1] ss:$2 sm:$0xff] %v640_v0  ;;  %v54_v10 = vperm.slane %v721_v47, 2 }
  0x24   :  { %v162_v14 = vld.sshfl [vmem:[#allocation1 + $0x10] sm:$0xff pattern:$0x75316420]  ;;  %v163_v15 = vld.sshfl [vmem:[#allocation1 + $0x18] sm:$0xff pattern:$0x75316420] }
  0x25   :  { %214 = vst [vmem:[#allocation1 + $0x10] ss:$2 sm:$0xff] %v640_v0  ;;  %170 = vrot.lane.b32.xlu2 %v163_v15, %s606_s21 }
  0x2a   :  { %168 = vrot.lane.b32.xlu1 %v162_v14, %s606_s21  ;;  %v675_v16 = vld.sshfl [vmem:[#allocation1 + $0x8] sm:$0xff pattern:$0x75316420] }
  0x2b   :  { %113 = vst [vmem:[#allocation1] ss:$2 sm:$0xff] %v647_v1 }
  0x2c   :  { %v217_v17 = vld.sshfl [vmem:[#allocation1 + $0x10] sm:$0xff pattern:$0x75316420]  ;;  %v218_v18 = vld.sshfl [vmem:[#allocation1 + $0x18] sm:$0xff pattern:$0x75316420] }
  0x2d   :  { %223 = vrot.lane.b32.xlu0 %v217_v17, %s607_s22  ;;  %258 = vst [vmem:[#allocation1 + $0x10] ss:$2 sm:$0xff] %v640_v0 }
  0x32   :  { %225 = vrot.lane.b32.xlu1 %v218_v18, %s607_s22  ;;  %v117_v19 = vld.sshfl [vmem:[#allocation1 + $0x8] sm:$0xff pattern:$0x75316420]  ;;  %v681_v20 = vld.sshfl [vmem:[#allocation1] sm:$0xff pattern:$0x75316420] }
  0x33   :  { %152 = vst [vmem:[#allocation1] ss:$2 sm:$0xff] %v640_v0 }
  0x34   :  { %v261_v21 = vld.sshfl [vmem:[#allocation1 + $0x10] sm:$0xff pattern:$0x75316420]  ;;  %v262_v22 = vld.sshfl [vmem:[#allocation1 + $0x18] sm:$0xff pattern:$0x75316420] }
  0x35   :  { %267 = vrot.lane.b32.xlu0 %v261_v21, %s608_s23  ;;  %302 = vst [vmem:[#allocation1 + $0x10] ss:$2 sm:$0xff] %v640_v0 }
  0x3a   :  { %269 = vrot.lane.b32.xlu1 %v262_v22, %s608_s23  ;;  %v153_v23 = vld.sshfl [vmem:[#allocation1 + $0x8] sm:$0xff pattern:$0x75316420] }
  0x3b   :  { %154 = vrot.lane.b32.xlu2 %v153_v23, %s606_s21  ;;  %157 = vst [vmem:[#allocation1] ss:$2 sm:$0xff] %v647_v1 }
  0x3c   :  { %v305_v24 = vld.sshfl [vmem:[#allocation1 + $0x10] sm:$0xff pattern:$0x75316420]  ;;  %v306_v25 = vld.sshfl [vmem:[#allocation1 + $0x18] sm:$0xff pattern:$0x75316420] }
  0x3d   :  { %122 = vrot.lane.b32.xlu0 %v117_v19, %s605_s0  ;;  %346 = vst [vmem:[#allocation1 + $0x10] ss:$2 sm:$0xff] %v640_v0 }
  0x42   :  { %v160_v26 = vld.sshfl [vmem:[#allocation1] sm:$0xff pattern:$0x75316420]  ;;  %v161_v27 = vld.sshfl [vmem:[#allocation1 + $0x8] sm:$0xff pattern:$0x75316420] }
  0x43   :  { %212 = vst [vmem:[#allocation1] ss:$2 sm:$0xff] %v647_v1 }
  0x44   :  { %v350_v28 = vld.sshfl [vmem:[#allocation1 + $0x18] sm:$0xff pattern:$0x75316420]  ;;  %v349_v29 = vld.sshfl [vmem:[#allocation1 + $0x10] sm:$0xff pattern:$0x75316420] }
  0x45   :  { %311 = vrot.lane.b32.xlu0 %v305_v24, %s609_s24  ;;  %357 = vrot.lane.b32.xlu2 %v350_v28, %s610_s25  ;;  %416 = vst [vmem:[#allocation1 + $0x10] ss:$2 sm:$0xff] %v211_v43 }
  0x46   :  { %355 = vrot.lane.b32.xlu1 %v349_v29, %s610_s25  ;;  %v790_v29 = vld [vmem:[%s958_s3 + $0x14] sm:$0xf] }
  0x47   :  { %v246_v46 = vperm.slane %v790_v29, 2 }
  0x4a   :  { %v216_v30 = vld.sshfl [vmem:[#allocation1 + $0x8] sm:$0xff pattern:$0x75316420]  ;;  %v215_v31 = vld.sshfl [vmem:[#allocation1] sm:$0xff pattern:$0x75316420] }
  0x4b   :  { %235 = vst [vmem:[#allocation1] ss:$2 sm:$0xff] %v647_v1 }
  0x4d   :  { %313 = vrot.lane.b32.xlu0 %v306_v25, %s609_s24  ;;  %221 = vrot.lane.b32.xlu2 %v216_v30, %s607_s22 }
  0x4e   :  { %219 = vrot.lane.b32.xlu1 %v215_v31, %s607_s22  ;;  %v245_v31 = vperm.slane %v790_v29, 1 }
  0x52   :  { %v236_v32 = vld.sshfl [vmem:[#allocation1] sm:$0xff pattern:$0x75316420] }
  0x53   :  { %256 = vst [vmem:[#allocation1] ss:$2 sm:$0xff] %v647_v1 }
  0x55   :  { %166 = vrot.lane.b32.xlu0 %v161_v27, %s606_s21  ;;  %237 = vrot.lane.b32.xlu2 %v236_v32, %s607_s22 }
  0x5a   :  { %v260_v33 = vld.sshfl [vmem:[#allocation1 + $0x8] sm:$0xff pattern:$0x75316420]  ;;  %v259_v34 = vld.sshfl [vmem:[#allocation1] sm:$0xff pattern:$0x75316420] }
  0x5b   :  { %265 = vrot.lane.b32.xlu1 %v260_v33, %s608_s23  ;;  %279 = vst [vmem:[#allocation1] ss:$2 sm:$0xff] %v647_v1 }
  0x5d   :  { %164 = vrot.lane.b32.xlu0 %v160_v26, %s606_s21 }
  0x62   :  { %v280_v35 = vld.sshfl [vmem:[#allocation1] sm:$0xff pattern:$0x75316420] }
  0x63   :  { %281 = vrot.lane.b32.xlu2 %v280_v35, %s608_s23  ;;  %300 = vst [vmem:[#allocation1] ss:$2 sm:$0xff] %v647_v1 }
  0x64   :  { %v38_v44 = vpop.permute.xlu2 %37 }
  0x65   :  { %263 = vrot.lane.b32.xlu0 %v259_v34, %s608_s23 }
  0x6a   :  { %v304_v40 = vld.sshfl [vmem:[#allocation1 + $0x8] sm:$0xff pattern:$0x75316420]  ;;  %v303_v41 = vld.sshfl [vmem:[#allocation1] sm:$0xff pattern:$0x75316420] }
  0x6b   :  { %309 = vrot.lane.b32.xlu1 %v304_v40, %s609_s24  ;;  %323 = vst [vmem:[#allocation1] ss:$2 sm:$0xff] %v647_v1  ;;  %v378_v40 = vperm.slane %v811_v39, 2 }
  0x6c   :  { %v83_v48 = vpop.permute.xlu2 %82 }
  0x6d   :  { %307 = vrot.lane.b32.xlu0 %v303_v41, %s609_s24 }
  0x72   :  { %v324_v45 = vld.sshfl [vmem:[#allocation1] sm:$0xff pattern:$0x75316420] }
  0x73   :  { %325 = vrot.lane.b32.xlu1 %v324_v45, %s609_s24  ;;  %344 = vst [vmem:[#allocation1] ss:$2 sm:$0xff] %v647_v1 }
  0x77   :  { %v127_v60 = vpop.permute.xlu2 %126 }
  0x7a   :  { %v348_v52 = vld.sshfl [vmem:[#allocation1 + $0x8] sm:$0xff pattern:$0x75316420]  ;;  %v347_v53 = vld.sshfl [vmem:[#allocation1] sm:$0xff pattern:$0x75316420] }
  0x7b   :  { %66 = vrot.lane.b32.xlu1 %v662_v9, %s604_s20  ;;  %353 = vrot.lane.b32.xlu0 %v348_v52, %s610_s25  ;;  %367 = vst [vmem:[#allocation1] ss:$2 sm:$0xff] %v647_v1  ;;  %v143_v9 = vperm.slane %v756_v7, 3  ;;  %v290_v52 = vperm.slane %v830_v49, 2 }
  0x7c   :  { %351 = vrot.lane.b32.xlu2 %v347_v53, %s610_s25  ;;  %v40_v55 = vpop.permute.xlu0 %39 }
  0x7d   :  { %v44_v56 = vsel %vm41_vm1, %v38_v44, %v40_v55 }
  0x7e   :  { %v63_v57 = vmul.f32 %v55_v51, %v44_v56 }
  0x7f   :  { %v171_v5 = vpop.permute.xlu2 %170 }
  0x82   :  { %v368_v61 = vld.sshfl [vmem:[#allocation1] sm:$0xff pattern:$0x75316420] }
  0x83   :  { %120 = vrot.lane.b32.xlu1 %v681_v20, %s605_s0  ;;  %110 = vrot.lane.b32.xlu0 %v675_v16, %s605_s0  ;;  %414 = vst [vmem:[#allocation1] ss:$2 sm:$0xff] %v210_v59  ;;  %v778_v20 = vld [vmem:[%s958_s3 + $0xc] sm:$0xf] }
  0x84   :  { %369 = vrot.lane.b32.xlu2 %v368_v61, %s610_s25  ;;  %v81_v63 = vpop.permute.xlu1 %80 }
  0x85   :  { %v87_v0 = vsel %vm84_vm2, %v81_v63, %v83_v48 }
  0x86   :  { %v107_v2 = vmul.f32 %v99_v62, %v87_v0 }
  0x88   :  { %v395_v3 = vrot.slane %v107_v2, 4  ;;  %v186_v2 = vperm.slane %v778_v20, 2 }
  0x8a   :  { %v745_v1 = vsel %vm205_vm0, %v63_v57, %v395_v3  ;;  %v142_v3 = vperm.slane %v756_v7, 2 }
  0x8b   :  { %33 = vrot.lane.b32.xlu0 %v656_v8, %s603_s19 }
  0x8c   :  { %76 = vrot.lane.b32.xlu2 %v668_v13, %s604_s20  ;;  %v751_v6 = vpop.permute.xlu1 %35 }
  0x8d   :  { %v43_v8 = vsel %vm41_vm1, %v751_v6, %v38_v44  ;;  %v822_v44 = vld [vmem:[%s958_s3 + $0x1c] sm:$0xf] }
  0x8e   :  { %v62_v18 = vmul.f32 %v54_v10, %v43_v8  ;;  %v334_v50 = vperm.slane %v822_v44, 2 }
  0x94   :  { %v763_v12 = vpop.permute.xlu1 %124  ;;  %22 = vrot.lane.b32.xlu2 %v652_v4, %s603_s19  ;;  %v187_v4 = vperm.slane %v778_v20, 3 }
  0x95   :  { %v131_v13 = vsel %vm128_vm3, %v763_v12, %v127_v60  ;;  %v769_v14 = vpop.permute.xlu0 %78  ;;  %v771_v15 = vpop.permute.xlu2 %154 }
  0x96   :  { %v151_v16 = vmul.f32 %v143_v9, %v131_v13  ;;  %v86_v17 = vsel %vm84_vm2, %v769_v14, %v81_v63  ;;  %v419_v63 = vld.sshfl [vmem:[#allocation1 + $0x10] sm:$0xff pattern:$0x75316420] }
  0x97   :  { %v106_v19 = vmul.f32 %v98_v11, %v86_v17  ;;  %v289_v17 = vperm.slane %v830_v49, 1 }
  0x99   :  { %v394_v21 = vrot.slane %v106_v19, 4  ;;  %v184_v19 = vperm.slane %v778_v20, 0 }
  0x9b   :  { %v782_v22 = vsel %vm205_vm0, %v62_v18, %v394_v21 }
  0x9c   :  { %v169_v23 = vpop.permute.xlu1 %168 }
  0x9d   :  { %v175_v24 = vsel %vm172_vm4, %v169_v23, %v171_v5 }
  0x9e   :  { %v195_v25 = vmul.f32 %v187_v4, %v175_v24 }
  0x9f   :  { %v224_v26 = vpop.permute.xlu0 %223  ;;  %v785_v27 = vpop.permute.xlu2 %357 }
  0xa0   :  { %v407_v28 = vrot.slane %v195_v25, 4 }
  0xa2   :  { %v793_v30 = vsel %vm205_vm0, %v151_v16, %v407_v28 }
  0xa4   :  { %v796_v32 = vpop.permute.xlu1 %225 }
  0xa5   :  { %v230_v48 = vsel %vm227_vm5, %v224_v26, %v796_v32 }
  0xa6   :  { %v254_v51 = vmul.f32 %v246_v46, %v230_v48 }
  0xa7   :  { %v268_v33 = vpop.permute.xlu0 %267  ;;  %v798_v34 = vpop.permute.xlu2 %221 }
  0xa8   :  { %v229_v35 = vsel %vm227_vm5, %v798_v34, %v224_v26  ;;  %v431_v57 = vrot.slane %v254_v51, 4 }
  0xa9   :  { %v802_v36 = vmul.f32 %v245_v31, %v229_v35  ;;  %v869_v35 = vld [vmem:[%s959_s1] sm:$0xff] }
  0xaa   :  { %v459_v9 = vsel %vm205_vm0, %v419_v63, %v431_v57  ;;  %v611_v57 = vmov 0  }
  0xab   :  { %601 = vset.pattern.permute.xlu1 %v611_v57  ;;  %602 = vset.pattern.permute.xlu0 %v611_v57 }
  0xac   :  { %v806_v38 = vpop.permute.xlu1 %269 }
  0xad   :  { %v274_v54 = vsel %vm271_vm7, %v268_v33, %v806_v38 }
  0xae   :  { %v298_v59 = vmul.f32 %v290_v52, %v274_v54  ;;  %v335_v54 = vperm.slane %v822_v44, 3 }
  0xaf   :  { %v804_v37 = vpop.permute.xlu0 %122  ;;  %v238_v62 = vpop.permute.xlu2 %237 }
  0xb0   :  { %v130_v10 = vsel %vm128_vm3, %v804_v37, %v763_v12  ;;  %v240_v52 = vsel %vm227_vm5, %v796_v32, %v238_v62  ;;  %v332_v62 = vperm.slane %v822_v44, 0 }
  0xb1   :  { %v150_v13 = vmul.f32 %v142_v3, %v130_v10  ;;  %v244_v3 = vperm.slane %v790_v29, 0 }
  0xb7   :  { %v312_v41 = vpop.permute.xlu0 %311 }
  0xb8   :  { %v814_v42 = vpop.permute.xlu1 %355 }
  0xb9   :  { %v362_v43 = vsel %vm359_vm6, %v814_v42, %v785_v27 }
  0xba   :  { %v386_v45 = vmul.f32 %v378_v40, %v362_v43  ;;  %v379_v40 = vperm.slane %v811_v39, 3 }
  0xbc   :  { %588 = vmatpush.msk.msra.mxu2 %vm205_vm0, %v386_v45 }
  0xbd   :  { %v282_v4 = vpop.permute.xlu2 %281 }
  0xbe   :  { %v284_v32 = vsel %vm271_vm7, %v806_v38, %v282_v4 }
  0xbf   :  { %v835_v53 = vpop.permute.xlu0 %313 }
  0xc0   :  { %v318_v55 = vsel %vm315_vm8, %v312_v41, %v835_v53  ;;  %v841_v61 = vpop.permute.xlu1 %219 }
  0xc1   :  { %v342_v56 = vmul.f32 %v334_v50, %v318_v55  ;;  %v247_v50 = vperm.slane %v790_v29, 3 }
  0xc3   :  { %v443_v60 = vrot.slane %v342_v56, 4 }
  0xc5   :  { %v463_v0 = vsel %vm205_vm0, %v298_v59, %v443_v60  ;;  %v291_v59 = vperm.slane %v830_v49, 3 }
  0xc6   :  { %540 = vmatpush.msra.mxu2 %v463_v0 }
  0xc7   :  { %v846_v5 = vpop.permute.xlu0 %166  ;;  %v299_v10 = vmul.f32 %v291_v59, %v284_v32 }
  0xc8   :  { %v174_v11 = vsel %vm172_vm4, %v846_v5, %v169_v23  ;;  %541 = vmatpush.msra.mxu2 %v459_v9 }
  0xc9   :  { %v194_v8 = vmul.f32 %v186_v2, %v174_v11  ;;  %v228_v11 = vsel %vm227_vm5, %v841_v61, %v798_v34 }
  0xcb   :  { %v406_v16 = vrot.slane %v194_v8, 4 }
  0xcd   :  { %v455_v18 = vsel %vm205_vm0, %v150_v13, %v406_v16  ;;  %v266_v21 = vpop.permute.xlu1 %265  ;;  %v420_v16 = vld.sshfl [vmem:[#allocation1 + $0x18] sm:$0xff pattern:$0x75316420] }
  0xce   :  { %542 = vmatpush.msra.mxu2 %v455_v18  ;;  %v273_v24 = vsel %vm271_vm7, %v266_v21, %v268_v33  ;;  %v333_v33 = vperm.slane %v822_v44, 1  ;;  %v376_v44 = vperm.slane %v811_v39, 0  ;;  %v288_v18 = vperm.slane %v830_v49, 0 }
  0xcf   :  { %v858_v25 = vpop.permute.xlu0 %164  ;;  %v297_v12 = vmul.f32 %v289_v17, %v273_v24  ;;  %v252_v17 = vmul.f32 %v244_v3, %v228_v11  ;;  %v430_v49 = vrot.slane %v802_v36, 4 }
  0xd0   :  { %v180_v23 = vsel %vm172_vm4, %v771_v15, %v858_v25  ;;  %543 = vmatpush.msra.mxu2 %v782_v22 }
  0xd1   :  { %v864_v26 = vmul.f32 %v184_v19, %v180_v23  ;;  %589 = vmatmul.msk.f32.vlgmr.msra.gmra.mxu2 %vm472_vm9, %v869_v35  ;;  %v185_v23 = vperm.slane %v778_v20, 1 }
  0xd6   :  { %v352_v28 = vpop.permute.xlu2 %351 }
  0xd7   :  { %v264_v31 = vpop.permute.xlu0 %263 }
  0xd8   :  { %v272_v29 = vsel %vm271_vm7, %v264_v31, %v266_v21  ;;  %v173_v21 = vsel %vm172_vm4, %v858_v25, %v846_v5  ;;  %v140_v5 = vperm.slane %v756_v7, 0 }
  0xd9   :  { %v296_v31 = vmul.f32 %v288_v18, %v272_v29 }
  0xdd   :  { %v310_v15 = vpop.permute.xlu1 %309 }
  0xde   :  { %v317_v22 = vsel %vm315_vm8, %v310_v15, %v312_v41  ;;  %v370_v43 = vpop.permute.xlu2 %369  ;;  %v466_v41 = vld [vmem:[%s960_s2] sm:$0xff] }
  0xdf   :  { %v341_v45 = vmul.f32 %v333_v33, %v317_v22  ;;  %v372_v46 = vsel %vm359_vm6, %v785_v27, %v370_v43  ;;  %v308_v56 = vpop.permute.xlu0 %307  ;;  %v255_v27 = vmul.f32 %v247_v50, %v240_v52  ;;  %469 = vperm.xlu1 %601, %v466_v41   ;;  %v141_v22 = vperm.slane %v756_v7, 1 }
  0xe0   :  { %v387_v48 = vmul.f32 %v379_v40, %v372_v46  ;;  %v316_v0 = vsel %vm315_vm8, %v308_v56, %v310_v15  ;;  %v429_v40 = vrot.slane %v252_v17, 4  ;;  %v193_v15 = vmul.f32 %v185_v23, %v173_v21 }
  0xe1   :  { %v442_v51 = vrot.slane %v341_v45, 4  ;;  %v432_v9 = vrot.slane %v255_v27, 4  ;;  %v340_v13 = vmul.f32 %v332_v62, %v316_v0  ;;  %v96_v46 = vperm.slane %v734_v58, 0 }
  0xe2   :  { %590 = vmatpush.msk.msra.mxu3 %vm205_vm0, %v387_v48  ;;  %v404_v50 = vrot.slane %v864_v26, 4  ;;  %v53_v27 = vperm.slane %v721_v47, 1  ;;  %v52_v26 = vperm.slane %v721_v47, 0 }
  0xe3   :  { %v462_v55 = vsel %vm205_vm0, %v297_v12, %v442_v51  ;;  %v460_v24 = vsel %vm205_vm0, %v420_v16, %v432_v9  ;;  %v441_v34 = vrot.slane %v340_v13, 4  ;;  %v405_v51 = vrot.slane %v193_v15, 4 }
  0xe5   :  { %v326_v60 = vpop.permute.xlu1 %325  ;;  %v461_v20 = vsel %vm205_vm0, %v296_v31, %v441_v34 }
  0xe6   :  { %v328_v63 = vsel %vm315_vm8, %v835_v53, %v326_v60  ;;  %v377_v53 = vperm.slane %v811_v39, 1  ;;  %v77_v36 = vpop.permute.xlu2 %76 }
  0xe7   :  { %v343_v2 = vmul.f32 %v335_v54, %v328_v63 }
  0xe9   :  { %v444_v8 = vrot.slane %v343_v2, 4 }
  0xeb   :  { %v464_v38 = vsel %vm205_vm0, %v299_v10, %v444_v8 }
  0xec   :  { %560 = vmatpush.msra.mxu3 %v464_v38 }
  0xed   :  { %v67_v19 = vpop.permute.xlu1 %66  ;;  %v354_v4 = vpop.permute.xlu0 %353 }
  0xee   :  { %v360_v61 = vsel %vm359_vm6, %v352_v28, %v354_v4  ;;  %v361_v12 = vsel %vm359_vm6, %v354_v4, %v814_v42  ;;  %561 = vmatpush.msra.mxu3 %v460_v24  ;;  %v417_v42 = vld.sshfl [vmem:[#allocation1] sm:$0xff pattern:$0x75316420]  ;;  %v418_v28 = vld.sshfl [vmem:[#allocation1 + $0x8] sm:$0xff pattern:$0x75316420]  ;;  %v92_v41 = vsel %vm84_vm2, %v67_v19, %v77_v36  ;;  %v23_v59 = vpop.permute.xlu2 %22 }
  0xef   :  { %v384_v39 = vmul.f32 %v376_v44, %v360_v61  ;;  %v385_v33 = vmul.f32 %v377_v53, %v361_v12  ;;  %v458_v25 = vsel %vm205_vm0, %v418_v28, %v430_v49 }
  0xf0   :  { %562 = vmatpush.msra.mxu3 %v793_v30  ;;  %v457_v30 = vsel %vm205_vm0, %v417_v42, %v429_v40 }
  0xf1   :  { %584 = vmatpush.msk.msra.mxu0 %vm205_vm0, %v384_v39  ;;  %586 = vmatpush.msk.msra.mxu1 %vm205_vm0, %v385_v33 }
  0xf2   :  { %563 = vmatpush.msra.mxu3 %v745_v1  ;;  %v97_v1 = vperm.slane %v734_v58, 1 }
  0xf3   :  { %500 = vmatpush.msra.mxu0 %v461_v20  ;;  %520 = vmatpush.msra.mxu1 %v462_v55  ;;  %v85_v55 = vsel %vm84_vm2, %v77_v36, %v769_v14 }
  0xf4   :  { %591 = vmatmul.msk.f32.vlgmr.msra.gmra.mxu3 %vm472_vm9, %v869_v35  ;;  %v105_v58 = vmul.f32 %v97_v1, %v85_v55 }
  0xf5   :  { %v121_v43 = vpop.permute.xlu1 %120  ;;  %v111_v45 = vpop.permute.xlu0 %110  ;;  %501 = vmatpush.msra.mxu0 %v457_v30  ;;  %521 = vmatpush.msra.mxu1 %v458_v25 }
  0xf6   :  { %v129_v48 = vsel %vm128_vm3, %v121_v43, %v804_v37  ;;  %v136_v7 = vsel %vm128_vm3, %v111_v45, %v121_v43  ;;  %v104_v37 = vmul.f32 %v96_v46, %v92_v41  ;;  %v393_v62 = vrot.slane %v105_v58, 4 }
  0xf7   :  { %v149_v52 = vmul.f32 %v141_v22, %v129_v48  ;;  %v148_v54 = vmul.f32 %v140_v5, %v136_v7 }
  0xf8   :  { %v392_v63 = vrot.slane %v104_v37, 4 }
  0xf9   :  { %v453_v56 = vsel %vm205_vm0, %v148_v54, %v404_v50  ;;  %v454_v57 = vsel %vm205_vm0, %v149_v52, %v405_v51 }
  0xfa   :  { %502 = vmatpush.msra.mxu0 %v453_v56  ;;  %522 = vmatpush.msra.mxu1 %v454_v57 }
  0xfd   :  { %v34_v60 = vpop.permute.xlu0 %33 }
  0xfe   :  { %v42_v32 = vsel %vm41_vm1, %v34_v60, %v751_v6  ;;  %v49_v14 = vsel %vm41_vm1, %v23_v59, %v34_v60 }
  0xff   :  { %v61_v0 = vmul.f32 %v53_v27, %v42_v32  ;;  %v60_v2 = vmul.f32 %v52_v26, %v49_v14 }
 0x101   :  { %v449_v3 = vsel %vm205_vm0, %v60_v2, %v392_v63  ;;  %v450_v9 = vsel %vm205_vm0, %v61_v0, %v393_v62 }
 0x102   :  { %503 = vmatpush.msra.mxu0 %v449_v3  ;;  %523 = vmatpush.msra.mxu1 %v450_v9 }
 0x103   :  { %585 = vmatmul.msk.f32.vlgmr.msra.gmra.mxu0 %vm472_vm9, %v869_v35  ;;  %587 = vmatmul.msk.f32.vlgmr.msra.gmra.mxu1 %vm472_vm9, %v869_v35 }
 0x151   :  { %v470_v47 = vpop.permute.xlu1 %469 }
 0x154   :  { %v545_v6 = vpop.f32.mrf.mxu2 }
 0x155   :  { %v546_v10 = vadd.f32 %v545_v6, %v470_v47 }
 0x157   :  { %570 = vst [vmem:[%s961_s4 + $0x10] sm:$0xff] %v546_v10 }
 0x177   :  { %v565_v11 = vpop.f32.mrf.mxu3 }
 0x178   :  { %v566_v8 = vadd.f32 %v565_v11, %v470_v47 }
 0x17a   :  { %571 = vst [vmem:[%s961_s4 + $0x18] sm:$0xff] %v566_v8 }
 0x180   :  { %v505_v13 = vpop.f32.mrf.mxu0  ;;  %v525_v16 = vpop.f32.mrf.mxu1 }
 0x181   :  { %v506_v38 = vadd.f32 %v505_v13, %v470_v47  ;;  %v526_v44 = vadd.f32 %v525_v16, %v470_v47 }
 0x183   :  { %568 = vst [vmem:[%s961_s4] sm:$0xff] %v506_v38 }
 0x184   :  { %569 = vst [vmem:[%s961_s4 + $0x8] sm:$0xff] %v526_v44 }

// kernel: jvp__.19
= control target key start
LH: loop header
LB: loop body
LE: loop exit
PB: predicated region body
PF: predicated region fallthrough
CT: control target
= control target key end

     0   :  { %v698_v1 = vmov 8.0   ;;  %vm157_vm9 = vcmask 1042434   ;;  %s700_s11 = smov 112   ;;  %vm155_vm14 = vcmask 1040384   ;;  %vm159_vm15 = vcmask 1041408   ;;  %s701_s20 = smov 113   ;;  %s1062_s0 = inlined_call_operand.vmem [shape: f32[8,512], index: 0, kind: input, shape index: {}]   ;;  %s1063_s6 = inlined_call_operand.vmem [shape: f32[8,512], index: 6, kind: output, shape index: {2}]   ;;  %s1064_s7 = inlined_call_operand.vmem [shape: f32[1,512], index: 7, kind: output, shape index: {3}]   ;;  %s1065_s3 = inlined_call_operand.vmem [shape: f32[9,1,512], index: 3, kind: input, shape index: {}]   ;;  %s1066_s2 = inlined_call_operand.vmem [shape: f32[8,1], index: 2, kind: input, shape index: {}]   ;;  %s1067_s1 = inlined_call_operand.vmem [shape: f32[8,72], index: 1, kind: input, shape index: {}]   ;;  %s1068_s5 = inlined_call_operand.vmem [shape: f32[8,512], index: 5, kind: output, shape index: {1}]   ;;  %s1069_s4 = inlined_call_operand.vmem [shape: f32[8,512], index: 4, kind: output, shape index: {0}]  }
   0x1   :  { %v24_v0 = vld [vmem:[%s1062_s0 + $0x18] sm:$0xff]  ;;  %672 = vrcp.f32 %v698_v1  ;;  %v23_v2 = vld [vmem:[%s1062_s0 + $0x10] sm:$0xff]  ;;  %v21_v3 = vld [vmem:[%s1062_s0] sm:$0xff]  ;;  %s704_s21 = smov 15   ;;  %s705_s22 = smov 16  }
   0x2   :  { %v43_v4 = vrot.slane %v24_v0, 4  ;;  %v37_v5 = vrot.slane %v23_v2, 4  ;;  %v25_v6 = vrot.slane %v21_v3, 4  ;;  %v22_v13 = vld [vmem:[%s1062_s0 + $0x8] sm:$0xff]  ;;  %s699_s0 = smov 111   ;;  %s706_s23 = smov 17  }
   0x3   :  { %v31_v15 = vrot.slane %v22_v13, 4 }
   0x4   :  { %v44_v7 = vadd.f32 %v43_v4, %v24_v0  ;;  %v38_v8 = vadd.f32 %v37_v5, %v23_v2  ;;  %v26_v9 = vadd.f32 %v25_v6, %v21_v3 }
   0x5   :  { %v32_v20 = vadd.f32 %v31_v15, %v22_v13 }
   0x6   :  { %v45_v10 = vrot.slane %v44_v7, 2  ;;  %v39_v11 = vrot.slane %v38_v8, 2  ;;  %v27_v12 = vrot.slane %v26_v9, 2 }
   0x7   :  { %v673_v14 = vpop.eup %672  ;;  %v33_v25 = vrot.slane %v32_v20, 2 }
   0x8   :  { %v46_v16 = vadd.f32 %v45_v10, %v44_v7  ;;  %v50_v17 = vmul.f32 8.0, %v673_v14  ;;  %v40_v18 = vadd.f32 %v39_v11, %v38_v8  ;;  %v28_v19 = vadd.f32 %v27_v12, %v26_v9 }
   0x9   :  { %vm54_vm0 = vweird.f32 %v673_v14  ;;  %v34_v30 = vadd.f32 %v33_v25, %v32_v20 }
   0xa   :  { %v47_v21 = vrot.slane %v46_v16, 1  ;;  %v51_v22 = vsub.f32 1.0, %v50_v17  ;;  %v41_v23 = vrot.slane %v40_v18, 1  ;;  %v29_v24 = vrot.slane %v28_v19, 1 }
   0xb   :  { %v35_v32 = vrot.slane %v34_v30, 1 }
   0xc   :  { %v52_v26 = vmul.f32 %v673_v14, %v51_v22  ;;  %v48_v27 = vadd.f32 %v47_v21, %v46_v16  ;;  %v42_v28 = vadd.f32 %v41_v23, %v40_v18  ;;  %v30_v29 = vadd.f32 %v29_v24, %v28_v19 }
   0xd   :  { %v36_v37 = vadd.f32 %v35_v32, %v34_v30 }
   0xe   :  { %v53_v31 = vadd.f32 %v673_v14, %v52_v26 }
  0x10   :  { %v55_v33 = vsel %vm54_vm0, %v673_v14, %v53_v31 }
  0x11   :  { %v59_v34 = vmul.f32 %v55_v33, %v48_v27  ;;  %v58_v35 = vmul.f32 %v55_v33, %v42_v28  ;;  %v56_v36 = vmul.f32 %v55_v33, %v30_v29  ;;  %v57_v41 = vmul.f32 %v55_v33, %v36_v37 }
  0x13   :  { %v760_v38 = vsub.f32 %v24_v0, %v59_v34  ;;  %v762_v39 = vsub.f32 %v23_v2, %v58_v35  ;;  %v764_v40 = vsub.f32 %v21_v3, %v56_v36  ;;  %v772_v45 = vsub.f32 %v22_v13, %v57_v41 }
  0x15   :  { %v67_v42 = vmul.f32 %v760_v38, %v760_v38  ;;  %v66_v43 = vmul.f32 %v762_v39, %v762_v39  ;;  %v64_v44 = vmul.f32 %v764_v40, %v764_v40  ;;  %v65_v49 = vmul.f32 %v772_v45, %v772_v45 }
  0x17   :  { %v86_v46 = vrot.slane %v67_v42, 4  ;;  %v80_v47 = vrot.slane %v66_v43, 4  ;;  %v68_v48 = vrot.slane %v64_v44, 4  ;;  %v74_v53 = vrot.slane %v65_v49, 4 }
  0x19   :  { %v87_v50 = vadd.f32 %v86_v46, %v67_v42  ;;  %v81_v51 = vadd.f32 %v80_v47, %v66_v43  ;;  %v69_v52 = vadd.f32 %v68_v48, %v64_v44  ;;  %v75_v57 = vadd.f32 %v74_v53, %v65_v49 }
  0x1b   :  { %v88_v54 = vrot.slane %v87_v50, 2  ;;  %v82_v55 = vrot.slane %v81_v51, 2  ;;  %v70_v56 = vrot.slane %v69_v52, 2  ;;  %v76_v61 = vrot.slane %v75_v57, 2 }
  0x1d   :  { %v89_v58 = vadd.f32 %v88_v54, %v87_v50  ;;  %v83_v59 = vadd.f32 %v82_v55, %v81_v51  ;;  %v71_v60 = vadd.f32 %v70_v56, %v69_v52  ;;  %v77_v1 = vadd.f32 %v76_v61, %v75_v57  ;;  %v849_v56 = vld [vmem:[%s1065_s3 + $0x20] sm:$0xf] }
  0x1f   :  { %v90_v62 = vrot.slane %v89_v58, 1  ;;  %v84_v63 = vrot.slane %v83_v59, 1  ;;  %v72_v0 = vrot.slane %v71_v60, 1  ;;  %v78_v5 = vrot.slane %v77_v1, 1 }
  0x21   :  { %v91_v2 = vadd.f32 %v90_v62, %v89_v58  ;;  %v85_v3 = vadd.f32 %v84_v63, %v83_v59  ;;  %v73_v4 = vadd.f32 %v72_v0, %v71_v60  ;;  %v79_v9 = vadd.f32 %v78_v5, %v77_v1  ;;  %v859_v63 = vld [vmem:[%s1065_s3 + $0x1c] sm:$0xf] }
  0x22   :  { %v440_v58 = vperm.slane %v849_v56, 3  ;;  %v407_v0 = vperm.slane %v859_v63, 3  ;;  %v406_v5 = vperm.slane %v859_v63, 2 }
  0x23   :  { %v95_v6 = vmul.f32 0.14285715, %v91_v2  ;;  %v94_v7 = vmul.f32 0.14285715, %v85_v3  ;;  %v92_v8 = vmul.f32 0.14285715, %v73_v4 }
  0x24   :  { %v93_v13 = vmul.f32 0.14285715, %v79_v9  ;;  %v439_v2 = vperm.slane %v849_v56, 2 }
  0x25   :  { %v99_v10 = vadd.f32 1e-05, %v95_v6  ;;  %v98_v11 = vadd.f32 1e-05, %v94_v7  ;;  %v96_v12 = vadd.f32 1e-05, %v92_v8 }
  0x26   :  { %v97_v14 = vadd.f32 1e-05, %v93_v13 }
  0x27   :  { %674 = vrsqrt.f32 %v99_v10  ;;  %vm136_vm1 = vweird.f32 %v99_v10  ;;  %vm126_vm3 = vweird.f32 %v98_v11  ;;  %vm106_vm5 = vweird.f32 %v96_v12 }
  0x28   :  { %676 = vrsqrt.f32 %v98_v11  ;;  %vm116_vm11 = vweird.f32 %v97_v14 }
  0x29   :  { %678 = vrsqrt.f32 %v96_v12 }
  0x2a   :  { %680 = vrsqrt.f32 %v97_v14 }
  0x2d   :  { %v675_v15 = vpop.eup %674 }
  0x2e   :  { %v677_v16 = vpop.eup %676  ;;  %v131_v17 = vmul.f32 %v675_v15, %v99_v10  ;;  %vm137_vm2 = vweird.f32 %v675_v15 }
  0x2f   :  { %v679_v18 = vpop.eup %678  ;;  %v121_v19 = vmul.f32 %v677_v16, %v98_v11  ;;  %vm127_vm4 = vweird.f32 %v677_v16  ;;  %vm138_vm7 = vmor %vm136_vm1, %vm137_vm2  ;;  %vm424_vm1 = vcmask 908288   ;;  %vm391_vm2 = vcmask 916480   ;;  %v871_v11 = vld [vmem:[%s1065_s3 + $0x18] sm:$0xf] }
  0x30   :  { %v681_v20 = vpop.eup %680  ;;  %v132_v21 = vmul.f32 %v675_v15, %v131_v17  ;;  %v101_v22 = vmul.f32 %v679_v18, %v96_v12  ;;  %vm107_vm6 = vweird.f32 %v679_v18  ;;  %vm128_vm8 = vmor %vm126_vm3, %vm127_vm4  ;;  %v373_v13 = vperm.slane %v871_v11, 2 }
  0x31   :  { %v122_v23 = vmul.f32 %v677_v16, %v121_v19  ;;  %v111_v24 = vmul.f32 %v681_v20, %v97_v14  ;;  %vm108_vm10 = vmor %vm106_vm5, %vm107_vm6  ;;  %vm117_vm12 = vweird.f32 %v681_v20  ;;  %vm358_vm3 = vcmask 924672  }
  0x32   :  { %v133_v25 = vmul.f32 0.5, %v132_v21  ;;  %v102_v26 = vmul.f32 %v679_v18, %v101_v22  ;;  %vm118_vm13 = vmor %vm116_vm11, %vm117_vm12  ;;  %v885_v22 = vld [vmem:[%s1065_s3 + $0x14] sm:$0xf]  ;;  %vm325_vm4 = vcmask 1039360   ;;  %vm278_vm5 = vcmask 7168  }
  0x33   :  { %v123_v27 = vmul.f32 0.5, %v122_v23  ;;  %v112_v28 = vmul.f32 %v681_v20, %v111_v24  ;;  %v340_v24 = vperm.slane %v885_v22, 2  ;;  %vm245_vm6 = vcmask 121856  }
  0x34   :  { %v134_v29 = vsub.f32 1.5, %v133_v25  ;;  %v103_v30 = vmul.f32 0.5, %v102_v26 }
  0x35   :  { %v124_v31 = vsub.f32 1.5, %v123_v27  ;;  %v113_v32 = vmul.f32 0.5, %v112_v28  ;;  %v341_v27 = vperm.slane %v885_v22, 3 }
  0x36   :  { %v135_v33 = vmul.f32 %v675_v15, %v134_v29  ;;  %v104_v34 = vsub.f32 1.5, %v103_v30 }
  0x37   :  { %v125_v35 = vmul.f32 %v677_v16, %v124_v31  ;;  %v114_v36 = vsub.f32 1.5, %v113_v32 }
  0x38   :  { %v139_v37 = vsel %vm138_vm7, %v675_v15, %v135_v33  ;;  %v105_v41 = vmul.f32 %v679_v18, %v104_v34  ;;  %v374_v15 = vperm.slane %v871_v11, 3  ;;  %vm212_vm7 = vcmask 130048  }
  0x39   :  { %v777_v42 = vmul.f32 %v139_v37, %v760_v38  ;;  %v154_v43 = vrot.slane %v139_v37, 5  ;;  %v129_v44 = vsel %vm128_vm8, %v677_v16, %v125_v35  ;;  %v115_v46 = vmul.f32 %v681_v20, %v114_v36 }
  0x3a   :  { %v780_v47 = vmul.f32 %v129_v44, %v762_v39  ;;  %v153_v48 = vrot.slane %v129_v44, 6  ;;  %v109_v49 = vsel %vm108_vm10, %v679_v18, %v105_v41  ;;  %v437_v41 = vperm.slane %v849_v56, 0 }
  0x3b   :  { %422 = vrot.lane.b32.xlu1 %v777_v42, %s699_s0  ;;  %147 = vst [vmem:[%s1063_s6 + $0x18] sm:$0xff] %v777_v42  ;;  %v789_v38 = vmul.f32 %v109_v49, %v764_v40  ;;  %v119_v50 = vsel %vm118_vm13, %v681_v20, %v115_v46  ;;  %v162_v40 = vlaneseq  ;;  %v880_v20 = vld [vmem:[%s1065_s3 + $0x10] sm:$0xf]  ;;  %v404_v46 = vperm.slane %v859_v63, 0 }
  0x3c   :  { %v158_v51 = vsel %vm157_vm9, %v153_v48, %v154_v43  ;;  %387 = vrot.lane.b32.xlu2 %v780_v47, %s700_s11  ;;  %146 = vst [vmem:[%s1063_s6 + $0x10] sm:$0xff] %v780_v47  ;;  %v798_v39 = vmul.f32 %v119_v50, %v772_v45  ;;  %v152_v52 = vrot.slane %v119_v50, 7  ;;  %v307_v25 = vperm.slane %v880_v20, 2 }
  0x3d   :  { %416 = vrot.lane.b32.xlu0 %v789_v38, %s699_s0  ;;  %144 = vst [vmem:[%s1063_s6] sm:$0xff] %v789_v38  ;;  %vm164_vm0 = vcmp.lt.s32.totalorder %v162_v40, 512  ;;  %v308_v28 = vperm.slane %v880_v20, 3  ;;  %v438_v43 = vperm.slane %v849_v56, 1  ;;  %vm180_vm8 = vcmask 138240  }
  0x3e   :  { %145 = vst [vmem:[%s1063_s6 + $0x8] sm:$0xff] %v798_v39  ;;  %v156_v53 = vsel %vm155_vm14, %v109_v49, %v152_v52  ;;  %s702_s6 = smov 127   ;;  %v315_v32 = vmul.f32 %v307_v25, %v780_v47  ;;  %v707_v25 = vmov 0   ;;  %vm456_vm9 = vcmask 588800  }
  0x3f   :  { %v160_v45 = vsel %vm159_vm15, %v156_v53, %v158_v51  ;;  %v316_v35 = vmul.f32 %v308_v28, %v777_v42  ;;  %v916_v51 = vld [vmem:[%s1065_s3 + $0xc] sm:$0xf]  ;;  %v371_v53 = vperm.slane %v871_v11, 0  ;;  %670 = vset.pattern.permute.xlu2 %v707_v25  ;;  %671 = vset.pattern.permute.xlu0 %v707_v25 }
  0x40   :  { %166 = vst.msk [vmem:[%s1064_s7] sm:$0xf] %vm164_vm0, %v160_v45  ;;  %s703_s7 = smov 1   ;;  %v372_v45 = vperm.slane %v871_v11, 1 }
  0x43   :  { %383 = vrot.lane.b32.xlu1 %v789_v38, %s700_s11 }
  0x44   :  { %389 = vrot.lane.b32.xlu2 %v777_v42, %s700_s11 }
  0x45   :  { %420 = vrot.lane.b32.xlu0 %v780_v47, %s699_s0 }
  0x4b   :  { %354 = vrot.lane.b32.xlu1 %v780_v47, %s701_s20 }
  0x4c   :  { %356 = vrot.lane.b32.xlu2 %v777_v42, %s701_s20 }
  0x4d   :  { %350 = vrot.lane.b32.xlu0 %v789_v38, %s701_s20 }
  0x53   :  { %321 = vrot.lane.b32.xlu1 %v780_v47, %s702_s6 }
  0x54   :  { %323 = vrot.lane.b32.xlu2 %v777_v42, %s702_s6 }
  0x55   :  { %317 = vrot.lane.b32.xlu0 %v789_v38, %s702_s6 }
  0x5b   :  { %385 = vrot.lane.b32.xlu1 %v798_v39, %s700_s11 }
  0x5c   :  { %269 = vrot.lane.b32.xlu2 %v777_v42, %s703_s7 }
  0x5d   :  { %418 = vrot.lane.b32.xlu0 %v798_v39, %s699_s0 }
  0x63   :  { %276 = vrot.lane.b32.xlu1 %v780_v47, %s703_s7 }
  0x64   :  { %352 = vrot.lane.b32.xlu2 %v798_v39, %s701_s20 }
  0x65   :  { %274 = vrot.lane.b32.xlu0 %v798_v39, %s703_s7 }
  0x6b   :  { %241 = vrot.lane.b32.xlu1 %v798_v39, %s704_s21 }
  0x6c   :  { %243 = vrot.lane.b32.xlu2 %v780_v47, %s704_s21 }
  0x6d   :  { %236 = vrot.lane.b32.xlu0 %v777_v42, %s704_s21 }
  0x73   :  { %203 = vrot.lane.b32.xlu1 %v777_v42, %s705_s22 }
  0x74   :  { %208 = vrot.lane.b32.xlu2 %v798_v39, %s705_s22 }
  0x75   :  { %319 = vrot.lane.b32.xlu0 %v798_v39, %s702_s6 }
  0x7b   :  { %168 = vrot.lane.b32.xlu1 %v777_v42, %s706_s23 }
  0x7c   :  { %176 = vrot.lane.b32.xlu2 %v798_v39, %s706_s23 }
  0x7d   :  { %210 = vrot.lane.b32.xlu0 %v780_v47, %s705_s22 }
  0x83   :  { %272 = vrot.lane.b32.xlu1 %v789_v38, %s703_s7 }
  0x84   :  { %239 = vrot.lane.b32.xlu2 %v789_v38, %s704_s21 }
  0x85   :  { %178 = vrot.lane.b32.xlu0 %v780_v47, %s706_s23  ;;  %v405_v47 = vperm.slane %v859_v63, 1 }
  0x8b   :  { %174 = vrot.lane.b32.xlu1 %v789_v38, %s706_s23 }
  0x8d   :  { %206 = vrot.lane.b32.xlu0 %v789_v38, %s705_s22 }
  0x96   :  { %v844_v54 = vpop.permute.xlu2 %387 }
  0x9e   :  { %v390_v55 = vpop.permute.xlu2 %389 }
  0x9f   :  { %v394_v7 = vsel %vm391_vm2, %v844_v54, %v390_v55 }
  0xa0   :  { %v414_v12 = vmul.f32 %v406_v5, %v394_v7  ;;  %v933_v5 = vld [vmem:[%s1065_s3 + $0x8] sm:$0xf] }
  0xa6   :  { %v357_v59 = vpop.permute.xlu2 %356 }
  0xad   :  { %v423_v57 = vpop.permute.xlu1 %422 }
  0xae   :  { %v324_v9 = vpop.permute.xlu2 %323 }
  0xaf   :  { %v852_v60 = vpop.permute.xlu0 %416 }
  0xb0   :  { %v433_v61 = vsel %vm424_vm1, %v423_v57, %v852_v60 }
  0xb1   :  { %v448_v62 = vmul.f32 %v440_v58, %v433_v61  ;;  %v293_v58 = vperm.slane %v916_v51, 3 }
  0xb3   :  { %527 = vmatpush.msra.mxu3 %v448_v62  ;;  %v292_v62 = vperm.slane %v916_v51, 2 }
  0xb5   :  { %v384_v1 = vpop.permute.xlu1 %383 }
  0xb6   :  { %v400_v3 = vsel %vm391_vm2, %v390_v55, %v384_v1  ;;  %v887_v23 = vpop.permute.xlu2 %269 }
  0xb7   :  { %v421_v4 = vpop.permute.xlu0 %420  ;;  %v415_v6 = vmul.f32 %v407_v0, %v400_v3 }
  0xb8   :  { %v427_v8 = vsel %vm424_vm1, %v421_v4, %v423_v57 }
  0xb9   :  { %v447_v10 = vmul.f32 %v439_v2, %v427_v8  ;;  %528 = vmatpush.msra.mxu3 %v415_v6  ;;  %v259_v6 = vperm.slane %v933_v5, 2  ;;  %v260_v8 = vperm.slane %v933_v5, 3 }
  0xbb   :  { %507 = vmatpush.msra.mxu2 %v447_v10 }
  0xbd   :  { %508 = vmatpush.msra.mxu2 %v414_v12  ;;  %v355_v14 = vpop.permute.xlu1 %354 }
  0xbe   :  { %v361_v16 = vsel %vm358_vm3, %v355_v14, %v357_v59  ;;  %v353_v36 = vpop.permute.xlu2 %352 }
  0xbf   :  { %v351_v17 = vpop.permute.xlu0 %350  ;;  %v381_v18 = vmul.f32 %v373_v13, %v361_v16  ;;  %v360_v55 = vsel %vm358_vm3, %v353_v36, %v355_v14  ;;  %v338_v16 = vperm.slane %v885_v22, 0 }
  0xc0   :  { %v367_v19 = vsel %vm358_vm3, %v357_v59, %v351_v17  ;;  %v380_v61 = vmul.f32 %v372_v45, %v360_v55  ;;  %v257_v45 = vperm.slane %v933_v5, 0  ;;  %v258_v55 = vperm.slane %v933_v5, 1 }
  0xc1   :  { %v382_v21 = vmul.f32 %v374_v15, %v367_v19  ;;  %509 = vmatpush.msra.mxu2 %v381_v18  ;;  %v305_v18 = vperm.slane %v880_v20, 0  ;;  %v306_v19 = vperm.slane %v880_v20, 1 }
  0xc3   :  { %529 = vmatpush.msra.mxu3 %v382_v21  ;;  %v450_v21 = vld [vmem:[%s1066_s2] sm:$0xff]  ;;  %v314_v20 = vmul.f32 %v306_v19, %v798_v39 }
  0xc4   :  { %453 = vperm.xlu2 %670, %v450_v21  }
  0xc5   :  { %v891_v26 = vpop.permute.xlu1 %321 }
  0xc6   :  { %v328_v29 = vsel %vm325_vm4, %v891_v26, %v324_v9  ;;  %v244_v0 = vpop.permute.xlu2 %243 }
  0xc7   :  { %v897_v30 = vpop.permute.xlu0 %317  ;;  %v348_v31 = vmul.f32 %v340_v24, %v328_v29 }
  0xc8   :  { %v334_v33 = vsel %vm325_vm4, %v324_v9, %v897_v30 }
  0xc9   :  { %v349_v34 = vmul.f32 %v341_v27, %v334_v33  ;;  %510 = vmatpush.msra.mxu2 %v348_v31  ;;  %v313_v31 = vmul.f32 %v305_v18, %v789_v38 }
  0xcb   :  { %530 = vmatpush.msra.mxu3 %v349_v34  ;;  %511 = vmatpush.msra.mxu2 %v315_v32  ;;  %v959_v32 = vld [vmem:[%s1065_s3 + $0x4] sm:$0xf] }
  0xcd   :  { %v386_v37 = vpop.permute.xlu1 %385  ;;  %531 = vmatpush.msra.mxu3 %v316_v35 }
  0xce   :  { %v392_v48 = vsel %vm391_vm2, %v384_v1, %v386_v37  ;;  %v393_v49 = vsel %vm391_vm2, %v386_v37, %v844_v54  ;;  %v359_v54 = vsel %vm358_vm3, %v351_v17, %v353_v36  ;;  %v939_v13 = vpop.permute.xlu2 %208  ;;  %v339_v17 = vperm.slane %v885_v22, 1 }
  0xcf   :  { %v419_v44 = vpop.permute.xlu0 %418  ;;  %v412_v56 = vmul.f32 %v404_v46, %v392_v48  ;;  %v413_v57 = vmul.f32 %v405_v47, %v393_v49 }
  0xd0   :  { %v425_v42 = vsel %vm424_vm1, %v852_v60, %v419_v44  ;;  %v426_v50 = vsel %vm424_vm1, %v419_v44, %v421_v4  ;;  %v379_v60 = vmul.f32 %v371_v53, %v359_v54  ;;  %v291_v44 = vperm.slane %v916_v51, 1 }
  0xd1   :  { %v445_v52 = vmul.f32 %v437_v41, %v425_v42  ;;  %v446_v40 = vmul.f32 %v438_v43, %v426_v50  ;;  %v189_v41 = vld [vmem:[%s1065_s3] sm:$0xf]  ;;  %v290_v43 = vperm.slane %v916_v51, 0 }
  0xd2   :  { %v193_v48 = vperm.slane %v189_v41, 2  ;;  %v194_v49 = vperm.slane %v189_v41, 3 }
  0xd3   :  { %467 = vmatpush.msra.mxu0 %v445_v52  ;;  %487 = vmatpush.msra.mxu1 %v446_v40 }
  0xd5   :  { %468 = vmatpush.msra.mxu0 %v412_v56  ;;  %488 = vmatpush.msra.mxu1 %v413_v57  ;;  %v277_v59 = vpop.permute.xlu1 %276 }
  0xd6   :  { %v281_v63 = vsel %vm278_vm5, %v277_v59, %v887_v23  ;;  %v177_v33 = vpop.permute.xlu2 %176 }
  0xd7   :  { %469 = vmatpush.msra.mxu0 %v379_v60  ;;  %489 = vmatpush.msra.mxu1 %v380_v61  ;;  %v926_v1 = vpop.permute.xlu0 %274  ;;  %v301_v2 = vmul.f32 %v293_v58, %v281_v63  ;;  %v224_v63 = vperm.slane %v959_v32, 0 }
  0xd8   :  { %v280_v3 = vsel %vm278_vm5, %v926_v1, %v277_v59 }
  0xd9   :  { %v300_v4 = vmul.f32 %v292_v62, %v280_v3  ;;  %532 = vmatpush.msra.mxu3 %v301_v2  ;;  %v191_v2 = vperm.slane %v189_v41, 0  ;;  %v192_v3 = vperm.slane %v189_v41, 1 }
  0xdb   :  { %512 = vmatpush.msra.mxu2 %v300_v4 }
  0xdd   :  { %v242_v7 = vpop.permute.xlu1 %241 }
  0xde   :  { %v247_v9 = vsel %vm245_vm6, %v242_v7, %v244_v0  ;;  %v240_v46 = vpop.permute.xlu2 %239 }
  0xdf   :  { %v237_v10 = vpop.permute.xlu0 %236  ;;  %v267_v11 = vmul.f32 %v259_v6, %v247_v9  ;;  %v246_v51 = vsel %vm245_vm6, %v240_v46, %v242_v7 }
  0xe0   :  { %v248_v12 = vsel %vm245_vm6, %v244_v0, %v237_v10  ;;  %v253_v54 = vsel %vm245_vm6, %v237_v10, %v240_v46  ;;  %v266_v61 = vmul.f32 %v258_v55, %v246_v51  ;;  %v225_v0 = vperm.slane %v959_v32, 1 }
  0xe1   :  { %v268_v14 = vmul.f32 %v260_v8, %v248_v12  ;;  %513 = vmatpush.msra.mxu2 %v267_v11  ;;  %v265_v60 = vmul.f32 %v257_v45, %v253_v54 }
  0xe3   :  { %533 = vmatpush.msra.mxu3 %v268_v14 }
  0xe5   :  { %v941_v15 = vpop.permute.xlu1 %203 }
  0xe7   :  { %v320_v24 = vpop.permute.xlu0 %319 }
  0xe8   :  { %v326_v27 = vsel %vm325_vm4, %v897_v30, %v320_v24  ;;  %v327_v28 = vsel %vm325_vm4, %v320_v24, %v891_v26  ;;  %v226_v30 = vperm.slane %v959_v32, 2  ;;  %v227_v26 = vperm.slane %v959_v32, 3 }
  0xe9   :  { %v346_v22 = vmul.f32 %v338_v16, %v326_v27  ;;  %v347_v29 = vmul.f32 %v339_v17, %v327_v28 }
  0xeb   :  { %470 = vmatpush.msra.mxu0 %v346_v22  ;;  %490 = vmatpush.msra.mxu1 %v347_v29 }
  0xed   :  { %v169_v34 = vpop.permute.xlu1 %168  ;;  %471 = vmatpush.msra.mxu0 %v313_v31  ;;  %491 = vmatpush.msra.mxu1 %v314_v20 }
  0xef   :  { %v211_v35 = vpop.permute.xlu0 %210 }
  0xf0   :  { %v214_v38 = vsel %vm212_vm7, %v939_v13, %v211_v35  ;;  %v215_v39 = vsel %vm212_vm7, %v211_v35, %v941_v15 }
  0xf1   :  { %v234_v36 = vmul.f32 %v226_v30, %v214_v38  ;;  %v235_v37 = vmul.f32 %v227_v26, %v215_v39 }
  0xf3   :  { %514 = vmatpush.msra.mxu2 %v234_v36  ;;  %534 = vmatpush.msra.mxu3 %v235_v37 }
  0xf5   :  { %v273_v47 = vpop.permute.xlu1 %272 }
  0xf6   :  { %v279_v42 = vsel %vm278_vm5, %v273_v47, %v926_v1  ;;  %v286_v50 = vsel %vm278_vm5, %v887_v23, %v273_v47  ;;  %v449_v23 = vld [vmem:[%s1067_s1] sm:$0xff] }
  0xf7   :  { %v179_v52 = vpop.permute.xlu0 %178  ;;  %v298_v40 = vmul.f32 %v290_v43, %v286_v50  ;;  %v299_v53 = vmul.f32 %v291_v44, %v279_v42 }
  0xf8   :  { %v182_v56 = vsel %vm180_vm8, %v177_v33, %v179_v52  ;;  %v183_v57 = vsel %vm180_vm8, %v179_v52, %v169_v34 }
  0xf9   :  { %472 = vmatpush.msra.mxu0 %v298_v40  ;;  %492 = vmatpush.msra.mxu1 %v299_v53  ;;  %v201_v58 = vmul.f32 %v193_v48, %v182_v56  ;;  %v202_v59 = vmul.f32 %v194_v49, %v183_v57 }
  0xfb   :  { %515 = vmatpush.msra.mxu2 %v201_v58  ;;  %535 = vmatpush.msra.mxu3 %v202_v59 }
  0xfc   :  { %654 = vmatmul.msk.f32.vlgmr.msra.gmra.mxu2 %vm456_vm9, %v449_v23  ;;  %655 = vmatmul.msk.f32.vlgmr.msra.gmra.mxu3 %vm456_vm9, %v449_v23 }
  0xfd   :  { %473 = vmatpush.msra.mxu0 %v265_v60  ;;  %493 = vmatpush.msra.mxu1 %v266_v61  ;;  %v175_v62 = vpop.permute.xlu1 %174 }
  0xfe   :  { %v181_v4 = vsel %vm180_vm8, %v175_v62, %v177_v33  ;;  %v188_v5 = vsel %vm180_vm8, %v169_v34, %v175_v62 }
  0xff   :  { %v207_v1 = vpop.permute.xlu0 %206  ;;  %v199_v10 = vmul.f32 %v191_v2, %v188_v5  ;;  %v200_v11 = vmul.f32 %v192_v3, %v181_v4 }
 0x100   :  { %v213_v6 = vsel %vm212_vm7, %v207_v1, %v939_v13  ;;  %v220_v7 = vsel %vm212_vm7, %v941_v15, %v207_v1 }
 0x101   :  { %v232_v8 = vmul.f32 %v224_v63, %v220_v7  ;;  %v233_v9 = vmul.f32 %v225_v0, %v213_v6 }
 0x103   :  { %474 = vmatpush.msra.mxu0 %v232_v8  ;;  %494 = vmatpush.msra.mxu1 %v233_v9 }
 0x105   :  { %475 = vmatpush.msra.mxu0 %v199_v10  ;;  %495 = vmatpush.msra.mxu1 %v200_v11 }
 0x106   :  { %652 = vmatmul.msk.f32.vlgmr.msra.gmra.mxu0 %vm456_vm9, %v449_v23  ;;  %653 = vmatmul.msk.f32.vlgmr.msra.gmra.mxu1 %vm456_vm9, %v449_v23 }
 0x11e   :  { %v454_v12 = vpop.permute.xlu2 %453 }
 0x17f   :  { %v517_v14 = vpop.f32.mrf.mxu2  ;;  %v537_v16 = vpop.f32.mrf.mxu3 }
 0x180   :  { %v997_v17 = vadd.f32 %v517_v14, %v454_v12  ;;  %v999_v13 = vadd.f32 %v537_v16, %v454_v12 }
 0x182   :  { %v658_v15 = vmul.f32 -1.442695, %v997_v17  ;;  %622 = vst [vmem:[%s1068_s5 + $0x10] sm:$0xff] %v997_v17  ;;  %v659_v18 = vmul.f32 -1.442695, %v999_v13 }
 0x183   :  { %623 = vst [vmem:[%s1068_s5 + $0x18] sm:$0xff] %v999_v13  ;;  %v477_v19 = vpop.f32.mrf.mxu0  ;;  %v497_v21 = vpop.f32.mrf.mxu1 }
 0x184   :  { %682 = vpow2.f32 %v658_v15  ;;  %v1011_v24 = vadd.f32 %v477_v19, %v454_v12  ;;  %v1013_v25 = vadd.f32 %v497_v21, %v454_v12 }
 0x185   :  { %684 = vpow2.f32 %v659_v18 }
 0x186   :  { %v656_v27 = vmul.f32 -1.442695, %v1011_v24  ;;  %620 = vst [vmem:[%s1068_s5] sm:$0xff] %v1011_v24  ;;  %v657_v28 = vmul.f32 -1.442695, %v1013_v25 }
 0x187   :  { %621 = vst [vmem:[%s1068_s5 + $0x8] sm:$0xff] %v1013_v25 }
 0x188   :  { %686 = vpow2.f32 %v656_v27 }
 0x189   :  { %688 = vpow2.f32 %v657_v28 }
 0x18a   :  { %v683_v22 = vpop.eup %682 }
 0x18b   :  { %v685_v29 = vpop.eup %684  ;;  %v554_v31 = vadd.f32 1.0, %v683_v22 }
 0x18c   :  { %v555_v20 = vadd.f32 1.0, %v685_v29 }
 0x18d   :  { %690 = vrcp.f32 %v554_v31  ;;  %v595_v35 = vand.u32 2147483647, %v554_v31  ;;  %v597_v36 = vand.u32 2147483648, %v554_v31  ;;  %vm591_vm10 = vweird.f32 %v554_v31 }
 0x18e   :  { %v687_v32 = vpop.eup %686  ;;  %692 = vrcp.f32 %v555_v20  ;;  %v610_v41 = vand.u32 2147483647, %v555_v20  ;;  %v612_v44 = vand.u32 2147483648, %v555_v20  ;;  %vm606_vm12 = vweird.f32 %v555_v20 }
 0x18f   :  { %v689_v33 = vpop.eup %688  ;;  %v552_v34 = vadd.f32 1.0, %v687_v32  ;;  %vm1028_vm11 = vcmp.eq.f32.partialorder %v595_v35, 8.507059e+37  ;;  %v598_v50 = vor.u32 1.1754944e-38, %v597_v36 }
 0x190   :  { %v1025_v30 = vadd.f32 1.0, %v689_v33  ;;  %vm1032_vm15 = vcmp.eq.f32.partialorder %v610_v41, 8.507059e+37  ;;  %v613_v51 = vor.u32 1.1754944e-38, %v612_v44 }
 0x191   :  { %694 = vrcp.f32 %v552_v34  ;;  %v565_v56 = vand.u32 2147483647, %v552_v34  ;;  %v567_v58 = vand.u32 2147483648, %v552_v34  ;;  %vm561_vm4 = vweird.f32 %v552_v34 }
 0x192   :  { %696 = vrcp.f32 %v1025_v30  ;;  %v580_v23 = vand.u32 2147483647, %v1025_v30  ;;  %v582_v62 = vand.u32 2147483648, %v1025_v30  ;;  %vm576_vm6 = vweird.f32 %v1025_v30 }
 0x193   :  { %v691_v26 = vpop.eup %690  ;;  %v568_v6 = vor.u32 1.1754944e-38, %v567_v58  ;;  %vm566_vm7 = vcmp.eq.f32.partialorder %v565_v56, 8.507059e+37 }
 0x194   :  { %v693_v38 = vpop.eup %692  ;;  %v587_v39 = vmul.f32 %v691_v26, %v554_v31  ;;  %vm592_vm13 = vweird.f32 %v691_v26  ;;  %v583_v9 = vor.u32 1.1754944e-38, %v582_v62  ;;  %vm581_vm9 = vcmp.eq.f32.partialorder %v580_v23, 8.507059e+37 }
 0x195   :  { %v602_v37 = vmul.f32 %v693_v38, %v555_v20  ;;  %vm607_vm14 = vweird.f32 %v693_v38  ;;  %vm593_vm0 = vmor %vm591_vm10, %vm592_vm13 }
 0x196   :  { %v588_v43 = vsub.f32 1.0, %v587_v39  ;;  %vm608_vm1 = vmor %vm606_vm12, %vm607_vm14 }
 0x197   :  { %v695_v46 = vpop.eup %694  ;;  %v603_v48 = vsub.f32 1.0, %v602_v37 }
 0x198   :  { %v697_v49 = vpop.eup %696  ;;  %v589_v42 = vmul.f32 %v691_v26, %v588_v43  ;;  %v557_v52 = vmul.f32 %v695_v46, %v552_v34  ;;  %vm562_vm2 = vweird.f32 %v695_v46 }
 0x199   :  { %v604_v40 = vmul.f32 %v693_v38, %v603_v48  ;;  %v572_v45 = vmul.f32 %v697_v49, %v1025_v30  ;;  %vm577_vm3 = vweird.f32 %v697_v49  ;;  %vm563_vm5 = vmor %vm561_vm4, %vm562_vm2 }
 0x19a   :  { %v590_v55 = vadd.f32 %v691_v26, %v589_v42  ;;  %v558_v54 = vsub.f32 1.0, %v557_v52  ;;  %vm578_vm8 = vmor %vm576_vm6, %vm577_vm3 }
 0x19b   :  { %v605_v57 = vadd.f32 %v693_v38, %v604_v40  ;;  %v573_v59 = vsub.f32 1.0, %v572_v45 }
 0x19c   :  { %v594_v60 = vsel %vm593_vm0, %v691_v26, %v590_v55  ;;  %v559_v61 = vmul.f32 %v695_v46, %v558_v54 }
 0x19d   :  { %v599_v63 = vsel %vm1028_vm11, %v598_v50, %v594_v60  ;;  %v609_v0 = vsel %vm608_vm1, %v693_v38, %v605_v57  ;;  %v574_v1 = vmul.f32 %v697_v49, %v573_v59 }
 0x19e   :  { %v618_v2 = vmul.f32 %v599_v63, %v997_v17  ;;  %v614_v3 = vsel %vm1032_vm15, %v613_v51, %v609_v0  ;;  %v560_v4 = vadd.f32 %v695_v46, %v559_v61 }
 0x19f   :  { %v619_v5 = vmul.f32 %v614_v3, %v999_v13  ;;  %v575_v7 = vadd.f32 %v697_v49, %v574_v1 }
 0x1a0   :  { %626 = vst [vmem:[%s1069_s4 + $0x10] sm:$0xff] %v618_v2  ;;  %v564_v8 = vsel %vm563_vm5, %v695_v46, %v560_v4 }
 0x1a1   :  { %627 = vst [vmem:[%s1069_s4 + $0x18] sm:$0xff] %v619_v5  ;;  %v569_v10 = vsel %vm566_vm7, %v568_v6, %v564_v8  ;;  %v579_v11 = vsel %vm578_vm8, %v697_v49, %v575_v7 }
 0x1a2   :  { %v616_v12 = vmul.f32 %v569_v10, %v1011_v24  ;;  %v584_v14 = vsel %vm581_vm9, %v583_v9, %v579_v11 }
 0x1a3   :  { %v617_v16 = vmul.f32 %v584_v14, %v1013_v25 }
 0x1a4   :  { %624 = vst [vmem:[%s1069_s4] sm:$0xff] %v616_v12 }
 0x1a5   :  { %625 = vst [vmem:[%s1069_s4 + $0x8] sm:$0xff] %v617_v16 }

// kernel: jvp__.21
= control target key start
LH: loop header
LB: loop body
LE: loop exit
PB: predicated region body
PF: predicated region fallthrough
CT: control target
= control target key end

     0   :  { %s455_s21 = smov 111   ;;  %s456_s22 = smov 112   ;;  %vm278_vm0 = vcmask 908288   ;;  %vm245_vm1 = vcmask 916480   ;;  %vm212_vm2 = vcmask 924672   ;;  %vm179_vm3 = vcmask 1039360   ;;  %s732_s0 = inlined_call_operand.vmem [shape: f32[8,512], index: 0, kind: input, shape index: {}]   ;;  %s733_s3 = inlined_call_operand.vmem [shape: f32[9,1,512], index: 3, kind: input, shape index: {}]   ;;  %s734_s2 = inlined_call_operand.vmem [shape: f32[16,1], index: 2, kind: input, shape index: {}]   ;;  %s735_s1 = inlined_call_operand.vmem [shape: f32[16,72], index: 1, kind: input, shape index: {}]   ;;  %s736_s4 = inlined_call_operand.vmem [shape: f32[16,512], index: 4, kind: output, shape index: {}]  }
   0x1   :  { %v492_v0 = vld [vmem:[%s732_s0 + $0x18] sm:$0xff]  ;;  %v497_v1 = vld [vmem:[%s732_s0 + $0x10] sm:$0xff]  ;;  %v502_v2 = vld [vmem:[%s732_s0] sm:$0xff]  ;;  %s457_s23 = smov 113   ;;  %s458_s24 = smov 127   ;;  %vm132_vm4 = vcmask 7168  }
   0x2   :  { %276 = vrot.lane.b32.xlu1 %v492_v0, %s455_s21  ;;  %241 = vrot.lane.b32.xlu2 %v497_v1, %s456_s22  ;;  %v519_v3 = vld [vmem:[%s732_s0 + $0x8] sm:$0xff]  ;;  %s459_s27 = smov 1   ;;  %s460_s28 = smov 15   ;;  %v546_v6 = vld [vmem:[%s733_s3 + $0x20] sm:$0xf]  ;;  %vm99_vm5 = vcmask 121856  }
   0x3   :  { %270 = vrot.lane.b32.xlu0 %v502_v2, %s455_s21  ;;  %s461_s0 = smov 16   ;;  %s462_s29 = smov 17   ;;  %v294_v7 = vperm.slane %v546_v6, 3  ;;  %v556_v13 = vld [vmem:[%s733_s3 + $0x1c] sm:$0xf]  ;;  %v293_v15 = vperm.slane %v546_v6, 2 }
   0x4   :  { %v261_v14 = vperm.slane %v556_v13, 3  ;;  %v260_v19 = vperm.slane %v556_v13, 2  ;;  %v568_v25 = vld [vmem:[%s733_s3 + $0x18] sm:$0xf]  ;;  %v577_v35 = vld [vmem:[%s733_s3 + $0x10] sm:$0xf] }
   0x5   :  { %v227_v27 = vperm.slane %v568_v25, 2  ;;  %v228_v28 = vperm.slane %v568_v25, 3  ;;  %v584_v37 = vld [vmem:[%s733_s3 + $0x14] sm:$0xf]  ;;  %v161_v39 = vperm.slane %v577_v35, 2  ;;  %v162_v41 = vperm.slane %v577_v35, 3 }
   0x6   :  { %v194_v38 = vperm.slane %v584_v37, 2  ;;  %v195_v40 = vperm.slane %v584_v37, 3  ;;  %v291_v51 = vperm.slane %v546_v6, 0  ;;  %v292_v52 = vperm.slane %v546_v6, 1 }
   0x7   :  { %v169_v47 = vmul.f32 %v161_v39, %v497_v1  ;;  %v170_v49 = vmul.f32 %v162_v41, %v492_v0  ;;  %v258_v55 = vperm.slane %v556_v13, 0  ;;  %v259_v56 = vperm.slane %v556_v13, 1 }
   0x8   :  { %v225_v63 = vperm.slane %v568_v25, 0  ;;  %vm66_vm6 = vcmask 130048   ;;  %vm34_vm7 = vcmask 138240   ;;  %vm317_vm8 = vcmask 588800  }
   0xa   :  { %243 = vrot.lane.b32.xlu2 %v492_v0, %s456_s22  ;;  %237 = vrot.lane.b32.xlu1 %v502_v2, %s456_s22 }
   0xb   :  { %274 = vrot.lane.b32.xlu0 %v497_v1, %s455_s21 }
  0x12   :  { %210 = vrot.lane.b32.xlu2 %v492_v0, %s457_s23  ;;  %208 = vrot.lane.b32.xlu1 %v497_v1, %s457_s23 }
  0x13   :  { %204 = vrot.lane.b32.xlu0 %v502_v2, %s457_s23 }
  0x1a   :  { %177 = vrot.lane.b32.xlu2 %v492_v0, %s458_s24  ;;  %175 = vrot.lane.b32.xlu1 %v497_v1, %s458_s24 }
  0x1b   :  { %171 = vrot.lane.b32.xlu0 %v502_v2, %s458_s24 }
  0x22   :  { %123 = vrot.lane.b32.xlu2 %v492_v0, %s459_s27  ;;  %239 = vrot.lane.b32.xlu1 %v519_v3, %s456_s22 }
  0x23   :  { %272 = vrot.lane.b32.xlu0 %v519_v3, %s455_s21 }
  0x2a   :  { %206 = vrot.lane.b32.xlu2 %v519_v3, %s457_s23  ;;  %130 = vrot.lane.b32.xlu1 %v497_v1, %s459_s27 }
  0x2b   :  { %128 = vrot.lane.b32.xlu0 %v519_v3, %s459_s27 }
  0x32   :  { %97 = vrot.lane.b32.xlu2 %v497_v1, %s460_s28  ;;  %95 = vrot.lane.b32.xlu1 %v519_v3, %s460_s28 }
  0x33   :  { %90 = vrot.lane.b32.xlu0 %v492_v0, %s460_s28 }
  0x3a   :  { %62 = vrot.lane.b32.xlu2 %v519_v3, %s461_s0  ;;  %57 = vrot.lane.b32.xlu1 %v492_v0, %s461_s0 }
  0x3b   :  { %173 = vrot.lane.b32.xlu0 %v519_v3, %s458_s24 }
  0x42   :  { %30 = vrot.lane.b32.xlu2 %v519_v3, %s462_s29  ;;  %22 = vrot.lane.b32.xlu1 %v492_v0, %s462_s29  ;;  %v226_v0 = vperm.slane %v568_v25, 1 }
  0x43   :  { %64 = vrot.lane.b32.xlu0 %v497_v1, %s461_s0 }
  0x4a   :  { %93 = vrot.lane.b32.xlu2 %v502_v2, %s460_s28  ;;  %126 = vrot.lane.b32.xlu1 %v502_v2, %s459_s27 }
  0x4b   :  { %32 = vrot.lane.b32.xlu0 %v497_v1, %s462_s29  ;;  %v615_v1 = vld [vmem:[%s733_s3 + $0xc] sm:$0xf] }
  0x52   :  { %28 = vrot.lane.b32.xlu1 %v502_v2, %s462_s29 }
  0x53   :  { %60 = vrot.lane.b32.xlu0 %v502_v2, %s461_s0 }
  0x5c   :  { %v541_v4 = vpop.permute.xlu2 %241 }
  0x64   :  { %v244_v5 = vpop.permute.xlu2 %243 }
  0x65   :  { %v248_v20 = vsel %vm245_vm1, %v541_v4, %v244_v5 }
  0x66   :  { %v268_v26 = vmul.f32 %v260_v19, %v248_v20  ;;  %v630_v19 = vld [vmem:[%s733_s3 + $0x8] sm:$0xf] }
  0x67   :  { %v113_v20 = vperm.slane %v630_v19, 2 }
  0x6c   :  { %v211_v8 = vpop.permute.xlu2 %210 }
  0x74   :  { %v277_v9 = vpop.permute.xlu1 %276  ;;  %v178_v21 = vpop.permute.xlu2 %177 }
  0x75   :  { %v549_v10 = vpop.permute.xlu0 %270 }
  0x76   :  { %v287_v11 = vsel %vm278_vm0, %v277_v9, %v549_v10 }
  0x77   :  { %v302_v12 = vmul.f32 %v294_v7, %v287_v11  ;;  %v146_v11 = vperm.slane %v615_v1, 2 }
  0x79   :  { %400 = vmatpush.msra.mxu3 %v302_v12 }
  0x7c   :  { %v238_v16 = vpop.permute.xlu1 %237  ;;  %v579_v36 = vpop.permute.xlu2 %123 }
  0x7d   :  { %v254_v17 = vsel %vm245_vm1, %v244_v5, %v238_v16  ;;  %v275_v18 = vpop.permute.xlu0 %274 }
  0x7e   :  { %v281_v22 = vsel %vm278_vm0, %v275_v18, %v277_v9  ;;  %v269_v23 = vmul.f32 %v261_v14, %v254_v17 }
  0x7f   :  { %v301_v24 = vmul.f32 %v293_v15, %v281_v22 }
  0x80   :  { %401 = vmatpush.msra.mxu3 %v269_v23 }
  0x81   :  { %377 = vmatpush.msra.mxu2 %v301_v24 }
  0x83   :  { %378 = vmatpush.msra.mxu2 %v268_v26 }
  0x84   :  { %v209_v29 = vpop.permute.xlu1 %208  ;;  %v207_v50 = vpop.permute.xlu2 %206 }
  0x85   :  { %v215_v30 = vsel %vm212_vm2, %v209_v29, %v211_v8  ;;  %v205_v31 = vpop.permute.xlu0 %204  ;;  %v214_v5 = vsel %vm212_vm2, %v207_v50, %v209_v29  ;;  %v192_v29 = vperm.slane %v584_v37, 0 }
  0x86   :  { %v221_v32 = vsel %vm212_vm2, %v211_v8, %v205_v31  ;;  %v235_v33 = vmul.f32 %v227_v27, %v215_v30  ;;  %v147_v8 = vperm.slane %v615_v1, 3  ;;  %v193_v30 = vperm.slane %v584_v37, 1 }
  0x87   :  { %v236_v34 = vmul.f32 %v228_v28, %v221_v32  ;;  %v160_v32 = vperm.slane %v577_v35, 1 }
  0x88   :  { %379 = vmatpush.msra.mxu2 %v235_v33 }
  0x89   :  { %402 = vmatpush.msra.mxu3 %v236_v34 }
  0x8c   :  { %v590_v42 = vpop.permute.xlu1 %175  ;;  %v98_v12 = vpop.permute.xlu2 %97 }
  0x8d   :  { %v182_v43 = vsel %vm179_vm3, %v590_v42, %v178_v21  ;;  %v594_v44 = vpop.permute.xlu0 %171 }
  0x8e   :  { %v188_v45 = vsel %vm179_vm3, %v178_v21, %v594_v44  ;;  %v202_v46 = vmul.f32 %v194_v38, %v182_v43  ;;  %v114_v21 = vperm.slane %v630_v19, 3 }
  0x8f   :  { %v203_v48 = vmul.f32 %v195_v40, %v188_v45  ;;  %v168_v45 = vmul.f32 %v160_v32, %v519_v3  ;;  %v305_v3 = vld [vmem:[%s734_s2] sm:$0xff] }
  0x90   :  { %380 = vmatpush.msra.mxu2 %v202_v46 }
  0x91   :  { %403 = vmatpush.msra.mxu3 %v203_v48  ;;  %v463_v48 = vmov 0  }
  0x92   :  { %381 = vmatpush.msra.mxu2 %v169_v47  ;;  %454 = vset.pattern.permute.xlu0 %v463_v48 }
  0x93   :  { %404 = vmatpush.msra.mxu3 %v170_v49  ;;  %453 = vset.pattern.permute.xlu2 %v463_v48 }
  0x94   :  { %v240_v53 = vpop.permute.xlu1 %239  ;;  %v635_v25 = vpop.permute.xlu2 %62  ;;  %309 = vperm.xlu2 %453, %v305_v3  }
  0x95   :  { %v273_v54 = vpop.permute.xlu0 %272  ;;  %v246_v57 = vsel %vm245_vm1, %v238_v16, %v240_v53  ;;  %v247_v58 = vsel %vm245_vm1, %v240_v53, %v541_v4  ;;  %v213_v4 = vsel %vm212_vm2, %v205_v31, %v207_v50  ;;  %v159_v31 = vperm.slane %v577_v35, 0  ;;  %v655_v35 = vld [vmem:[%s733_s3 + $0x4] sm:$0xf]  ;;  %v43_v53 = vld [vmem:[%s733_s3] sm:$0xf] }
  0x96   :  { %v279_v59 = vsel %vm278_vm0, %v549_v10, %v273_v54  ;;  %v280_v60 = vsel %vm278_vm0, %v273_v54, %v275_v18  ;;  %v266_v6 = vmul.f32 %v258_v55, %v246_v57  ;;  %v267_v7 = vmul.f32 %v259_v56, %v247_v58 }
  0x97   :  { %v299_v61 = vmul.f32 %v291_v51, %v279_v59  ;;  %v300_v62 = vmul.f32 %v292_v52, %v280_v60  ;;  %v233_v9 = vmul.f32 %v225_v63, %v213_v4  ;;  %v234_v10 = vmul.f32 %v226_v0, %v214_v5 }
  0x98   :  { %v167_v43 = vmul.f32 %v159_v31, %v502_v2  ;;  %v306_v2 = vld [vmem:[%s734_s2 + $0x8] sm:$0xff]  ;;  %v144_v55 = vperm.slane %v615_v1, 0  ;;  %v145_v56 = vperm.slane %v615_v1, 1  ;;  %v47_v57 = vperm.slane %v43_v53, 2 }
  0x99   :  { %331 = vmatpush.msra.mxu0 %v299_v61  ;;  %354 = vmatpush.msra.mxu1 %v300_v62  ;;  %v48_v58 = vperm.slane %v43_v53, 3  ;;  %v111_v60 = vperm.slane %v630_v19, 0  ;;  %v112_v61 = vperm.slane %v630_v19, 1 }
  0x9a   :  { %314 = vperm.xlu0 %454, %v306_v2  }
  0x9b   :  { %332 = vmatpush.msra.mxu0 %v266_v6  ;;  %355 = vmatpush.msra.mxu1 %v267_v7 }
  0x9c   :  { %v131_v13 = vpop.permute.xlu1 %130  ;;  %v650_v37 = vpop.permute.xlu2 %30 }
  0x9d   :  { %v135_v14 = vsel %vm132_vm4, %v131_v13, %v579_v36  ;;  %333 = vmatpush.msra.mxu0 %v233_v9  ;;  %356 = vmatpush.msra.mxu1 %v234_v10  ;;  %v623_v15 = vpop.permute.xlu0 %128 }
  0x9e   :  { %v134_v16 = vsel %vm132_vm4, %v623_v15, %v131_v13  ;;  %v155_v17 = vmul.f32 %v147_v8, %v135_v14  ;;  %v303_v13 = vld [vmem:[%s735_s1] sm:$0xff]  ;;  %v79_v14 = vperm.slane %v655_v35, 1 }
  0x9f   :  { %v154_v18 = vmul.f32 %v146_v11, %v134_v16 }
  0xa0   :  { %405 = vmatpush.msra.mxu3 %v155_v17  ;;  %v45_v17 = vperm.slane %v43_v53, 0 }
  0xa1   :  { %382 = vmatpush.msra.mxu2 %v154_v18  ;;  %v46_v18 = vperm.slane %v43_v53, 1 }
  0xa4   :  { %v96_v22 = vpop.permute.xlu1 %95  ;;  %v94_v54 = vpop.permute.xlu2 %93 }
  0xa5   :  { %v101_v23 = vsel %vm99_vm5, %v96_v22, %v98_v12  ;;  %v91_v24 = vpop.permute.xlu0 %90  ;;  %v100_v62 = vsel %vm99_vm5, %v94_v54, %v96_v22 }
  0xa6   :  { %v102_v26 = vsel %vm99_vm5, %v98_v12, %v91_v24  ;;  %v121_v27 = vmul.f32 %v113_v20, %v101_v23  ;;  %v107_v63 = vsel %vm99_vm5, %v91_v24, %v94_v54  ;;  %v120_v12 = vmul.f32 %v112_v61, %v100_v62 }
  0xa7   :  { %v122_v28 = vmul.f32 %v114_v21, %v102_v26  ;;  %v119_v11 = vmul.f32 %v111_v60, %v107_v63 }
  0xa8   :  { %383 = vmatpush.msra.mxu2 %v121_v27 }
  0xa9   :  { %406 = vmatpush.msra.mxu3 %v122_v28  ;;  %v304_v28 = vld [vmem:[%s735_s1 + $0x8] sm:$0xff] }
  0xac   :  { %v642_v33 = vpop.permute.xlu1 %57 }
  0xad   :  { %v174_v34 = vpop.permute.xlu0 %173 }
  0xae   :  { %v180_v38 = vsel %vm179_vm3, %v594_v44, %v174_v34  ;;  %v181_v39 = vsel %vm179_vm3, %v174_v34, %v590_v42  ;;  %v80_v44 = vperm.slane %v655_v35, 2  ;;  %v81_v42 = vperm.slane %v655_v35, 3 }
  0xaf   :  { %v200_v40 = vmul.f32 %v192_v29, %v180_v38  ;;  %v201_v41 = vmul.f32 %v193_v30, %v181_v39 }
  0xb1   :  { %334 = vmatpush.msra.mxu0 %v200_v40  ;;  %357 = vmatpush.msra.mxu1 %v201_v41 }
  0xb3   :  { %335 = vmatpush.msra.mxu0 %v167_v43  ;;  %358 = vmatpush.msra.mxu1 %v168_v45 }
  0xb4   :  { %v23_v46 = vpop.permute.xlu1 %22 }
  0xb5   :  { %v65_v47 = vpop.permute.xlu0 %64 }
  0xb6   :  { %v68_v49 = vsel %vm66_vm6, %v635_v25, %v65_v47  ;;  %v69_v50 = vsel %vm66_vm6, %v65_v47, %v642_v33 }
  0xb7   :  { %v88_v51 = vmul.f32 %v80_v44, %v68_v49  ;;  %v89_v52 = vmul.f32 %v81_v42, %v69_v50 }
  0xb9   :  { %384 = vmatpush.msra.mxu2 %v88_v51  ;;  %407 = vmatpush.msra.mxu3 %v89_v52 }
  0xbc   :  { %v127_v59 = vpop.permute.xlu1 %126 }
  0xbd   :  { %v133_v0 = vsel %vm132_vm4, %v127_v59, %v623_v15  ;;  %v140_v5 = vsel %vm132_vm4, %v579_v36, %v127_v59  ;;  %v33_v4 = vpop.permute.xlu0 %32  ;;  %v78_v36 = vperm.slane %v655_v35, 0 }
  0xbe   :  { %v36_v1 = vsel %vm34_vm7, %v650_v37, %v33_v4  ;;  %v37_v6 = vsel %vm34_vm7, %v33_v4, %v23_v46  ;;  %v152_v7 = vmul.f32 %v144_v55, %v140_v5  ;;  %v153_v8 = vmul.f32 %v145_v56, %v133_v0 }
  0xbf   :  { %v55_v9 = vmul.f32 %v47_v57, %v36_v1  ;;  %v56_v10 = vmul.f32 %v48_v58, %v37_v6 }
  0xc0   :  { %336 = vmatpush.msra.mxu0 %v152_v7  ;;  %359 = vmatpush.msra.mxu1 %v153_v8 }
  0xc1   :  { %385 = vmatpush.msra.mxu2 %v55_v9  ;;  %408 = vmatpush.msra.mxu3 %v56_v10 }
  0xc2   :  { %337 = vmatpush.msra.mxu0 %v119_v11  ;;  %360 = vmatpush.msra.mxu1 %v120_v12 }
  0xc3   :  { %440 = vmatmul.msk.f32.vlgmr.msra.gmra.mxu2 %vm317_vm8, %v303_v13  ;;  %442 = vmatmul.msk.f32.vlgmr.msra.gmra.mxu3 %vm317_vm8, %v303_v13 }
  0xc4   :  { %v29_v15 = vpop.permute.xlu1 %28 }
  0xc5   :  { %v61_v16 = vpop.permute.xlu0 %60  ;;  %v35_v19 = vsel %vm34_vm7, %v29_v15, %v650_v37  ;;  %v42_v20 = vsel %vm34_vm7, %v23_v46, %v29_v15 }
  0xc6   :  { %v67_v21 = vsel %vm66_vm6, %v61_v16, %v635_v25  ;;  %v74_v22 = vsel %vm66_vm6, %v642_v33, %v61_v16  ;;  %v53_v26 = vmul.f32 %v45_v17, %v42_v20  ;;  %v54_v27 = vmul.f32 %v46_v18, %v35_v19 }
  0xc7   :  { %v86_v23 = vmul.f32 %v78_v36, %v74_v22  ;;  %v87_v24 = vmul.f32 %v79_v14, %v67_v21 }
  0xc9   :  { %338 = vmatpush.msra.mxu0 %v86_v23  ;;  %361 = vmatpush.msra.mxu1 %v87_v24 }
  0xcb   :  { %339 = vmatpush.msra.mxu0 %v53_v26  ;;  %362 = vmatpush.msra.mxu1 %v54_v27 }
  0xcc   :  { %436 = vmatmul.msk.f32.vlgmr.msra.gmra.mxu0 %vm317_vm8, %v303_v13  ;;  %438 = vmatmul.msk.f32.vlgmr.msra.gmra.mxu1 %vm317_vm8, %v303_v13 }
  0xcd   :  { %441 = vmatmul.msk.f32.gmra.mxu2 %vm317_vm8, %v304_v28  ;;  %443 = vmatmul.msk.f32.gmra.mxu3 %vm317_vm8, %v304_v28 }
  0xd4   :  { %437 = vmatmul.msk.f32.gmra.mxu0 %vm317_vm8, %v304_v28  ;;  %439 = vmatmul.msk.f32.gmra.mxu1 %vm317_vm8, %v304_v28 }
  0xee   :  { %v310_v25 = vpop.permute.xlu2 %309 }
 0x10c   :  { %v315_v40 = vpop.permute.xlu0 %314 }
 0x146   :  { %v387_v29 = vpop.f32.mrf.mxu2  ;;  %v410_v30 = vpop.f32.mrf.mxu3 }
 0x147   :  { %v388_v31 = vadd.f32 %v387_v29, %v310_v25  ;;  %v411_v32 = vadd.f32 %v410_v30, %v310_v25 }
 0x149   :  { %v341_v33 = vpop.f32.mrf.mxu0  ;;  %v364_v34 = vpop.f32.mrf.mxu1  ;;  %418 = vst [vmem:[%s736_s4 + $0x10] sm:$0xff] %v388_v31 }
 0x14a   :  { %v342_v38 = vadd.f32 %v341_v33, %v310_v25  ;;  %v365_v39 = vadd.f32 %v364_v34, %v310_v25  ;;  %419 = vst [vmem:[%s736_s4 + $0x18] sm:$0xff] %v411_v32 }
 0x14c   :  { %416 = vst [vmem:[%s736_s4] sm:$0xff] %v342_v38 }
 0x14d   :  { %417 = vst [vmem:[%s736_s4 + $0x8] sm:$0xff] %v365_v39 }
 0x150   :  { %v390_v41 = vpop.f32.mrf.mxu2  ;;  %v413_v43 = vpop.f32.mrf.mxu3 }
 0x151   :  { %v367_v45 = vpop.f32.mrf.mxu1  ;;  %v391_v37 = vadd.f32 %v390_v41, %v315_v40  ;;  %v414_v35 = vadd.f32 %v413_v43, %v315_v40  ;;  %v344_v44 = vpop.f32.mrf.mxu0 }
 0x152   :  { %v368_v42 = vadd.f32 %v367_v45, %v315_v40  ;;  %v345_v46 = vadd.f32 %v344_v44, %v315_v40 }
 0x153   :  { %422 = vst [vmem:[%s736_s4 + $0x30] sm:$0xff] %v391_v37 }
 0x154   :  { %421 = vst [vmem:[%s736_s4 + $0x28] sm:$0xff] %v368_v42 }
 0x155   :  { %423 = vst [vmem:[%s736_s4 + $0x38] sm:$0xff] %v414_v35 }
 0x156   :  { %420 = vst [vmem:[%s736_s4 + $0x20] sm:$0xff] %v345_v46 }

// kernel: jvp__.23
= control target key start
LH: loop header
LB: loop body
LE: loop exit
PB: predicated region body
PF: predicated region fallthrough
CT: control target
= control target key end

     0   :  { %s253_s17 = smov 120   ;;  %s254_s18 = smov 121   ;;  %v261_v17 = vmov 0   ;;  %vm147_vm0 = vcmask 130048   ;;  %s344_s0 = inlined_call_operand.vmem [shape: f32[16,128], index: 0, kind: input, shape index: {}]   ;;  %s345_s3 = inlined_call_operand.vmem [shape: f32[9,1,128], index: 3, kind: input, shape index: {}]   ;;  %s346_s2 = inlined_call_operand.vmem [shape: f32[16,1], index: 2, kind: input, shape index: {}]   ;;  %s347_s1 = inlined_call_operand.vmem [shape: f32[16,144], index: 1, kind: input, shape index: {}]   ;;  %s348_s4 = inlined_call_operand.vmem [shape: f32[16,128], index: 4, kind: output, shape index: {}]  }
   0x1   :  { %v18_v0 = vld [vmem:[%s344_s0 + $0x8] sm:$0xff]  ;;  %s255_s19 = smov 127   ;;  %v17_v1 = vld [vmem:[%s344_s0] sm:$0xff]  ;;  %s256_s22 = smov 1   ;;  %241 = vset.pattern.permute.xlu1 %v261_v17  ;;  %242 = vset.pattern.permute.xlu2 %v261_v17  ;;  %v133_v47 = vld [vmem:[%s347_s1 + $0x10] sm:$0xff] }
   0x2   :  { %107 = vrot.lane.b32.xlu0 %v18_v0, %s253_s17  ;;  %94 = vrot.lane.b32.xlu1 %v18_v0, %s254_s18  ;;  %s257_s23 = smov 7   ;;  %s258_s24 = smov 8   ;;  %v244_v3 = vld [vmem:[%s345_s3 + $0x7] ss:$0 sm:$0xff]  ;;  %v245_v8 = vld [vmem:[%s345_s3 + $0x6] ss:$0 sm:$0xff] }
   0x3   :  { %81 = vrot.lane.b32.xlu2 %v18_v0, %s255_s19  ;;  %s259_s25 = smov 9   ;;  %s260_s26 = smov 119   ;;  %v246_v13 = vld [vmem:[%s345_s3 + $0x5] ss:$0 sm:$0xff]  ;;  %v248_v16 = vld [vmem:[%s345_s3 + $0x4] ss:$0 sm:$0xff]  ;;  %243 = vset.pattern.permute.xlu0 %v261_v17 }
   0x4   :  { %v78_v22 = vmul.f32 %v248_v16, %v18_v0  ;;  %v247_v23 = vld [vmem:[%s345_s3 + $0x3] ss:$0 sm:$0xff]  ;;  %v77_v24 = vmul.f32 %v248_v16, %v17_v1  ;;  %v136_v26 = vld [vmem:[%s346_s2 + $0x8] sm:$0xff]  ;;  %v249_v29 = vld [vmem:[%s345_s3 + $0x2] ss:$0 sm:$0xff] }
   0x5   :  { %v135_v25 = vld [vmem:[%s346_s2] sm:$0xff]  ;;  %v252_v37 = vld [vmem:[%s345_s3 + $0x8] ss:$0 sm:$0xff]  ;;  %v134_v51 = vld [vmem:[%s347_s1 + $0x18] sm:$0xff] }
   0x6   :  { %v250_v33 = vld [vmem:[%s345_s3 + $0x1] ss:$0 sm:$0xff]  ;;  %v251_v39 = vld [vmem:[%s345_s3] ss:$0 sm:$0xff]  ;;  %v132_v50 = vld [vmem:[%s347_s1 + $0x8] sm:$0xff] }
   0x7   :  { %v131_v46 = vld [vmem:[%s347_s1] sm:$0xff] }
   0xa   :  { %105 = vrot.lane.b32.xlu0 %v17_v1, %s253_s17  ;;  %92 = vrot.lane.b32.xlu1 %v17_v1, %s254_s18 }
   0xb   :  { %79 = vrot.lane.b32.xlu2 %v17_v1, %s255_s19 }
  0x12   :  { %61 = vrot.lane.b32.xlu0 %v18_v0, %s256_s22  ;;  %59 = vrot.lane.b32.xlu1 %v17_v1, %s256_s22 }
  0x13   :  { %48 = vrot.lane.b32.xlu2 %v18_v0, %s257_s23 }
  0x1a   :  { %46 = vrot.lane.b32.xlu0 %v17_v1, %s257_s23  ;;  %35 = vrot.lane.b32.xlu1 %v18_v0, %s258_s24 }
  0x1b   :  { %33 = vrot.lane.b32.xlu2 %v17_v1, %s258_s24 }
  0x22   :  { %23 = vrot.lane.b32.xlu0 %v18_v0, %s259_s25  ;;  %120 = vrot.lane.b32.xlu1 %v18_v0, %s260_s26 }
  0x23   :  { %21 = vrot.lane.b32.xlu2 %v17_v1, %s259_s25 }
  0x2a   :  { %118 = vrot.lane.b32.xlu0 %v17_v1, %s260_s26  ;;  %139 = vperm.xlu1 %241, %v135_v25  }
  0x2b   :  { %144 = vperm.xlu2 %242, %v136_v26  }
  0x5d   :  { %v82_v2 = vpop.permute.xlu2 %81 }
  0x5e   :  { %v91_v18 = vmul.f32 %v246_v13, %v82_v2 }
  0x65   :  { %v80_v7 = vpop.permute.xlu2 %79 }
  0x66   :  { %v90_v19 = vmul.f32 %v246_v13, %v80_v7 }
  0x6d   :  { %v49_v15 = vpop.permute.xlu2 %48 }
  0x6e   :  { %v58_v34 = vmul.f32 %v249_v29, %v49_v15 }
  0x74   :  { %v108_v4 = vpop.permute.xlu0 %107  ;;  %v95_v5 = vpop.permute.xlu1 %94 }
  0x75   :  { %v117_v6 = vmul.f32 %v244_v3, %v108_v4  ;;  %v104_v12 = vmul.f32 %v245_v8, %v95_v5  ;;  %v34_v27 = vpop.permute.xlu2 %33 }
  0x76   :  { %v44_v38 = vmul.f32 %v250_v33, %v34_v27 }
  0x77   :  { %154 = vmatpush.msra.mxu0 %v117_v6  ;;  %216 = vmatpush.msra.mxu2 %v117_v6 }
  0x7c   :  { %v106_v9 = vpop.permute.xlu0 %105  ;;  %v93_v10 = vpop.permute.xlu1 %92 }
  0x7d   :  { %v116_v11 = vmul.f32 %v244_v3, %v106_v9  ;;  %v103_v14 = vmul.f32 %v245_v8, %v93_v10  ;;  %v22_v40 = vpop.permute.xlu2 %21 }
  0x7e   :  { %v31_v45 = vmul.f32 %v251_v39, %v22_v40 }
  0x7f   :  { %155 = vmatpush.msra.mxu0 %v116_v11  ;;  %217 = vmatpush.msra.mxu2 %v116_v11 }
  0x81   :  { %156 = vmatpush.msra.mxu0 %v104_v12  ;;  %218 = vmatpush.msra.mxu2 %v104_v12 }
  0x83   :  { %157 = vmatpush.msra.mxu0 %v103_v14  ;;  %219 = vmatpush.msra.mxu2 %v103_v14 }
  0x84   :  { %v62_v20 = vpop.permute.xlu0 %61  ;;  %v60_v21 = vpop.permute.xlu1 %59 }
  0x85   :  { %158 = vmatpush.msra.mxu0 %v91_v18  ;;  %220 = vmatpush.msra.mxu2 %v91_v18  ;;  %v71_v28 = vmul.f32 %v247_v23, %v62_v20  ;;  %v70_v32 = vmul.f32 %v247_v23, %v60_v21  ;;  %v145_v57 = vpop.permute.xlu2 %144 }
  0x87   :  { %159 = vmatpush.msra.mxu0 %v90_v19  ;;  %221 = vmatpush.msra.mxu2 %v90_v19 }
  0x89   :  { %160 = vmatpush.msra.mxu0 %v78_v22  ;;  %222 = vmatpush.msra.mxu2 %v78_v22 }
  0x8b   :  { %161 = vmatpush.msra.mxu0 %v77_v24  ;;  %223 = vmatpush.msra.mxu2 %v77_v24 }
  0x8c   :  { %v47_v30 = vpop.permute.xlu0 %46  ;;  %v36_v31 = vpop.permute.xlu1 %35 }
  0x8d   :  { %162 = vmatpush.msra.mxu0 %v71_v28  ;;  %224 = vmatpush.msra.mxu2 %v71_v28  ;;  %v57_v35 = vmul.f32 %v249_v29, %v47_v30  ;;  %v45_v36 = vmul.f32 %v250_v33, %v36_v31 }
  0x8f   :  { %163 = vmatpush.msra.mxu0 %v70_v32  ;;  %225 = vmatpush.msra.mxu2 %v70_v32 }
  0x91   :  { %164 = vmatpush.msra.mxu0 %v58_v34  ;;  %226 = vmatpush.msra.mxu2 %v58_v34 }
  0x93   :  { %165 = vmatpush.msra.mxu0 %v57_v35  ;;  %227 = vmatpush.msra.mxu2 %v57_v35 }
  0x94   :  { %v24_v41 = vpop.permute.xlu0 %23  ;;  %v121_v42 = vpop.permute.xlu1 %120 }
  0x95   :  { %166 = vmatpush.msra.mxu0 %v45_v36  ;;  %228 = vmatpush.msra.mxu2 %v45_v36  ;;  %v130_v43 = vmul.f32 %v252_v37, %v121_v42  ;;  %v32_v44 = vmul.f32 %v251_v39, %v24_v41 }
  0x97   :  { %167 = vmatpush.msra.mxu0 %v44_v38  ;;  %229 = vmatpush.msra.mxu2 %v44_v38 }
  0x98   :  { %191 = vmatpush.msra.mxu1 %v130_v43 }
  0x99   :  { %168 = vmatpush.msra.mxu0 %v32_v44  ;;  %230 = vmatpush.msra.mxu2 %v32_v44 }
  0x9b   :  { %169 = vmatpush.msra.mxu0 %v31_v45  ;;  %231 = vmatpush.msra.mxu2 %v31_v45 }
  0x9c   :  { %v119_v48 = vpop.permute.xlu0 %118  ;;  %170 = vmatmul.f32.vlgmr.msra.gmra.mxu0 %v131_v46  ;;  %173 = vmatmul.f32.vlgmr.msra.gmra.mxu2 %v133_v47  ;;  %v140_v52 = vpop.permute.xlu1 %139 }
  0x9d   :  { %v129_v49 = vmul.f32 %v252_v37, %v119_v48 }
  0x9f   :  { %192 = vmatpush.msra.mxu1 %v129_v49 }
  0xa0   :  { %214 = vmatmul.msk.f32.vlgmr.msra.gmra.mxu1 %vm147_vm0, %v132_v50 }
  0xa8   :  { %215 = vmatmul.msk.f32.gmra.mxu1 %vm147_vm0, %v134_v51 }
 0x119   :  { %v171_v53 = vpop.f32.mrf.mxu0 }
 0x11a   :  { %v172_v54 = vadd.f32 %v171_v53, %v140_v52 }
 0x11d   :  { %v194_v55 = vpop.f32.mrf.mxu1 }
 0x11e   :  { %v195_v56 = vadd.f32 %v194_v55, %v172_v54 }
 0x11f   :  { %v174_v58 = vpop.f32.mrf.mxu2 }
 0x120   :  { %200 = vst [vmem:[%s348_s4] sm:$0xff] %v195_v56  ;;  %v175_v59 = vadd.f32 %v174_v58, %v145_v57 }
 0x125   :  { %v197_v60 = vpop.f32.mrf.mxu1 }
 0x126   :  { %v198_v61 = vadd.f32 %v197_v60, %v175_v59 }
 0x128   :  { %201 = vst [vmem:[%s348_s4 + $0x8] sm:$0xff] %v198_v61 }

// kernel: jvp__.22
= control target key start
LH: loop header
LB: loop body
LE: loop exit
PB: predicated region body
PF: predicated region fallthrough
CT: control target
= control target key end

     0   :  { %v369_v2 = vmov 16.0   ;;  %s370_s29 = smov 120   ;;  %s371_s9 = smov 121   ;;  %v378_v54 = vmov 0   ;;  %vm194_vm4 = vcmask 130048   ;;  %s503_s0 = inlined_call_operand.vmem [shape: f32[16,128], index: 0, kind: input, shape index: {}]   ;;  %s504_s3 = inlined_call_operand.vmem [shape: f32[9,1,128], index: 3, kind: input, shape index: {}]   ;;  %s505_s7 = inlined_call_operand.vmem [shape: f32[1,128], index: 7, kind: output, shape index: {3}]   ;;  %s506_s6 = inlined_call_operand.vmem [shape: f32[16,128], index: 6, kind: output, shape index: {2}]   ;;  %s507_s2 = inlined_call_operand.vmem [shape: f32[16,1], index: 2, kind: input, shape index: {}]   ;;  %s508_s1 = inlined_call_operand.vmem [shape: f32[16,144], index: 1, kind: input, shape index: {}]   ;;  %s509_s5 = inlined_call_operand.vmem [shape: f32[16,128], index: 5, kind: output, shape index: {1}]   ;;  %s510_s4 = inlined_call_operand.vmem [shape: f32[16,128], index: 4, kind: output, shape index: {0}]  }
   0x1   :  { %v21_v0 = vld [vmem:[%s503_s0] sm:$0xff]  ;;  %v22_v1 = vld [vmem:[%s503_s0 + $0x8] sm:$0xff]  ;;  %357 = vrcp.f32 %v369_v2  ;;  %s372_s12 = smov 127   ;;  %s374_s13 = smov 7   ;;  %345 = vset.pattern.permute.xlu1 %v378_v54  ;;  %346 = vset.pattern.permute.xlu2 %v378_v54 }
   0x2   :  { %v23_v3 = vadd.f32 %v22_v1, %v21_v0  ;;  %s375_s14 = smov 8   ;;  %s377_s15 = smov 119   ;;  %v348_v40 = vld [vmem:[%s504_s3 + $0x7] ss:$0 sm:$0xff]  ;;  %v349_v45 = vld [vmem:[%s504_s3 + $0x6] ss:$0 sm:$0xff]  ;;  %347 = vset.pattern.permute.xlu0 %v378_v54 }
   0x3   :  { %v350_v50 = vld [vmem:[%s504_s3 + $0x5] ss:$0 sm:$0xff]  ;;  %v352_v53 = vld [vmem:[%s504_s3 + $0x4] ss:$0 sm:$0xff]  ;;  %v351_v60 = vld [vmem:[%s504_s3 + $0x3] ss:$0 sm:$0xff] }
   0x4   :  { %v24_v4 = vrot.slane %v23_v3, 4  ;;  %v182_v62 = vld [vmem:[%s507_s2] sm:$0xff]  ;;  %v183_v63 = vld [vmem:[%s507_s2 + $0x8] sm:$0xff] }
   0x5   :  { %v353_v2 = vld [vmem:[%s504_s3 + $0x2] ss:$0 sm:$0xff] }
   0x6   :  { %v25_v5 = vadd.f32 %v24_v4, %v23_v3 }
   0x7   :  { %v358_v6 = vpop.eup %357 }
   0x8   :  { %v26_v7 = vrot.slane %v25_v5, 2  ;;  %v31_v8 = vmul.f32 16.0, %v358_v6  ;;  %vm35_vm0 = vweird.f32 %v358_v6 }
   0xa   :  { %v27_v9 = vadd.f32 %v26_v7, %v25_v5  ;;  %v32_v10 = vsub.f32 1.0, %v31_v8 }
   0xc   :  { %v28_v11 = vrot.slane %v27_v9, 1  ;;  %v33_v12 = vmul.f32 %v358_v6, %v32_v10  ;;  %v356_v10 = vld [vmem:[%s504_s3 + $0x8] ss:$0 sm:$0xff] }
   0xe   :  { %v29_v13 = vadd.f32 %v28_v11, %v27_v9  ;;  %v34_v14 = vadd.f32 %v358_v6, %v33_v12  ;;  %v355_v12 = vld [vmem:[%s504_s3] ss:$0 sm:$0xff] }
  0x10   :  { %v36_v15 = vsel %vm35_vm0, %v358_v6, %v34_v14  ;;  %v354_v6 = vld [vmem:[%s504_s3 + $0x1] ss:$0 sm:$0xff] }
  0x11   :  { %v37_v16 = vmul.f32 %v36_v15, %v29_v13 }
  0x13   :  { %v38_v17 = vsub.f32 %v21_v0, %v37_v16  ;;  %v39_v18 = vsub.f32 %v22_v1, %v37_v16 }
  0x15   :  { %v40_v19 = vmul.f32 %v38_v17, %v38_v17  ;;  %v41_v20 = vmul.f32 %v39_v18, %v39_v18 }
  0x17   :  { %v42_v21 = vadd.f32 %v41_v20, %v40_v19  ;;  %v178_v19 = vld [vmem:[%s508_s1] sm:$0xff]  ;;  %v180_v20 = vld [vmem:[%s508_s1 + $0x10] sm:$0xff] }
  0x19   :  { %v43_v22 = vrot.slane %v42_v21, 4 }
  0x1b   :  { %v44_v23 = vadd.f32 %v43_v22, %v42_v21 }
  0x1d   :  { %v45_v24 = vrot.slane %v44_v23, 2 }
  0x1f   :  { %v46_v25 = vadd.f32 %v45_v24, %v44_v23  ;;  %v179_v23 = vld [vmem:[%s508_s1 + $0x8] sm:$0xff]  ;;  %v181_v24 = vld [vmem:[%s508_s1 + $0x18] sm:$0xff] }
  0x21   :  { %v47_v26 = vrot.slane %v46_v25, 1 }
  0x23   :  { %v48_v27 = vadd.f32 %v47_v26, %v46_v25 }
  0x25   :  { %v49_v28 = vmul.f32 0.06666667, %v48_v27 }
  0x27   :  { %v50_v29 = vadd.f32 1e-05, %v49_v28 }
  0x29   :  { %359 = vrsqrt.f32 %v50_v29  ;;  %vm57_vm1 = vweird.f32 %v50_v29 }
  0x2f   :  { %v360_v30 = vpop.eup %359 }
  0x30   :  { %v52_v31 = vmul.f32 %v360_v30, %v50_v29  ;;  %vm58_vm2 = vweird.f32 %v360_v30 }
  0x31   :  { %vm59_vm3 = vmor %vm57_vm1, %vm58_vm2 }
  0x32   :  { %v53_v32 = vmul.f32 %v360_v30, %v52_v31 }
  0x34   :  { %v54_v33 = vmul.f32 0.5, %v53_v32 }
  0x36   :  { %v55_v34 = vsub.f32 1.5, %v54_v33 }
  0x38   :  { %v56_v35 = vmul.f32 %v360_v30, %v55_v34 }
  0x3a   :  { %v60_v36 = vsel %vm59_vm3, %v360_v30, %v56_v35 }
  0x3b   :  { %v62_v37 = vmul.f32 %v60_v36, %v39_v18  ;;  %65 = vst [vmem:[%s505_s7] sm:$0x1] %v60_v36  ;;  %v428_v38 = vmul.f32 %v60_v36, %v38_v17  ;;  %s373_s7 = smov 1  }
  0x3d   :  { %154 = vrot.lane.b32.xlu0 %v62_v37, %s370_s29  ;;  %64 = vst [vmem:[%s506_s6 + $0x8] sm:$0xff] %v62_v37  ;;  %141 = vrot.lane.b32.xlu1 %v62_v37, %s371_s9  ;;  %v125_v59 = vmul.f32 %v352_v53, %v62_v37  ;;  %v124_v61 = vmul.f32 %v352_v53, %v428_v38 }
  0x3e   :  { %63 = vst [vmem:[%s506_s6] sm:$0xff] %v428_v38  ;;  %128 = vrot.lane.b32.xlu2 %v62_v37, %s372_s12  ;;  %s376_s6 = smov 9  }
  0x45   :  { %152 = vrot.lane.b32.xlu0 %v428_v38, %s370_s29  ;;  %139 = vrot.lane.b32.xlu1 %v428_v38, %s371_s9 }
  0x46   :  { %126 = vrot.lane.b32.xlu2 %v428_v38, %s372_s12 }
  0x4d   :  { %108 = vrot.lane.b32.xlu0 %v62_v37, %s373_s7  ;;  %106 = vrot.lane.b32.xlu1 %v428_v38, %s373_s7 }
  0x4e   :  { %95 = vrot.lane.b32.xlu2 %v62_v37, %s374_s13 }
  0x55   :  { %93 = vrot.lane.b32.xlu0 %v428_v38, %s374_s13  ;;  %82 = vrot.lane.b32.xlu1 %v62_v37, %s375_s14 }
  0x56   :  { %80 = vrot.lane.b32.xlu2 %v428_v38, %s375_s14 }
  0x5d   :  { %70 = vrot.lane.b32.xlu0 %v62_v37, %s376_s6  ;;  %167 = vrot.lane.b32.xlu1 %v62_v37, %s377_s15 }
  0x5e   :  { %68 = vrot.lane.b32.xlu2 %v428_v38, %s376_s6 }
  0x65   :  { %165 = vrot.lane.b32.xlu0 %v428_v38, %s377_s15  ;;  %186 = vperm.xlu1 %345, %v182_v62  }
  0x66   :  { %191 = vperm.xlu2 %346, %v183_v63  }
  0x98   :  { %v129_v39 = vpop.permute.xlu2 %128 }
  0x99   :  { %v138_v55 = vmul.f32 %v350_v50, %v129_v39 }
  0xa0   :  { %v127_v44 = vpop.permute.xlu2 %126 }
  0xa1   :  { %v137_v56 = vmul.f32 %v350_v50, %v127_v44 }
  0xa8   :  { %v96_v52 = vpop.permute.xlu2 %95 }
  0xa9   :  { %v105_v7 = vmul.f32 %v353_v2, %v96_v52 }
  0xaf   :  { %v155_v41 = vpop.permute.xlu0 %154  ;;  %v142_v42 = vpop.permute.xlu1 %141 }
  0xb0   :  { %v164_v43 = vmul.f32 %v348_v40, %v155_v41  ;;  %v151_v49 = vmul.f32 %v349_v45, %v142_v42  ;;  %v81_v0 = vpop.permute.xlu2 %80 }
  0xb1   :  { %v91_v11 = vmul.f32 %v354_v6, %v81_v0 }
  0xb2   :  { %201 = vmatpush.msra.mxu0 %v164_v43  ;;  %319 = vmatpush.msra.mxu2 %v164_v43 }
  0xb7   :  { %v153_v46 = vpop.permute.xlu0 %152  ;;  %v140_v47 = vpop.permute.xlu1 %139 }
  0xb8   :  { %v163_v48 = vmul.f32 %v348_v40, %v153_v46  ;;  %v150_v51 = vmul.f32 %v349_v45, %v140_v47  ;;  %v69_v13 = vpop.permute.xlu2 %68 }
  0xb9   :  { %v78_v18 = vmul.f32 %v355_v12, %v69_v13 }
  0xba   :  { %202 = vmatpush.msra.mxu0 %v163_v48  ;;  %320 = vmatpush.msra.mxu2 %v163_v48 }
  0xbc   :  { %203 = vmatpush.msra.mxu0 %v151_v49  ;;  %321 = vmatpush.msra.mxu2 %v151_v49 }
  0xbe   :  { %204 = vmatpush.msra.mxu0 %v150_v51  ;;  %322 = vmatpush.msra.mxu2 %v150_v51 }
  0xbf   :  { %v109_v57 = vpop.permute.xlu0 %108  ;;  %v107_v58 = vpop.permute.xlu1 %106 }
  0xc0   :  { %205 = vmatpush.msra.mxu0 %v138_v55  ;;  %323 = vmatpush.msra.mxu2 %v138_v55  ;;  %v118_v1 = vmul.f32 %v351_v60, %v109_v57  ;;  %v117_v5 = vmul.f32 %v351_v60, %v107_v58  ;;  %v192_v30 = vpop.permute.xlu2 %191 }
  0xc2   :  { %206 = vmatpush.msra.mxu0 %v137_v56  ;;  %324 = vmatpush.msra.mxu2 %v137_v56 }
  0xc4   :  { %207 = vmatpush.msra.mxu0 %v125_v59  ;;  %325 = vmatpush.msra.mxu2 %v125_v59 }
  0xc6   :  { %208 = vmatpush.msra.mxu0 %v124_v61  ;;  %326 = vmatpush.msra.mxu2 %v124_v61 }
  0xc7   :  { %v94_v3 = vpop.permute.xlu0 %93  ;;  %v83_v4 = vpop.permute.xlu1 %82 }
  0xc8   :  { %209 = vmatpush.msra.mxu0 %v118_v1  ;;  %327 = vmatpush.msra.mxu2 %v118_v1  ;;  %v104_v8 = vmul.f32 %v353_v2, %v94_v3  ;;  %v92_v9 = vmul.f32 %v354_v6, %v83_v4 }
  0xca   :  { %210 = vmatpush.msra.mxu0 %v117_v5  ;;  %328 = vmatpush.msra.mxu2 %v117_v5 }
  0xcc   :  { %211 = vmatpush.msra.mxu0 %v105_v7  ;;  %329 = vmatpush.msra.mxu2 %v105_v7 }
  0xce   :  { %212 = vmatpush.msra.mxu0 %v104_v8  ;;  %330 = vmatpush.msra.mxu2 %v104_v8 }
  0xcf   :  { %v71_v14 = vpop.permute.xlu0 %70  ;;  %v168_v15 = vpop.permute.xlu1 %167 }
  0xd0   :  { %213 = vmatpush.msra.mxu0 %v92_v9  ;;  %331 = vmatpush.msra.mxu2 %v92_v9  ;;  %v177_v16 = vmul.f32 %v356_v10, %v168_v15  ;;  %v79_v17 = vmul.f32 %v355_v12, %v71_v14 }
  0xd2   :  { %214 = vmatpush.msra.mxu0 %v91_v11  ;;  %332 = vmatpush.msra.mxu2 %v91_v11 }
  0xd3   :  { %238 = vmatpush.msra.mxu1 %v177_v16 }
  0xd4   :  { %215 = vmatpush.msra.mxu0 %v79_v17  ;;  %333 = vmatpush.msra.mxu2 %v79_v17 }
  0xd6   :  { %216 = vmatpush.msra.mxu0 %v78_v18  ;;  %334 = vmatpush.msra.mxu2 %v78_v18 }
  0xd7   :  { %v166_v21 = vpop.permute.xlu0 %165  ;;  %217 = vmatmul.f32.vlgmr.msra.gmra.mxu0 %v178_v19  ;;  %220 = vmatmul.f32.vlgmr.msra.gmra.mxu2 %v180_v20  ;;  %v187_v25 = vpop.permute.xlu1 %186 }
  0xd8   :  { %v176_v22 = vmul.f32 %v356_v10, %v166_v21 }
  0xda   :  { %239 = vmatpush.msra.mxu1 %v176_v22 }
  0xdb   :  { %315 = vmatmul.msk.f32.vlgmr.msra.gmra.mxu1 %vm194_vm4, %v179_v23 }
  0xe3   :  { %316 = vmatmul.msk.f32.gmra.mxu1 %vm194_vm4, %v181_v24 }
 0x154   :  { %v218_v26 = vpop.f32.mrf.mxu0 }
 0x155   :  { %v219_v27 = vadd.f32 %v218_v26, %v187_v25 }
 0x158   :  { %v241_v28 = vpop.f32.mrf.mxu1 }
 0x159   :  { %v242_v29 = vadd.f32 %v241_v28, %v219_v27 }
 0x15a   :  { %v221_v31 = vpop.f32.mrf.mxu2 }
 0x15b   :  { %v317_v32 = vmul.f32 -1.442695, %v242_v29  ;;  %287 = vst [vmem:[%s509_s5] sm:$0xff] %v242_v29  ;;  %v222_v33 = vadd.f32 %v221_v31, %v192_v30 }
 0x15d   :  { %361 = vpow2.f32 %v317_v32 }
 0x160   :  { %v244_v34 = vpop.f32.mrf.mxu1 }
 0x161   :  { %v245_v35 = vadd.f32 %v244_v34, %v222_v33 }
 0x163   :  { %v362_v36 = vpop.eup %361  ;;  %v318_v37 = vmul.f32 -1.442695, %v245_v35  ;;  %288 = vst [vmem:[%s509_s5 + $0x8] sm:$0xff] %v245_v35 }
 0x164   :  { %v253_v38 = vadd.f32 1.0, %v362_v36 }
 0x165   :  { %363 = vpow2.f32 %v318_v37 }
 0x166   :  { %365 = vrcp.f32 %v253_v38  ;;  %v266_v44 = vand.u32 2147483648, %v253_v38  ;;  %v264_v46 = vand.u32 2147483647, %v253_v38  ;;  %vm260_vm6 = vweird.f32 %v253_v38 }
 0x168   :  { %v267_v49 = vor.u32 1.1754944e-38, %v266_v44  ;;  %vm265_vm8 = vcmp.eq.f32.partialorder %v264_v46, 8.507059e+37 }
 0x16b   :  { %v364_v39 = vpop.eup %363 }
 0x16c   :  { %v366_v40 = vpop.eup %365  ;;  %v254_v41 = vadd.f32 1.0, %v364_v39 }
 0x16d   :  { %v256_v42 = vmul.f32 %v366_v40, %v253_v38  ;;  %vm261_vm5 = vweird.f32 %v366_v40 }
 0x16e   :  { %367 = vrcp.f32 %v254_v41  ;;  %vm262_vm7 = vmor %vm260_vm6, %vm261_vm5  ;;  %v281_v55 = vand.u32 2147483648, %v254_v41  ;;  %v279_v57 = vand.u32 2147483647, %v254_v41  ;;  %vm275_vm10 = vweird.f32 %v254_v41 }
 0x16f   :  { %v257_v43 = vsub.f32 1.0, %v256_v42 }
 0x170   :  { %v282_v59 = vor.u32 1.1754944e-38, %v281_v55  ;;  %vm280_vm12 = vcmp.eq.f32.partialorder %v279_v57, 8.507059e+37 }
 0x171   :  { %v258_v45 = vmul.f32 %v366_v40, %v257_v43 }
 0x173   :  { %v259_v47 = vadd.f32 %v366_v40, %v258_v45 }
 0x174   :  { %v368_v48 = vpop.eup %367 }
 0x175   :  { %v263_v50 = vsel %vm262_vm7, %v366_v40, %v259_v47  ;;  %v271_v51 = vmul.f32 %v368_v48, %v254_v41  ;;  %vm276_vm9 = vweird.f32 %v368_v48 }
 0x176   :  { %v268_v52 = vsel %vm265_vm8, %v267_v49, %v263_v50  ;;  %vm277_vm11 = vmor %vm275_vm10, %vm276_vm9 }
 0x177   :  { %v285_v53 = vmul.f32 %v268_v52, %v242_v29  ;;  %v272_v54 = vsub.f32 1.0, %v271_v51 }
 0x179   :  { %289 = vst [vmem:[%s510_s4] sm:$0xff] %v285_v53  ;;  %v273_v56 = vmul.f32 %v368_v48, %v272_v54 }
 0x17b   :  { %v274_v58 = vadd.f32 %v368_v48, %v273_v56 }
 0x17d   :  { %v278_v60 = vsel %vm277_vm11, %v368_v48, %v274_v58 }
 0x17e   :  { %v283_v61 = vsel %vm280_vm12, %v282_v59, %v278_v60 }
 0x17f   :  { %v286_v62 = vmul.f32 %v283_v61, %v245_v35 }
 0x181   :  { %290 = vst [vmem:[%s510_s4 + $0x8] sm:$0xff] %v286_v62 }

// kernel: jvp__.30
= control target key start
LH: loop header
LB: loop body
LE: loop exit
PB: predicated region body
PF: predicated region fallthrough
CT: control target
= control target key end

     0   :  { %v873_v2 = vmov 16.0   ;;  %s875_s15 = smov 112   ;;  %vm182_vm13 = vcmask 1040384   ;;  %vm184_vm14 = vcmask 1042434   ;;  %vm186_vm15 = vcmask 1041408   ;;  %s878_s8 = smov 15   ;;  %s1512_s0 = inlined_call_operand.vmem [shape: f32[16,512], index: 0, kind: input, shape index: {}]   ;;  %s1513_s5 = inlined_call_operand.vmem [shape: f32[16,512], index: 5, kind: output, shape index: {1}]   ;;  %s1514_s6 = inlined_call_operand.vmem [shape: f32[1,512], index: 6, kind: output, shape index: {2}]   ;;  %s1515_s3 = inlined_call_operand.vmem [shape: f32[9,1,512], index: 3, kind: input, shape index: {}]   ;;  %s1516_s1 = inlined_call_operand.vmem [shape: f32[8,144], index: 1, kind: input, shape index: {}]   ;;  %s1517_s2 = inlined_call_operand.vmem [shape: f32[8,1], index: 2, kind: input, shape index: {}]   ;;  %s1518_s4 = inlined_call_operand.vmem [shape: f32[8,512], index: 4, kind: output, shape index: {0}]  }
   0x1   :  { %v21_v0 = vld [vmem:[%s1512_s0 + $0x8] sm:$0xff]  ;;  %863 = vrcp.f32 %v873_v2  ;;  %v22_v3 = vld [vmem:[%s1512_s0 + $0x10] sm:$0xff]  ;;  %v20_v6 = vld [vmem:[%s1512_s0] sm:$0xff]  ;;  %s879_s9 = smov 16   ;;  %s880_s12 = smov 17  }
   0x2   :  { %v25_v1 = vld [vmem:[%s1512_s0 + $0x28] sm:$0xff]  ;;  %v26_v5 = vld [vmem:[%s1512_s0 + $0x30] sm:$0xff]  ;;  %v24_v7 = vld [vmem:[%s1512_s0 + $0x20] sm:$0xff] }
   0x3   :  { %v35_v4 = vadd.f32 %v25_v1, %v21_v0  ;;  %v42_v8 = vadd.f32 %v26_v5, %v22_v3  ;;  %v28_v9 = vadd.f32 %v24_v7, %v20_v6  ;;  %v23_v10 = vld [vmem:[%s1512_s0 + $0x18] sm:$0xff] }
   0x4   :  { %v27_v11 = vld [vmem:[%s1512_s0 + $0x38] sm:$0xff]  ;;  %s874_s0 = smov 113  }
   0x5   :  { %v36_v12 = vrot.slane %v35_v4, 4  ;;  %v49_v13 = vadd.f32 %v27_v11, %v23_v10  ;;  %v43_v14 = vrot.slane %v42_v8, 4  ;;  %v29_v15 = vrot.slane %v28_v9, 4 }
   0x7   :  { %v37_v16 = vadd.f32 %v36_v12, %v35_v4  ;;  %v50_v17 = vrot.slane %v49_v13, 4  ;;  %v864_v18 = vpop.eup %863  ;;  %v44_v19 = vadd.f32 %v43_v14, %v42_v8  ;;  %v30_v20 = vadd.f32 %v29_v15, %v28_v9 }
   0x8   :  { %v57_v22 = vmul.f32 16.0, %v864_v18  ;;  %vm61_vm0 = vweird.f32 %v864_v18 }
   0x9   :  { %v38_v21 = vrot.slane %v37_v16, 2  ;;  %v51_v23 = vadd.f32 %v50_v17, %v49_v13  ;;  %v45_v24 = vrot.slane %v44_v19, 2  ;;  %v31_v25 = vrot.slane %v30_v20, 2 }
   0xa   :  { %v58_v27 = vsub.f32 1.0, %v57_v22 }
   0xb   :  { %v39_v26 = vadd.f32 %v38_v21, %v37_v16  ;;  %v52_v28 = vrot.slane %v51_v23, 2  ;;  %v46_v29 = vadd.f32 %v45_v24, %v44_v19  ;;  %v32_v30 = vadd.f32 %v31_v25, %v30_v20 }
   0xc   :  { %v59_v32 = vmul.f32 %v864_v18, %v58_v27 }
   0xd   :  { %v40_v31 = vrot.slane %v39_v26, 1  ;;  %v53_v33 = vadd.f32 %v52_v28, %v51_v23  ;;  %v47_v34 = vrot.slane %v46_v29, 1  ;;  %v33_v35 = vrot.slane %v32_v30, 1 }
   0xe   :  { %v60_v37 = vadd.f32 %v864_v18, %v59_v32 }
   0xf   :  { %v41_v36 = vadd.f32 %v40_v31, %v39_v26  ;;  %v54_v38 = vrot.slane %v53_v33, 1  ;;  %v48_v39 = vadd.f32 %v47_v34, %v46_v29  ;;  %v34_v40 = vadd.f32 %v33_v35, %v32_v30 }
  0x10   :  { %v62_v41 = vsel %vm61_vm0, %v864_v18, %v60_v37 }
  0x11   :  { %v55_v42 = vadd.f32 %v54_v38, %v53_v33  ;;  %v64_v43 = vmul.f32 %v62_v41, %v41_v36  ;;  %v65_v44 = vmul.f32 %v62_v41, %v48_v39  ;;  %v63_v45 = vmul.f32 %v62_v41, %v34_v40 }
  0x13   :  { %v66_v46 = vmul.f32 %v62_v41, %v55_v42  ;;  %v942_v47 = vsub.f32 %v21_v0, %v64_v43  ;;  %v944_v48 = vsub.f32 %v25_v1, %v64_v43  ;;  %v946_v49 = vsub.f32 %v22_v3, %v65_v44 }
  0x14   :  { %v948_v50 = vsub.f32 %v26_v5, %v65_v44  ;;  %v950_v51 = vsub.f32 %v20_v6, %v63_v45  ;;  %v952_v52 = vsub.f32 %v24_v7, %v63_v45 }
  0x15   :  { %v954_v53 = vsub.f32 %v23_v10, %v66_v46  ;;  %v956_v54 = vsub.f32 %v27_v11, %v66_v46  ;;  %v76_v55 = vmul.f32 %v942_v47, %v942_v47  ;;  %v80_v56 = vmul.f32 %v944_v48, %v944_v48 }
  0x16   :  { %v77_v57 = vmul.f32 %v946_v49, %v946_v49  ;;  %v81_v58 = vmul.f32 %v948_v50, %v948_v50  ;;  %v75_v59 = vmul.f32 %v950_v51, %v950_v51  ;;  %v79_v60 = vmul.f32 %v952_v52, %v952_v52 }
  0x17   :  { %v78_v61 = vmul.f32 %v954_v53, %v954_v53  ;;  %v82_v62 = vmul.f32 %v956_v54, %v956_v54  ;;  %v90_v63 = vadd.f32 %v80_v56, %v76_v55 }
  0x18   :  { %v97_v0 = vadd.f32 %v81_v58, %v77_v57  ;;  %v83_v1 = vadd.f32 %v79_v60, %v75_v59 }
  0x19   :  { %v104_v2 = vadd.f32 %v82_v62, %v78_v61  ;;  %v91_v3 = vrot.slane %v90_v63, 4 }
  0x1a   :  { %v98_v4 = vrot.slane %v97_v0, 4  ;;  %v84_v5 = vrot.slane %v83_v1, 4 }
  0x1b   :  { %v105_v6 = vrot.slane %v104_v2, 4  ;;  %v92_v7 = vadd.f32 %v91_v3, %v90_v63 }
  0x1c   :  { %v99_v8 = vadd.f32 %v98_v4, %v97_v0  ;;  %v85_v9 = vadd.f32 %v84_v5, %v83_v1 }
  0x1d   :  { %v106_v10 = vadd.f32 %v105_v6, %v104_v2  ;;  %v93_v11 = vrot.slane %v92_v7, 2 }
  0x1e   :  { %v100_v12 = vrot.slane %v99_v8, 2  ;;  %v86_v13 = vrot.slane %v85_v9, 2 }
  0x1f   :  { %v107_v14 = vrot.slane %v106_v10, 2  ;;  %v94_v15 = vadd.f32 %v93_v11, %v92_v7 }
  0x20   :  { %v101_v16 = vadd.f32 %v100_v12, %v99_v8  ;;  %v87_v17 = vadd.f32 %v86_v13, %v85_v9  ;;  %v189_v9 = vlaneseq }
  0x21   :  { %v108_v18 = vadd.f32 %v107_v14, %v106_v10  ;;  %v95_v19 = vrot.slane %v94_v15, 1 }
  0x22   :  { %v102_v20 = vrot.slane %v101_v16, 1  ;;  %v88_v21 = vrot.slane %v87_v17, 1  ;;  %vm191_vm0 = vcmp.lt.s32.totalorder %v189_v9, 512 }
  0x23   :  { %v109_v22 = vrot.slane %v108_v18, 1  ;;  %v96_v23 = vadd.f32 %v95_v19, %v94_v15 }
  0x24   :  { %v103_v24 = vadd.f32 %v102_v20, %v101_v16  ;;  %v89_v25 = vadd.f32 %v88_v21, %v87_v17 }
  0x25   :  { %v110_v26 = vadd.f32 %v109_v22, %v108_v18  ;;  %v112_v27 = vmul.f32 0.06666667, %v96_v23  ;;  %v1112_v18 = vld [vmem:[%s1515_s3 + $0x1c] sm:$0xf] }
  0x26   :  { %v113_v28 = vmul.f32 0.06666667, %v103_v24  ;;  %v111_v29 = vmul.f32 0.06666667, %v89_v25  ;;  %v582_v19 = vperm.slane %v1112_v18, 0 }
  0x27   :  { %v114_v30 = vmul.f32 0.06666667, %v110_v26  ;;  %v116_v31 = vadd.f32 1e-05, %v112_v27  ;;  %v1129_v25 = vld [vmem:[%s1515_s3 + $0x18] sm:$0xf] }
  0x28   :  { %v117_v32 = vadd.f32 1e-05, %v113_v28  ;;  %v115_v33 = vadd.f32 1e-05, %v111_v29  ;;  %v583_v26 = vperm.slane %v1112_v18, 1  ;;  %v529_v29 = vperm.slane %v1129_v25, 1 }
  0x29   :  { %v118_v34 = vadd.f32 1e-05, %v114_v30  ;;  %865 = vrsqrt.f32 %v116_v31  ;;  %vm135_vm1 = vweird.f32 %v116_v31 }
  0x2a   :  { %867 = vrsqrt.f32 %v117_v32  ;;  %vm145_vm3 = vweird.f32 %v117_v32  ;;  %vm125_vm5 = vweird.f32 %v115_v33 }
  0x2b   :  { %869 = vrsqrt.f32 %v115_v33  ;;  %vm155_vm10 = vweird.f32 %v118_v34 }
  0x2c   :  { %871 = vrsqrt.f32 %v118_v34 }
  0x2f   :  { %v866_v35 = vpop.eup %865 }
  0x30   :  { %v868_v36 = vpop.eup %867  ;;  %v130_v37 = vmul.f32 %v866_v35, %v116_v31  ;;  %vm136_vm2 = vweird.f32 %v866_v35 }
  0x31   :  { %v870_v38 = vpop.eup %869  ;;  %v140_v39 = vmul.f32 %v868_v36, %v117_v32  ;;  %vm146_vm4 = vweird.f32 %v868_v36  ;;  %vm137_vm7 = vmor %vm135_vm1, %vm136_vm2  ;;  %vm560_vm1 = vcmask 916480   ;;  %vm506_vm2 = vcmask 924672  }
  0x32   :  { %v872_v40 = vpop.eup %871  ;;  %v131_v41 = vmul.f32 %v866_v35, %v130_v37  ;;  %v120_v42 = vmul.f32 %v870_v38, %v115_v33  ;;  %vm126_vm6 = vweird.f32 %v870_v38  ;;  %vm147_vm8 = vmor %vm145_vm3, %vm146_vm4  ;;  %v530_v37 = vperm.slane %v1129_v25, 2 }
  0x33   :  { %v141_v43 = vmul.f32 %v868_v36, %v140_v39  ;;  %v150_v44 = vmul.f32 %v872_v40, %v118_v34  ;;  %vm127_vm9 = vmor %vm125_vm5, %vm126_vm6  ;;  %vm156_vm11 = vweird.f32 %v872_v40  ;;  %vm452_vm3 = vcmask 1039360  }
  0x34   :  { %v132_v45 = vmul.f32 0.5, %v131_v41  ;;  %v121_v46 = vmul.f32 %v870_v38, %v120_v42  ;;  %vm980_vm12 = vmor %vm155_vm10, %vm156_vm11  ;;  %vm381_vm4 = vcmask 7168   ;;  %vm327_vm5 = vcmask 121856  }
  0x35   :  { %v142_v55 = vmul.f32 0.5, %v141_v43  ;;  %v151_v56 = vmul.f32 %v872_v40, %v150_v44  ;;  %vm273_vm6 = vcmask 130048  }
  0x36   :  { %v133_v57 = vsub.f32 1.5, %v132_v45  ;;  %v122_v58 = vmul.f32 0.5, %v121_v46  ;;  %v1167_v45 = vld [vmem:[%s1515_s3 + $0x14] sm:$0xf]  ;;  %v585_v46 = vperm.slane %v1112_v18, 3 }
  0x37   :  { %v143_v59 = vsub.f32 1.5, %v142_v55  ;;  %v152_v60 = vmul.f32 0.5, %v151_v56  ;;  %v475_v55 = vperm.slane %v1167_v45, 1  ;;  %v584_v56 = vperm.slane %v1112_v18, 2 }
  0x38   :  { %v134_v61 = vmul.f32 %v866_v35, %v133_v57  ;;  %v123_v62 = vsub.f32 1.5, %v122_v58 }
  0x39   :  { %v144_v63 = vmul.f32 %v868_v36, %v143_v59  ;;  %v153_v0 = vsub.f32 1.5, %v152_v60 }
  0x3a   :  { %v138_v1 = vsel %vm137_vm7, %v866_v35, %v134_v61  ;;  %v124_v2 = vmul.f32 %v870_v38, %v123_v62  ;;  %vm614_vm7 = vcmask 908288  }
  0x3b   :  { %v975_v3 = vmul.f32 %v138_v1, %v944_v48  ;;  %v978_v4 = vmul.f32 %v138_v1, %v942_v47  ;;  %v148_v5 = vsel %vm147_vm8, %v868_v36, %v144_v63  ;;  %v179_v6 = vrot.slane %v138_v1, 7 }
  0x3c   :  { %v128_v7 = vsel %vm127_vm9, %v870_v38, %v124_v2  ;;  %v993_v47 = vmul.f32 %v148_v5, %v948_v50  ;;  %v154_v48 = vmul.f32 %v872_v40, %v153_v0  ;;  %v180_v10 = vrot.slane %v148_v5, 6 }
  0x3d   :  { %500 = vrot.lane.b32.xlu2 %v975_v3, %s874_s0  ;;  %172 = vst [vmem:[%s1513_s5 + $0x28] sm:$0xff] %v975_v3  ;;  %554 = vrot.lane.b32.xlu0 %v975_v3, %s875_s15  ;;  %v1002_v11 = vmul.f32 %v148_v5, %v946_v49  ;;  %v1009_v50 = vmul.f32 %v128_v7, %v952_v52  ;;  %vm220_vm8 = vcmask 138240  }
  0x3e   :  { %546 = vrot.lane.b32.xlu1 %v978_v4, %s875_s15  ;;  %168 = vst [vmem:[%s1513_s5 + $0x8] sm:$0xff] %v978_v4  ;;  %v158_v12 = vsel %vm980_vm12, %v872_v40, %v154_v48  ;;  %v183_v13 = vsel %vm182_vm13, %v128_v7, %v179_v6 }
  0x3f   :  { %173 = vst [vmem:[%s1513_s5 + $0x30] sm:$0xff] %v993_v47  ;;  %v1018_v49 = vmul.f32 %v158_v12, %v956_v54  ;;  %v181_v14 = vrot.slane %v158_v12, 5  ;;  %v1025_v52 = vmul.f32 %v158_v12, %v954_v53  ;;  %v1036_v54 = vmul.f32 %v128_v7, %v950_v51 }
  0x40   :  { %169 = vst [vmem:[%s1513_s5 + $0x10] sm:$0xff] %v1002_v11 }
  0x41   :  { %171 = vst [vmem:[%s1513_s5 + $0x20] sm:$0xff] %v1009_v50  ;;  %v185_v15 = vsel %vm184_vm14, %v180_v10, %v181_v14  ;;  %v1204_v10 = vld [vmem:[%s1515_s3 + $0x10] sm:$0xf] }
  0x42   :  { %174 = vst [vmem:[%s1513_s5 + $0x38] sm:$0xff] %v1018_v49  ;;  %v187_v16 = vsel %vm186_vm15, %v183_v13, %v185_v15  ;;  %v421_v14 = vperm.slane %v1204_v10, 1  ;;  %v528_v15 = vperm.slane %v1129_v25, 0 }
  0x43   :  { %170 = vst [vmem:[%s1513_s5 + $0x18] sm:$0xff] %v1025_v52 }
  0x44   :  { %193 = vst.msk [vmem:[%s1514_s6] sm:$0xf] %vm191_vm0, %v187_v16  ;;  %s876_s6 = smov 127   ;;  %v531_v16 = vperm.slane %v1129_v25, 3 }
  0x45   :  { %502 = vrot.lane.b32.xlu2 %v993_v47, %s874_s0  ;;  %556 = vrot.lane.b32.xlu0 %v993_v47, %s875_s15  ;;  %167 = vst [vmem:[%s1513_s5] sm:$0xff] %v1036_v54  ;;  %s877_s5 = smov 1  }
  0x46   :  { %548 = vrot.lane.b32.xlu1 %v1002_v11, %s875_s15 }
  0x4d   :  { %492 = vrot.lane.b32.xlu0 %v978_v4, %s874_s0  ;;  %552 = vrot.lane.b32.xlu2 %v1009_v50, %s875_s15 }
  0x4e   :  { %494 = vrot.lane.b32.xlu1 %v1002_v11, %s874_s0 }
  0x55   :  { %558 = vrot.lane.b32.xlu0 %v1018_v49, %s875_s15  ;;  %448 = vrot.lane.b32.xlu2 %v993_v47, %s876_s6 }
  0x56   :  { %446 = vrot.lane.b32.xlu1 %v975_v3, %s876_s6 }
  0x5d   :  { %438 = vrot.lane.b32.xlu2 %v978_v4, %s876_s6  ;;  %544 = vrot.lane.b32.xlu0 %v1036_v54, %s875_s15 }
  0x5e   :  { %550 = vrot.lane.b32.xlu1 %v1025_v52, %s875_s15 }
  0x65   :  { %504 = vrot.lane.b32.xlu2 %v1018_v49, %s874_s0  ;;  %440 = vrot.lane.b32.xlu0 %v1002_v11, %s876_s6 }
  0x66   :  { %498 = vrot.lane.b32.xlu1 %v1009_v50, %s874_s0 }
  0x6d   :  { %444 = vrot.lane.b32.xlu2 %v1009_v50, %s876_s6  ;;  %490 = vrot.lane.b32.xlu0 %v1036_v54, %s874_s0 }
  0x6e   :  { %496 = vrot.lane.b32.xlu1 %v1025_v52, %s874_s0  ;;  %s881_s0 = smov 111  }
  0x75   :  { %377 = vrot.lane.b32.xlu2 %v975_v3, %s877_s5  ;;  %450 = vrot.lane.b32.xlu0 %v1018_v49, %s876_s6 }
  0x76   :  { %375 = vrot.lane.b32.xlu1 %v1009_v50, %s877_s5 }
  0x7d   :  { %369 = vrot.lane.b32.xlu2 %v1036_v54, %s877_s5  ;;  %436 = vrot.lane.b32.xlu0 %v1036_v54, %s876_s6 }
  0x7e   :  { %442 = vrot.lane.b32.xlu1 %v1025_v52, %s876_s6 }
  0x85   :  { %323 = vrot.lane.b32.xlu2 %v975_v3, %s878_s8  ;;  %371 = vrot.lane.b32.xlu0 %v978_v4, %s877_s5 }
  0x86   :  { %321 = vrot.lane.b32.xlu1 %v1009_v50, %s878_s8 }
  0x8d   :  { %365 = vrot.lane.b32.xlu2 %v1018_v49, %s877_s5  ;;  %315 = vrot.lane.b32.xlu0 %v1036_v54, %s878_s8 }
  0x8e   :  { %317 = vrot.lane.b32.xlu1 %v978_v4, %s878_s8 }
  0x95   :  { %269 = vrot.lane.b32.xlu2 %v975_v3, %s879_s9  ;;  %379 = vrot.lane.b32.xlu0 %v993_v47, %s877_s5 }
  0x96   :  { %267 = vrot.lane.b32.xlu1 %v1009_v50, %s879_s9 }
  0x97   :  { %v1097_v51 = vpop.permute.xlu2 %500 }
  0x9d   :  { %261 = vrot.lane.b32.xlu2 %v1036_v54, %s879_s9  ;;  %363 = vrot.lane.b32.xlu0 %v1025_v52, %s877_s5 }
  0x9e   :  { %373 = vrot.lane.b32.xlu1 %v1002_v11, %s877_s5 }
  0x9f   :  { %v503_v53 = vpop.permute.xlu2 %502 }
  0xa0   :  { %v511_v30 = vsel %vm506_vm2, %v1097_v51, %v503_v53 }
  0xa1   :  { %v541_v36 = vmul.f32 %v529_v29, %v511_v30  ;;  %v474_v30 = vperm.slane %v1167_v45, 0 }
  0xa5   :  { %325 = vrot.lane.b32.xlu2 %v993_v47, %s878_s8  ;;  %263 = vrot.lane.b32.xlu0 %v978_v4, %s879_s9 }
  0xa6   :  { %311 = vrot.lane.b32.xlu1 %v1018_v49, %s878_s8 }
  0xa7   :  { %v553_v17 = vpop.permute.xlu2 %552 }
  0xad   :  { %214 = vrot.lane.b32.xlu2 %v1009_v50, %s880_s12  ;;  %610 = vrot.lane.b32.xlu0 %v993_v47, %s881_s0 }
  0xae   :  { %612 = vrot.lane.b32.xlu1 %v1018_v49, %s881_s0 }
  0xaf   :  { %v555_v20 = vpop.permute.xlu0 %554  ;;  %v1121_v21 = vpop.permute.xlu2 %448 }
  0xb0   :  { %v547_v22 = vpop.permute.xlu1 %546  ;;  %v564_v23 = vsel %vm560_vm1, %v553_v17, %v555_v20 }
  0xb1   :  { %v594_v24 = vmul.f32 %v582_v19, %v564_v23 }
  0xb3   :  { %663 = vmatpush.msra.mxu0 %v594_v24  ;;  %v433_v24 = vmul.f32 %v421_v14, %v975_v3 }
  0xb5   :  { %319 = vrot.lane.b32.xlu2 %v1002_v11, %s878_s8  ;;  %216 = vrot.lane.b32.xlu0 %v975_v3, %s880_s12 }
  0xb6   :  { %309 = vrot.lane.b32.xlu1 %v1025_v52, %s878_s8 }
  0xb7   :  { %v557_v27 = vpop.permute.xlu0 %556  ;;  %v1138_v28 = vpop.permute.xlu2 %438 }
  0xb8   :  { %v549_v31 = vpop.permute.xlu1 %548  ;;  %v565_v32 = vsel %vm560_vm1, %v555_v20, %v557_v27 }
  0xb9   :  { %v562_v33 = vsel %vm560_vm1, %v547_v22, %v549_v31  ;;  %v595_v34 = vmul.f32 %v583_v26, %v565_v32 }
  0xba   :  { %v591_v35 = vmul.f32 %v583_v26, %v562_v33 }
  0xbb   :  { %703 = vmatpush.msra.mxu2 %v595_v34 }
  0xbd   :  { %704 = vmatpush.msra.mxu2 %v591_v35  ;;  %208 = vrot.lane.b32.xlu2 %v1036_v54, %s880_s12 }
  0xbe   :  { %604 = vrot.lane.b32.xlu1 %v1025_v52, %s881_s0  ;;  %602 = vrot.lane.b32.xlu0 %v1002_v11, %s881_s0 }
  0xbf   :  { %v1152_v38 = vpop.permute.xlu0 %492  ;;  %v505_v39 = vpop.permute.xlu2 %504  ;;  %705 = vmatpush.msra.mxu2 %v541_v36 }
  0xc0   :  { %v1154_v40 = vpop.permute.xlu1 %494  ;;  %v512_v41 = vsel %vm506_vm2, %v503_v53, %v505_v39 }
  0xc1   :  { %v508_v42 = vsel %vm506_vm2, %v1152_v38, %v1154_v40  ;;  %v1162_v43 = vmul.f32 %v530_v37, %v512_v41 }
  0xc2   :  { %v537_v44 = vmul.f32 %v529_v29, %v508_v42  ;;  %v429_v29 = vmul.f32 %v421_v14, %v978_v4  ;;  %v1255_v42 = vld [vmem:[%s1515_s3 + $0xc] sm:$0xf] }
  0xc3   :  { %v402_v25 = vperm.slane %v1255_v42, 1 }
  0xc4   :  { %706 = vmatpush.msra.mxu2 %v537_v44 }
  0xc5   :  { %271 = vrot.lane.b32.xlu2 %v993_v47, %s879_s9 }
  0xc6   :  { %257 = vrot.lane.b32.xlu1 %v1018_v49, %s879_s9  ;;  %210 = vrot.lane.b32.xlu0 %v978_v4, %s880_s12 }
  0xc7   :  { %v559_v57 = vpop.permute.xlu0 %558  ;;  %v1178_v58 = vpop.permute.xlu2 %444 }
  0xc8   :  { %v566_v59 = vsel %vm560_vm1, %v557_v27, %v559_v57  ;;  %v578_v60 = vsel %vm560_vm1, %v559_v57, %v553_v17  ;;  %v447_v61 = vpop.permute.xlu1 %446 }
  0xc9   :  { %v457_v62 = vsel %vm452_vm3, %v447_v61, %v1121_v21  ;;  %v1184_v63 = vmul.f32 %v585_v46, %v578_v60  ;;  %v1186_v1 = vmul.f32 %v584_v56, %v566_v59 }
  0xca   :  { %v487_v0 = vmul.f32 %v475_v55, %v457_v62 }
  0xcc   :  { %707 = vmatpush.msra.mxu2 %v487_v0 }
  0xcd   :  { %606 = vrot.lane.b32.xlu2 %v1009_v50, %s881_s0 }
  0xce   :  { %265 = vrot.lane.b32.xlu1 %v1002_v11, %s879_s9  ;;  %255 = vrot.lane.b32.xlu0 %v1025_v52, %s879_s9 }
  0xcf   :  { %v1194_v2 = vpop.permute.xlu2 %377  ;;  %v545_v5 = vpop.permute.xlu0 %544 }
  0xd0   :  { %v551_v6 = vpop.permute.xlu1 %550  ;;  %v561_v7 = vsel %vm560_vm1, %v545_v5, %v547_v22 }
  0xd1   :  { %v563_v8 = vsel %vm560_vm1, %v549_v31, %v551_v6  ;;  %v577_v48 = vsel %vm560_vm1, %v551_v6, %v545_v5  ;;  %v590_v9 = vmul.f32 %v582_v19, %v561_v7  ;;  %v456_v31 = vsel %vm452_vm3, %v1178_v58, %v447_v61 }
  0xd2   :  { %v1206_v12 = vmul.f32 %v585_v46, %v577_v48  ;;  %v1208_v13 = vmul.f32 %v584_v56, %v563_v8  ;;  %v486_v41 = vmul.f32 %v474_v30, %v456_v31  ;;  %v420_v61 = vperm.slane %v1204_v10, 0 }
  0xd3   :  { %664 = vmatpush.msra.mxu0 %v590_v9 }
  0xd4   :  { %v432_v8 = vmul.f32 %v420_v61, %v1009_v50  ;;  %v428_v14 = vmul.f32 %v420_v61, %v1036_v54 }
  0xd5   :  { %218 = vrot.lane.b32.xlu2 %v993_v47, %s880_s12 }
  0xd6   :  { %198 = vrot.lane.b32.xlu1 %v1018_v49, %s880_s12  ;;  %608 = vrot.lane.b32.xlu0 %v975_v3, %s881_s0 }
  0xd7   :  { %v1219_v53 = vpop.permute.xlu2 %369  ;;  %v441_v17 = vpop.permute.xlu0 %440 }
  0xd8   :  { %v499_v18 = vpop.permute.xlu1 %498  ;;  %v454_v19 = vsel %vm452_vm3, %v1138_v28, %v441_v17 }
  0xd9   :  { %v510_v20 = vsel %vm506_vm2, %v499_v18, %v1097_v51  ;;  %v524_v22 = vsel %vm506_vm2, %v505_v39, %v499_v18  ;;  %v483_v23 = vmul.f32 %v475_v55, %v454_v19 }
  0xda   :  { %v540_v26 = vmul.f32 %v528_v15, %v510_v20  ;;  %v1227_v27 = vmul.f32 %v531_v16, %v524_v22 }
  0xdb   :  { %708 = vmatpush.msra.mxu2 %v483_v23 }
  0xdc   :  { %665 = vmatpush.msra.mxu0 %v540_v26 }
  0xdd   :  { %196 = vrot.lane.b32.xlu2 %v1025_v52, %s880_s12  ;;  %709 = vmatpush.msra.mxu2 %v433_v24 }
  0xde   :  { %600 = vrot.lane.b32.xlu1 %v978_v4, %s881_s0  ;;  %598 = vrot.lane.b32.xlu0 %v1036_v54, %s881_s0 }
  0xdf   :  { %v1236_v51 = vpop.permute.xlu2 %323  ;;  %v491_v3 = vpop.permute.xlu0 %490  ;;  %710 = vmatpush.msra.mxu2 %v429_v29 }
  0xe0   :  { %v497_v32 = vpop.permute.xlu1 %496  ;;  %v507_v33 = vsel %vm506_vm2, %v491_v3, %v1152_v38  ;;  %v477_v38 = vperm.slane %v1167_v45, 3 }
  0xe1   :  { %v509_v34 = vsel %vm506_vm2, %v1154_v40, %v497_v32  ;;  %v523_v4 = vsel %vm506_vm2, %v497_v32, %v491_v3  ;;  %v536_v35 = vmul.f32 %v528_v15, %v507_v33  ;;  %v476_v40 = vperm.slane %v1167_v45, 2 }
  0xe2   :  { %v1246_v36 = vmul.f32 %v531_v16, %v523_v4  ;;  %v1250_v39 = vmul.f32 %v530_v37, %v509_v34  ;;  %v401_v15 = vperm.slane %v1255_v42, 0  ;;  %v1311_v4 = vld [vmem:[%s1515_s3 + $0x4] sm:$0xf] }
  0xe3   :  { %666 = vmatpush.msra.mxu0 %v536_v35  ;;  %v404_v35 = vperm.slane %v1255_v42, 3 }
  0xe5   :  { %667 = vmatpush.msra.mxu0 %v486_v41  ;;  %v403_v41 = vperm.slane %v1255_v42, 2 }
  0xe6   :  { %212 = vrot.lane.b32.xlu0 %v1002_v11, %s880_s12 }
  0xe7   :  { %v366_v37 = vpop.permute.xlu2 %365  ;;  %v451_v44 = vpop.permute.xlu0 %450 }
  0xe8   :  { %v376_v46 = vpop.permute.xlu1 %375  ;;  %v458_v55 = vsel %vm452_vm3, %v1121_v21, %v451_v44  ;;  %v470_v56 = vsel %vm452_vm3, %v451_v44, %v1178_v58 }
  0xe9   :  { %v385_v57 = vsel %vm381_vm4, %v376_v46, %v1194_v2  ;;  %v1268_v59 = vmul.f32 %v477_v38, %v470_v56  ;;  %v1270_v45 = vmul.f32 %v476_v40, %v458_v55  ;;  %v397_v16 = vsel %vm381_vm4, %v366_v37, %v376_v46 }
  0xea   :  { %v414_v60 = vmul.f32 %v402_v25, %v385_v57  ;;  %v413_v18 = vmul.f32 %v401_v15, %v397_v16 }
  0xec   :  { %711 = vmatpush.msra.mxu2 %v414_v60 }
  0xef   :  { %v1273_v62 = vpop.permute.xlu2 %269  ;;  %v437_v0 = vpop.permute.xlu0 %436 }
  0xf0   :  { %v443_v5 = vpop.permute.xlu1 %442  ;;  %v453_v21 = vsel %vm452_vm3, %v437_v0, %v1138_v28  ;;  %v1290_v28 = vld [vmem:[%s1515_s3 + $0x8] sm:$0xf] }
  0xf1   :  { %v455_v58 = vsel %vm452_vm3, %v441_v17, %v443_v5  ;;  %v469_v6 = vsel %vm452_vm3, %v443_v5, %v437_v0  ;;  %v482_v7 = vmul.f32 %v474_v30, %v453_v21  ;;  %v348_v19 = vperm.slane %v1290_v28, 1 }
  0xf2   :  { %v1280_v48 = vmul.f32 %v477_v38, %v469_v6  ;;  %v1282_v9 = vmul.f32 %v476_v40, %v455_v58  ;;  %v349_v26 = vperm.slane %v1290_v28, 2  ;;  %v294_v38 = vperm.slane %v1311_v4, 1 }
  0xf3   :  { %668 = vmatpush.msra.mxu0 %v482_v7  ;;  %v350_v16 = vperm.slane %v1290_v28, 3 }
  0xf5   :  { %669 = vmatpush.msra.mxu0 %v432_v8 }
  0xf7   :  { %v1292_v17 = vpop.permute.xlu2 %261  ;;  %v372_v50 = vpop.permute.xlu0 %371  ;;  %670 = vmatpush.msra.mxu0 %v428_v14  ;;  %v347_v14 = vperm.slane %v1290_v28, 0  ;;  %v1357_v28 = vld [vmem:[%s1515_s3 + $0x20] sm:$0xf] }
  0xf8   :  { %v322_v20 = vpop.permute.xlu1 %321  ;;  %v382_v54 = vsel %vm381_vm4, %v1219_v53, %v372_v50 }
  0xf9   :  { %v331_v22 = vsel %vm327_vm5, %v322_v20, %v1236_v51  ;;  %671 = vmatpush.msra.mxu0 %v413_v18  ;;  %v410_v23 = vmul.f32 %v402_v25, %v382_v54 }
  0xfa   :  { %v360_v24 = vmul.f32 %v348_v19, %v331_v22 }
  0xfb   :  { %712 = vmatpush.msra.mxu2 %v410_v23 }
  0xfd   :  { %713 = vmatpush.msra.mxu2 %v360_v24 }
  0xff   :  { %v326_v29 = vpop.permute.xlu2 %325  ;;  %v1300_v3 = vpop.permute.xlu0 %315 }
 0x100   :  { %v318_v30 = vpop.permute.xlu1 %317  ;;  %v332_v31 = vsel %vm327_vm5, %v1236_v51, %v326_v29 }
 0x101   :  { %v328_v32 = vsel %vm327_vm5, %v1300_v3, %v318_v30  ;;  %v1306_v33 = vmul.f32 %v349_v26, %v332_v31 }
 0x102   :  { %v356_v34 = vmul.f32 %v348_v19, %v328_v32 }
 0x104   :  { %714 = vmatpush.msra.mxu2 %v356_v34 }
 0x107   :  { %v1316_v51 = vpop.permute.xlu2 %214  ;;  %v380_v40 = vpop.permute.xlu0 %379 }
 0x108   :  { %v1318_v25 = vpop.permute.xlu1 %267  ;;  %v386_v44 = vsel %vm381_vm4, %v1194_v2, %v380_v40  ;;  %v387_v46 = vsel %vm381_vm4, %v380_v40, %v366_v37 }
 0x109   :  { %v277_v55 = vsel %vm273_vm6, %v1318_v25, %v1273_v62  ;;  %v1326_v56 = vmul.f32 %v404_v35, %v387_v46  ;;  %v1328_v42 = vmul.f32 %v403_v41, %v386_v44 }
 0x10a   :  { %v306_v57 = vmul.f32 %v294_v38, %v277_v55 }
 0x10c   :  { %715 = vmatpush.msra.mxu2 %v306_v57 }
 0x10f   :  { %v320_v60 = vpop.permute.xlu2 %319  ;;  %v364_v61 = vpop.permute.xlu0 %363 }
 0x110   :  { %v374_v0 = vpop.permute.xlu1 %373  ;;  %v329_v5 = vsel %vm327_vm5, %v318_v30, %v320_v60  ;;  %v396_v2 = vsel %vm381_vm4, %v364_v61, %v1219_v53  ;;  %v638_v30 = vperm.slane %v1357_v28, 2 }
 0x111   :  { %v383_v37 = vsel %vm381_vm4, %v372_v50, %v374_v0  ;;  %v384_v21 = vsel %vm381_vm4, %v374_v0, %v364_v61  ;;  %v409_v58 = vmul.f32 %v401_v15, %v396_v2  ;;  %v1335_v6 = vmul.f32 %v349_v26, %v329_v5 }
 0x112   :  { %v1337_v7 = vmul.f32 %v404_v35, %v384_v21  ;;  %v1339_v8 = vmul.f32 %v403_v41, %v383_v37  ;;  %v295_v26 = vperm.slane %v1311_v4, 2 }
 0x113   :  { %672 = vmatpush.msra.mxu0 %v409_v58 }
 0x117   :  { %v1343_v18 = vpop.permute.xlu2 %208  ;;  %v1345_v19 = vpop.permute.xlu0 %263 }
 0x118   :  { %v312_v53 = vpop.permute.xlu1 %311  ;;  %v274_v15 = vsel %vm273_vm6, %v1292_v17, %v1345_v19 }
 0x119   :  { %v333_v50 = vsel %vm327_vm5, %v326_v29, %v312_v53  ;;  %v343_v54 = vsel %vm327_vm5, %v312_v53, %v322_v20  ;;  %v302_v22 = vmul.f32 %v294_v38, %v274_v15  ;;  %v1378_v38 = vld [vmem:[%s1515_s3] sm:$0xf] }
 0x11a   :  { %v359_v23 = vmul.f32 %v347_v14, %v343_v54  ;;  %v1352_v24 = vmul.f32 %v350_v16, %v333_v50  ;;  %v240_v40 = vperm.slane %v1378_v38, 1  ;;  %v241_v37 = vperm.slane %v1378_v38, 2 }
 0x11b   :  { %716 = vmatpush.msra.mxu2 %v302_v22 }
 0x11c   :  { %673 = vmatpush.msra.mxu0 %v359_v23 }
 0x11f   :  { %v1361_v31 = vpop.permute.xlu2 %271  ;;  %v1363_v29 = vpop.permute.xlu0 %610 }
 0x120   :  { %v1365_v20 = vpop.permute.xlu1 %612  ;;  %v278_v32 = vsel %vm273_vm6, %v1273_v62, %v1361_v31 }
 0x121   :  { %v620_v34 = vsel %vm614_vm7, %v1363_v29, %v1365_v20  ;;  %v1373_v35 = vmul.f32 %v295_v26, %v278_v32 }
 0x122   :  { %v650_v41 = vmul.f32 %v638_v30, %v620_v34 }
 0x124   :  { %777 = vmatpush.msra.mxu3 %v650_v41 }
 0x127   :  { %v1381_v44 = vpop.permute.xlu2 %606  ;;  %v217_v46 = vpop.permute.xlu0 %216 }
 0x128   :  { %v310_v62 = vpop.permute.xlu1 %309  ;;  %v224_v55 = vsel %vm220_vm8, %v1316_v51, %v217_v46 }
 0x129   :  { %v330_v57 = vsel %vm327_vm5, %v320_v60, %v310_v62  ;;  %v342_v61 = vsel %vm327_vm5, %v310_v62, %v1300_v3  ;;  %v252_v0 = vmul.f32 %v240_v40, %v224_v55 }
 0x12a   :  { %v355_v5 = vmul.f32 %v347_v14, %v342_v61  ;;  %v1388_v2 = vmul.f32 %v350_v16, %v330_v57  ;;  %v293_v16 = vperm.slane %v1311_v4, 0  ;;  %v239_v57 = vperm.slane %v1378_v38, 0 }
 0x12b   :  { %717 = vmatpush.msra.mxu2 %v252_v0  ;;  %v639_v61 = vperm.slane %v1357_v28, 3 }
 0x12c   :  { %674 = vmatpush.msra.mxu0 %v355_v5 }
 0x12f   :  { %v1391_v21 = vpop.permute.xlu2 %218 }
 0x130   :  { %v1393_v58 = vpop.permute.xlu1 %604  ;;  %v225_v53 = vsel %vm220_vm8, %v217_v46, %v1391_v21  ;;  %v1397_v15 = vpop.permute.xlu0 %602  ;;  %v632_v46 = vsel %vm614_vm7, %v1365_v20, %v1381_v44 }
 0x131   :  { %v617_v3 = vsel %vm614_vm7, %v1397_v15, %v1393_v58  ;;  %v1404_v60 = vmul.f32 %v241_v37, %v225_v53 }
 0x132   :  { %v646_v14 = vmul.f32 %v638_v30, %v617_v3  ;;  %v423_v30 = vperm.slane %v1204_v10, 3 }
 0x134   :  { %778 = vmatpush.msra.mxu3 %v646_v14 }
 0x136   :  { %783 = vmatpush.msrb.mxu3 %v1184_v63 }
 0x138   :  { %784 = vmatpush.msrb.mxu3 %v1206_v12  ;;  %v258_v50 = vpop.permute.xlu1 %257  ;;  %v1409_v54 = vpop.permute.xlu0 %210  ;;  %v435_v12 = vmul.f32 %v423_v30, %v1018_v49 }
 0x139   :  { %v289_v22 = vsel %vm273_vm6, %v258_v50, %v1318_v25  ;;  %v221_v23 = vsel %vm220_vm8, %v1343_v18, %v1409_v54  ;;  %v431_v25 = vmul.f32 %v423_v30, %v1025_v52  ;;  %v653_v52 = vld [vmem:[%s1516_s1 + $0x8] sm:$0xff] }
 0x13a   :  { %785 = vmatpush.msrb.mxu3 %v1227_v27  ;;  %v305_v32 = vmul.f32 %v293_v16, %v289_v22  ;;  %v248_v63 = vmul.f32 %v240_v40, %v221_v23 }
 0x13b   :  { %849 = vmatmul.msk.f32.vlgmr.msra.gmra.mxu3 %vm273_vm6, %v653_v52 }
 0x13c   :  { %786 = vmatpush.msrb.mxu3 %v1246_v36  ;;  %675 = vmatpush.msra.mxu0 %v305_v32  ;;  %v1430_v36 = vld [vmem:[%s1516_s1] sm:$0xff] }
 0x13d   :  { %718 = vmatpush.msra.mxu2 %v248_v63  ;;  %v654_v63 = vld [vmem:[%s1517_s2] sm:$0xff] }
 0x13e   :  { %787 = vmatpush.msrb.mxu3 %v1268_v59  ;;  %719 = vmatmul.f32.vlgmr.msra.gmra.mxu2 %v1430_v36 }
 0x140   :  { %788 = vmatpush.msrb.mxu3 %v1280_v48  ;;  %v266_v34 = vpop.permute.xlu1 %265  ;;  %v256_v41 = vpop.permute.xlu0 %255 }
 0x141   :  { %v275_v27 = vsel %vm273_vm6, %v1345_v19, %v266_v34  ;;  %v288_v40 = vsel %vm273_vm6, %v256_v41, %v1292_v17  ;;  %v197_v48 = vpop.permute.xlu2 %196  ;;  %v636_v17 = vperm.slane %v1357_v28, 0  ;;  %v637_v19 = vperm.slane %v1357_v28, 1 }
 0x142   :  { %789 = vmatpush.msrb.mxu3 %v435_v12  ;;  %v301_v59 = vmul.f32 %v293_v16, %v288_v40  ;;  %v1433_v49 = vmul.f32 %v295_v26, %v275_v27  ;;  %v296_v26 = vperm.slane %v1311_v4, 3  ;;  %v235_v0 = vsel %vm220_vm8, %v197_v48, %v1343_v18 }
 0x143   :  { %v276_v20 = vsel %vm273_vm6, %v266_v34, %v256_v41  ;;  %v242_v18 = vperm.slane %v1378_v38, 3 }
 0x144   :  { %790 = vmatpush.msrb.mxu3 %v431_v25  ;;  %676 = vmatpush.msra.mxu0 %v301_v59  ;;  %v422_v25 = vperm.slane %v1204_v10, 2 }
 0x146   :  { %791 = vmatpush.msrb.mxu3 %v1326_v56  ;;  %v279_v56 = vsel %vm273_vm6, %v1361_v31, %v258_v50  ;;  %v434_v41 = vmul.f32 %v422_v25, %v993_v47 }
 0x147   :  { %v308_v28 = vmul.f32 %v296_v26, %v279_v56 }
 0x148   :  { %792 = vmatpush.msrb.mxu3 %v1337_v7  ;;  %v199_v62 = vpop.permute.xlu1 %198  ;;  %v609_v55 = vpop.permute.xlu0 %608 }
 0x149   :  { %v236_v7 = vsel %vm220_vm8, %v199_v62, %v1316_v51  ;;  %v619_v4 = vsel %vm614_vm7, %v609_v55, %v1363_v29  ;;  %v618_v31 = vsel %vm614_vm7, %v1381_v44, %v609_v55  ;;  %v226_v51 = vsel %vm220_vm8, %v1391_v21, %v199_v62 }
 0x14a   :  { %793 = vmatpush.msrb.mxu3 %v1352_v24  ;;  %v251_v5 = vmul.f32 %v239_v57, %v236_v7  ;;  %v648_v53 = vmul.f32 %v636_v17, %v618_v31  ;;  %v649_v3 = vmul.f32 %v637_v19, %v619_v4  ;;  %v247_v29 = vmul.f32 %v239_v57, %v235_v0 }
 0x14b   :  { %v304_v24 = vmul.f32 %v296_v26, %v276_v20  ;;  %v651_v44 = vmul.f32 %v639_v61, %v632_v46  ;;  %v254_v14 = vmul.f32 %v242_v18, %v226_v51 }
 0x14c   :  { %794 = vmatpush.msrb.mxu3 %v1388_v2  ;;  %677 = vmatpush.msra.mxu0 %v251_v5 }
 0x14d   :  { %697 = vmatpush.msra.mxu1 %v648_v53  ;;  %737 = vmatpush.msrb.mxu2 %v649_v3 }
 0x14e   :  { %795 = vmatpush.msrb.mxu3 %v308_v28  ;;  %678 = vmatpush.msra.mxu0 %v247_v29 }
 0x14f   :  { %679 = vmatmul.f32.vlgmr.msra.gmra.mxu0 %v1430_v36 }
 0x150   :  { %796 = vmatpush.msrb.mxu3 %v304_v24  ;;  %817 = vmatpush.msrb.mxu0 %v651_v44  ;;  %v601_v16 = vpop.permute.xlu1 %600  ;;  %v599_v50 = vpop.permute.xlu0 %598 }
 0x151   :  { %v616_v2 = vsel %vm614_vm7, %v601_v16, %v1397_v15  ;;  %v615_v21 = vsel %vm614_vm7, %v599_v50, %v601_v16  ;;  %v631_v22 = vsel %vm614_vm7, %v1393_v58, %v599_v50  ;;  %v882_v58 = vmov 0  }
 0x152   :  { %797 = vmatpush.msrb.mxu3 %v254_v14  ;;  %v644_v23 = vmul.f32 %v636_v17, %v615_v21  ;;  %v645_v30 = vmul.f32 %v637_v19, %v616_v2  ;;  %v647_v32 = vmul.f32 %v639_v61, %v631_v22  ;;  %861 = vset.pattern.permute.xlu1 %v882_v58 }
 0x153   :  { %657 = vperm.xlu1 %861, %v654_v63   ;;  %862 = vset.pattern.permute.xlu0 %v882_v58 }
 0x154   :  { %698 = vmatpush.msra.mxu1 %v644_v23  ;;  %738 = vmatpush.msrb.mxu2 %v645_v30 }
 0x155   :  { %818 = vmatpush.msrb.mxu0 %v647_v32  ;;  %848 = vmatmul.msk.f32.vlgmr.msrb.gmra.mxu2 %vm273_vm6, %v653_v52 }
 0x156   :  { %743 = vmatpush.msrb.mxu1 %v1186_v1 }
 0x157   :  { %847 = vmatmul.msk.f32.vlgmr.msra.gmra.mxu1 %vm273_vm6, %v653_v52  ;;  %850 = vmatmul.msk.f32.vlgmr.msrb.gmra.mxu0 %vm273_vm6, %v653_v52 }
 0x158   :  { %744 = vmatpush.msrb.mxu1 %v1208_v13  ;;  %v213_v15 = vpop.permute.xlu0 %212 }
 0x159   :  { %v222_v12 = vsel %vm220_vm8, %v1409_v54, %v213_v15  ;;  %v223_v1 = vsel %vm220_vm8, %v213_v15, %v197_v48 }
 0x15a   :  { %745 = vmatpush.msrb.mxu1 %v1162_v43  ;;  %v250_v34 = vmul.f32 %v242_v18, %v223_v1  ;;  %v249_v13 = vmul.f32 %v241_v37, %v222_v12  ;;  %v430_v43 = vmul.f32 %v422_v25, %v1002_v11 }
 0x15c   :  { %746 = vmatpush.msrb.mxu1 %v1250_v39  ;;  %798 = vmatpush.msrb.mxu3 %v250_v34 }
 0x15d   :  { %799 = vmatmul.f32.vlgmr.msrb.gmra.mxu3 %v1430_v36 }
 0x15e   :  { %747 = vmatpush.msrb.mxu1 %v1270_v45 }
 0x160   :  { %748 = vmatpush.msrb.mxu1 %v1282_v9 }
 0x162   :  { %749 = vmatpush.msrb.mxu1 %v434_v41 }
 0x164   :  { %750 = vmatpush.msrb.mxu1 %v430_v43 }
 0x166   :  { %751 = vmatpush.msrb.mxu1 %v1328_v42 }
 0x168   :  { %752 = vmatpush.msrb.mxu1 %v1339_v8 }
 0x16a   :  { %753 = vmatpush.msrb.mxu1 %v1306_v33 }
 0x16c   :  { %754 = vmatpush.msrb.mxu1 %v1335_v6 }
 0x16e   :  { %755 = vmatpush.msrb.mxu1 %v1373_v35 }
 0x170   :  { %756 = vmatpush.msrb.mxu1 %v1433_v49 }
 0x172   :  { %757 = vmatpush.msrb.mxu1 %v1404_v60 }
 0x174   :  { %758 = vmatpush.msrb.mxu1 %v249_v13 }
 0x175   :  { %759 = vmatmul.f32.vlgmr.msrb.gmra.mxu1 %v1430_v36 }
 0x1be   :  { %v780_v33 = vpop.f32.mrf.mxu3 }
 0x1c1   :  { %v720_v10 = vpop.f32.mrf.mxu2 }
 0x1c5   :  { %v658_v47 = vpop.permute.xlu1 %657 }
 0x1c6   :  { %v721_v42 = vadd.f32 %v720_v10, %v658_v47 }
 0x1cc   :  { %v680_v11 = vpop.f32.mrf.mxu0 }
 0x1cd   :  { %v681_v39 = vadd.f32 %v680_v11, %v658_v47 }
 0x1d4   :  { %v700_v45 = vpop.f32.mrf.mxu1  ;;  %v820_v38 = vpop.f32.mrf.mxu0 }
 0x1d5   :  { %v701_v9 = vadd.f32 %v700_v45, %v681_v39 }
 0x1d7   :  { %823 = vst [vmem:[%s1518_s4] sm:$0xff] %v701_v9 }
 0x1d8   :  { %v740_v6 = vpop.f32.mrf.mxu2 }
 0x1d9   :  { %v741_v8 = vadd.f32 %v740_v6, %v721_v42 }
 0x1db   :  { %824 = vst [vmem:[%s1518_s4 + $0x8] sm:$0xff] %v741_v8 }
 0x1e0   :  { %v800_v35 = vpop.f32.mrf.mxu3 }
 0x1e1   :  { %v801_v37 = vadd.f32 %v800_v35, %v658_v47 }
 0x1e3   :  { %v821_v60 = vadd.f32 %v820_v38, %v801_v37 }
 0x1e5   :  { %826 = vst [vmem:[%s1518_s4 + $0x18] sm:$0xff] %v821_v60 }
 0x1f2   :  { %v760_v54 = vpop.f32.mrf.mxu1 }
 0x1f3   :  { %v761_v27 = vadd.f32 %v760_v54, %v658_v47 }
 0x1f5   :  { %v781_v40 = vadd.f32 %v780_v33, %v761_v27 }
 0x1f7   :  { %825 = vst [vmem:[%s1518_s4 + $0x10] sm:$0xff] %v781_v40 }

// kernel: jvp__.33
= control target key start
LH: loop header
LB: loop body
LE: loop exit
PB: predicated region body
PF: predicated region fallthrough
CT: control target
= control target key end

     0   :  { %s434_s19 = smov 111   ;;  %s435_s20 = smov 112   ;;  %vm278_vm0 = vcmask 908288   ;;  %vm245_vm1 = vcmask 916480   ;;  %vm212_vm2 = vcmask 924672   ;;  %vm179_vm3 = vcmask 1039360   ;;  %s639_s0 = inlined_call_operand.vmem [shape: f32[8,512], index: 0, kind: input, shape index: {}]   ;;  %s640_s3 = inlined_call_operand.vmem [shape: f32[9,1,512], index: 3, kind: input, shape index: {}]   ;;  %s641_s2 = inlined_call_operand.vmem [shape: f32[4,1], index: 2, kind: input, shape index: {}]   ;;  %s642_s1 = inlined_call_operand.vmem [shape: f32[4,72], index: 1, kind: input, shape index: {}]   ;;  %s643_s4 = inlined_call_operand.vmem [shape: f32[4,512], index: 4, kind: output, shape index: {}]  }
   0x1   :  { %v471_v0 = vld [vmem:[%s639_s0 + $0x10] sm:$0xff]  ;;  %v476_v1 = vld [vmem:[%s639_s0] sm:$0xff]  ;;  %v484_v2 = vld [vmem:[%s639_s0 + $0x18] sm:$0xff]  ;;  %s436_s23 = smov 113   ;;  %s437_s24 = smov 127   ;;  %vm132_vm4 = vcmask 7168  }
   0x2   :  { %274 = vrot.lane.b32.xlu2 %v471_v0, %s434_s19  ;;  %237 = vrot.lane.b32.xlu1 %v476_v1, %s435_s20  ;;  %v495_v3 = vld [vmem:[%s639_s0 + $0x8] sm:$0xff]  ;;  %s438_s27 = smov 1   ;;  %s439_s28 = smov 15   ;;  %v418_v7 = vld [vmem:[%s640_s3 + $0x20] sm:$0xf]  ;;  %vm99_vm5 = vcmask 121856  }
   0x3   :  { %270 = vrot.lane.b32.xlu0 %v476_v1, %s434_s19  ;;  %s440_s0 = smov 16   ;;  %s441_s29 = smov 17   ;;  %v292_v8 = vperm.slane %v418_v7, 1  ;;  %v291_v9 = vperm.slane %v418_v7, 0  ;;  %v417_v17 = vld [vmem:[%s640_s3 + $0x1c] sm:$0xf] }
   0x4   :  { %v293_v18 = vperm.slane %v418_v7, 2  ;;  %v294_v19 = vperm.slane %v418_v7, 3  ;;  %v261_v22 = vperm.slane %v417_v17, 3  ;;  %v538_v28 = vld [vmem:[%s640_s3 + $0x18] sm:$0xf]  ;;  %v260_v30 = vperm.slane %v417_v17, 2 }
   0x5   :  { %v228_v31 = vperm.slane %v538_v28, 3  ;;  %v415_v39 = vld [vmem:[%s640_s3 + $0x14] sm:$0xf]  ;;  %v414_v40 = vld [vmem:[%s640_s3 + $0x10] sm:$0xf]  ;;  %v227_v41 = vperm.slane %v538_v28, 2 }
   0x6   :  { %v195_v42 = vperm.slane %v415_v39, 3  ;;  %v162_v43 = vperm.slane %v414_v40, 3  ;;  %v258_v52 = vperm.slane %v417_v17, 0  ;;  %v259_v53 = vperm.slane %v417_v17, 1  ;;  %v566_v7 = vld [vmem:[%s640_s3 + $0xc] sm:$0xf] }
   0x7   :  { %v194_v54 = vperm.slane %v415_v39, 2  ;;  %v161_v55 = vperm.slane %v414_v40, 2  ;;  %vm66_vm6 = vcmask 130048   ;;  %vm34_vm7 = vcmask 138240  }
   0x8   :  { %v170_v51 = vmul.f32 %v162_v43, %v484_v2  ;;  %v304_v43 = vld [vmem:[%s641_s2] sm:$0xf]  ;;  %vm310_vm8 = vcmask 588800   ;;  %vm400_vm9 = vcmask 1043456  }
   0xa   :  { %204 = vrot.lane.b32.xlu2 %v476_v1, %s436_s23  ;;  %243 = vrot.lane.b32.xlu1 %v484_v2, %s435_s20 }
   0xb   :  { %276 = vrot.lane.b32.xlu0 %v484_v2, %s434_s19 }
  0x12   :  { %171 = vrot.lane.b32.xlu2 %v476_v1, %s437_s24  ;;  %241 = vrot.lane.b32.xlu1 %v471_v0, %s435_s20 }
  0x13   :  { %210 = vrot.lane.b32.xlu0 %v484_v2, %s436_s23 }
  0x1a   :  { %272 = vrot.lane.b32.xlu2 %v495_v3, %s434_s19  ;;  %208 = vrot.lane.b32.xlu1 %v471_v0, %s436_s23 }
  0x1b   :  { %177 = vrot.lane.b32.xlu0 %v484_v2, %s437_s24 }
  0x22   :  { %123 = vrot.lane.b32.xlu2 %v484_v2, %s438_s27  ;;  %239 = vrot.lane.b32.xlu1 %v495_v3, %s435_s20 }
  0x23   :  { %175 = vrot.lane.b32.xlu0 %v471_v0, %s437_s24 }
  0x2a   :  { %90 = vrot.lane.b32.xlu2 %v484_v2, %s439_s28  ;;  %206 = vrot.lane.b32.xlu1 %v495_v3, %s436_s23 }
  0x2b   :  { %130 = vrot.lane.b32.xlu0 %v471_v0, %s438_s27 }
  0x32   :  { %173 = vrot.lane.b32.xlu2 %v495_v3, %s437_s24  ;;  %128 = vrot.lane.b32.xlu1 %v495_v3, %s438_s27 }
  0x33   :  { %97 = vrot.lane.b32.xlu0 %v471_v0, %s439_s28 }
  0x3a   :  { %95 = vrot.lane.b32.xlu2 %v495_v3, %s439_s28  ;;  %64 = vrot.lane.b32.xlu1 %v471_v0, %s440_s0 }
  0x3b   :  { %57 = vrot.lane.b32.xlu0 %v484_v2, %s440_s0 }
  0x42   :  { %62 = vrot.lane.b32.xlu2 %v495_v3, %s440_s0  ;;  %32 = vrot.lane.b32.xlu1 %v471_v0, %s441_s29 }
  0x43   :  { %22 = vrot.lane.b32.xlu0 %v484_v2, %s441_s29  ;;  %v169_v2 = vmul.f32 %v161_v55, %v471_v0 }
  0x4a   :  { %93 = vrot.lane.b32.xlu2 %v476_v1, %s439_s28  ;;  %30 = vrot.lane.b32.xlu1 %v495_v3, %s441_s29 }
  0x4b   :  { %126 = vrot.lane.b32.xlu0 %v476_v1, %s438_s27 }
  0x52   :  { %28 = vrot.lane.b32.xlu1 %v476_v1, %s441_s29 }
  0x53   :  { %60 = vrot.lane.b32.xlu0 %v476_v1, %s440_s0 }
  0x5c   :  { %v275_v4 = vpop.permute.xlu2 %274 }
  0x64   :  { %v520_v5 = vpop.permute.xlu2 %204 }
  0x6c   :  { %v522_v6 = vpop.permute.xlu2 %171 }
  0x74   :  { %v273_v10 = vpop.permute.xlu2 %272  ;;  %v238_v11 = vpop.permute.xlu1 %237 }
  0x75   :  { %v271_v12 = vpop.permute.xlu0 %270  ;;  %v280_v13 = vsel %vm278_vm0, %v273_v10, %v275_v4 }
  0x76   :  { %v279_v14 = vsel %vm278_vm0, %v271_v12, %v273_v10  ;;  %v300_v15 = vmul.f32 %v292_v8, %v280_v13  ;;  %v225_v8 = vperm.slane %v538_v28, 0  ;;  %v147_v10 = vperm.slane %v566_v7, 3 }
  0x77   :  { %v299_v16 = vmul.f32 %v291_v9, %v279_v14  ;;  %v226_v9 = vperm.slane %v538_v28, 1  ;;  %v193_v13 = vperm.slane %v415_v39, 1  ;;  %v159_v14 = vperm.slane %v414_v40, 0 }
  0x78   :  { %341 = vmatpush.msra.mxu1 %v300_v15  ;;  %v160_v15 = vperm.slane %v414_v40, 1  ;;  %v146_v28 = vperm.slane %v566_v7, 2 }
  0x79   :  { %321 = vmatpush.msra.mxu0 %v299_v16 }
  0x7c   :  { %v244_v20 = vpop.permute.xlu1 %243  ;;  %v541_v32 = vpop.permute.xlu2 %123 }
  0x7d   :  { %v277_v21 = vpop.permute.xlu0 %276  ;;  %v254_v23 = vsel %vm245_vm1, %v244_v20, %v238_v11 }
  0x7e   :  { %v281_v24 = vsel %vm278_vm0, %v275_v4, %v277_v21  ;;  %v287_v25 = vsel %vm278_vm0, %v277_v21, %v271_v12  ;;  %v269_v29 = vmul.f32 %v261_v22, %v254_v23 }
  0x7f   :  { %v301_v26 = vmul.f32 %v293_v18, %v281_v24  ;;  %v302_v27 = vmul.f32 %v294_v19, %v287_v25  ;;  %v582_v25 = vld [vmem:[%s640_s3 + $0x8] sm:$0xf] }
  0x81   :  { %361 = vmatpush.msra.mxu2 %v301_v26  ;;  %381 = vmatpush.msra.mxu3 %v302_v27  ;;  %v168_v26 = vmul.f32 %v160_v15, %v495_v3 }
  0x83   :  { %382 = vmatpush.msra.mxu3 %v269_v29  ;;  %v114_v29 = vperm.slane %v582_v25, 3 }
  0x84   :  { %v242_v33 = vpop.permute.xlu1 %241  ;;  %v554_v47 = vpop.permute.xlu2 %90 }
  0x85   :  { %v248_v34 = vsel %vm245_vm1, %v242_v33, %v244_v20  ;;  %v211_v35 = vpop.permute.xlu0 %210 }
  0x86   :  { %v221_v36 = vsel %vm212_vm2, %v211_v35, %v520_v5  ;;  %v268_v37 = vmul.f32 %v260_v30, %v248_v34 }
  0x87   :  { %v236_v38 = vmul.f32 %v228_v31, %v221_v36  ;;  %v113_v31 = vperm.slane %v582_v25, 2 }
  0x88   :  { %362 = vmatpush.msra.mxu2 %v268_v37 }
  0x89   :  { %383 = vmatpush.msra.mxu3 %v236_v38  ;;  %v596_v38 = vld [vmem:[%s640_s3 + $0x4] sm:$0xf] }
  0x8a   :  { %v81_v40 = vperm.slane %v596_v38, 3 }
  0x8c   :  { %v209_v44 = vpop.permute.xlu1 %208  ;;  %v174_v4 = vpop.permute.xlu2 %173 }
  0x8d   :  { %v215_v45 = vsel %vm212_vm2, %v209_v44, %v211_v35  ;;  %v178_v46 = vpop.permute.xlu0 %177  ;;  %v180_v0 = vsel %vm179_vm3, %v522_v6, %v174_v4 }
  0x8e   :  { %v188_v48 = vsel %vm179_vm3, %v178_v46, %v522_v6  ;;  %v235_v49 = vmul.f32 %v227_v41, %v215_v45 }
  0x8f   :  { %v203_v50 = vmul.f32 %v195_v42, %v188_v48 }
  0x90   :  { %363 = vmatpush.msra.mxu2 %v235_v49 }
  0x91   :  { %384 = vmatpush.msra.mxu3 %v203_v50 }
  0x93   :  { %385 = vmatpush.msra.mxu3 %v170_v51  ;;  %v43_v51 = vld [vmem:[%s640_s3] sm:$0xf] }
  0x94   :  { %v240_v56 = vpop.permute.xlu1 %239  ;;  %v96_v27 = vpop.permute.xlu2 %95 }
  0x95   :  { %v246_v57 = vsel %vm245_vm1, %v238_v11, %v240_v56  ;;  %v247_v58 = vsel %vm245_vm1, %v240_v56, %v242_v33  ;;  %v176_v59 = vpop.permute.xlu0 %175  ;;  %v192_v11 = vperm.slane %v415_v39, 0  ;;  %v80_v39 = vperm.slane %v596_v38, 2 }
  0x96   :  { %v182_v60 = vsel %vm179_vm3, %v176_v59, %v178_v46  ;;  %v266_v61 = vmul.f32 %v258_v52, %v246_v57  ;;  %v267_v62 = vmul.f32 %v259_v53, %v247_v58  ;;  %v181_v16 = vsel %vm179_vm3, %v174_v4, %v176_v59  ;;  %v303_v57 = vld [vmem:[%s642_s1] sm:$0xf] }
  0x97   :  { %v202_v63 = vmul.f32 %v194_v54, %v182_v60  ;;  %v200_v24 = vmul.f32 %v192_v11, %v180_v0  ;;  %v201_v6 = vmul.f32 %v193_v13, %v181_v16  ;;  %v442_v46 = vmov 0  }
  0x98   :  { %322 = vmatpush.msra.mxu0 %v266_v61  ;;  %342 = vmatpush.msra.mxu1 %v267_v62  ;;  %v48_v52 = vperm.slane %v43_v51, 3  ;;  %v47_v58 = vperm.slane %v43_v51, 2  ;;  %v144_v60 = vperm.slane %v566_v7, 0  ;;  %v145_v61 = vperm.slane %v566_v7, 1 }
  0x99   :  { %364 = vmatpush.msra.mxu2 %v202_v63  ;;  %432 = vset.pattern.permute.xlu2 %v442_v46  ;;  %v78_v16 = vperm.slane %v596_v38, 0 }
  0x9a   :  { %433 = vset.pattern.permute.xlu0 %v442_v46  ;;  %307 = vperm.xlu2 %432, %v304_v43  }
  0x9b   :  { %365 = vmatpush.msra.mxu2 %v169_v2 }
  0x9c   :  { %v207_v12 = vpop.permute.xlu1 %206  ;;  %v63_v41 = vpop.permute.xlu2 %62 }
  0x9d   :  { %v213_v17 = vsel %vm212_vm2, %v520_v5, %v207_v12  ;;  %v214_v18 = vsel %vm212_vm2, %v207_v12, %v209_v44  ;;  %v131_v19 = vpop.permute.xlu0 %130  ;;  %v167_v5 = vmul.f32 %v159_v14, %v476_v1 }
  0x9e   :  { %v135_v20 = vsel %vm132_vm4, %v131_v19, %v541_v32  ;;  %v233_v21 = vmul.f32 %v225_v8, %v213_v17  ;;  %v234_v22 = vmul.f32 %v226_v9, %v214_v18  ;;  %v111_v8 = vperm.slane %v582_v25, 0 }
  0x9f   :  { %v155_v23 = vmul.f32 %v147_v10, %v135_v20  ;;  %v112_v9 = vperm.slane %v582_v25, 1 }
  0xa0   :  { %323 = vmatpush.msra.mxu0 %v233_v21  ;;  %343 = vmatpush.msra.mxu1 %v234_v22 }
  0xa1   :  { %386 = vmatpush.msra.mxu3 %v155_v23 }
  0xa2   :  { %324 = vmatpush.msra.mxu0 %v200_v24  ;;  %344 = vmatpush.msra.mxu1 %v201_v6 }
  0xa4   :  { %v129_v30 = vpop.permute.xlu1 %128  ;;  %325 = vmatpush.msra.mxu0 %v167_v5  ;;  %345 = vmatpush.msra.mxu1 %v168_v26  ;;  %v94_v59 = vpop.permute.xlu2 %93 }
  0xa5   :  { %v134_v33 = vsel %vm132_vm4, %v129_v30, %v131_v19  ;;  %v98_v34 = vpop.permute.xlu0 %97  ;;  %v100_v63 = vsel %vm99_vm5, %v94_v59, %v96_v27  ;;  %v107_v10 = vsel %vm99_vm5, %v554_v47, %v94_v59  ;;  %v45_v19 = vperm.slane %v43_v51, 0 }
  0xa6   :  { %v101_v1 = vsel %vm99_vm5, %v96_v27, %v98_v34  ;;  %v102_v3 = vsel %vm99_vm5, %v98_v34, %v554_v47  ;;  %v154_v35 = vmul.f32 %v146_v28, %v134_v33  ;;  %v119_v14 = vmul.f32 %v111_v8, %v107_v10 }
  0xa7   :  { %v122_v36 = vmul.f32 %v114_v29, %v102_v3  ;;  %v121_v37 = vmul.f32 %v113_v31, %v101_v1  ;;  %v120_v15 = vmul.f32 %v112_v9, %v100_v63  ;;  %v79_v47 = vperm.slane %v596_v38, 1 }
  0xa8   :  { %366 = vmatpush.msra.mxu2 %v154_v35 }
  0xa9   :  { %387 = vmatpush.msra.mxu3 %v122_v36 }
  0xaa   :  { %367 = vmatpush.msra.mxu2 %v121_v37 }
  0xac   :  { %v65_v42 = vpop.permute.xlu1 %64 }
  0xad   :  { %v68_v44 = vsel %vm66_vm6, %v63_v41, %v65_v42  ;;  %v58_v45 = vpop.permute.xlu0 %57 }
  0xae   :  { %v69_v48 = vsel %vm66_vm6, %v65_v42, %v58_v45  ;;  %v88_v49 = vmul.f32 %v80_v39, %v68_v44 }
  0xaf   :  { %v89_v50 = vmul.f32 %v81_v40, %v69_v48 }
  0xb0   :  { %368 = vmatpush.msra.mxu2 %v88_v49 }
  0xb1   :  { %388 = vmatpush.msra.mxu3 %v89_v50 }
  0xb4   :  { %v33_v53 = vpop.permute.xlu1 %32 }
  0xb5   :  { %v23_v54 = vpop.permute.xlu0 %22 }
  0xb6   :  { %v37_v55 = vsel %vm34_vm7, %v33_v53, %v23_v54 }
  0xb7   :  { %v56_v56 = vmul.f32 %v48_v52, %v37_v55 }
  0xb9   :  { %389 = vmatpush.msra.mxu3 %v56_v56 }
  0xba   :  { %422 = vmatmul.msk.f32.vlgmr.msra.gmra.mxu3 %vm310_vm8, %v303_v57 }
  0xbc   :  { %v31_v62 = vpop.permute.xlu1 %30 }
  0xbd   :  { %v36_v2 = vsel %vm34_vm7, %v31_v62, %v33_v53  ;;  %v127_v4 = vpop.permute.xlu0 %126 }
  0xbe   :  { %v133_v11 = vsel %vm132_vm4, %v127_v4, %v129_v30  ;;  %v140_v0 = vsel %vm132_vm4, %v541_v32, %v127_v4  ;;  %v55_v12 = vmul.f32 %v47_v58, %v36_v2  ;;  %v46_v32 = vperm.slane %v43_v51, 1 }
  0xbf   :  { %v152_v7 = vmul.f32 %v144_v60, %v140_v0  ;;  %v153_v13 = vmul.f32 %v145_v61, %v133_v11 }
  0xc0   :  { %369 = vmatpush.msra.mxu2 %v55_v12 }
  0xc1   :  { %326 = vmatpush.msra.mxu0 %v152_v7  ;;  %346 = vmatpush.msra.mxu1 %v153_v13 }
  0xc2   :  { %421 = vmatmul.msk.f32.vlgmr.msra.gmra.mxu2 %vm310_vm8, %v303_v57 }
  0xc3   :  { %327 = vmatpush.msra.mxu0 %v119_v14  ;;  %347 = vmatpush.msra.mxu1 %v120_v15 }
  0xc4   :  { %v29_v17 = vpop.permute.xlu1 %28 }
  0xc5   :  { %v61_v18 = vpop.permute.xlu0 %60  ;;  %v35_v20 = vsel %vm34_vm7, %v29_v17, %v31_v62  ;;  %v42_v21 = vsel %vm34_vm7, %v23_v54, %v29_v17 }
  0xc6   :  { %v67_v22 = vsel %vm66_vm6, %v61_v18, %v63_v41  ;;  %v74_v23 = vsel %vm66_vm6, %v58_v45, %v61_v18  ;;  %v53_v25 = vmul.f32 %v45_v19, %v42_v21  ;;  %v54_v5 = vmul.f32 %v46_v32, %v35_v20 }
  0xc7   :  { %v86_v24 = vmul.f32 %v78_v16, %v74_v23  ;;  %v87_v6 = vmul.f32 %v79_v47, %v67_v22 }
  0xc9   :  { %328 = vmatpush.msra.mxu0 %v86_v24  ;;  %348 = vmatpush.msra.mxu1 %v87_v6 }
  0xcb   :  { %329 = vmatpush.msra.mxu0 %v53_v25  ;;  %349 = vmatpush.msra.mxu1 %v54_v5 }
  0xcc   :  { %419 = vmatmul.msk.f32.vlgmr.msra.gmra.mxu0 %vm310_vm8, %v303_v57  ;;  %420 = vmatmul.msk.f32.vlgmr.msra.gmra.mxu1 %vm310_vm8, %v303_v57 }
  0xf4   :  { %v308_v26 = vpop.permute.xlu2 %307 }
 0x13d   :  { %v391_v27 = vpop.f32.mrf.mxu3 }
 0x13e   :  { %v392_v28 = vadd.f32 %v391_v27, %v308_v26 }
 0x140   :  { %v399_v29 = vrot.slane %v392_v28, 4 }
 0x145   :  { %v371_v30 = vpop.f32.mrf.mxu2 }
 0x146   :  { %v372_v31 = vadd.f32 %v371_v30, %v308_v26 }
 0x148   :  { %v402_v33 = vsel %vm400_vm9, %v372_v31, %v399_v29 }
 0x149   :  { %v331_v34 = vpop.f32.mrf.mxu0  ;;  %v351_v1 = vpop.f32.mrf.mxu1  ;;  %406 = vst [vmem:[%s643_s4 + $0x8] sm:$0xff] %v402_v33 }
 0x14a   :  { %v352_v3 = vadd.f32 %v351_v1, %v308_v26  ;;  %v332_v35 = vadd.f32 %v331_v34, %v308_v26 }
 0x14c   :  { %v398_v36 = vrot.slane %v352_v3, 4 }
 0x14e   :  { %v401_v37 = vsel %vm400_vm9, %v332_v35, %v398_v36 }
 0x14f   :  { %405 = vst [vmem:[%s643_s4] sm:$0xff] %v401_v37 }

</bundles_post_ra>
